<compile_context>
chip_gen: v5e
topology: v5e:2x2
jax: 0.10.0
libtpu: 0.0.40
codegen_flags: <defaults>
</compile_context>

<pallas_src>
import functools
import math

import jax
import jax.numpy as jnp
from jax import lax
from jax.scipy.special import erf as _erf_exact
from jax.experimental import pallas as pl
from jax.experimental.pallas import tpu as pltpu

F32 = jnp.float32
MXU_DTYPE = jnp.bfloat16          # MXU operand dtype (f32 accumulation); F32 for exact parity
_INV_SQRT2 = 1.0 / math.sqrt(2.0)


# ----------------------------------------------------------------------------
# In-kernel math helpers
# ----------------------------------------------------------------------------
def _erf_poly(x):
    # Abramowitz & Stegun 7.1.26 (|err| < 1.5e-7): only mul/add/exp/div, lowers in Mosaic.
    a1, a2, a3, a4, a5 = (0.254829592, -0.284496736, 1.421413741,
                          -1.453152027, 1.061405429)
    p = 0.3275911
    s = jnp.where(x >= 0.0, 1.0, -1.0)
    ax = jnp.abs(x)
    t = 1.0 / (1.0 + p * ax)
    poly = t * (a1 + t * (a2 + t * (a3 + t * (a4 + t * a5))))
    return s * (1.0 - poly * jnp.exp(-ax * ax))


def _gelu(x):
    # exact (erf-based) GELU, matching torch.nn.GELU() default
    return 0.5 * x * (1.0 + _erf_poly(x * _INV_SQRT2))


# ----------------------------------------------------------------------------
# Fused UpBlock kernel
# ----------------------------------------------------------------------------
# Column-paired halo scratch:
#   pad_ref[yy, jj, pos*Cin + c]  ==  zero-padded concat[yy-1, 2*jj + pos - 1, c]
# i.e. padded column xx maps to pair jj = xx // 2, position pos = xx % 2; the
# concat channel order is [upsampled 0:half, skip half:Cin].  In this layout the
# 2x horizontal upsample interleave and the skip write are plain rectangular stores,
# and the 3x3 depthwise taps become windows at pair shifts dj in {0,1}.
def _upblock_kernel(x1_ref, x2_ref, upw_ref, upb_ref, s2_ref, t2_ref,
                    wt_ref, b_ref, o_ref, pad_ref, *, H, W, half):
    Cin = 2 * half                 # concat channels == UpBlock in_channels
    Ho = 2 * H                     # output rows
    Wp = W + 1                     # padded width in column pairs ((2W + 2) / 2)
    Q = H * W
    P = Ho * W                     # output rows * column pairs
    Cout2 = o_ref.shape[-1]        # 2 * out_channels (paired)

    # (1) ConvTranspose2d(k=2,s=2): one bf16 MXU matmul; BN (eval) of the upsampled
    #     half is folded into upw/upb host-side.  Columns are (2*dy+dx)*half + o.
    x1 = x1_ref[...].reshape(Q, Cin).astype(MXU_DTYPE)
    u = jnp.dot(x1, upw_ref[...], preferred_element_type=F32) + upb_ref[...]
    u = u.reshape(H, W, 4 * half)                               # u[i, j, phase, o]

    # (2) zero only the 1-pixel halo border stripes (interior is fully overwritten
    #     below every grid step, so this is also megacore-safe).
    pad_ref[0] = jnp.zeros((Wp, 2 * Cin), F32)                  # top pad row
    pad_ref[Ho + 1] = jnp.zeros((Wp, 2 * Cin), F32)             # bottom pad row
    pad_ref[:, 0:1, :] = jnp.zeros((Ho + 2, 1, 2 * Cin), F32)   # holds left pad (pos 0)
    pad_ref[:, W:Wp, :] = jnp.zeros((Ho + 2, 1, 2 * Cin), F32)  # holds right pad (pos 1)

    # (3) pixel-shuffle the 4 transposed-conv phases straight into the scratch.
    #     Up pixel (2i+dy, 2j+dx) -> padded column 2j+dx+1 -> pair j+dx, pos 1-dx.
    for dy in range(2):
        for dx in range(2):
            k = 2 * dy + dx
            blk = u[:, :, k * half:(k + 1) * half]              # (H, W, half)
            for i in range(H):
                row = 2 * i + dy + 1
                if dx == 0:   # pos = 1: up channels at lanes [Cin, Cin+half)
                    pad_ref[row, 0:W, Cin:Cin + half] = blk[i]
                else:         # pos = 0: lanes [0, half), shifted one pair right
                    pad_ref[row, 1:Wp, 0:half] = blk[i]

    # (4) BatchNorm (eval, folded affine) on the skip half, written straight into
    #     the scratch (applied BEFORE zero padding, matching the PyTorch order).
    x2bn = x2_ref[...] * s2_ref[...] + t2_ref[...]              # (Ho, W, 2*half)
    pad_ref[1:Ho + 1, 0:W, Cin + half:2 * Cin] = x2bn[:, :, 0:half]       # even cols
    pad_ref[1:Ho + 1, 1:Wp, half:Cin] = x2bn[:, :, half:2 * half]         # odd cols

    # (5) DSC: depthwise 3x3 (mult) folded into the pointwise -> 12 bf16 MXU matmuls
    #     over shifted windows of the paired scratch (weights pre-combined host-side
    #     so each window feeds both column positions of the paired output at once).
    acc = jnp.zeros((P, Cout2), F32)
    for ky in range(3):
        for t in range(4):                       # t = 2*dj + pos
            dj, pos = divmod(t, 2)
            slab = pad_ref[ky:ky + Ho, dj:dj + W, pos * Cin:(pos + 1) * Cin]
            slab = slab.reshape(P, Cin).astype(MXU_DTYPE)
            acc = acc + jnp.dot(slab, wt_ref[4 * ky + t],
                                preferred_element_type=F32)

    # (6) bias + exact-erf GELU epilogue; lane-dense (2*Cout wide) store.
    y = _gelu(acc + b_ref[...])
    o_ref[...] = y.reshape(Ho, W, Cout2)


def up_block_apply(x1, x2, kp):
    """Fused UpBlock forward, NHWC.

    x1: (B, H, W, Cin) bottleneck features; x2: (B, 2H, 2W, Cin//2) skip features.
    Returns (B, 2H, 2W, out_channels).
    """
    B, H, W, Cin = x1.shape
    half = Cin // 2
    Ho, Wo = 2 * H, 2 * W
    Cout2 = kp["wt"].shape[-1]
    assert x2.shape == (B, Ho, Wo, half), x2.shape

    # free row-major reshape into the column-paired layout used by the kernel
    x2p = x2.reshape(B, Ho, W, 2 * half)

    # rough VMEM budget: double-buffered I/O blocks + (conservatively x2) constants
    # + halo scratch + headroom; re-derive once a spatial grid axis is added.
    io_bytes = 4 * (H * W * Cin + Ho * W * 2 * half + Ho * W * Cout2)
    const_bytes = sum(int(kp[k].size) * kp[k].dtype.itemsize
                      for k in ("up_w", "up_b", "bn_s2", "bn_t2", "wt", "bias"))
    scratch_bytes = 4 * (Ho + 2) * (W + 1) * 2 * Cin
    vmem_limit = int(min(64 << 20,
                         max(32 << 20,
                             2 * (io_bytes + const_bytes) + scratch_bytes + (8 << 20))))

    kernel = functools.partial(_upblock_kernel, H=H, W=W, half=half)
    out_p = pl.pallas_call(
        kernel,
        out_shape=jax.ShapeDtypeStruct((B, Ho, W, Cout2), F32),
        grid=(B,),
        in_specs=[
            pl.BlockSpec((None, H, W, Cin), lambda b: (b, 0, 0, 0)),        # x1
            pl.BlockSpec((None, Ho, W, 2 * half), lambda b: (b, 0, 0, 0)),  # x2 (paired)
            # constant operands (weights / biases / BN affine):
            pl.BlockSpec((Cin, 4 * half), lambda b: (0, 0)),                # up W (BN folded)
            pl.BlockSpec((1, 4 * half), lambda b: (0, 0)),                  # up b (BN folded)
            pl.BlockSpec((1, 1, 2 * half), lambda b: (0, 0, 0)),            # BN scale (skip)
            pl.BlockSpec((1, 1, 2 * half), lambda b: (0, 0, 0)),            # BN shift (skip)
            pl.BlockSpec((12, Cin, Cout2), lambda b: (0, 0, 0)),            # folded DSC W
            pl.BlockSpec((1, Cout2), lambda b: (0, 0)),                     # folded DSC b
        ],
        out_specs=pl.BlockSpec((None, Ho, W, Cout2), lambda b: (b, 0, 0, 0)),
        scratch_shapes=[pltpu.VMEM((Ho + 2, W + 1, 2 * Cin), F32)],         # paired halo
        compiler_params=pltpu.CompilerParams(
            dimension_semantics=("parallel",),
            vmem_limit_bytes=vmem_limit),
    )(x1.astype(F32), x2p.astype(F32), kp["up_w"], kp["up_b"], kp["bn_s2"],
      kp["bn_t2"], kp["wt"], kp["bias"])

    # free row-major reshape back from the paired layout
    return out_p.reshape(B, Ho, Wo, Cout2 // 2)


# ----------------------------------------------------------------------------
# Parameters: torch-layout synthesis + host-side folding / relayout for the kernel
# ----------------------------------------------------------------------------
def make_torch_layout_params(key, in_channels, out_channels, mult=2):
    """Synthetic deterministic parameters in PyTorch layouts."""
    half = in_channels // 2
    dw_out = in_channels * mult
    ks = jax.random.split(key, 10)

    def rnd(k, shape, scale=0.1):
        return jax.random.normal(k, shape, dtype=F32) * scale

    return dict(
        up_w=rnd(ks[0], (in_channels, half, 2, 2)),    # ConvTranspose2d.weight (Cin, Cout, kH, kW)
        up_b=rnd(ks[1], (half,)),
        bn_gamma=1.0 + rnd(ks[2], (in_channels,), 0.05),
        bn_beta=rnd(ks[3], (in_channels,)),
        bn_mean=rnd(ks[4], (in_channels,)),
        bn_var=1.0 + jnp.abs(rnd(ks[5], (in_channels,))),
        dw_w=rnd(ks[6], (dw_out, 3, 3)),               # depthwise Conv2d.weight (O, kH, kW), groups=Cin
        dw_b=rnd(ks[7], (dw_out,)),
        pw_w=rnd(ks[8], (out_channels, dw_out)),       # pointwise Conv2d.weight (O, I)
        pw_b=rnd(ks[9], (out_channels,)),
    )


def prepare_kernel_params(tp, mult=2, eps=1e-5):
    """Fold BN (eval) and the DSC into the layouts the fused kernel consumes."""
    Cin = tp["bn_gamma"].shape[0]
    half = Cin // 2
    Cout = tp["pw_b"].shape[0]

    # BatchNorm2d eval-mode running stats -> per-channel affine.
    # TODO(synk): BatchNorm2d training-mode (batch statistics) path not implemented.
    scale = tp["bn_gamma"] / jnp.sqrt(tp["bn_var"] + eps)
    shift = tp["bn_beta"] - tp["bn_mean"] * scale

    # BN of the upsampled half folds into the transposed-conv weight/bias; columns are
    # ordered (2*dy+dx)*half + o so the kernel slices phases at 128-aligned lane offsets.
    w = tp["up_w"] * scale[None, :half, None, None]                 # (Cin, half, 2, 2)
    up_w = jnp.transpose(w, (0, 2, 3, 1)).reshape(Cin, 4 * half)
    up_b = jnp.tile(tp["up_b"] * scale[:half] + shift[:half], 4).reshape(1, 4 * half)

    # BN affine of the skip half, duplicated for the two column positions of the
    # paired layout (applied in-kernel before zero padding, matching PyTorch order).
    s2 = jnp.tile(scale[half:], 2).reshape(1, 1, 2 * half)
    t2 = jnp.tile(shift[half:], 2).reshape(1, 1, 2 * half)

    # Fold depthwise (3x3, groups=Cin, channel mult) into the pointwise:
    #   M[ky,kx][c,o] = sum_j dw[c*mult+j, ky, kx] * pw[o, c*mult+j]
    #   bias[o]       = sum_{c,j} dw_b[c*mult+j] * pw[o, c*mult+j] + pw_b[o]
    dw = tp["dw_w"].reshape(Cin, mult, 3, 3)
    pw = tp["pw_w"].reshape(Cout, Cin, mult)
    M = jnp.einsum("cjyx,ocj->yxco", dw, pw)                        # (3, 3, Cin, Cout)
    bias = jnp.einsum("cj,ocj->o", tp["dw_b"].reshape(Cin, mult), pw) + tp["pw_b"]

    # Pre-combine horizontal taps for the column-paired layout: the scratch window at
    # (ky, pair shift dj, position pos) feeds output position s via tap kx whenever
    # s + kx == 2*dj + pos, so each window gets a (Cin, 2*Cout) weight.
    Z = jnp.zeros((Cin, Cout), F32)
    rows = []
    for ky in range(3):
        rows += [jnp.concatenate([M[ky, 0], Z], axis=1),            # (dj=0, pos=0)
                 jnp.concatenate([M[ky, 1], M[ky, 0]], axis=1),     # (dj=0, pos=1)
                 jnp.concatenate([M[ky, 2], M[ky, 1]], axis=1),     # (dj=1, pos=0)
                 jnp.concatenate([Z, M[ky, 2]], axis=1)]            # (dj=1, pos=1)
    wt = jnp.stack(rows, axis=0)                                    # (12, Cin, 2*Cout)
    bias_p = jnp.tile(bias, 2).reshape(1, 2 * Cout)

    return dict(up_w=up_w.astype(MXU_DTYPE), up_b=up_b.astype(F32),
                bn_s2=s2.astype(F32), bn_t2=t2.astype(F32),
                wt=wt.astype(MXU_DTYPE), bias=bias_p.astype(F32))


# ----------------------------------------------------------------------------
# Pure-JAX NHWC reference (PyTorch UpBlock semantics, BN eval mode) for validation
# ----------------------------------------------------------------------------
def up_block_reference(x1, x2, tp, eps=1e-5):
    B, H, W, Cin = x1.shape
    half = Cin // 2
    # ConvTranspose2d(k=2, s=2)
    up = jnp.einsum("bijc,coyx->biyjxo", x1, tp["up_w"])
    up = up.reshape(B, 2 * H, 2 * W, half) + tp["up_b"]
    # cat + BatchNorm2d (eval)
    cat = jnp.concatenate([up, x2], axis=-1)
    scale = tp["bn_gamma"] / jnp.sqrt(tp["bn_var"] + eps)
    shift = tp["bn_beta"] - tp["bn_mean"] * scale
    bn = cat * scale + shift
    # DSC: depthwise 3x3 (groups=Cin, mult) + pointwise 1x1
    k_hwio = jnp.transpose(tp["dw_w"], (1, 2, 0))[:, :, None, :]    # (3,3,1,Cin*mult)
    dwo = lax.conv_general_dilated(
        bn, k_hwio, window_strides=(1, 1), padding="SAME",
        dimension_numbers=("NHWC", "HWIO", "NHWC"),
        feature_group_count=Cin) + tp["dw_b"]
    y = jnp.einsum("bhwk,ok->bhwo", dwo, tp["pw_w"]) + tp["pw_b"]
    return 0.5 * y * (1.0 + _erf_exact(y * _INV_SQRT2))             # exact GELU


# ----------------------------------------------------------------------------
if __name__ == "__main__":
    key = jax.random.PRNGKey(0)
    p_key, x1_key, x2_key = jax.random.split(key, 3)

    B, H, W = 2, 8, 8
    in_channels, out_channels = 256, 128      # multiples of 128 -> lane-dense channel axes
    half = in_channels // 2

    torch_params = make_torch_layout_params(p_key, in_channels, out_channels)
    kparams = prepare_kernel_params(torch_params)

    # NHWC activations: the surrounding model is assumed NHWC, so no layout transposes
    # wrap the kernel (each would cost a full HBM round trip of its operand).
    x1 = jax.random.normal(x1_key, (B, H, W, in_channels), dtype=F32)
    x2 = jax.random.normal(x2_key, (B, 2 * H, 2 * W, half), dtype=F32)

    out = jax.jit(lambda a, b: up_block_apply(a, b, kparams))(x1, x2)
    out = jax.block_until_ready(out)

    assert out.shape == (B, 2 * H, 2 * W, out_channels), out.shape
    assert bool(jnp.all(jnp.isfinite(out)))

    # loose tolerance: kernel uses bf16 MXU operands (f32 accumulation)
    ref = up_block_reference(x1, x2, torch_params)
    assert bool(jnp.allclose(out, ref, rtol=5e-2, atol=5e-2)), \
        float(jnp.max(jnp.abs(out - ref)))

    print("KERNEL_OK")
</pallas_src>

<mosaic_0001>
module attributes {stable_mosaic.version = 11 : i64} {
  func.func @_upblock_kernel(%arg0: i32, %arg1: memref<1x8x8x256xf32, #tpu.memory_space<vmem>>, %arg2: memref<1x16x8x256xf32, #tpu.memory_space<vmem>>, %arg3: memref<256x512xbf16, #tpu.memory_space<vmem>>, %arg4: memref<1x512xf32, #tpu.memory_space<vmem>>, %arg5: memref<1x1x256xf32, #tpu.memory_space<vmem>>, %arg6: memref<1x1x256xf32, #tpu.memory_space<vmem>>, %arg7: memref<12x256x256xbf16, #tpu.memory_space<vmem>>, %arg8: memref<1x256xf32, #tpu.memory_space<vmem>>, %arg9: memref<1x16x8x256xf32, #tpu.memory_space<vmem>>, %arg10: memref<18x9x512xf32, #tpu.memory_space<vmem>>) attributes {dimension_semantics = [#tpu.dimension_semantics<parallel>], iteration_bounds = array<i64: 2>, scalar_prefetch = 0 : i64, scratch_operands = 1 : i64, tpu.core_type = #tpu.core_type<tc>, window_params = [{transform_indices = @transform_0, window_bounds = array<i64: 1, 8, 8, 256>}, {transform_indices = @transform_1, window_bounds = array<i64: 1, 16, 8, 256>}, {pipeline_mode = #tpu.pipeline_mode<synchronous>, transform_indices = @transform_2, window_bounds = array<i64: 256, 512>}, {pipeline_mode = #tpu.pipeline_mode<synchronous>, transform_indices = @transform_3, window_bounds = array<i64: 1, 512>}, {pipeline_mode = #tpu.pipeline_mode<synchronous>, transform_indices = @transform_4, window_bounds = array<i64: 1, 1, 256>}, {pipeline_mode = #tpu.pipeline_mode<synchronous>, transform_indices = @transform_5, window_bounds = array<i64: 1, 1, 256>}, {pipeline_mode = #tpu.pipeline_mode<synchronous>, transform_indices = @transform_6, window_bounds = array<i64: 12, 256, 256>}, {pipeline_mode = #tpu.pipeline_mode<synchronous>, transform_indices = @transform_7, window_bounds = array<i64: 1, 256>}, {transform_indices = @transform_8, window_bounds = array<i64: 1, 16, 8, 256>}]} {
    %c0 = arith.constant 0 : index
    %c0_0 = arith.constant 0 : index
    %c0_1 = arith.constant 0 : index
    %c0_2 = arith.constant 0 : index
    %0 = vector.load %arg1[%c0, %c0_0, %c0_1, %c0_2] : memref<1x8x8x256xf32, #tpu.memory_space<vmem>>, vector<1x8x8x256xf32>
    %1 = vector.shape_cast %0 : vector<1x8x8x256xf32> to vector<8x8x256xf32>
    %2 = vector.shape_cast %1 : vector<8x8x256xf32> to vector<64x256xf32>
    %3 = arith.truncf %2 : vector<64x256xf32> to vector<64x256xbf16>
    %c0_3 = arith.constant 0 : index
    %c0_4 = arith.constant 0 : index
    %4 = vector.load %arg3[%c0_3, %c0_4] : memref<256x512xbf16, #tpu.memory_space<vmem>>, vector<256x512xbf16>
    %cst = arith.constant dense<0.000000e+00> : vector<64x512xf32>
    %5 = tpu.matmul %3, %4, %cst {dimension_numbers = #tpu.dot_dimension_numbers<[1], [0], [0], [1], [0, 0, 1, 1], [], []>} : vector<64x256xbf16>, vector<256x512xbf16>, vector<64x512xf32> -> vector<64x512xf32>
    %c0_5 = arith.constant 0 : index
    %c0_6 = arith.constant 0 : index
    %6 = vector.load %arg4[%c0_5, %c0_6] : memref<1x512xf32, #tpu.memory_space<vmem>>, vector<1x512xf32>
    %7 = vector.broadcast %6 : vector<1x512xf32> to vector<64x512xf32>
    %8 = arith.addf %5, %7 : vector<64x512xf32>
    %9 = vector.shape_cast %8 : vector<64x512xf32> to vector<8x8x512xf32>
    %cst_7 = arith.constant 0.000000e+00 : f32
    %10 = vector.broadcast %cst_7 : f32 to vector<9x512xf32>
    %c0_8 = arith.constant 0 : index
    %c0_9 = arith.constant 0 : index
    %c0_10 = arith.constant 0 : index
    %11 = vector.load %arg10[%c0_8, %c0_9, %c0_10] : memref<18x9x512xf32, #tpu.memory_space<vmem>>, vector<1x9x512xf32>
    %12 = vector.shape_cast %11 : vector<1x9x512xf32> to vector<9x512xf32>
    %13 = vector.shape_cast %10 : vector<9x512xf32> to vector<1x9x512xf32>
    tpu.vector_store %arg10[%c0_8, %c0_9, %c0_10], %13 {strides = array<i32>} : memref<18x9x512xf32, #tpu.memory_space<vmem>>, vector<1x9x512xf32>,
    %cst_11 = arith.constant 0.000000e+00 : f32
    %14 = vector.broadcast %cst_11 : f32 to vector<9x512xf32>
    %c17 = arith.constant 17 : index
    %c0_12 = arith.constant 0 : index
    %c0_13 = arith.constant 0 : index
    %15 = vector.load %arg10[%c17, %c0_12, %c0_13] : memref<18x9x512xf32, #tpu.memory_space<vmem>>, vector<1x9x512xf32>
    %16 = vector.shape_cast %15 : vector<1x9x512xf32> to vector<9x512xf32>
    %17 = vector.shape_cast %14 : vector<9x512xf32> to vector<1x9x512xf32>
    tpu.vector_store %arg10[%c17, %c0_12, %c0_13], %17 {strides = array<i32>} : memref<18x9x512xf32, #tpu.memory_space<vmem>>, vector<1x9x512xf32>,
    %cst_14 = arith.constant 0.000000e+00 : f32
    %18 = vector.broadcast %cst_14 : f32 to vector<18x1x512xf32>
    %c0_15 = arith.constant 0 : index
    %c0_16 = arith.constant 0 : index
    %c0_17 = arith.constant 0 : index
    %19 = vector.load %arg10[%c0_15, %c0_16, %c0_17] : memref<18x9x512xf32, #tpu.memory_space<vmem>>, vector<18x1x512xf32>
    tpu.vector_store %arg10[%c0_15, %c0_16, %c0_17], %18 {strides = array<i32>} : memref<18x9x512xf32, #tpu.memory_space<vmem>>, vector<18x1x512xf32>,
    %cst_18 = arith.constant 0.000000e+00 : f32
    %20 = vector.broadcast %cst_18 : f32 to vector<18x1x512xf32>
    %c0_19 = arith.constant 0 : index
    %c8 = arith.constant 8 : index
    %c0_20 = arith.constant 0 : index
    %21 = vector.load %arg10[%c0_19, %c8, %c0_20] : memref<18x9x512xf32, #tpu.memory_space<vmem>>, vector<18x1x512xf32>
    tpu.vector_store %arg10[%c0_19, %c8, %c0_20], %20 {strides = array<i32>} : memref<18x9x512xf32, #tpu.memory_space<vmem>>, vector<18x1x512xf32>,
    %22 = vector.extract_strided_slice %9 {offsets = [0, 0, 0], sizes = [8, 8, 128], strides = [1, 1, 1]} : vector<8x8x512xf32> to vector<8x8x128xf32>
    %23 = vector.extract_strided_slice %22 {offsets = [0, 0, 0], sizes = [1, 8, 128], strides = [1, 1, 1]} : vector<8x8x128xf32> to vector<1x8x128xf32>
    %24 = vector.shape_cast %23 : vector<1x8x128xf32> to vector<8x128xf32>
    %c1 = arith.constant 1 : index
    %c0_21 = arith.constant 0 : index
    %c256 = arith.constant 256 : index
    %25 = vector.load %arg10[%c1, %c0_21, %c256] : memref<18x9x512xf32, #tpu.memory_space<vmem>>, vector<1x8x128xf32>
    %26 = vector.shape_cast %25 : vector<1x8x128xf32> to vector<8x128xf32>
    %27 = vector.shape_cast %24 : vector<8x128xf32> to vector<1x8x128xf32>
    tpu.vector_store %arg10[%c1, %c0_21, %c256], %27 {strides = array<i32>} : memref<18x9x512xf32, #tpu.memory_space<vmem>>, vector<1x8x128xf32>,
    %28 = vector.extract_strided_slice %22 {offsets = [1, 0, 0], sizes = [1, 8, 128], strides = [1, 1, 1]} : vector<8x8x128xf32> to vector<1x8x128xf32>
    %29 = vector.shape_cast %28 : vector<1x8x128xf32> to vector<8x128xf32>
    %c3 = arith.constant 3 : index
    %c0_22 = arith.constant 0 : index
    %c256_23 = arith.constant 256 : index
    %30 = vector.load %arg10[%c3, %c0_22, %c256_23] : memref<18x9x512xf32, #tpu.memory_space<vmem>>, vector<1x8x128xf32>
    %31 = vector.shape_cast %30 : vector<1x8x128xf32> to vector<8x128xf32>
    %32 = vector.shape_cast %29 : vector<8x128xf32> to vector<1x8x128xf32>
    tpu.vector_store %arg10[%c3, %c0_22, %c256_23], %32 {strides = array<i32>} : memref<18x9x512xf32, #tpu.memory_space<vmem>>, vector<1x8x128xf32>,
    %33 = vector.extract_strided_slice %22 {offsets = [2, 0, 0], sizes = [1, 8, 128], strides = [1, 1, 1]} : vector<8x8x128xf32> to vector<1x8x128xf32>
    %34 = vector.shape_cast %33 : vector<1x8x128xf32> to vector<8x128xf32>
    %c5 = arith.constant 5 : index
    %c0_24 = arith.constant 0 : index
    %c256_25 = arith.constant 256 : index
    %35 = vector.load %arg10[%c5, %c0_24, %c256_25] : memref<18x9x512xf32, #tpu.memory_space<vmem>>, vector<1x8x128xf32>
    %36 = vector.shape_cast %35 : vector<1x8x128xf32> to vector<8x128xf32>
    %37 = vector.shape_cast %34 : vector<8x128xf32> to vector<1x8x128xf32>
    tpu.vector_store %arg10[%c5, %c0_24, %c256_25], %37 {strides = array<i32>} : memref<18x9x512xf32, #tpu.memory_space<vmem>>, vector<1x8x128xf32>,
    %38 = vector.extract_strided_slice %22 {offsets = [3, 0, 0], sizes = [1, 8, 128], strides = [1, 1, 1]} : vector<8x8x128xf32> to vector<1x8x128xf32>
    %39 = vector.shape_cast %38 : vector<1x8x128xf32> to vector<8x128xf32>
    %c7 = arith.constant 7 : index
    %c0_26 = arith.constant 0 : index
    %c256_27 = arith.constant 256 : index
    %40 = vector.load %arg10[%c7, %c0_26, %c256_27] : memref<18x9x512xf32, #tpu.memory_space<vmem>>, vector<1x8x128xf32>
    %41 = vector.shape_cast %40 : vector<1x8x128xf32> to vector<8x128xf32>
    %42 = vector.shape_cast %39 : vector<8x128xf32> to vector<1x8x128xf32>
    tpu.vector_store %arg10[%c7, %c0_26, %c256_27], %42 {strides = array<i32>} : memref<18x9x512xf32, #tpu.memory_space<vmem>>, vector<1x8x128xf32>,
    %43 = vector.extract_strided_slice %22 {offsets = [4, 0, 0], sizes = [1, 8, 128], strides = [1, 1, 1]} : vector<8x8x128xf32> to vector<1x8x128xf32>
    %44 = vector.shape_cast %43 : vector<1x8x128xf32> to vector<8x128xf32>
    %c9 = arith.constant 9 : index
    %c0_28 = arith.constant 0 : index
    %c256_29 = arith.constant 256 : index
    %45 = vector.load %arg10[%c9, %c0_28, %c256_29] : memref<18x9x512xf32, #tpu.memory_space<vmem>>, vector<1x8x128xf32>
    %46 = vector.shape_cast %45 : vector<1x8x128xf32> to vector<8x128xf32>
    %47 = vector.shape_cast %44 : vector<8x128xf32> to vector<1x8x128xf32>
    tpu.vector_store %arg10[%c9, %c0_28, %c256_29], %47 {strides = array<i32>} : memref<18x9x512xf32, #tpu.memory_space<vmem>>, vector<1x8x128xf32>,
    %48 = vector.extract_strided_slice %22 {offsets = [5, 0, 0], sizes = [1, 8, 128], strides = [1, 1, 1]} : vector<8x8x128xf32> to vector<1x8x128xf32>
    %49 = vector.shape_cast %48 : vector<1x8x128xf32> to vector<8x128xf32>
    %c11 = arith.constant 11 : index
    %c0_30 = arith.constant 0 : index
    %c256_31 = arith.constant 256 : index
    %50 = vector.load %arg10[%c11, %c0_30, %c256_31] : memref<18x9x512xf32, #tpu.memory_space<vmem>>, vector<1x8x128xf32>
    %51 = vector.shape_cast %50 : vector<1x8x128xf32> to vector<8x128xf32>
    %52 = vector.shape_cast %49 : vector<8x128xf32> to vector<1x8x128xf32>
    tpu.vector_store %arg10[%c11, %c0_30, %c256_31], %52 {strides = array<i32>} : memref<18x9x512xf32, #tpu.memory_space<vmem>>, vector<1x8x128xf32>,
    %53 = vector.extract_strided_slice %22 {offsets = [6, 0, 0], sizes = [1, 8, 128], strides = [1, 1, 1]} : vector<8x8x128xf32> to vector<1x8x128xf32>
    %54 = vector.shape_cast %53 : vector<1x8x128xf32> to vector<8x128xf32>
    %c13 = arith.constant 13 : index
    %c0_32 = arith.constant 0 : index
    %c256_33 = arith.constant 256 : index
    %55 = vector.load %arg10[%c13, %c0_32, %c256_33] : memref<18x9x512xf32, #tpu.memory_space<vmem>>, vector<1x8x128xf32>
    %56 = vector.shape_cast %55 : vector<1x8x128xf32> to vector<8x128xf32>
    %57 = vector.shape_cast %54 : vector<8x128xf32> to vector<1x8x128xf32>
    tpu.vector_store %arg10[%c13, %c0_32, %c256_33], %57 {strides = array<i32>} : memref<18x9x512xf32, #tpu.memory_space<vmem>>, vector<1x8x128xf32>,
    %58 = vector.extract_strided_slice %22 {offsets = [7, 0, 0], sizes = [1, 8, 128], strides = [1, 1, 1]} : vector<8x8x128xf32> to vector<1x8x128xf32>
    %59 = vector.shape_cast %58 : vector<1x8x128xf32> to vector<8x128xf32>
    %c15 = arith.constant 15 : index
    %c0_34 = arith.constant 0 : index
    %c256_35 = arith.constant 256 : index
    %60 = vector.load %arg10[%c15, %c0_34, %c256_35] : memref<18x9x512xf32, #tpu.memory_space<vmem>>, vector<1x8x128xf32>
    %61 = vector.shape_cast %60 : vector<1x8x128xf32> to vector<8x128xf32>
    %62 = vector.shape_cast %59 : vector<8x128xf32> to vector<1x8x128xf32>
    tpu.vector_store %arg10[%c15, %c0_34, %c256_35], %62 {strides = array<i32>} : memref<18x9x512xf32, #tpu.memory_space<vmem>>, vector<1x8x128xf32>,
    %63 = vector.extract_strided_slice %9 {offsets = [0, 0, 128], sizes = [8, 8, 128], strides = [1, 1, 1]} : vector<8x8x512xf32> to vector<8x8x128xf32>
    %64 = vector.extract_strided_slice %63 {offsets = [0, 0, 0], sizes = [1, 8, 128], strides = [1, 1, 1]} : vector<8x8x128xf32> to vector<1x8x128xf32>
    %65 = vector.shape_cast %64 : vector<1x8x128xf32> to vector<8x128xf32>
    %c1_36 = arith.constant 1 : index
    %c1_37 = arith.constant 1 : index
    %c0_38 = arith.constant 0 : index
    %66 = vector.load %arg10[%c1_36, %c1_37, %c0_38] : memref<18x9x512xf32, #tpu.memory_space<vmem>>, vector<1x8x128xf32>
    %67 = vector.shape_cast %66 : vector<1x8x128xf32> to vector<8x128xf32>
    %68 = vector.shape_cast %65 : vector<8x128xf32> to vector<1x8x128xf32>
    tpu.vector_store %arg10[%c1_36, %c1_37, %c0_38], %68 {strides = array<i32>} : memref<18x9x512xf32, #tpu.memory_space<vmem>>, vector<1x8x128xf32>,
    %69 = vector.extract_strided_slice %63 {offsets = [1, 0, 0], sizes = [1, 8, 128], strides = [1, 1, 1]} : vector<8x8x128xf32> to vector<1x8x128xf32>
    %70 = vector.shape_cast %69 : vector<1x8x128xf32> to vector<8x128xf32>
    %c3_39 = arith.constant 3 : index
    %c1_40 = arith.constant 1 : index
    %c0_41 = arith.constant 0 : index
    %71 = vector.load %arg10[%c3_39, %c1_40, %c0_41] : memref<18x9x512xf32, #tpu.memory_space<vmem>>, vector<1x8x128xf32>
    %72 = vector.shape_cast %71 : vector<1x8x128xf32> to vector<8x128xf32>
    %73 = vector.shape_cast %70 : vector<8x128xf32> to vector<1x8x128xf32>
    tpu.vector_store %arg10[%c3_39, %c1_40, %c0_41], %73 {strides = array<i32>} : memref<18x9x512xf32, #tpu.memory_space<vmem>>, vector<1x8x128xf32>,
    %74 = vector.extract_strided_slice %63 {offsets = [2, 0, 0], sizes = [1, 8, 128], strides = [1, 1, 1]} : vector<8x8x128xf32> to vector<1x8x128xf32>
    %75 = vector.shape_cast %74 : vector<1x8x128xf32> to vector<8x128xf32>
    %c5_42 = arith.constant 5 : index
    %c1_43 = arith.constant 1 : index
    %c0_44 = arith.constant 0 : index
    %76 = vector.load %arg10[%c5_42, %c1_43, %c0_44] : memref<18x9x512xf32, #tpu.memory_space<vmem>>, vector<1x8x128xf32>
    %77 = vector.shape_cast %76 : vector<1x8x128xf32> to vector<8x128xf32>
    %78 = vector.shape_cast %75 : vector<8x128xf32> to vector<1x8x128xf32>
    tpu.vector_store %arg10[%c5_42, %c1_43, %c0_44], %78 {strides = array<i32>} : memref<18x9x512xf32, #tpu.memory_space<vmem>>, vector<1x8x128xf32>,
    %79 = vector.extract_strided_slice %63 {offsets = [3, 0, 0], sizes = [1, 8, 128], strides = [1, 1, 1]} : vector<8x8x128xf32> to vector<1x8x128xf32>
    %80 = vector.shape_cast %79 : vector<1x8x128xf32> to vector<8x128xf32>
    %c7_45 = arith.constant 7 : index
    %c1_46 = arith.constant 1 : index
    %c0_47 = arith.constant 0 : index
    %81 = vector.load %arg10[%c7_45, %c1_46, %c0_47] : memref<18x9x512xf32, #tpu.memory_space<vmem>>, vector<1x8x128xf32>
    %82 = vector.shape_cast %81 : vector<1x8x128xf32> to vector<8x128xf32>
    %83 = vector.shape_cast %80 : vector<8x128xf32> to vector<1x8x128xf32>
    tpu.vector_store %arg10[%c7_45, %c1_46, %c0_47], %83 {strides = array<i32>} : memref<18x9x512xf32, #tpu.memory_space<vmem>>, vector<1x8x128xf32>,
    %84 = vector.extract_strided_slice %63 {offsets = [4, 0, 0], sizes = [1, 8, 128], strides = [1, 1, 1]} : vector<8x8x128xf32> to vector<1x8x128xf32>
    %85 = vector.shape_cast %84 : vector<1x8x128xf32> to vector<8x128xf32>
    %c9_48 = arith.constant 9 : index
    %c1_49 = arith.constant 1 : index
    %c0_50 = arith.constant 0 : index
    %86 = vector.load %arg10[%c9_48, %c1_49, %c0_50] : memref<18x9x512xf32, #tpu.memory_space<vmem>>, vector<1x8x128xf32>
    %87 = vector.shape_cast %86 : vector<1x8x128xf32> to vector<8x128xf32>
    %88 = vector.shape_cast %85 : vector<8x128xf32> to vector<1x8x128xf32>
    tpu.vector_store %arg10[%c9_48, %c1_49, %c0_50], %88 {strides = array<i32>} : memref<18x9x512xf32, #tpu.memory_space<vmem>>, vector<1x8x128xf32>,
    %89 = vector.extract_strided_slice %63 {offsets = [5, 0, 0], sizes = [1, 8, 128], strides = [1, 1, 1]} : vector<8x8x128xf32> to vector<1x8x128xf32>
    %90 = vector.shape_cast %89 : vector<1x8x128xf32> to vector<8x128xf32>
    %c11_51 = arith.constant 11 : index
    %c1_52 = arith.constant 1 : index
    %c0_53 = arith.constant 0 : index
    %91 = vector.load %arg10[%c11_51, %c1_52, %c0_53] : memref<18x9x512xf32, #tpu.memory_space<vmem>>, vector<1x8x128xf32>
    %92 = vector.shape_cast %91 : vector<1x8x128xf32> to vector<8x128xf32>
    %93 = vector.shape_cast %90 : vector<8x128xf32> to vector<1x8x128xf32>
    tpu.vector_store %arg10[%c11_51, %c1_52, %c0_53], %93 {strides = array<i32>} : memref<18x9x512xf32, #tpu.memory_space<vmem>>, vector<1x8x128xf32>,
    %94 = vector.extract_strided_slice %63 {offsets = [6, 0, 0], sizes = [1, 8, 128], strides = [1, 1, 1]} : vector<8x8x128xf32> to vector<1x8x128xf32>
    %95 = vector.shape_cast %94 : vector<1x8x128xf32> to vector<8x128xf32>
    %c13_54 = arith.constant 13 : index
    %c1_55 = arith.constant 1 : index
    %c0_56 = arith.constant 0 : index
    %96 = vector.load %arg10[%c13_54, %c1_55, %c0_56] : memref<18x9x512xf32, #tpu.memory_space<vmem>>, vector<1x8x128xf32>
    %97 = vector.shape_cast %96 : vector<1x8x128xf32> to vector<8x128xf32>
    %98 = vector.shape_cast %95 : vector<8x128xf32> to vector<1x8x128xf32>
    tpu.vector_store %arg10[%c13_54, %c1_55, %c0_56], %98 {strides = array<i32>} : memref<18x9x512xf32, #tpu.memory_space<vmem>>, vector<1x8x128xf32>,
    %99 = vector.extract_strided_slice %63 {offsets = [7, 0, 0], sizes = [1, 8, 128], strides = [1, 1, 1]} : vector<8x8x128xf32> to vector<1x8x128xf32>
    %100 = vector.shape_cast %99 : vector<1x8x128xf32> to vector<8x128xf32>
    %c15_57 = arith.constant 15 : index
    %c1_58 = arith.constant 1 : index
    %c0_59 = arith.constant 0 : index
    %101 = vector.load %arg10[%c15_57, %c1_58, %c0_59] : memref<18x9x512xf32, #tpu.memory_space<vmem>>, vector<1x8x128xf32>
    %102 = vector.shape_cast %101 : vector<1x8x128xf32> to vector<8x128xf32>
    %103 = vector.shape_cast %100 : vector<8x128xf32> to vector<1x8x128xf32>
    tpu.vector_store %arg10[%c15_57, %c1_58, %c0_59], %103 {strides = array<i32>} : memref<18x9x512xf32, #tpu.memory_space<vmem>>, vector<1x8x128xf32>,
    %104 = vector.extract_strided_slice %9 {offsets = [0, 0, 256], sizes = [8, 8, 128], strides = [1, 1, 1]} : vector<8x8x512xf32> to vector<8x8x128xf32>
    %105 = vector.extract_strided_slice %104 {offsets = [0, 0, 0], sizes = [1, 8, 128], strides = [1, 1, 1]} : vector<8x8x128xf32> to vector<1x8x128xf32>
    %106 = vector.shape_cast %105 : vector<1x8x128xf32> to vector<8x128xf32>
    %c2 = arith.constant 2 : index
    %c0_60 = arith.constant 0 : index
    %c256_61 = arith.constant 256 : index
    %107 = vector.load %arg10[%c2, %c0_60, %c256_61] : memref<18x9x512xf32, #tpu.memory_space<vmem>>, vector<1x8x128xf32>
    %108 = vector.shape_cast %107 : vector<1x8x128xf32> to vector<8x128xf32>
    %109 = vector.shape_cast %106 : vector<8x128xf32> to vector<1x8x128xf32>
    tpu.vector_store %arg10[%c2, %c0_60, %c256_61], %109 {strides = array<i32>} : memref<18x9x512xf32, #tpu.memory_space<vmem>>, vector<1x8x128xf32>,
    %110 = vector.extract_strided_slice %104 {offsets = [1, 0, 0], sizes = [1, 8, 128], strides = [1, 1, 1]} : vector<8x8x128xf32> to vector<1x8x128xf32>
    %111 = vector.shape_cast %110 : vector<1x8x128xf32> to vector<8x128xf32>
    %c4 = arith.constant 4 : index
    %c0_62 = arith.constant 0 : index
    %c256_63 = arith.constant 256 : index
    %112 = vector.load %arg10[%c4, %c0_62, %c256_63] : memref<18x9x512xf32, #tpu.memory_space<vmem>>, vector<1x8x128xf32>
    %113 = vector.shape_cast %112 : vector<1x8x128xf32> to vector<8x128xf32>
    %114 = vector.shape_cast %111 : vector<8x128xf32> to vector<1x8x128xf32>
    tpu.vector_store %arg10[%c4, %c0_62, %c256_63], %114 {strides = array<i32>} : memref<18x9x512xf32, #tpu.memory_space<vmem>>, vector<1x8x128xf32>,
    %115 = vector.extract_strided_slice %104 {offsets = [2, 0, 0], sizes = [1, 8, 128], strides = [1, 1, 1]} : vector<8x8x128xf32> to vector<1x8x128xf32>
    %116 = vector.shape_cast %115 : vector<1x8x128xf32> to vector<8x128xf32>
    %c6 = arith.constant 6 : index
    %c0_64 = arith.constant 0 : index
    %c256_65 = arith.constant 256 : index
    %117 = vector.load %arg10[%c6, %c0_64, %c256_65] : memref<18x9x512xf32, #tpu.memory_space<vmem>>, vector<1x8x128xf32>
    %118 = vector.shape_cast %117 : vector<1x8x128xf32> to vector<8x128xf32>
    %119 = vector.shape_cast %116 : vector<8x128xf32> to vector<1x8x128xf32>
    tpu.vector_store %arg10[%c6, %c0_64, %c256_65], %119 {strides = array<i32>} : memref<18x9x512xf32, #tpu.memory_space<vmem>>, vector<1x8x128xf32>,
    %120 = vector.extract_strided_slice %104 {offsets = [3, 0, 0], sizes = [1, 8, 128], strides = [1, 1, 1]} : vector<8x8x128xf32> to vector<1x8x128xf32>
    %121 = vector.shape_cast %120 : vector<1x8x128xf32> to vector<8x128xf32>
    %c8_66 = arith.constant 8 : index
    %c0_67 = arith.constant 0 : index
    %c256_68 = arith.constant 256 : index
    %122 = vector.load %arg10[%c8_66, %c0_67, %c256_68] : memref<18x9x512xf32, #tpu.memory_space<vmem>>, vector<1x8x128xf32>
    %123 = vector.shape_cast %122 : vector<1x8x128xf32> to vector<8x128xf32>
    %124 = vector.shape_cast %121 : vector<8x128xf32> to vector<1x8x128xf32>
    tpu.vector_store %arg10[%c8_66, %c0_67, %c256_68], %124 {strides = array<i32>} : memref<18x9x512xf32, #tpu.memory_space<vmem>>, vector<1x8x128xf32>,
    %125 = vector.extract_strided_slice %104 {offsets = [4, 0, 0], sizes = [1, 8, 128], strides = [1, 1, 1]} : vector<8x8x128xf32> to vector<1x8x128xf32>
    %126 = vector.shape_cast %125 : vector<1x8x128xf32> to vector<8x128xf32>
    %c10 = arith.constant 10 : index
    %c0_69 = arith.constant 0 : index
    %c256_70 = arith.constant 256 : index
    %127 = vector.load %arg10[%c10, %c0_69, %c256_70] : memref<18x9x512xf32, #tpu.memory_space<vmem>>, vector<1x8x128xf32>
    %128 = vector.shape_cast %127 : vector<1x8x128xf32> to vector<8x128xf32>
    %129 = vector.shape_cast %126 : vector<8x128xf32> to vector<1x8x128xf32>
    tpu.vector_store %arg10[%c10, %c0_69, %c256_70], %129 {strides = array<i32>} : memref<18x9x512xf32, #tpu.memory_space<vmem>>, vector<1x8x128xf32>,
    %130 = vector.extract_strided_slice %104 {offsets = [5, 0, 0], sizes = [1, 8, 128], strides = [1, 1, 1]} : vector<8x8x128xf32> to vector<1x8x128xf32>
    %131 = vector.shape_cast %130 : vector<1x8x128xf32> to vector<8x128xf32>
    %c12 = arith.constant 12 : index
    %c0_71 = arith.constant 0 : index
    %c256_72 = arith.constant 256 : index
    %132 = vector.load %arg10[%c12, %c0_71, %c256_72] : memref<18x9x512xf32, #tpu.memory_space<vmem>>, vector<1x8x128xf32>
    %133 = vector.shape_cast %132 : vector<1x8x128xf32> to vector<8x128xf32>
    %134 = vector.shape_cast %131 : vector<8x128xf32> to vector<1x8x128xf32>
    tpu.vector_store %arg10[%c12, %c0_71, %c256_72], %134 {strides = array<i32>} : memref<18x9x512xf32, #tpu.memory_space<vmem>>, vector<1x8x128xf32>,
    %135 = vector.extract_strided_slice %104 {offsets = [6, 0, 0], sizes = [1, 8, 128], strides = [1, 1, 1]} : vector<8x8x128xf32> to vector<1x8x128xf32>
    %136 = vector.shape_cast %135 : vector<1x8x128xf32> to vector<8x128xf32>
    %c14 = arith.constant 14 : index
    %c0_73 = arith.constant 0 : index
    %c256_74 = arith.constant 256 : index
    %137 = vector.load %arg10[%c14, %c0_73, %c256_74] : memref<18x9x512xf32, #tpu.memory_space<vmem>>, vector<1x8x128xf32>
    %138 = vector.shape_cast %137 : vector<1x8x128xf32> to vector<8x128xf32>
    %139 = vector.shape_cast %136 : vector<8x128xf32> to vector<1x8x128xf32>
    tpu.vector_store %arg10[%c14, %c0_73, %c256_74], %139 {strides = array<i32>} : memref<18x9x512xf32, #tpu.memory_space<vmem>>, vector<1x8x128xf32>,
    %140 = vector.extract_strided_slice %104 {offsets = [7, 0, 0], sizes = [1, 8, 128], strides = [1, 1, 1]} : vector<8x8x128xf32> to vector<1x8x128xf32>
    %141 = vector.shape_cast %140 : vector<1x8x128xf32> to vector<8x128xf32>
    %c16 = arith.constant 16 : index
    %c0_75 = arith.constant 0 : index
    %c256_76 = arith.constant 256 : index
    %142 = vector.load %arg10[%c16, %c0_75, %c256_76] : memref<18x9x512xf32, #tpu.memory_space<vmem>>, vector<1x8x128xf32>
    %143 = vector.shape_cast %142 : vector<1x8x128xf32> to vector<8x128xf32>
    %144 = vector.shape_cast %141 : vector<8x128xf32> to vector<1x8x128xf32>
    tpu.vector_store %arg10[%c16, %c0_75, %c256_76], %144 {strides = array<i32>} : memref<18x9x512xf32, #tpu.memory_space<vmem>>, vector<1x8x128xf32>,
    %145 = vector.extract_strided_slice %9 {offsets = [0, 0, 384], sizes = [8, 8, 128], strides = [1, 1, 1]} : vector<8x8x512xf32> to vector<8x8x128xf32>
    %146 = vector.extract_strided_slice %145 {offsets = [0, 0, 0], sizes = [1, 8, 128], strides = [1, 1, 1]} : vector<8x8x128xf32> to vector<1x8x128xf32>
    %147 = vector.shape_cast %146 : vector<1x8x128xf32> to vector<8x128xf32>
    %c2_77 = arith.constant 2 : index
    %c1_78 = arith.constant 1 : index
    %c0_79 = arith.constant 0 : index
    %148 = vector.load %arg10[%c2_77, %c1_78, %c0_79] : memref<18x9x512xf32, #tpu.memory_space<vmem>>, vector<1x8x128xf32>
    %149 = vector.shape_cast %148 : vector<1x8x128xf32> to vector<8x128xf32>
    %150 = vector.shape_cast %147 : vector<8x128xf32> to vector<1x8x128xf32>
    tpu.vector_store %arg10[%c2_77, %c1_78, %c0_79], %150 {strides = array<i32>} : memref<18x9x512xf32, #tpu.memory_space<vmem>>, vector<1x8x128xf32>,
    %151 = vector.extract_strided_slice %145 {offsets = [1, 0, 0], sizes = [1, 8, 128], strides = [1, 1, 1]} : vector<8x8x128xf32> to vector<1x8x128xf32>
    %152 = vector.shape_cast %151 : vector<1x8x128xf32> to vector<8x128xf32>
    %c4_80 = arith.constant 4 : index
    %c1_81 = arith.constant 1 : index
    %c0_82 = arith.constant 0 : index
    %153 = vector.load %arg10[%c4_80, %c1_81, %c0_82] : memref<18x9x512xf32, #tpu.memory_space<vmem>>, vector<1x8x128xf32>
    %154 = vector.shape_cast %153 : vector<1x8x128xf32> to vector<8x128xf32>
    %155 = vector.shape_cast %152 : vector<8x128xf32> to vector<1x8x128xf32>
    tpu.vector_store %arg10[%c4_80, %c1_81, %c0_82], %155 {strides = array<i32>} : memref<18x9x512xf32, #tpu.memory_space<vmem>>, vector<1x8x128xf32>,
    %156 = vector.extract_strided_slice %145 {offsets = [2, 0, 0], sizes = [1, 8, 128], strides = [1, 1, 1]} : vector<8x8x128xf32> to vector<1x8x128xf32>
    %157 = vector.shape_cast %156 : vector<1x8x128xf32> to vector<8x128xf32>
    %c6_83 = arith.constant 6 : index
    %c1_84 = arith.constant 1 : index
    %c0_85 = arith.constant 0 : index
    %158 = vector.load %arg10[%c6_83, %c1_84, %c0_85] : memref<18x9x512xf32, #tpu.memory_space<vmem>>, vector<1x8x128xf32>
    %159 = vector.shape_cast %158 : vector<1x8x128xf32> to vector<8x128xf32>
    %160 = vector.shape_cast %157 : vector<8x128xf32> to vector<1x8x128xf32>
    tpu.vector_store %arg10[%c6_83, %c1_84, %c0_85], %160 {strides = array<i32>} : memref<18x9x512xf32, #tpu.memory_space<vmem>>, vector<1x8x128xf32>,
    %161 = vector.extract_strided_slice %145 {offsets = [3, 0, 0], sizes = [1, 8, 128], strides = [1, 1, 1]} : vector<8x8x128xf32> to vector<1x8x128xf32>
    %162 = vector.shape_cast %161 : vector<1x8x128xf32> to vector<8x128xf32>
    %c8_86 = arith.constant 8 : index
    %c1_87 = arith.constant 1 : index
    %c0_88 = arith.constant 0 : index
    %163 = vector.load %arg10[%c8_86, %c1_87, %c0_88] : memref<18x9x512xf32, #tpu.memory_space<vmem>>, vector<1x8x128xf32>
    %164 = vector.shape_cast %163 : vector<1x8x128xf32> to vector<8x128xf32>
    %165 = vector.shape_cast %162 : vector<8x128xf32> to vector<1x8x128xf32>
    tpu.vector_store %arg10[%c8_86, %c1_87, %c0_88], %165 {strides = array<i32>} : memref<18x9x512xf32, #tpu.memory_space<vmem>>, vector<1x8x128xf32>,
    %166 = vector.extract_strided_slice %145 {offsets = [4, 0, 0], sizes = [1, 8, 128], strides = [1, 1, 1]} : vector<8x8x128xf32> to vector<1x8x128xf32>
    %167 = vector.shape_cast %166 : vector<1x8x128xf32> to vector<8x128xf32>
    %c10_89 = arith.constant 10 : index
    %c1_90 = arith.constant 1 : index
    %c0_91 = arith.constant 0 : index
    %168 = vector.load %arg10[%c10_89, %c1_90, %c0_91] : memref<18x9x512xf32, #tpu.memory_space<vmem>>, vector<1x8x128xf32>
    %169 = vector.shape_cast %168 : vector<1x8x128xf32> to vector<8x128xf32>
    %170 = vector.shape_cast %167 : vector<8x128xf32> to vector<1x8x128xf32>
    tpu.vector_store %arg10[%c10_89, %c1_90, %c0_91], %170 {strides = array<i32>} : memref<18x9x512xf32, #tpu.memory_space<vmem>>, vector<1x8x128xf32>,
    %171 = vector.extract_strided_slice %145 {offsets = [5, 0, 0], sizes = [1, 8, 128], strides = [1, 1, 1]} : vector<8x8x128xf32> to vector<1x8x128xf32>
    %172 = vector.shape_cast %171 : vector<1x8x128xf32> to vector<8x128xf32>
    %c12_92 = arith.constant 12 : index
    %c1_93 = arith.constant 1 : index
    %c0_94 = arith.constant 0 : index
    %173 = vector.load %arg10[%c12_92, %c1_93, %c0_94] : memref<18x9x512xf32, #tpu.memory_space<vmem>>, vector<1x8x128xf32>
    %174 = vector.shape_cast %173 : vector<1x8x128xf32> to vector<8x128xf32>
    %175 = vector.shape_cast %172 : vector<8x128xf32> to vector<1x8x128xf32>
    tpu.vector_store %arg10[%c12_92, %c1_93, %c0_94], %175 {strides = array<i32>} : memref<18x9x512xf32, #tpu.memory_space<vmem>>, vector<1x8x128xf32>,
    %176 = vector.extract_strided_slice %145 {offsets = [6, 0, 0], sizes = [1, 8, 128], strides = [1, 1, 1]} : vector<8x8x128xf32> to vector<1x8x128xf32>
    %177 = vector.shape_cast %176 : vector<1x8x128xf32> to vector<8x128xf32>
    %c14_95 = arith.constant 14 : index
    %c1_96 = arith.constant 1 : index
    %c0_97 = arith.constant 0 : index
    %178 = vector.load %arg10[%c14_95, %c1_96, %c0_97] : memref<18x9x512xf32, #tpu.memory_space<vmem>>, vector<1x8x128xf32>
    %179 = vector.shape_cast %178 : vector<1x8x128xf32> to vector<8x128xf32>
    %180 = vector.shape_cast %177 : vector<8x128xf32> to vector<1x8x128xf32>
    tpu.vector_store %arg10[%c14_95, %c1_96, %c0_97], %180 {strides = array<i32>} : memref<18x9x512xf32, #tpu.memory_space<vmem>>, vector<1x8x128xf32>,
    %181 = vector.extract_strided_slice %145 {offsets = [7, 0, 0], sizes = [1, 8, 128], strides = [1, 1, 1]} : vector<8x8x128xf32> to vector<1x8x128xf32>
    %182 = vector.shape_cast %181 : vector<1x8x128xf32> to vector<8x128xf32>
    %c16_98 = arith.constant 16 : index
    %c1_99 = arith.constant 1 : index
    %c0_100 = arith.constant 0 : index
    %183 = vector.load %arg10[%c16_98, %c1_99, %c0_100] : memref<18x9x512xf32, #tpu.memory_space<vmem>>, vector<1x8x128xf32>
    %184 = vector.shape_cast %183 : vector<1x8x128xf32> to vector<8x128xf32>
    %185 = vector.shape_cast %182 : vector<8x128xf32> to vector<1x8x128xf32>
    tpu.vector_store %arg10[%c16_98, %c1_99, %c0_100], %185 {strides = array<i32>} : memref<18x9x512xf32, #tpu.memory_space<vmem>>, vector<1x8x128xf32>,
    %c0_101 = arith.constant 0 : index
    %c0_102 = arith.constant 0 : index
    %c0_103 = arith.constant 0 : index
    %c0_104 = arith.constant 0 : index
    %186 = vector.load %arg2[%c0_101, %c0_102, %c0_103, %c0_104] : memref<1x16x8x256xf32, #tpu.memory_space<vmem>>, vector<1x16x8x256xf32>
    %187 = vector.shape_cast %186 : vector<1x16x8x256xf32> to vector<16x8x256xf32>
    %c0_105 = arith.constant 0 : index
    %c0_106 = arith.constant 0 : index
    %c0_107 = arith.constant 0 : index
    %188 = vector.load %arg5[%c0_105, %c0_106, %c0_107] : memref<1x1x256xf32, #tpu.memory_space<vmem>>, vector<1x1x256xf32>
    %189 = vector.broadcast %188 : vector<1x1x256xf32> to vector<16x8x256xf32>
    %190 = arith.mulf %187, %189 : vector<16x8x256xf32>
    %c0_108 = arith.constant 0 : index
    %c0_109 = arith.constant 0 : index
    %c0_110 = arith.constant 0 : index
    %191 = vector.load %arg6[%c0_108, %c0_109, %c0_110] : memref<1x1x256xf32, #tpu.memory_space<vmem>>, vector<1x1x256xf32>
    %192 = vector.broadcast %191 : vector<1x1x256xf32> to vector<16x8x256xf32>
    %193 = arith.addf %190, %192 : vector<16x8x256xf32>
    %194 = vector.extract_strided_slice %193 {offsets = [0, 0, 0], sizes = [16, 8, 128], strides = [1, 1, 1]} : vector<16x8x256xf32> to vector<16x8x128xf32>
    %c1_111 = arith.constant 1 : index
    %c0_112 = arith.constant 0 : index
    %c384 = arith.constant 384 : index
    %195 = vector.load %arg10[%c1_111, %c0_112, %c384] : memref<18x9x512xf32, #tpu.memory_space<vmem>>, vector<16x8x128xf32>
    tpu.vector_store %arg10[%c1_111, %c0_112, %c384], %194 {strides = array<i32>} : memref<18x9x512xf32, #tpu.memory_space<vmem>>, vector<16x8x128xf32>,
    %196 = vector.extract_strided_slice %193 {offsets = [0, 0, 128], sizes = [16, 8, 128], strides = [1, 1, 1]} : vector<16x8x256xf32> to vector<16x8x128xf32>
    %c1_113 = arith.constant 1 : index
    %c1_114 = arith.constant 1 : index
    %c128 = arith.constant 128 : index
    %197 = vector.load %arg10[%c1_113, %c1_114, %c128] : memref<18x9x512xf32, #tpu.memory_space<vmem>>, vector<16x8x128xf32>
    tpu.vector_store %arg10[%c1_113, %c1_114, %c128], %196 {strides = array<i32>} : memref<18x9x512xf32, #tpu.memory_space<vmem>>, vector<16x8x128xf32>,
    %cst_115 = arith.constant 0.000000e+00 : f32
    %198 = vector.broadcast %cst_115 : f32 to vector<128x256xf32>
    %c0_116 = arith.constant 0 : index
    %c0_117 = arith.constant 0 : index
    %c0_118 = arith.constant 0 : index
    %199 = vector.load %arg10[%c0_116, %c0_117, %c0_118] : memref<18x9x512xf32, #tpu.memory_space<vmem>>, vector<16x8x256xf32>
    %200 = vector.shape_cast %199 : vector<16x8x256xf32> to vector<128x256xf32>
    %201 = arith.truncf %200 : vector<128x256xf32> to vector<128x256xbf16>
    %c0_119 = arith.constant 0 : index
    %c0_120 = arith.constant 0 : index
    %c0_121 = arith.constant 0 : index
    %202 = vector.load %arg7[%c0_119, %c0_120, %c0_121] : memref<12x256x256xbf16, #tpu.memory_space<vmem>>, vector<1x256x256xbf16>
    %203 = vector.shape_cast %202 : vector<1x256x256xbf16> to vector<256x256xbf16>
    %cst_122 = arith.constant dense<0.000000e+00> : vector<128x256xf32>
    %204 = tpu.matmul %201, %203, %cst_122 {dimension_numbers = #tpu.dot_dimension_numbers<[1], [0], [0], [1], [0, 0, 1, 1], [], []>} : vector<128x256xbf16>, vector<256x256xbf16>, vector<128x256xf32> -> vector<128x256xf32>
    %205 = arith.addf %198, %204 : vector<128x256xf32>
    %c0_123 = arith.constant 0 : index
    %c0_124 = arith.constant 0 : index
    %c256_125 = arith.constant 256 : index
    %206 = vector.load %arg10[%c0_123, %c0_124, %c256_125] : memref<18x9x512xf32, #tpu.memory_space<vmem>>, vector<16x8x256xf32>
    %207 = vector.shape_cast %206 : vector<16x8x256xf32> to vector<128x256xf32>
    %208 = arith.truncf %207 : vector<128x256xf32> to vector<128x256xbf16>
    %c1_126 = arith.constant 1 : index
    %c0_127 = arith.constant 0 : index
    %c0_128 = arith.constant 0 : index
    %209 = vector.load %arg7[%c1_126, %c0_127, %c0_128] : memref<12x256x256xbf16, #tpu.memory_space<vmem>>, vector<1x256x256xbf16>
    %210 = vector.shape_cast %209 : vector<1x256x256xbf16> to vector<256x256xbf16>
    %cst_129 = arith.constant dense<0.000000e+00> : vector<128x256xf32>
    %211 = tpu.matmul %208, %210, %cst_129 {dimension_numbers = #tpu.dot_dimension_numbers<[1], [0], [0], [1], [0, 0, 1, 1], [], []>} : vector<128x256xbf16>, vector<256x256xbf16>, vector<128x256xf32> -> vector<128x256xf32>
    %212 = arith.addf %205, %211 : vector<128x256xf32>
    %c0_130 = arith.constant 0 : index
    %c1_131 = arith.constant 1 : index
    %c0_132 = arith.constant 0 : index
    %213 = vector.load %arg10[%c0_130, %c1_131, %c0_132] : memref<18x9x512xf32, #tpu.memory_space<vmem>>, vector<16x8x256xf32>
    %214 = vector.shape_cast %213 : vector<16x8x256xf32> to vector<128x256xf32>
    %215 = arith.truncf %214 : vector<128x256xf32> to vector<128x256xbf16>
    %c2_133 = arith.constant 2 : index
    %c0_134 = arith.constant 0 : index
    %c0_135 = arith.constant 0 : index
    %216 = vector.load %arg7[%c2_133, %c0_134, %c0_135] : memref<12x256x256xbf16, #tpu.memory_space<vmem>>, vector<1x256x256xbf16>
    %217 = vector.shape_cast %216 : vector<1x256x256xbf16> to vector<256x256xbf16>
    %cst_136 = arith.constant dense<0.000000e+00> : vector<128x256xf32>
    %218 = tpu.matmul %215, %217, %cst_136 {dimension_numbers = #tpu.dot_dimension_numbers<[1], [0], [0], [1], [0, 0, 1, 1], [], []>} : vector<128x256xbf16>, vector<256x256xbf16>, vector<128x256xf32> -> vector<128x256xf32>
    %219 = arith.addf %212, %218 : vector<128x256xf32>
    %c0_137 = arith.constant 0 : index
    %c1_138 = arith.constant 1 : index
    %c256_139 = arith.constant 256 : index
    %220 = vector.load %arg10[%c0_137, %c1_138, %c256_139] : memref<18x9x512xf32, #tpu.memory_space<vmem>>, vector<16x8x256xf32>
    %221 = vector.shape_cast %220 : vector<16x8x256xf32> to vector<128x256xf32>
    %222 = arith.truncf %221 : vector<128x256xf32> to vector<128x256xbf16>
    %c3_140 = arith.constant 3 : index
    %c0_141 = arith.constant 0 : index
    %c0_142 = arith.constant 0 : index
    %223 = vector.load %arg7[%c3_140, %c0_141, %c0_142] : memref<12x256x256xbf16, #tpu.memory_space<vmem>>, vector<1x256x256xbf16>
    %224 = vector.shape_cast %223 : vector<1x256x256xbf16> to vector<256x256xbf16>
    %cst_143 = arith.constant dense<0.000000e+00> : vector<128x256xf32>
    %225 = tpu.matmul %222, %224, %cst_143 {dimension_numbers = #tpu.dot_dimension_numbers<[1], [0], [0], [1], [0, 0, 1, 1], [], []>} : vector<128x256xbf16>, vector<256x256xbf16>, vector<128x256xf32> -> vector<128x256xf32>
    %226 = arith.addf %219, %225 : vector<128x256xf32>
    %c1_144 = arith.constant 1 : index
    %c0_145 = arith.constant 0 : index
    %c0_146 = arith.constant 0 : index
    %227 = vector.load %arg10[%c1_144, %c0_145, %c0_146] : memref<18x9x512xf32, #tpu.memory_space<vmem>>, vector<16x8x256xf32>
    %228 = vector.shape_cast %227 : vector<16x8x256xf32> to vector<128x256xf32>
    %229 = arith.truncf %228 : vector<128x256xf32> to vector<128x256xbf16>
    %c4_147 = arith.constant 4 : index
    %c0_148 = arith.constant 0 : index
    %c0_149 = arith.constant 0 : index
    %230 = vector.load %arg7[%c4_147, %c0_148, %c0_149] : memref<12x256x256xbf16, #tpu.memory_space<vmem>>, vector<1x256x256xbf16>
    %231 = vector.shape_cast %230 : vector<1x256x256xbf16> to vector<256x256xbf16>
    %cst_150 = arith.constant dense<0.000000e+00> : vector<128x256xf32>
    %232 = tpu.matmul %229, %231, %cst_150 {dimension_numbers = #tpu.dot_dimension_numbers<[1], [0], [0], [1], [0, 0, 1, 1], [], []>} : vector<128x256xbf16>, vector<256x256xbf16>, vector<128x256xf32> -> vector<128x256xf32>
    %233 = arith.addf %226, %232 : vector<128x256xf32>
    %c1_151 = arith.constant 1 : index
    %c0_152 = arith.constant 0 : index
    %c256_153 = arith.constant 256 : index
    %234 = vector.load %arg10[%c1_151, %c0_152, %c256_153] : memref<18x9x512xf32, #tpu.memory_space<vmem>>, vector<16x8x256xf32>
    %235 = vector.shape_cast %234 : vector<16x8x256xf32> to vector<128x256xf32>
    %236 = arith.truncf %235 : vector<128x256xf32> to vector<128x256xbf16>
    %c5_154 = arith.constant 5 : index
    %c0_155 = arith.constant 0 : index
    %c0_156 = arith.constant 0 : index
    %237 = vector.load %arg7[%c5_154, %c0_155, %c0_156] : memref<12x256x256xbf16, #tpu.memory_space<vmem>>, vector<1x256x256xbf16>
    %238 = vector.shape_cast %237 : vector<1x256x256xbf16> to vector<256x256xbf16>
    %cst_157 = arith.constant dense<0.000000e+00> : vector<128x256xf32>
    %239 = tpu.matmul %236, %238, %cst_157 {dimension_numbers = #tpu.dot_dimension_numbers<[1], [0], [0], [1], [0, 0, 1, 1], [], []>} : vector<128x256xbf16>, vector<256x256xbf16>, vector<128x256xf32> -> vector<128x256xf32>
    %240 = arith.addf %233, %239 : vector<128x256xf32>
    %c1_158 = arith.constant 1 : index
    %c1_159 = arith.constant 1 : index
    %c0_160 = arith.constant 0 : index
    %241 = vector.load %arg10[%c1_158, %c1_159, %c0_160] : memref<18x9x512xf32, #tpu.memory_space<vmem>>, vector<16x8x256xf32>
    %242 = vector.shape_cast %241 : vector<16x8x256xf32> to vector<128x256xf32>
    %243 = arith.truncf %242 : vector<128x256xf32> to vector<128x256xbf16>
    %c6_161 = arith.constant 6 : index
    %c0_162 = arith.constant 0 : index
    %c0_163 = arith.constant 0 : index
    %244 = vector.load %arg7[%c6_161, %c0_162, %c0_163] : memref<12x256x256xbf16, #tpu.memory_space<vmem>>, vector<1x256x256xbf16>
    %245 = vector.shape_cast %244 : vector<1x256x256xbf16> to vector<256x256xbf16>
    %cst_164 = arith.constant dense<0.000000e+00> : vector<128x256xf32>
    %246 = tpu.matmul %243, %245, %cst_164 {dimension_numbers = #tpu.dot_dimension_numbers<[1], [0], [0], [1], [0, 0, 1, 1], [], []>} : vector<128x256xbf16>, vector<256x256xbf16>, vector<128x256xf32> -> vector<128x256xf32>
    %247 = arith.addf %240, %246 : vector<128x256xf32>
    %c1_165 = arith.constant 1 : index
    %c1_166 = arith.constant 1 : index
    %c256_167 = arith.constant 256 : index
    %248 = vector.load %arg10[%c1_165, %c1_166, %c256_167] : memref<18x9x512xf32, #tpu.memory_space<vmem>>, vector<16x8x256xf32>
    %249 = vector.shape_cast %248 : vector<16x8x256xf32> to vector<128x256xf32>
    %250 = arith.truncf %249 : vector<128x256xf32> to vector<128x256xbf16>
    %c7_168 = arith.constant 7 : index
    %c0_169 = arith.constant 0 : index
    %c0_170 = arith.constant 0 : index
    %251 = vector.load %arg7[%c7_168, %c0_169, %c0_170] : memref<12x256x256xbf16, #tpu.memory_space<vmem>>, vector<1x256x256xbf16>
    %252 = vector.shape_cast %251 : vector<1x256x256xbf16> to vector<256x256xbf16>
    %cst_171 = arith.constant dense<0.000000e+00> : vector<128x256xf32>
    %253 = tpu.matmul %250, %252, %cst_171 {dimension_numbers = #tpu.dot_dimension_numbers<[1], [0], [0], [1], [0, 0, 1, 1], [], []>} : vector<128x256xbf16>, vector<256x256xbf16>, vector<128x256xf32> -> vector<128x256xf32>
    %254 = arith.addf %247, %253 : vector<128x256xf32>
    %c2_172 = arith.constant 2 : index
    %c0_173 = arith.constant 0 : index
    %c0_174 = arith.constant 0 : index
    %255 = vector.load %arg10[%c2_172, %c0_173, %c0_174] : memref<18x9x512xf32, #tpu.memory_space<vmem>>, vector<16x8x256xf32>
    %256 = vector.shape_cast %255 : vector<16x8x256xf32> to vector<128x256xf32>
    %257 = arith.truncf %256 : vector<128x256xf32> to vector<128x256xbf16>
    %c8_175 = arith.constant 8 : index
    %c0_176 = arith.constant 0 : index
    %c0_177 = arith.constant 0 : index
    %258 = vector.load %arg7[%c8_175, %c0_176, %c0_177] : memref<12x256x256xbf16, #tpu.memory_space<vmem>>, vector<1x256x256xbf16>
    %259 = vector.shape_cast %258 : vector<1x256x256xbf16> to vector<256x256xbf16>
    %cst_178 = arith.constant dense<0.000000e+00> : vector<128x256xf32>
    %260 = tpu.matmul %257, %259, %cst_178 {dimension_numbers = #tpu.dot_dimension_numbers<[1], [0], [0], [1], [0, 0, 1, 1], [], []>} : vector<128x256xbf16>, vector<256x256xbf16>, vector<128x256xf32> -> vector<128x256xf32>
    %261 = arith.addf %254, %260 : vector<128x256xf32>
    %c2_179 = arith.constant 2 : index
    %c0_180 = arith.constant 0 : index
    %c256_181 = arith.constant 256 : index
    %262 = vector.load %arg10[%c2_179, %c0_180, %c256_181] : memref<18x9x512xf32, #tpu.memory_space<vmem>>, vector<16x8x256xf32>
    %263 = vector.shape_cast %262 : vector<16x8x256xf32> to vector<128x256xf32>
    %264 = arith.truncf %263 : vector<128x256xf32> to vector<128x256xbf16>
    %c9_182 = arith.constant 9 : index
    %c0_183 = arith.constant 0 : index
    %c0_184 = arith.constant 0 : index
    %265 = vector.load %arg7[%c9_182, %c0_183, %c0_184] : memref<12x256x256xbf16, #tpu.memory_space<vmem>>, vector<1x256x256xbf16>
    %266 = vector.shape_cast %265 : vector<1x256x256xbf16> to vector<256x256xbf16>
    %cst_185 = arith.constant dense<0.000000e+00> : vector<128x256xf32>
    %267 = tpu.matmul %264, %266, %cst_185 {dimension_numbers = #tpu.dot_dimension_numbers<[1], [0], [0], [1], [0, 0, 1, 1], [], []>} : vector<128x256xbf16>, vector<256x256xbf16>, vector<128x256xf32> -> vector<128x256xf32>
    %268 = arith.addf %261, %267 : vector<128x256xf32>
    %c2_186 = arith.constant 2 : index
    %c1_187 = arith.constant 1 : index
    %c0_188 = arith.constant 0 : index
    %269 = vector.load %arg10[%c2_186, %c1_187, %c0_188] : memref<18x9x512xf32, #tpu.memory_space<vmem>>, vector<16x8x256xf32>
    %270 = vector.shape_cast %269 : vector<16x8x256xf32> to vector<128x256xf32>
    %271 = arith.truncf %270 : vector<128x256xf32> to vector<128x256xbf16>
    %c10_189 = arith.constant 10 : index
    %c0_190 = arith.constant 0 : index
    %c0_191 = arith.constant 0 : index
    %272 = vector.load %arg7[%c10_189, %c0_190, %c0_191] : memref<12x256x256xbf16, #tpu.memory_space<vmem>>, vector<1x256x256xbf16>
    %273 = vector.shape_cast %272 : vector<1x256x256xbf16> to vector<256x256xbf16>
    %cst_192 = arith.constant dense<0.000000e+00> : vector<128x256xf32>
    %274 = tpu.matmul %271, %273, %cst_192 {dimension_numbers = #tpu.dot_dimension_numbers<[1], [0], [0], [1], [0, 0, 1, 1], [], []>} : vector<128x256xbf16>, vector<256x256xbf16>, vector<128x256xf32> -> vector<128x256xf32>
    %275 = arith.addf %268, %274 : vector<128x256xf32>
    %c2_193 = arith.constant 2 : index
    %c1_194 = arith.constant 1 : index
    %c256_195 = arith.constant 256 : index
    %276 = vector.load %arg10[%c2_193, %c1_194, %c256_195] : memref<18x9x512xf32, #tpu.memory_space<vmem>>, vector<16x8x256xf32>
    %277 = vector.shape_cast %276 : vector<16x8x256xf32> to vector<128x256xf32>
    %278 = arith.truncf %277 : vector<128x256xf32> to vector<128x256xbf16>
    %c11_196 = arith.constant 11 : index
    %c0_197 = arith.constant 0 : index
    %c0_198 = arith.constant 0 : index
    %279 = vector.load %arg7[%c11_196, %c0_197, %c0_198] : memref<12x256x256xbf16, #tpu.memory_space<vmem>>, vector<1x256x256xbf16>
    %280 = vector.shape_cast %279 : vector<1x256x256xbf16> to vector<256x256xbf16>
    %cst_199 = arith.constant dense<0.000000e+00> : vector<128x256xf32>
    %281 = tpu.matmul %278, %280, %cst_199 {dimension_numbers = #tpu.dot_dimension_numbers<[1], [0], [0], [1], [0, 0, 1, 1], [], []>} : vector<128x256xbf16>, vector<256x256xbf16>, vector<128x256xf32> -> vector<128x256xf32>
    %282 = arith.addf %275, %281 : vector<128x256xf32>
    %c0_200 = arith.constant 0 : index
    %c0_201 = arith.constant 0 : index
    %283 = vector.load %arg8[%c0_200, %c0_201] : memref<1x256xf32, #tpu.memory_space<vmem>>, vector<1x256xf32>
    %284 = vector.broadcast %283 : vector<1x256xf32> to vector<128x256xf32>
    %285 = arith.addf %282, %284 : vector<128x256xf32>
    %cst_202 = arith.constant 5.000000e-01 : f32
    %286 = vector.broadcast %cst_202 : f32 to vector<128x256xf32>
    %287 = arith.mulf %286, %285 : vector<128x256xf32>
    %cst_203 = arith.constant 0.707106769 : f32
    %288 = vector.broadcast %cst_203 : f32 to vector<128x256xf32>
    %289 = arith.mulf %285, %288 : vector<128x256xf32>
    %cst_204 = arith.constant 0.000000e+00 : f32
    %290 = vector.broadcast %cst_204 : f32 to vector<128x256xf32>
    %291 = arith.cmpf oge, %289, %290 : vector<128x256xf32>
    %cst_205 = arith.constant 1.000000e+00 : f32
    %cst_206 = arith.constant -1.000000e+00 : f32
    %292 = vector.broadcast %cst_205 : f32 to vector<128x256xf32>
    %293 = vector.broadcast %cst_206 : f32 to vector<128x256xf32>
    %294 = arith.select %291, %292, %293 : vector<128x256xi1>, vector<128x256xf32>
    %295 = math.absf %289 : vector<128x256xf32>
    %cst_207 = arith.constant 0.327591091 : f32
    %296 = vector.broadcast %cst_207 : f32 to vector<128x256xf32>
    %297 = arith.mulf %296, %295 : vector<128x256xf32>
    %cst_208 = arith.constant 1.000000e+00 : f32
    %298 = vector.broadcast %cst_208 : f32 to vector<128x256xf32>
    %299 = arith.addf %298, %297 : vector<128x256xf32>
    %cst_209 = arith.constant 1.000000e+00 : f32
    %300 = vector.broadcast %cst_209 : f32 to vector<128x256xf32>
    %301 = arith.divf %300, %299 : vector<128x256xf32>
    %cst_210 = arith.constant 1.06140542 : f32
    %302 = vector.broadcast %cst_210 : f32 to vector<128x256xf32>
    %303 = arith.mulf %301, %302 : vector<128x256xf32>
    %cst_211 = arith.constant -1.45315206 : f32
    %304 = vector.broadcast %cst_211 : f32 to vector<128x256xf32>
    %305 = arith.addf %304, %303 : vector<128x256xf32>
    %306 = arith.mulf %301, %305 : vector<128x256xf32>
    %cst_212 = arith.constant 1.42141378 : f32
    %307 = vector.broadcast %cst_212 : f32 to vector<128x256xf32>
    %308 = arith.addf %307, %306 : vector<128x256xf32>
    %309 = arith.mulf %301, %308 : vector<128x256xf32>
    %cst_213 = arith.constant -0.284496725 : f32
    %310 = vector.broadcast %cst_213 : f32 to vector<128x256xf32>
    %311 = arith.addf %310, %309 : vector<128x256xf32>
    %312 = arith.mulf %301, %311 : vector<128x256xf32>
    %cst_214 = arith.constant 0.254829586 : f32
    %313 = vector.broadcast %cst_214 : f32 to vector<128x256xf32>
    %314 = arith.addf %313, %312 : vector<128x256xf32>
    %315 = arith.mulf %301, %314 : vector<128x256xf32>
    %cst_215 = arith.constant 0.000000e+00 : f32
    %316 = vector.broadcast %cst_215 : f32 to vector<128x256xf32>
    %317 = arith.subf %316, %295 : vector<128x256xf32>
    %318 = arith.mulf %317, %295 : vector<128x256xf32>
    %319 = math.exp %318 : vector<128x256xf32>
    %320 = arith.mulf %315, %319 : vector<128x256xf32>
    %cst_216 = arith.constant 1.000000e+00 : f32
    %321 = vector.broadcast %cst_216 : f32 to vector<128x256xf32>
    %322 = arith.subf %321, %320 : vector<128x256xf32>
    %323 = arith.mulf %294, %322 : vector<128x256xf32>
    %cst_217 = arith.constant 1.000000e+00 : f32
    %324 = vector.broadcast %cst_217 : f32 to vector<128x256xf32>
    %325 = arith.addf %324, %323 : vector<128x256xf32>
    %326 = arith.mulf %287, %325 : vector<128x256xf32>
    %327 = vector.shape_cast %326 : vector<128x256xf32> to vector<16x8x256xf32>
    %c0_218 = arith.constant 0 : index
    %c0_219 = arith.constant 0 : index
    %c0_220 = arith.constant 0 : index
    %c0_221 = arith.constant 0 : index
    %328 = vector.load %arg9[%c0_218, %c0_219, %c0_220, %c0_221] : memref<1x16x8x256xf32, #tpu.memory_space<vmem>>, vector<1x16x8x256xf32>
    %329 = vector.shape_cast %328 : vector<1x16x8x256xf32> to vector<16x8x256xf32>
    %330 = vector.shape_cast %327 : vector<16x8x256xf32> to vector<1x16x8x256xf32>
    tpu.vector_store %arg9[%c0_218, %c0_219, %c0_220, %c0_221], %330 {strides = array<i32>} : memref<1x16x8x256xf32, #tpu.memory_space<vmem>>, vector<1x16x8x256xf32>,
    return
  }
  func.func @transform_0(%arg0: i32) -> (i32, i32, i32, i32) {
    %c0_i32 = arith.constant 0 : i32
    %c0_i32_0 = arith.constant 0 : i32
    %c0_i32_1 = arith.constant 0 : i32
    %c0_i32_2 = arith.constant 0 : i32
    return %arg0, %c0_i32, %c0_i32_0, %c0_i32_1 : i32, i32, i32, i32
  }
  func.func @transform_1(%arg0: i32) -> (i32, i32, i32, i32) {
    %c0_i32 = arith.constant 0 : i32
    %c0_i32_0 = arith.constant 0 : i32
    %c0_i32_1 = arith.constant 0 : i32
    %c0_i32_2 = arith.constant 0 : i32
    return %arg0, %c0_i32, %c0_i32_0, %c0_i32_1 : i32, i32, i32, i32
  }
  func.func @transform_2(%arg0: i32) -> (i32, i32) {
    %c0_i32 = arith.constant 0 : i32
    %c0_i32_0 = arith.constant 0 : i32
    %c0_i32_1 = arith.constant 0 : i32
    return %c0_i32, %c0_i32_0 : i32, i32
  }
  func.func @transform_3(%arg0: i32) -> (i32, i32) {
    %c0_i32 = arith.constant 0 : i32
    %c0_i32_0 = arith.constant 0 : i32
    %c0_i32_1 = arith.constant 0 : i32
    return %c0_i32, %c0_i32_0 : i32, i32
  }
  func.func @transform_4(%arg0: i32) -> (i32, i32, i32) {
    %c0_i32 = arith.constant 0 : i32
    %c0_i32_0 = arith.constant 0 : i32
    %c0_i32_1 = arith.constant 0 : i32
    %c0_i32_2 = arith.constant 0 : i32
    return %c0_i32, %c0_i32_0, %c0_i32_1 : i32, i32, i32
  }
  func.func @transform_5(%arg0: i32) -> (i32, i32, i32) {
    %c0_i32 = arith.constant 0 : i32
    %c0_i32_0 = arith.constant 0 : i32
    %c0_i32_1 = arith.constant 0 : i32
    %c0_i32_2 = arith.constant 0 : i32
    return %c0_i32, %c0_i32_0, %c0_i32_1 : i32, i32, i32
  }
  func.func @transform_6(%arg0: i32) -> (i32, i32, i32) {
    %c0_i32 = arith.constant 0 : i32
    %c0_i32_0 = arith.constant 0 : i32
    %c0_i32_1 = arith.constant 0 : i32
    %c0_i32_2 = arith.constant 0 : i32
    return %c0_i32, %c0_i32_0, %c0_i32_1 : i32, i32, i32
  }
  func.func @transform_7(%arg0: i32) -> (i32, i32) {
    %c0_i32 = arith.constant 0 : i32
    %c0_i32_0 = arith.constant 0 : i32
    %c0_i32_1 = arith.constant 0 : i32
    return %c0_i32, %c0_i32_0 : i32, i32
  }
  func.func @transform_8(%arg0: i32) -> (i32, i32, i32, i32) {
    %c0_i32 = arith.constant 0 : i32
    %c0_i32_0 = arith.constant 0 : i32
    %c0_i32_1 = arith.constant 0 : i32
    %c0_i32_2 = arith.constant 0 : i32
    return %arg0, %c0_i32, %c0_i32_0, %c0_i32_1 : i32, i32, i32, i32
  }
}

</mosaic_0001>

<bundles_post_ra>
// kernel: _lambda_.1
= control target key start
LH: loop header
LB: loop body
LE: loop exit
PB: predicated region body
PF: predicated region fallthrough
CT: control target
= control target key end

     0   :  { %13 = vsyncpa [#allocation4], 0  ;;  %s16005_s0 = inlined_call_operand.hbm [shape: f32[2,8,8,256], index: 0, kind: input, shape index: {}]   ;;  %s16006_s1 = inlined_call_operand.vmem [shape: f32[2,16,8,256], index: 1, kind: input, shape index: {}]   ;;  %s16007_s2 = inlined_call_operand.hbm [shape: bf16[256,512], index: 2, kind: input, shape index: {}]   ;;  %s16008_s3 = inlined_call_operand.hbm [shape: f32[1,512], index: 3, kind: input, shape index: {}]   ;;  %s16009_s4 = inlined_call_operand.hbm [shape: f32[1,1,256], index: 4, kind: input, shape index: {}]   ;;  %s16010_s5 = inlined_call_operand.hbm [shape: f32[1,1,256], index: 5, kind: input, shape index: {}]   ;;  %s16011_s6 = inlined_call_operand.hbm [shape: bf16[12,256,256], index: 6, kind: input, shape index: {}]   ;;  %s16012_s7 = inlined_call_operand.hbm [shape: f32[1,256], index: 7, kind: input, shape index: {}]   ;;  %s16013_s8 = inlined_call_operand.vmem [shape: f32[2,16,8,256], index: 8, kind: output, shape index: {}]  }
   0x1   :  { %15 = vsyncpa [#allocation4 + $0x1], 0 }
   0x2   :  { %16 = vsyncpa [#allocation6], 0 }
   0x3   :  { %17 = vsyncpa [#allocation9], 0 }
   0x4   :  { %18 = vsyncpa [#allocation12], 0  ;;  %s12745_s27 = smov 0   ;;  %s12747_s28 = smov 0  }
   0x5   :  { %s12749_s29 = smov 0   ;;  %s12751_s30 = smov 0  }
   0x6 LB: > { %s244_s11 = sshll.u32 %s16007_s2, 4  ;;  %s12769_s12 = sadd.s32 4294967295, %s12686_s30   ;;  %s12686_s30 = sphi %s12751_s30, %s16036_s30   ;;  %s12682_s29 = sphi %s12749_s29, %s16035_s29   ;;  %s12678_s28 = sphi %s12747_s28, %s16034_s28   ;;  %s12674_s27 = sphi %s12745_s27, %s16033_s27   ;;  %s245_s11 = int_to_ptr.hbm [resolvable:$true] %s244_s11 }
   0x7   : > { %p9928_p0 = scmp.ge.s32.totalorder %s12686_s30, 1  ;;  %p45_p1 = scmp.eq.s32.totalorder %s12769_s12, 0 }
   0x8   : > { %p233_p2 = scmp.lt.s32.totalorder %s12686_s30, 3  ;;  %s12688_s14 = smov [#allocation5]  }
   0x9   : > { %s246_s15 = sshll.u32 %s12688_s14, 4  ;;  %s271_s18 = sshll.u32 %s16009_s4, 4  ;;  %s247_s15 = int_to_ptr.vmem [resolvable:$true] %s246_s15  ;;  %s272_s18 = int_to_ptr.hbm [resolvable:$true] %s271_s18 }
   0xa   : > { %p12774_p3 = pnand %p9928_p0, %p233_p2  ;;  %s294_s22 = sshll.u32 %s16011_s6, 4  ;;  %s295_s22 = int_to_ptr.hbm [resolvable:$true] %s294_s22 }
   0xb   : > { %s12689_s23 = smov [#allocation8]   ;;  %s16014_s25 = smov 256  }
   0xc   : > { %p12222_p4 = pneg %p12774_p3  ;;  %s273_s24 = sshll.u32 %s12689_s23, 4  ;;  %s274_s24 = int_to_ptr.vmem [resolvable:$true] %s273_s24 }
   0xd   : > { %s12691_s26 = smov 16   ;;  %s12692_s9 = smov [#allocation11]  }
   0xe   : > { %p12785_p5 = pnand %p12222_p4, %p45_p1  ;;  %s296_s10 = sshll.u32 %s12692_s9, 4  ;;  %s297_s10 = int_to_ptr.vmem [resolvable:$true] %s296_s10 }
   0xf   : > { %s259_s17 = sshll.u32 %s16008_s3, 4  ;;  %s12693_s20 = smov 128   ;;  %s260_s17 = int_to_ptr.hbm [resolvable:$true] %s259_s17 }
  0x10   : > { %12225 = dma.hbm_to_vmem [thread:$0]  (!%p12785_p5), %s245_s11, 8192, %s247_s15, [#allocation6], %s16014_s25, %s16014_s25, %s12691_s26  }
  0x11   : > { %12231 = dma.hbm_to_vmem [thread:$0]  (!%p12785_p5), %s272_s18, 32, %s274_s24, [#allocation9]  }
  0x12   : > { %s12694_s21 = smov 8   ;;  %s12695_s11 = smov [#allocation7]  }
  0x13   : > { %12237 = dma.hbm_to_vmem [thread:$0]  (!%p12785_p5), %s295_s22, 49152, %s297_s10, [#allocation12], %s12693_s20, %s12693_s20, %s12694_s21  }
  0x14   : > { %s261_s15 = sshll.u32 %s12695_s11, 4  ;;  %s283_s18 = sshll.u32 %s16010_s5, 4  ;;  %s262_s15 = int_to_ptr.vmem [resolvable:$true] %s261_s15  ;;  %s284_s18 = int_to_ptr.hbm [resolvable:$true] %s283_s18 }
  0x15   : > { %12228 = dma.hbm_to_vmem [thread:$0]  (!%p12785_p5), %s260_s17, 64, %s262_s15, [#allocation6]  }
  0x16   : > { %s309_s22 = sshll.u32 %s16012_s7, 4  ;;  %s12696_s10 = smov [#allocation10]   ;;  %s310_s22 = int_to_ptr.hbm [resolvable:$true] %s309_s22 }
  0x17   : > { %s285_s14 = sshll.u32 %s12696_s10, 4  ;;  %s12697_s25 = smov [#allocation13]   ;;  %s286_s14 = int_to_ptr.vmem [resolvable:$true] %s285_s14 }
  0x18   : > { %12234 = dma.hbm_to_vmem [thread:$0]  (!%p12785_p5), %s284_s18, 32, %s286_s14, [#allocation9]  }
  0x19   : > { %s311_s16 = sshll.u32 %s12697_s25, 4  ;;  %s12817_s17 = sadd.s32 1, %s12686_s30   ;;  %s312_s16 = int_to_ptr.vmem [resolvable:$true] %s311_s16 }
  0x1a   : > { %12240 = dma.hbm_to_vmem [thread:$0]  (!%p12785_p5), %s310_s22, 32, %s312_s16, [#allocation12]  }
  0x1b   : > { %s28_s20 = ssub.s32 %s12686_s30, %s12817_s17  ;;  %s31_s21 = sadd.s32 1, %s12682_s29 }
  0x1c   : > { %p29_p6 = scmp.eq.s32.totalorder %s28_s20, 0  ;;  %p38_p7 = scmp.ne.s32.totalorder %s12682_s29, %s12678_s28 }
  0x1d   : > { %p39_p8 = scmp.eq.s32.totalorder %s12686_s30, 0  ;;  %p44_p9 = scmp.ne.s32.totalorder %s12678_s28, %s12674_s27 }
  0x1e   : > { %s12828_s11 = scalar_select %p29_p6, %s12682_s29, %s31_s21  }
  0x1f   : > { %p12832_p10 = por %p45_p1, %p44_p9  ;;  %p12251_p11 = scmp.lt.s32.totalorder %s12686_s30, 2 }
  0x20   : > { %s322_s23 = sand.u32 1, %s12682_s29   ;;  %s11745_s19 = sshll.u32 %s12686_s30, 7 }
  0x21   : > { %p40_p12 = por %p39_p8, %p38_p7  ;;  %s9936_s18 = sshll.u32 %s322_s23, 7 }
  0x22   : > { %s331_s22 = scalar_lea.hbm %s16005_s0, %s11745_s19  ;;  %s326_s14 = scalar_lea.vmem [#allocation3], %s9936_s18 }
  0x23   : > { %s332_s10 = sshll.u32 %s331_s22, 4  ;;  %s334_s25 = sshll.u32 %s326_s14, 4  ;;  %s333_s10 = int_to_ptr.hbm [resolvable:$true] %s332_s10  ;;  %s335_s25 = int_to_ptr.vmem [resolvable:$true] %s334_s25 }
  0x24   : > { %p12842_p13 = pnand %p12251_p11, %p40_p12  ;;  %s323_s16 = scalar_lea.sflag [#allocation4], %s322_s23 }
  0x25   : > { %s12610_s20 = sshra.s32 %s333_s10, 4  ;;  %s12617_s18 = scalar_lea.hbm %s16005_s0, 256  ;;  %s12611_s20 = int_to_ptr.hbm [resolvable:$true] %s12610_s20 }
  0x26   : > { %s12612_s30 = scalar_lea.hbm %s12611_s20, 128  ;;  %p12614_p2 = pneg %p12842_p13 }
  0x27   : > { %p12613_p0 = scmp.ne.s32.totalorder %s12611_s20, %s12612_s30  ;;  %p12618_p6 = scmp.lt.s32.totalorder %s12611_s20, %s16005_s0 }
  0x28   : > { %p12619_p7 = scmp.lt.s32.totalorder %s12617_s18, %s12612_s30 }
  0x29   : > { %p12615_p4 = pnand %p12614_p2, %p12613_p0 }
  0x2a   : > { %p12620_p8 = por %p12619_p7, %p12618_p6 }
  0x2b   : > { %p12616_p5 = pneg %p12615_p4 }
  0x2d   : > { %p12621_p9 = pnand %p12620_p8, %p12616_p5 }
  0x2f   : > { %12624 = shalt.err (!%p12621_p9)
}
  0x30   : > { %s16021_s23 = smov 256   ;;  %354 = sbr.rel (%p12774_p3) target bundleno = 2230 (0x8b6), region = 52 }
  0x31   : > { %12244 = dma.hbm_to_vmem [thread:$0]  (!%p12842_p13), %s333_s10, 2048, %s335_s25, %s323_s16, %s16021_s23, %s16021_s23, %s12691_s26  }
  0x35   : > { %s356_s22 = sand.u32 1, %s12678_s28  }
  0x36   : > { %s9940_s14 = sshll.u32 %s356_s22, 7  ;;  %s357_s21 = scalar_lea.sflag [#allocation4], %s356_s22 }
  0x37   : > { %s12862_s19 = scalar_lea.vmem [#allocation3], %s9940_s14 }
  0x38   : > { %12657 = dma.done.wait (%p12832_p10), %s357_s21, 2048  }
  0x39   : > { %12659 = vsyncadd (%p12832_p10), %s357_s21, 4294965248 }
  0x3a   : > { %12661 = dma.done.wait (%p45_p1), [#allocation6], 8256  }
  0x3b   : > { %12663 = vsyncadd (%p45_p1), [#allocation6], 4294959040 }
  0x3c   : > { %12665 = dma.done.wait (%p45_p1), [#allocation9], 64  }
  0x3d   : > { %12667 = vsyncadd (%p45_p1), [#allocation9], 4294967232 }
  0x3e   : > { %12669 = dma.done.wait (%p45_p1), [#allocation12], 49184  }
  0x3f   : > { %12671 = vsyncadd (%p45_p1), [#allocation12], 4294918112  ;;  %v10065_v0 = vld [vmem:[#allocation5 + $0xe0] sm:$0xf]  ;;  %v11778_v1 = vld [vmem:[#allocation5 + $0xec] sm:$0xf0] }
  0x40   : > { %v10193_v2 = vld [vmem:[#allocation5 + $0x1e0] sm:$0xf]  ;;  %v10066_v3 = vor.u32 %v11778_v1, %v10065_v0  ;;  %v11810_v4 = vld [vmem:[#allocation5 + $0x1ec] sm:$0xf0]  ;;  %v11776_v5 = vld [vmem:[#allocation5 + $0xe4] sm:$0xf] }
  0x41   : > { %v10067_v6 = vld [vmem:[#allocation5 + $0xf0] sm:$0xf0]  ;;  %v10194_v7 = vor.u32 %v11810_v4, %v10193_v2  ;;  %v11808_v9 = vld [vmem:[#allocation5 + $0x1e4] sm:$0xf]  ;;  %v10049_v11 = vld [vmem:[#allocation5 + $0xc0] sm:$0xf] }
  0x42   : > { %v10070_v8 = vor.u32 %v11776_v5, %v10067_v6  ;;  %v10195_v10 = vld [vmem:[#allocation5 + $0x1f0] sm:$0xf0]  ;;  %857 = vmatpush.bf16.msra.mxu0 %v10066_v3  ;;  %v11774_v13 = vld [vmem:[#allocation5 + $0xcc] sm:$0xf0]  ;;  %v10177_v14 = vld [vmem:[#allocation5 + $0x1c0] sm:$0xf] }
  0x43   : > { %v10198_v12 = vor.u32 %v11808_v9, %v10195_v10  ;;  %v11806_v15 = vld [vmem:[#allocation5 + $0x1cc] sm:$0xf0]  ;;  %886 = vmatpush.bf16.msra.mxu1 %v10194_v7  ;;  %v10050_v16 = vor.u32 %v11774_v13, %v10049_v11  ;;  %v11772_v18 = vld [vmem:[#allocation5 + $0xc4] sm:$0xf]  ;;  %v10051_v19 = vld [vmem:[#allocation5 + $0xd0] sm:$0xf0] }
  0x44   : > { %915 = vmatpush.bf16.msra.mxu2 %v10070_v8  ;;  %v10178_v17 = vor.u32 %v11806_v15, %v10177_v14  ;;  %v11804_v20 = vld [vmem:[#allocation5 + $0x1c4] sm:$0xf]  ;;  %v10054_v21 = vor.u32 %v11772_v18, %v10051_v19  ;;  %v10179_v22 = vld [vmem:[#allocation5 + $0x1d0] sm:$0xf0]  ;;  %v10033_v23 = vld [vmem:[#allocation5 + $0xa0] sm:$0xf] }
  0x45   : > { %944 = vmatpush.bf16.msra.mxu3 %v10198_v12  ;;  %v11770_v24 = vld [vmem:[#allocation5 + $0xac] sm:$0xf0]  ;;  %v10182_v25 = vor.u32 %v11804_v20, %v10179_v22  ;;  %v10161_v26 = vld [vmem:[#allocation5 + $0x1a0] sm:$0xf]  ;;  %v11768_v28 = vld [vmem:[#allocation5 + $0xa4] sm:$0xf] }
  0x46   : > { %v11802_v27 = vld [vmem:[#allocation5 + $0x1ac] sm:$0xf0]  ;;  %858 = vmatpush.bf16.msra.mxu0 %v10050_v16  ;;  %v10034_v29 = vor.u32 %v11770_v24, %v10033_v23  ;;  %v10035_v30 = vld [vmem:[#allocation5 + $0xb0] sm:$0xf0]  ;;  %v11800_v31 = vld [vmem:[#allocation5 + $0x1a4] sm:$0xf] }
  0x47   : > { %v10163_v32 = vld [vmem:[#allocation5 + $0x1b0] sm:$0xf0]  ;;  %887 = vmatpush.bf16.msra.mxu1 %v10178_v17  ;;  %v10162_v33 = vor.u32 %v11802_v27, %v10161_v26  ;;  %v10038_v34 = vor.u32 %v11768_v28, %v10035_v30  ;;  %v10017_v35 = vld [vmem:[#allocation5 + $0x80] sm:$0xf]  ;;  %v11766_v36 = vld [vmem:[#allocation5 + $0x8c] sm:$0xf0] }
  0x48   : > { %916 = vmatpush.bf16.msra.mxu2 %v10054_v21  ;;  %v10145_v37 = vld [vmem:[#allocation5 + $0x180] sm:$0xf]  ;;  %v10166_v38 = vor.u32 %v11800_v31, %v10163_v32  ;;  %v11798_v39 = vld [vmem:[#allocation5 + $0x18c] sm:$0xf0]  ;;  %v11764_v40 = vld [vmem:[#allocation5 + $0x84] sm:$0xf]  ;;  %v10018_v44 = vor.u32 %v11766_v36, %v10017_v35 }
  0x49   : > { %945 = vmatpush.bf16.msra.mxu3 %v10182_v25  ;;  %v10019_v41 = vld [vmem:[#allocation5 + $0x90] sm:$0xf0]  ;;  %v11796_v42 = vld [vmem:[#allocation5 + $0x184] sm:$0xf]  ;;  %v10146_v45 = vor.u32 %v11798_v39, %v10145_v37  ;;  %v10001_v47 = vld [vmem:[#allocation5 + $0x60] sm:$0xf] }
  0x4a   : > { %v10147_v43 = vld [vmem:[#allocation5 + $0x190] sm:$0xf0]  ;;  %859 = vmatpush.bf16.msra.mxu0 %v10034_v29  ;;  %v10022_v46 = vor.u32 %v11764_v40, %v10019_v41  ;;  %v11762_v48 = vld [vmem:[#allocation5 + $0x6c] sm:$0xf0]  ;;  %v10129_v49 = vld [vmem:[#allocation5 + $0x160] sm:$0xf] }
  0x4b   : > { %888 = vmatpush.bf16.msra.mxu1 %v10162_v33  ;;  %v10150_v50 = vor.u32 %v11796_v42, %v10147_v43  ;;  %v11794_v51 = vld [vmem:[#allocation5 + $0x16c] sm:$0xf0]  ;;  %v11760_v52 = vld [vmem:[#allocation5 + $0x64] sm:$0xf]  ;;  %v10003_v53 = vld [vmem:[#allocation5 + $0x70] sm:$0xf0]  ;;  %v10002_v56 = vor.u32 %v11762_v48, %v10001_v47 }
  0x4c   : > { %917 = vmatpush.bf16.msra.mxu2 %v10038_v34  ;;  %v11792_v54 = vld [vmem:[#allocation5 + $0x164] sm:$0xf]  ;;  %v10131_v55 = vld [vmem:[#allocation5 + $0x170] sm:$0xf0]  ;;  %v10130_v57 = vor.u32 %v11794_v51, %v10129_v49  ;;  %v10006_v58 = vor.u32 %v11760_v52, %v10003_v53  ;;  %v9985_v59 = vld [vmem:[#allocation5 + $0x40] sm:$0xf] }
  0x4d   : > { %946 = vmatpush.bf16.msra.mxu3 %v10166_v38  ;;  %v11758_v60 = vld [vmem:[#allocation5 + $0x4c] sm:$0xf0]  ;;  %v10113_v61 = vld [vmem:[#allocation5 + $0x140] sm:$0xf]  ;;  %v10134_v62 = vor.u32 %v11792_v54, %v10131_v55  ;;  %v11756_v0 = vld [vmem:[#allocation5 + $0x44] sm:$0xf] }
  0x4e   : > { %860 = vmatpush.bf16.msra.mxu0 %v10018_v44  ;;  %v11790_v63 = vld [vmem:[#allocation5 + $0x14c] sm:$0xf0]  ;;  %v9987_v1 = vld [vmem:[#allocation5 + $0x50] sm:$0xf0]  ;;  %v11788_v2 = vld [vmem:[#allocation5 + $0x144] sm:$0xf]  ;;  %v9986_v4 = vor.u32 %v11758_v60, %v9985_v59 }
  0x4f   : > { %889 = vmatpush.bf16.msra.mxu1 %v10146_v45  ;;  %v10115_v3 = vld [vmem:[#allocation5 + $0x150] sm:$0xf0]  ;;  %v10114_v5 = vor.u32 %v11790_v63, %v10113_v61  ;;  %v9990_v6 = vor.u32 %v11756_v0, %v9987_v1  ;;  %v9969_v7 = vld [vmem:[#allocation5 + $0x20] sm:$0xf]  ;;  %v11754_v8 = vld [vmem:[#allocation5 + $0x2c] sm:$0xf0] }
  0x50   : > { %918 = vmatpush.bf16.msra.mxu2 %v10022_v46  ;;  %v10097_v9 = vld [vmem:[#allocation5 + $0x120] sm:$0xf]  ;;  %v10118_v10 = vor.u32 %v11788_v2, %v10115_v3  ;;  %v11786_v11 = vld [vmem:[#allocation5 + $0x12c] sm:$0xf0]  ;;  %v11752_v12 = vld [vmem:[#allocation5 + $0x24] sm:$0xf]  ;;  %v9970_v16 = vor.u32 %v11754_v8, %v9969_v7 }
  0x51   : > { %947 = vmatpush.bf16.msra.mxu3 %v10150_v50  ;;  %v9971_v13 = vld [vmem:[#allocation5 + $0x30] sm:$0xf0]  ;;  %v11784_v14 = vld [vmem:[#allocation5 + $0x124] sm:$0xf]  ;;  %v9953_v17 = vld [vmem:[#allocation5] sm:$0xf]  ;;  %v10098_v19 = vor.u32 %v11786_v11, %v10097_v9 }
  0x52   : > { %861 = vmatpush.bf16.msra.mxu0 %v10002_v56  ;;  %v10099_v15 = vld [vmem:[#allocation5 + $0x130] sm:$0xf0]  ;;  %v11750_v18 = vld [vmem:[#allocation5 + $0xc] sm:$0xf0]  ;;  %v9974_v20 = vor.u32 %v11752_v12, %v9971_v13  ;;  %v10081_v21 = vld [vmem:[#allocation5 + $0x100] sm:$0xf] }
  0x53   : > { %890 = vmatpush.bf16.msra.mxu1 %v10130_v57  ;;  %v11782_v22 = vld [vmem:[#allocation5 + $0x10c] sm:$0xf0]  ;;  %v11748_v23 = vld [vmem:[#allocation5 + $0x4] sm:$0xf]  ;;  %v10102_v24 = vor.u32 %v11784_v14, %v10099_v15  ;;  %v9955_v25 = vld [vmem:[#allocation5 + $0x10] sm:$0xf0]  ;;  %v9954_v31 = vor.u32 %v11750_v18, %v9953_v17 }
  0x54   : > { %919 = vmatpush.bf16.msra.mxu2 %v10006_v58  ;;  %v11780_v26 = vld [vmem:[#allocation5 + $0x104] sm:$0xf]  ;;  %v10083_v27 = vld [vmem:[#allocation5 + $0x110] sm:$0xf0]  ;;  %v10073_v29 = vld [vmem:[#allocation5 + $0xe8] sm:$0xf]  ;;  %v10082_v35 = vor.u32 %v11782_v22, %v10081_v21  ;;  %v9958_v36 = vor.u32 %v11748_v23, %v9955_v25 }
  0x55   : > { %948 = vmatpush.bf16.msra.mxu3 %v10134_v62  ;;  %v439_v28 = vld [vmem:[%s12862_s19] sm:$0xff]  ;;  %v11779_v30 = vld [vmem:[#allocation5 + $0xf4] sm:$0xf0]  ;;  %v441_v32 = vld [vmem:[%s12862_s19 + $0x10] sm:$0xff]  ;;  %v10086_v39 = vor.u32 %v11780_v26, %v10083_v27  ;;  %p429_p1 = scmp.lt.s32.totalorder %s12769_s12, 1  ;;  %vm2534_vm1 = vcmask 1046528  }
  0x56   : > { %862 = vmatpush.bf16.msra.mxu0 %v9986_v4  ;;  %v10201_v33 = vld [vmem:[#allocation5 + $0x1e8] sm:$0xf]  ;;  %v11811_v34 = vld [vmem:[#allocation5 + $0x1f4] sm:$0xf0]  ;;  %v10074_v40 = vor.u32 %v11779_v30, %v10073_v29  ;;  %v12884_v41 = vpack.c.bf16 %v441_v32, %v439_v28  ;;  %v11777_v49 = vld [vmem:[#allocation5 + $0xec] sm:$0xf] }
  0x57   : > { %891 = vmatpush.bf16.msra.mxu1 %v10114_v5  ;;  %v440_v37 = vld [vmem:[%s12862_s19 + $0x8] sm:$0xff]  ;;  %v442_v38 = vld [vmem:[%s12862_s19 + $0x18] sm:$0xff]  ;;  %v10202_v42 = vor.u32 %v11811_v34, %v10201_v33  ;;  %s16038_s12 = smov (!%p429_p1, %s12769_s12), 1 }
  0x58   : > { %920 = vmatpush.bf16.msra.mxu2 %v9990_v6  ;;  %v10057_v43 = vld [vmem:[#allocation5 + $0xc8] sm:$0xf]  ;;  %v11775_v44 = vld [vmem:[#allocation5 + $0xd4] sm:$0xf0]  ;;  %v12886_v45 = vpack.c.bf16 %v442_v38, %v440_v37  ;;  %v10075_v50 = vld [vmem:[#allocation5 + $0xf8] sm:$0xf0] }
  0x59   : > { %949 = vmatpush.bf16.msra.mxu3 %v10118_v10  ;;  %v10185_v46 = vld [vmem:[#allocation5 + $0x1c8] sm:$0xf]  ;;  %v11807_v47 = vld [vmem:[#allocation5 + $0x1d4] sm:$0xf0]  ;;  %v10058_v48 = vor.u32 %v11775_v44, %v10057_v43  ;;  %v10078_v54 = vor.u32 %v11777_v49, %v10075_v50  ;;  %v11809_v57 = vld [vmem:[#allocation5 + $0x1ec] sm:$0xf] }
  0x5a   : > { %863 = vmatpush.bf16.msra.mxu0 %v9970_v16  ;;  %v10186_v51 = vor.u32 %v11807_v47, %v10185_v46  ;;  %v10041_v52 = vld [vmem:[#allocation5 + $0xa8] sm:$0xf]  ;;  %v11771_v53 = vld [vmem:[#allocation5 + $0xb4] sm:$0xf0]  ;;  %v10203_v59 = vld [vmem:[#allocation5 + $0x1f8] sm:$0xf0] }
  0x5b   : > { %892 = vmatpush.bf16.msra.mxu1 %v10098_v19  ;;  %v10169_v55 = vld [vmem:[#allocation5 + $0x1a8] sm:$0xf]  ;;  %v11803_v56 = vld [vmem:[#allocation5 + $0x1b4] sm:$0xf0]  ;;  %v10042_v60 = vor.u32 %v11771_v53, %v10041_v52  ;;  %v10206_v61 = vor.u32 %v11809_v57, %v10203_v59  ;;  %v11773_v62 = vld [vmem:[#allocation5 + $0xcc] sm:$0xf] }
  0x5c   : > { %921 = vmatpush.bf16.msra.mxu2 %v9974_v20  ;;  %v10025_v58 = vld [vmem:[#allocation5 + $0x88] sm:$0xf]  ;;  %v10059_v63 = vld [vmem:[#allocation5 + $0xd8] sm:$0xf0]  ;;  %v11805_v0 = vld [vmem:[#allocation5 + $0x1cc] sm:$0xf]  ;;  %v10170_v1 = vor.u32 %v11803_v56, %v10169_v55 }
  0x5d   : > { %950 = vmatpush.bf16.msra.mxu3 %v10102_v24  ;;  %v11767_v2 = vld [vmem:[#allocation5 + $0x94] sm:$0xf0]  ;;  %v10153_v3 = vld [vmem:[#allocation5 + $0x188] sm:$0xf]  ;;  %v10062_v4 = vor.u32 %v11773_v62, %v10059_v63  ;;  %v10187_v5 = vld [vmem:[#allocation5 + $0x1d8] sm:$0xf0] }
  0x5e   : > { %864 = vmatpush.bf16.msra.mxu0 %v9954_v31  ;;  %v11799_v6 = vld [vmem:[#allocation5 + $0x194] sm:$0xf0]  ;;  %v10190_v7 = vor.u32 %v11805_v0, %v10187_v5  ;;  %v11769_v8 = vld [vmem:[#allocation5 + $0xac] sm:$0xf]  ;;  %v10043_v9 = vld [vmem:[#allocation5 + $0xb8] sm:$0xf0]  ;;  %v10026_v13 = vor.u32 %v11767_v2, %v10025_v58 }
  0x5f   : > { %893 = vmatpush.bf16.msra.mxu1 %v10082_v35  ;;  %v10046_v10 = vor.u32 %v11769_v8, %v10043_v9  ;;  %v11801_v11 = vld [vmem:[#allocation5 + $0x1ac] sm:$0xf]  ;;  %v10171_v12 = vld [vmem:[#allocation5 + $0x1b8] sm:$0xf0]  ;;  %v443_v16 = vld [vmem:[%s12862_s19 + $0x20] sm:$0xff]  ;;  %v10154_v17 = vor.u32 %v11799_v6, %v10153_v3  ;;  %s11746_s13 = sshll.u32 %s16038_s12, 8 }
  0x60   : > { %922 = vmatpush.bf16.msra.mxu2 %v9958_v36  ;;  %v11765_v14 = vld [vmem:[#allocation5 + $0x8c] sm:$0xf]  ;;  %v10027_v15 = vld [vmem:[#allocation5 + $0x98] sm:$0xf0]  ;;  %v10009_v18 = vld [vmem:[#allocation5 + $0x68] sm:$0xf]  ;;  %v10174_v23 = vor.u32 %v11801_v11, %v10171_v12  ;;  %s12953_s10 = scalar_lea.vmem %s16006_s1, %s11746_s13  ;;  %s15015_s16 = scalar_lea.vmem %s16013_s8, %s11746_s13 }
  0x61   : > { %951 = vmatpush.bf16.msra.mxu3 %v10086_v39  ;;  %865 = vmatmul.bf16.vlgmr.msra.gmra.mxu0 %v12884_v41  ;;  %v11763_v19 = vld [vmem:[#allocation5 + $0x74] sm:$0xf0]  ;;  %v445_v20 = vld [vmem:[%s12862_s19 + $0x30] sm:$0xff]  ;;  %v10137_v21 = vld [vmem:[#allocation5 + $0x168] sm:$0xf]  ;;  %v10030_v26 = vor.u32 %v11765_v14, %v10027_v15 }
  0x62   : > { %973 = vmatpush.bf16.msrb.mxu0 %v10074_v40  ;;  %894 = vmatmul.bf16.vlgmr.msra.gmra.mxu1 %v12886_v45  ;;  %v11795_v22 = vld [vmem:[#allocation5 + $0x174] sm:$0xf0]  ;;  %v444_v24 = vld [vmem:[%s12862_s19 + $0x28] sm:$0xff]  ;;  %v10010_v27 = vor.u32 %v11763_v19, %v10009_v18  ;;  %v12896_v29 = vpack.c.bf16 %v445_v20, %v443_v16  ;;  %v10155_v33 = vld [vmem:[#allocation5 + $0x198] sm:$0xf0] }
  0x63   : > { %1002 = vmatpush.bf16.msrb.mxu1 %v10202_v42  ;;  %923 = vmatmul.bf16.vlgmr.msra.gmra.mxu2 %v12884_v41  ;;  %v446_v25 = vld [vmem:[%s12862_s19 + $0x38] sm:$0xff]  ;;  %v9993_v28 = vld [vmem:[#allocation5 + $0x48] sm:$0xf]  ;;  %v10138_v30 = vor.u32 %v11795_v22, %v10137_v21  ;;  %v11797_v32 = vld [vmem:[#allocation5 + $0x18c] sm:$0xf] }
  0x64   : > { %952 = vmatmul.bf16.vlgmr.msra.gmra.mxu3 %v12886_v45  ;;  %1031 = vmatpush.bf16.msrb.mxu2 %v10078_v54  ;;  %v11759_v31 = vld [vmem:[#allocation5 + $0x54] sm:$0xf0]  ;;  %v12898_v34 = vpack.c.bf16 %v446_v25, %v444_v24  ;;  %v10121_v35 = vld [vmem:[#allocation5 + $0x148] sm:$0xf]  ;;  %v10158_v38 = vor.u32 %v11797_v32, %v10155_v33  ;;  %v11761_v39 = vld [vmem:[#allocation5 + $0x6c] sm:$0xf] }
  0x65   : > { %1060 = vmatpush.bf16.msrb.mxu3 %v10206_v61  ;;  %v11791_v36 = vld [vmem:[#allocation5 + $0x154] sm:$0xf0]  ;;  %v9994_v37 = vor.u32 %v11759_v31, %v9993_v28  ;;  %v10011_v40 = vld [vmem:[#allocation5 + $0x78] sm:$0xf0]  ;;  %v9977_v44 = vld [vmem:[#allocation5 + $0x28] sm:$0xf] }
  0x66   : > { %974 = vmatpush.bf16.msrb.mxu0 %v10058_v48  ;;  %v10122_v42 = vor.u32 %v11791_v36, %v10121_v35  ;;  %v10014_v43 = vor.u32 %v11761_v39, %v10011_v40  ;;  %v11755_v46 = vld [vmem:[#allocation5 + $0x34] sm:$0xf0]  ;;  %v11793_v47 = vld [vmem:[#allocation5 + $0x16c] sm:$0xf]  ;;  %v10105_v48 = vld [vmem:[#allocation5 + $0x128] sm:$0xf] }
  0x67   : > { %1003 = vmatpush.bf16.msrb.mxu1 %v10186_v51  ;;  %v11787_v49 = vld [vmem:[#allocation5 + $0x134] sm:$0xf0]  ;;  %v10139_v50 = vld [vmem:[#allocation5 + $0x178] sm:$0xf0]  ;;  %v9978_v51 = vor.u32 %v11755_v46, %v9977_v44  ;;  %v11757_v53 = vld [vmem:[#allocation5 + $0x4c] sm:$0xf] }
  0x68   : > { %1032 = vmatpush.bf16.msrb.mxu2 %v10062_v4  ;;  %v10142_v52 = vor.u32 %v11793_v47, %v10139_v50  ;;  %v9995_v54 = vld [vmem:[#allocation5 + $0x58] sm:$0xf0]  ;;  %v11789_v55 = vld [vmem:[#allocation5 + $0x14c] sm:$0xf]  ;;  %v10106_v56 = vor.u32 %v11787_v49, %v10105_v48  ;;  %v9961_v59 = vld [vmem:[#allocation5 + $0x8] sm:$0xf] }
  0x69   : > { %1061 = vmatpush.bf16.msrb.mxu3 %v10190_v7  ;;  %v9998_v57 = vor.u32 %v11757_v53, %v9995_v54  ;;  %v10123_v58 = vld [vmem:[#allocation5 + $0x158] sm:$0xf0]  ;;  %v11753_v61 = vld [vmem:[#allocation5 + $0x2c] sm:$0xf]  ;;  %v10089_v63 = vld [vmem:[#allocation5 + $0x108] sm:$0xf] }
  0x6a   : > { %975 = vmatpush.bf16.msrb.mxu0 %v10042_v60  ;;  %v11751_v60 = vld [vmem:[#allocation5 + $0x14] sm:$0xf0]  ;;  %v9979_v62 = vld [vmem:[#allocation5 + $0x38] sm:$0xf0]  ;;  %v10126_v2 = vor.u32 %v11789_v55, %v10123_v58  ;;  %v11749_v4 = vld [vmem:[#allocation5 + $0xc] sm:$0xf] }
  0x6b   : > { %1004 = vmatpush.bf16.msrb.mxu1 %v10170_v1  ;;  %v9982_v0 = vor.u32 %v11753_v61, %v9979_v62  ;;  %v11783_v1 = vld [vmem:[#allocation5 + $0x114] sm:$0xf0]  ;;  %v9962_v3 = vor.u32 %v11751_v60, %v9961_v59  ;;  %v9963_v5 = vld [vmem:[#allocation5 + $0x18] sm:$0xf0]  ;;  %v11785_v7 = vld [vmem:[#allocation5 + $0x12c] sm:$0xf] }
  0x6c   : > { %1033 = vmatpush.bf16.msrb.mxu2 %v10046_v10  ;;  %v10090_v6 = vor.u32 %v11783_v1, %v10089_v63  ;;  %v10107_v8 = vld [vmem:[#allocation5 + $0x138] sm:$0xf0]  ;;  %v447_v9 = vld [vmem:[%s12862_s19 + $0x40] sm:$0xff]  ;;  %v449_v10 = vld [vmem:[%s12862_s19 + $0x50] sm:$0xff] }
  0x6d   : > { %1062 = vmatpush.bf16.msrb.mxu3 %v10174_v23  ;;  %v448_v11 = vld [vmem:[%s12862_s19 + $0x48] sm:$0xff]  ;;  %v450_v12 = vld [vmem:[%s12862_s19 + $0x58] sm:$0xff]  ;;  %v10110_v14 = vor.u32 %v11785_v7, %v10107_v8  ;;  %v12908_v15 = vpack.c.bf16 %v449_v10, %v447_v9  ;;  %v451_v20 = vld [vmem:[%s12862_s19 + $0x60] sm:$0xff] }
  0x6e   : > { %976 = vmatpush.bf16.msrb.mxu0 %v10026_v13  ;;  %v9966_v13 = vor.u32 %v11749_v4, %v9963_v5  ;;  %v11781_v16 = vld [vmem:[#allocation5 + $0x10c] sm:$0xf]  ;;  %v12910_v18 = vpack.c.bf16 %v450_v12, %v448_v11  ;;  %v453_v21 = vld [vmem:[%s12862_s19 + $0x70] sm:$0xff]  ;;  %v454_v23 = vld [vmem:[%s12862_s19 + $0x78] sm:$0xff] }
  0x6f   : > { %1005 = vmatpush.bf16.msrb.mxu1 %v10154_v17  ;;  %v10091_v17 = vld [vmem:[#allocation5 + $0x118] sm:$0xf0]  ;;  %v452_v22 = vld [vmem:[%s12862_s19 + $0x68] sm:$0xff]  ;;  %v12920_v24 = vpack.c.bf16 %v453_v21, %v451_v20  ;;  %v10329_v28 = vld [vmem:[#allocation11 + $0x1f0] sm:$0xf] }
  0x70   : > { %1034 = vmatpush.bf16.msrb.mxu2 %v10030_v26  ;;  %v10094_v19 = vor.u32 %v11781_v16, %v10091_v17  ;;  %v12922_v25 = vpack.c.bf16 %v454_v23, %v452_v22  ;;  %v10265_v26 = vld [vmem:[#allocation11 + $0x170] sm:$0xf]  ;;  %v11875_v31 = vld [vmem:[#allocation11 + $0x1f4] sm:$0xf0]  ;;  %v11858_v32 = vld [vmem:[#allocation11 + $0x174] sm:$0xf] }
  0x71   : > { %870 = vmatmul.bf16.gmra.mxu0 %v12896_v29  ;;  %1063 = vmatpush.bf16.msrb.mxu3 %v10158_v38  ;;  %v10267_v33 = vld [vmem:[#allocation11 + $0x178] sm:$0xf0]  ;;  %v10330_v35 = vor.u32 %v11875_v31, %v10329_v28  ;;  %v10257_v40 = vld [vmem:[#allocation11 + $0x160] sm:$0xf]  ;;  %v11856_v44 = vld [vmem:[#allocation11 + $0x164] sm:$0xf] }
  0x72   : > { %977 = vmatpush.bf16.msrb.mxu0 %v10010_v27  ;;  %899 = vmatmul.bf16.gmra.mxu1 %v12898_v34  ;;  %v11859_v27 = vld [vmem:[#allocation11 + $0x174] sm:$0xf0]  ;;  %v10270_v36 = vor.u32 %v11858_v32, %v10267_v33  ;;  %v10331_v38 = vld [vmem:[#allocation11 + $0x1f8] sm:$0xf0]  ;;  %v10259_v46 = vld [vmem:[#allocation11 + $0x168] sm:$0xf0] }
  0x73   : > { %1006 = vmatpush.bf16.msrb.mxu1 %v10138_v30  ;;  %928 = vmatmul.bf16.gmra.mxu2 %v12896_v29  ;;  %v10266_v30 = vor.u32 %v11859_v27, %v10265_v26  ;;  %v10262_v48 = vor.u32 %v11856_v44, %v10259_v46  ;;  %v11872_v49 = vld [vmem:[#allocation11 + $0x1e4] sm:$0xf]  ;;  %v10323_v50 = vld [vmem:[#allocation11 + $0x1e8] sm:$0xf0]  ;;  %v11855_v53 = vld [vmem:[#allocation11 + $0x154] sm:$0xf0] }
  0x74   : > { %957 = vmatmul.bf16.gmra.mxu3 %v12898_v34  ;;  %1035 = vmatpush.bf16.msrb.mxu2 %v10014_v43  ;;  %v11873_v43 = vld [vmem:[#allocation11 + $0x1e4] sm:$0xf0]  ;;  %v10313_v54 = vld [vmem:[#allocation11 + $0x1d0] sm:$0xf]  ;;  %v10251_v58 = vld [vmem:[#allocation11 + $0x158] sm:$0xf0] }
  0x75   : > { %1064 = vmatpush.bf16.msrb.mxu3 %v10142_v52  ;;  %v10249_v52 = vld [vmem:[#allocation11 + $0x150] sm:$0xf]  ;;  %v11870_v61 = vld [vmem:[#allocation11 + $0x1d4] sm:$0xf]  ;;  %v10315_v62 = vld [vmem:[#allocation11 + $0x1d8] sm:$0xf0] }
  0x76   : > { %978 = vmatpush.bf16.msrb.mxu0 %v9994_v37  ;;  %v11874_v37 = vld [vmem:[#allocation11 + $0x1f4] sm:$0xf]  ;;  %v10250_v55 = vor.u32 %v11855_v53, %v10249_v52  ;;  %v10318_v63 = vor.u32 %v11870_v61, %v10315_v62  ;;  %v11853_v1 = vld [vmem:[#allocation11 + $0x144] sm:$0xf0]  ;;  %v11852_v5 = vld [vmem:[#allocation11 + $0x144] sm:$0xf] }
  0x77   : > { %1007 = vmatpush.bf16.msrb.mxu1 %v10122_v42  ;;  %v10334_v39 = vor.u32 %v11874_v37, %v10331_v38  ;;  %v10321_v42 = vld [vmem:[#allocation11 + $0x1e0] sm:$0xf]  ;;  %v11869_v4 = vld [vmem:[#allocation11 + $0x1c4] sm:$0xf0]  ;;  %v11868_v9 = vld [vmem:[#allocation11 + $0x1c4] sm:$0xf] }
  0x78   : > { %1036 = vmatpush.bf16.msrb.mxu2 %v9998_v57  ;;  %v10322_v47 = vor.u32 %v11873_v43, %v10321_v42  ;;  %v11854_v57 = vld [vmem:[#allocation11 + $0x154] sm:$0xf]  ;;  %v10307_v10 = vld [vmem:[#allocation11 + $0x1c8] sm:$0xf0]  ;;  %v10233_v12 = vld [vmem:[#allocation11 + $0x130] sm:$0xf] }
  0x79   : > { %1065 = vmatpush.bf16.msrb.mxu3 %v10126_v2  ;;  %v10254_v60 = vor.u32 %v11854_v57, %v10251_v58  ;;  %v10305_v2 = vld [vmem:[#allocation11 + $0x1c0] sm:$0xf]  ;;  %v10310_v11 = vor.u32 %v11868_v9, %v10307_v10  ;;  %v12958_v17 = vld [vmem:[#allocation8] sm:$0x3]  ;;  %v12966_v21 = vld [vmem:[#allocation10] sm:$0x3] }
  0x7a   : > { %979 = vmatpush.bf16.msrb.mxu0 %v9978_v51  ;;  %v10326_v51 = vor.u32 %v11872_v49, %v10323_v50  ;;  %v10306_v7 = vor.u32 %v11869_v4, %v10305_v2  ;;  %v1329_v20 = vld [vmem:[%s12953_s10] sm:$0xff]  ;;  %v12971_v23 = vperm.slane %v12966_v21, 0  ;;  %v10297_v27 = vld [vmem:[#allocation11 + $0x1b0] sm:$0xf]  ;;  %v11866_v33 = vld [vmem:[#allocation11 + $0x1b4] sm:$0xf] }
  0x7b   : > { %1008 = vmatpush.bf16.msrb.mxu1 %v10106_v56  ;;  %v11871_v56 = vld [vmem:[#allocation11 + $0x1d4] sm:$0xf0]  ;;  %v10235_v31 = vld [vmem:[#allocation11 + $0x138] sm:$0xf0]  ;;  %v11849_v37 = vld [vmem:[#allocation11 + $0x124] sm:$0xf0] }
  0x7c   : > { %1037 = vmatpush.bf16.msrb.mxu2 %v9982_v0  ;;  %v10314_v59 = vor.u32 %v11871_v56, %v10313_v54  ;;  %v10241_v0 = vld [vmem:[#allocation11 + $0x140] sm:$0xf]  ;;  %v11867_v28 = vld [vmem:[#allocation11 + $0x1b4] sm:$0xf0]  ;;  %v11848_v42 = vld [vmem:[#allocation11 + $0x124] sm:$0xf] }
  0x7d   : > { %1066 = vmatpush.bf16.msrb.mxu3 %v10110_v14  ;;  %v1106_v14 = vlaneseq  ;;  %v11864_v44 = vld [vmem:[#allocation11 + $0x1a4] sm:$0xf]  ;;  %v10291_v46 = vld [vmem:[#allocation11 + $0x1a8] sm:$0xf0]  ;;  %v11847_v49 = vld [vmem:[#allocation11 + $0x114] sm:$0xf0] }
  0x7e   : > { %980 = vmatpush.bf16.msrb.mxu0 %v9962_v3  ;;  %v10242_v3 = vor.u32 %v11853_v1, %v10241_v0  ;;  %v11863_v52 = vld [vmem:[#allocation11 + $0x194] sm:$0xf0]  ;;  %v11846_v54 = vld [vmem:[#allocation11 + $0x114] sm:$0xf]  ;;  %v10283_v57 = vld [vmem:[#allocation11 + $0x198] sm:$0xf0] }
  0x7f   : > { %1009 = vmatpush.bf16.msrb.mxu1 %v10090_v6  ;;  %v10243_v6 = vld [vmem:[#allocation11 + $0x148] sm:$0xf0]  ;;  %vm12943_vm0 = vcmp.lt.s32.totalorder %v1106_v14, 512  ;;  %v13024_v58 = vld [vmem:[#allocation7] sm:$0xf]  ;;  %v1330_v14 = vld [vmem:[%s12953_s10 + $0x8] sm:$0xff] }
  0x80   : > { %1038 = vmatpush.bf16.msrb.mxu2 %v9966_v13  ;;  %v10246_v8 = vor.u32 %v11852_v5, %v10243_v6  ;;  %v11851_v13 = vld [vmem:[#allocation11 + $0x134] sm:$0xf0]  ;;  %v10273_v62 = vld [vmem:[#allocation11 + $0x180] sm:$0xf]  ;;  %v11844_v1 = vld [vmem:[#allocation11 + $0x104] sm:$0xf] }
  0x81   : > { %875 = vmatmul.bf16.gmra.mxu0 %v12908_v15  ;;  %1067 = vmatpush.bf16.msrb.mxu3 %v10094_v19  ;;  %v12962_v19 = vperm.slane %v12958_v17, 0  ;;  %v13042_v2 = vperm.slane %v13024_v58, 0  ;;  %v11860_v5 = vld [vmem:[#allocation11 + $0x184] sm:$0xf]  ;;  %v10275_v6 = vld [vmem:[#allocation11 + $0x188] sm:$0xf0] }
  0x82   : > { %904 = vmatmul.bf16.gmra.mxu1 %v12910_v18  ;;  %1854 = vmatpush.bf16.msra.mxu0 %v10266_v30  ;;  %v11850_v30 = vld [vmem:[#allocation11 + $0x134] sm:$0xf] }
  0x83   : > { %933 = vmatmul.bf16.gmra.mxu2 %v12908_v15  ;;  %1903 = vmatpush.bf16.msra.mxu1 %v10330_v35  ;;  %v1367_v22 = vmul.f32 %v12962_v19, %v1329_v20  ;;  %v10238_v32 = vor.u32 %v11850_v30, %v10235_v31  ;;  %v10299_v35 = vld [vmem:[#allocation11 + $0x1b8] sm:$0xf0] }
  0x84   : > { %962 = vmatmul.bf16.gmra.mxu3 %v12910_v18  ;;  %1952 = vmatpush.bf16.msra.mxu2 %v10270_v36  ;;  %v10225_v36 = vld [vmem:[#allocation11 + $0x120] sm:$0xf] }
  0x85   : > { %2001 = vmatpush.bf16.msra.mxu3 %v10334_v39  ;;  %v12979_v26 = vadd.f32 %v12971_v23, %v1367_v22  ;;  %v10226_v38 = vor.u32 %v11849_v37, %v10225_v36  ;;  %v10289_v39 = vld [vmem:[#allocation11 + $0x1a0] sm:$0xf] }
  0x87   : > { %1904 = vmatpush.bf16.msra.mxu1 %v10322_v47  ;;  %v10294_v47 = vor.u32 %v11864_v44, %v10291_v46 }
  0x88   : > { %1953 = vmatpush.bf16.msra.mxu2 %v10262_v48  ;;  %v10217_v48 = vld [vmem:[#allocation11 + $0x110] sm:$0xf] }
  0x89   : > { %2002 = vmatpush.bf16.msra.mxu3 %v10326_v51  ;;  %v10218_v50 = vor.u32 %v11847_v49, %v10217_v48  ;;  %v10281_v51 = vld [vmem:[#allocation11 + $0x190] sm:$0xf] }
  0x8a   : > { %v10282_v53 = vor.u32 %v11863_v52, %v10281_v51 }
  0x8b   : > { %1905 = vmatpush.bf16.msra.mxu1 %v10314_v59  ;;  %v10209_v59 = vld [vmem:[#allocation11 + $0x100] sm:$0xf] }
  0x8c   : > { %1954 = vmatpush.bf16.msra.mxu2 %v10254_v60  ;;  %v11845_v60 = vld [vmem:[#allocation11 + $0x104] sm:$0xf0] }
  0x8d   : > { %2003 = vmatpush.bf16.msra.mxu3 %v10318_v63  ;;  %v10210_v61 = vor.u32 %v11845_v60, %v10209_v59  ;;  %v11861_v63 = vld [vmem:[#allocation11 + $0x184] sm:$0xf0] }
  0x8e   : > { %v10274_v0 = vor.u32 %v11861_v63, %v10273_v62 }
  0x8f   : > { %1906 = vmatpush.bf16.msra.mxu1 %v10306_v7 }
  0x90   : > { %1955 = vmatpush.bf16.msra.mxu2 %v10246_v8  ;;  %v10278_v8 = vor.u32 %v11860_v5, %v10275_v6 }
  0x91   : > { %880 = vmatmul.bf16.gmra.mxu0 %v12920_v24  ;;  %2004 = vmatpush.bf16.msra.mxu3 %v10310_v11 }
  0x92   : > { %909 = vmatmul.bf16.gmra.mxu1 %v12922_v25 }
  0x93   : > { %938 = vmatmul.bf16.gmra.mxu2 %v12920_v24 }
  0x94   : > { %967 = vmatmul.bf16.gmra.mxu3 %v12922_v25  ;;  %1956 = vmatpush.bf16.msra.mxu2 %v10238_v32  ;;  %v1334_v32 = vld [vmem:[%s12953_s10 + $0x28] sm:$0xff] }
  0xa1   : > { %981 = vmatmul.bf16.vlgmr.msrb.gmra.mxu0 %v12884_v41 }
  0xa2   : > { %1010 = vmatmul.bf16.vlgmr.msrb.gmra.mxu1 %v12886_v45 }
  0xa3   : > { %1039 = vmatmul.bf16.vlgmr.msrb.gmra.mxu2 %v12884_v41  ;;  %v11857_v41 = vld [vmem:[#allocation11 + $0x164] sm:$0xf0] }
  0xa4   : > { %1068 = vmatmul.bf16.vlgmr.msrb.gmra.mxu3 %v12886_v45  ;;  %v10258_v45 = vor.u32 %v11857_v41, %v10257_v40  ;;  %v11865_v40 = vld [vmem:[#allocation11 + $0x1a4] sm:$0xf0] }
  0xa5   : > { %v10290_v41 = vor.u32 %v11865_v40, %v10289_v39 }
  0xa6   : > { %1855 = vmatpush.bf16.msra.mxu0 %v10258_v45  ;;  %v10227_v45 = vld [vmem:[#allocation11 + $0x128] sm:$0xf0] }
  0xa7   : > { %v10230_v43 = vor.u32 %v11848_v42, %v10227_v45 }
  0xa9   : > { %1957 = vmatpush.bf16.msra.mxu2 %v10230_v43  ;;  %v1338_v43 = vld [vmem:[%s12953_s10 + $0x48] sm:$0xff] }
  0xaa   : > { %1856 = vmatpush.bf16.msra.mxu0 %v10250_v55  ;;  %v10219_v55 = vld [vmem:[#allocation11 + $0x118] sm:$0xf0] }
  0xab   : > { %v10222_v56 = vor.u32 %v11846_v54, %v10219_v55  ;;  %v1346_v54 = vld [vmem:[%s12953_s10 + $0x88] sm:$0xff] }
  0xad   : > { %1958 = vmatpush.bf16.msra.mxu2 %v10222_v56 }
  0xae   : > { %1857 = vmatpush.bf16.msra.mxu0 %v10242_v3  ;;  %v10211_v3 = vld [vmem:[#allocation11 + $0x108] sm:$0xf0] }
  0xaf   : > { %v10214_v4 = vor.u32 %v11844_v1, %v10211_v3 }
  0xb1   : > { %986 = vmatmul.bf16.gmra.mxu0 %v12896_v29  ;;  %1959 = vmatpush.bf16.msra.mxu2 %v10214_v4 }
  0xb2   : > { %1015 = vmatmul.bf16.gmra.mxu1 %v12898_v34 }
  0xb3   : > { %1044 = vmatmul.bf16.gmra.mxu2 %v12896_v29  ;;  %v10234_v29 = vor.u32 %v11851_v13, %v10233_v12  ;;  %v13070_v12 = vperm.slane %v13024_v58, 1  ;;  %v13076_v13 = vperm.slane %v12958_v17, 1 }
  0xb4   : > { %1073 = vmatmul.bf16.gmra.mxu3 %v12898_v34  ;;  %v12698_v34 = vmov 0.0  }
  0xb5   : > { %1858 = vmatpush.bf16.msra.mxu0 %v10234_v29  ;;  %1089 = vst [vmem:[#allocation2] sm:$0xff] %v12698_v34  ;;  %v1372_v39 = vmul.f32 %v13076_v13, %v1334_v32  ;;  %v1376_v49 = vmul.f32 %v13076_v13, %v1338_v43 }
  0xb6   : > { %1113 = vst.msk [vmem:[#allocation2 + $0x40] ss:$8 sm:$0xf] %vm12943_vm0, %v12698_v34 }
  0xb7   : > { %1090 = vst [vmem:[#allocation2 + $0x8] sm:$0xff] %v12698_v34 }
  0xb8   : > { %1091 = vst [vmem:[#allocation2 + $0x10] sm:$0xff] %v12698_v34 }
  0xb9   : > { %1092 = vst [vmem:[#allocation2 + $0x18] sm:$0xff] %v12698_v34  ;;  %1859 = vmatpush.bf16.msra.mxu0 %v10226_v38 }
  0xba   : > { %1093 = vst [vmem:[#allocation2 + $0x20] sm:$0x1] %v12698_v34 }
  0xbb   : > { %1094 = vst [vmem:[#allocation2 + $0x28] sm:$0x1] %v12698_v34 }
  0xbc   : > { %1095 = vst [vmem:[#allocation2 + $0x30] sm:$0x1] %v12698_v34 }
  0xbd   : > { %1096 = vst [vmem:[#allocation2 + $0x38] sm:$0x1] %v12698_v34  ;;  %1860 = vmatpush.bf16.msra.mxu0 %v10218_v50 }
  0xbe   : > { %1437 = vst [vmem:[#allocation2 + $0x58] sm:$0xff] %v12979_v26 }
  0xbf   : > { %1098 = vst [vmem:[#allocation2 + $0x440] sm:$0xff] %v12698_v34 }
  0xc0   : > { %1099 = vst [vmem:[#allocation2 + $0x448] sm:$0xff] %v12698_v34 }
  0xc1   : > { %991 = vmatmul.bf16.gmra.mxu0 %v12908_v15  ;;  %1100 = vst [vmem:[#allocation2 + $0x450] sm:$0xff] %v12698_v34 }
  0xc2   : > { %1020 = vmatmul.bf16.gmra.mxu1 %v12910_v18  ;;  %1101 = vst [vmem:[#allocation2 + $0x458] sm:$0xff] %v12698_v34  ;;  %1861 = vmatpush.bf16.msra.mxu0 %v10210_v61  ;;  %v1384_v61 = vmul.f32 %v13076_v13, %v1346_v54 }
  0xc3   : > { %1049 = vmatmul.bf16.gmra.mxu2 %v12908_v15  ;;  %v10298_v15 = vor.u32 %v11867_v28, %v10297_v27  ;;  %1102 = vst [vmem:[#allocation2 + $0x460] sm:$0x1] %v12698_v34  ;;  %v1368_v28 = vmul.f32 %v13076_v13, %v1330_v14  ;;  %v11826_v14 = vld [vmem:[#allocation11 + $0x74] sm:$0xf] }
  0xc4   : > { %1078 = vmatmul.bf16.gmra.mxu3 %v12910_v18  ;;  %v10302_v18 = vor.u32 %v11866_v33, %v10299_v35  ;;  %1103 = vst [vmem:[#allocation2 + $0x468] sm:$0x1] %v12698_v34 }
  0xc5   : > { %1907 = vmatpush.bf16.msra.mxu1 %v10298_v15  ;;  %1104 = vst [vmem:[#allocation2 + $0x470] sm:$0x1] %v12698_v34  ;;  %v13094_v15 = vperm.slane %v12966_v21, 1 }
  0xc6   : > { %2005 = vmatpush.bf16.msra.mxu3 %v10302_v18  ;;  %1105 = vst [vmem:[#allocation2 + $0x478] sm:$0x1] %v12698_v34 }
  0xc7   : > { %1116 = vst.msk [vmem:[#allocation2 + $0x80] ss:$8 sm:$0xf] %vm12943_vm0, %v12698_v34  ;;  %v1406_v21 = vadd.f32 %v13094_v15, %v1368_v28  ;;  %v1410_v46 = vadd.f32 %v13094_v15, %v1372_v39  ;;  %v1422_v4 = vadd.f32 %v13094_v15, %v1384_v61  ;;  %v11842_v28 = vld [vmem:[#allocation11 + $0xf4] sm:$0xf] }
  0xc8   : > { %1119 = vst.msk [vmem:[#allocation2 + $0xc0] ss:$8 sm:$0xf] %vm12943_vm0, %v12698_v34 }
  0xc9   : > { %1908 = vmatpush.bf16.msra.mxu1 %v10290_v41  ;;  %1122 = vst.msk [vmem:[#allocation2 + $0x100] ss:$8 sm:$0xf] %vm12943_vm0, %v12698_v34  ;;  %v1469_v42 = vrot.slane %v1406_v21, 7  ;;  %v1471_v55 = vrot.slane %v1410_v46, 7  ;;  %v1477_v32 = vrot.slane %v1422_v4, 7 }
  0xca   : > { %2006 = vmatpush.bf16.msra.mxu3 %v10294_v47  ;;  %1125 = vst.msk [vmem:[#allocation2 + $0x140] ss:$8 sm:$0xf] %vm12943_vm0, %v12698_v34  ;;  %v1342_v47 = vld [vmem:[%s12953_s10 + $0x68] sm:$0xff] }
  0xcb   : > { %1128 = vst.msk [vmem:[#allocation2 + $0x180] ss:$8 sm:$0xf] %vm12943_vm0, %v12698_v34 }
  0xcc   : > { %1131 = vst.msk [vmem:[#allocation2 + $0x1c0] ss:$8 sm:$0xf] %vm12943_vm0, %v12698_v34 }
  0xcd   : > { %1134 = vst.msk [vmem:[#allocation2 + $0x200] ss:$8 sm:$0xf] %vm12943_vm0, %v12698_v34  ;;  %1909 = vmatpush.bf16.msra.mxu1 %v10282_v53  ;;  %v1380_v53 = vmul.f32 %v13076_v13, %v1342_v47 }
  0xce   : > { %1137 = vst.msk [vmem:[#allocation2 + $0x240] ss:$8 sm:$0xf] %vm12943_vm0, %v12698_v34 }
  0xcf   : > { %1140 = vst.msk [vmem:[#allocation2 + $0x280] ss:$8 sm:$0xf] %vm12943_vm0, %v12698_v34  ;;  %v1418_v63 = vadd.f32 %v13094_v15, %v1380_v53 }
  0xd0   : > { %1143 = vst.msk [vmem:[#allocation2 + $0x2c0] ss:$8 sm:$0xf] %vm12943_vm0, %v12698_v34 }
  0xd1   : > { %996 = vmatmul.bf16.gmra.mxu0 %v12920_v24  ;;  %1146 = vst.msk [vmem:[#allocation2 + $0x300] ss:$8 sm:$0xf] %vm12943_vm0, %v12698_v34  ;;  %1910 = vmatpush.bf16.msra.mxu1 %v10274_v0  ;;  %v1350_v0 = vld [vmem:[%s12953_s10 + $0xa8] sm:$0xff] }
  0xd2   : > { %1025 = vmatmul.bf16.gmra.mxu1 %v12922_v25  ;;  %1149 = vst.msk [vmem:[#allocation2 + $0x340] ss:$8 sm:$0xf] %vm12943_vm0, %v12698_v34  ;;  %v1388_v5 = vmul.f32 %v13076_v13, %v1350_v0 }
  0xd3   : > { %1054 = vmatmul.bf16.gmra.mxu2 %v12920_v24  ;;  %v11862_v24 = vld [vmem:[#allocation11 + $0x194] sm:$0xf]  ;;  %1152 = vst.msk [vmem:[#allocation2 + $0x380] ss:$8 sm:$0xf] %vm12943_vm0, %v12698_v34 }
  0xd4   : > { %1083 = vmatmul.bf16.gmra.mxu3 %v12922_v25  ;;  %v10286_v25 = vor.u32 %v11862_v24, %v10283_v57  ;;  %1155 = vst.msk [vmem:[#allocation2 + $0x3c0] ss:$8 sm:$0xf] %vm12943_vm0, %v12698_v34  ;;  %v1426_v21 = vadd.f32 %v13094_v15, %v1388_v5 }
  0xd5   : > { %1158 = vst.msk [vmem:[#allocation2 + $0x400] ss:$8 sm:$0xf] %vm12943_vm0, %v12698_v34 }
  0xd6   : > { %2007 = vmatpush.bf16.msra.mxu3 %v10286_v25  ;;  %1167 = vst.msk [vmem:[#allocation2 + $0x60] ss:$8 sm:$0xf] %vm12943_vm0, %v12698_v34 }
  0xd7   : > { %1170 = vst.msk [vmem:[#allocation2 + $0xa0] ss:$8 sm:$0xf] %vm12943_vm0, %v12698_v34 }
  0xd8   : > { %1173 = vst.msk [vmem:[#allocation2 + $0xe0] ss:$8 sm:$0xf] %vm12943_vm0, %v12698_v34 }
  0xd9   : > { %1176 = vst.msk [vmem:[#allocation2 + $0x120] ss:$8 sm:$0xf] %vm12943_vm0, %v12698_v34 }
  0xda   : > { %1179 = vst.msk [vmem:[#allocation2 + $0x160] ss:$8 sm:$0xf] %vm12943_vm0, %v12698_v34  ;;  %2008 = vmatpush.bf16.msra.mxu3 %v10278_v8  ;;  %v1354_v8 = vld [vmem:[%s12953_s10 + $0xc8] sm:$0xff] }
  0xdb   : > { %1182 = vst.msk [vmem:[#allocation2 + $0x1a0] ss:$8 sm:$0xf] %vm12943_vm0, %v12698_v34 }
  0xdc   : > { %1185 = vst.msk [vmem:[#allocation2 + $0x1e0] ss:$8 sm:$0xf] %vm12943_vm0, %v12698_v34 }
  0xdd   : > { %1188 = vst.msk [vmem:[#allocation2 + $0x220] ss:$8 sm:$0xf] %vm12943_vm0, %v12698_v34 }
  0xde   : > { %v866_v7 = vpop.f32.mrf.mxu0  ;;  %1191 = vst.msk [vmem:[#allocation2 + $0x260] ss:$8 sm:$0xf] %vm12943_vm0, %v12698_v34 }
  0xdf   : > { %v867_v9 = vadd.f32 %v866_v7, %v13042_v2  ;;  %v895_v10 = vpop.f32.mrf.mxu1  ;;  %1194 = vst.msk [vmem:[#allocation2 + $0x2a0] ss:$8 sm:$0xf] %vm12943_vm0, %v12698_v34  ;;  %v1475_v7 = vrot.slane %v1418_v63, 7 }
  0xe0   : > { %1197 = vst.msk [vmem:[#allocation2 + $0x2e0] ss:$8 sm:$0xf] %vm12943_vm0, %v12698_v34 }
  0xe1   : > { %v896_v11 = vadd.f32 %v895_v10, %v867_v9  ;;  %1200 = vst.msk [vmem:[#allocation2 + $0x320] ss:$8 sm:$0xf] %vm12943_vm0, %v12698_v34 }
  0xe2   : > { %1203 = vst.msk [vmem:[#allocation2 + $0x360] ss:$8 sm:$0xf] %vm12943_vm0, %v12698_v34 }
  0xe3   : > { %1218 = vst [vmem:[#allocation2 + $0x50] sm:$0xff] %v896_v11 }
  0xe4   : > { %1206 = vst.msk [vmem:[#allocation2 + $0x3a0] ss:$8 sm:$0xf] %vm12943_vm0, %v12698_v34 }
  0xe5   : > { %1209 = vst.msk [vmem:[#allocation2 + $0x3e0] ss:$8 sm:$0xf] %vm12943_vm0, %v12698_v34 }
  0xe6   : > { %v924_v29 = vpop.f32.mrf.mxu2  ;;  %v868_v22 = vpop.f32.mrf.mxu0  ;;  %1212 = vst.msk [vmem:[#allocation2 + $0x420] ss:$8 sm:$0xf] %vm12943_vm0, %v12698_v34 }
  0xe7   : > { %v925_v20 = vadd.f32 %v924_v29, %v13070_v12  ;;  %v953_v27 = vpop.f32.mrf.mxu3  ;;  %v897_v17 = vpop.f32.mrf.mxu1  ;;  %v869_v30 = vadd.f32 %v868_v22, %v13042_v2  ;;  %1110 = vst.msk [vmem:[#allocation2] ss:$8 sm:$0xf] %vm12943_vm0, %v12698_v34  ;;  %v1392_v29 = vmul.f32 %v13076_v13, %v1354_v8  ;;  %v10387_v8 = vld [vmem:[#allocation11 + $0x68] sm:$0xf0] }
  0xe8   : > { %1161 = vst.msk [vmem:[#allocation2 + $0x440] ss:$8 sm:$0xf] %vm12943_vm0, %v12698_v34 }
  0xe9   : > { %v954_v31 = vadd.f32 %v953_v27, %v925_v20  ;;  %v13114_v33 = vadd.f32 %v897_v17, %v869_v30  ;;  %1164 = vst.msk [vmem:[#allocation2 + $0x20] ss:$8 sm:$0xf] %vm12943_vm0, %v12698_v34  ;;  %v10395_v20 = vld [vmem:[#allocation11 + $0x78] sm:$0xf0] }
  0xea   : > { %1215 = vst.msk [vmem:[#allocation2 + $0x460] ss:$8 sm:$0xf] %vm12943_vm0, %v12698_v34  ;;  %v10398_v17 = vor.u32 %v11826_v14, %v10395_v20  ;;  %v10459_v30 = vld [vmem:[#allocation11 + $0xf8] sm:$0xf0] }
  0xeb   : > { %v1234_v18 = vrot.slane %v954_v31, 7  ;;  %1220 = vst [vmem:[#allocation2 + $0xd0] sm:$0xff] %v13114_v33  ;;  %v10451_v14 = vld [vmem:[#allocation11 + $0xe8] sm:$0xf0] }
  0xec   : > { %1501 = vst [vmem:[#allocation2 + $0x48] sm:$0xfe] %v1469_v42  ;;  %2308 = vmatpush.bf16.msrb.mxu2 %v10398_v17 }
  0xed   : > { %1236 = vst [vmem:[#allocation2 + $0x40] sm:$0xfe] %v1234_v18 }
  0xee   : > { %v926_v35 = vpop.f32.mrf.mxu2  ;;  %v871_v37 = vpop.f32.mrf.mxu0  ;;  %1237 = vst [vmem:[#allocation2 + $0x60] sm:$0x1] %v1234_v18  ;;  %v1613_v50 = vld [vmem:[#allocation2 + $0x10] sm:$0xff]  ;;  %v1614_v16 = vld [vmem:[#allocation2 + $0x18] sm:$0xff] }
  0xef   : > { %v927_v36 = vadd.f32 %v926_v35, %v13070_v12  ;;  %v955_v38 = vpop.f32.mrf.mxu3  ;;  %v872_v40 = vadd.f32 %v871_v37, %v13042_v2  ;;  %v900_v41 = vpop.f32.mrf.mxu1  ;;  %1502 = vst [vmem:[#allocation2 + $0x68] sm:$0x1] %v1469_v42  ;;  %v1645_v34 = vpack.c.bf16 %v896_v11, %v1613_v50  ;;  %v1646_v51 = vpack.c.bf16 %v12979_v26, %v1614_v16  ;;  %v10393_v42 = vld [vmem:[#allocation11 + $0x70] sm:$0xf] }
  0xf0   : > { %v1414_v26 = vadd.f32 %v13094_v15, %v1376_v49  ;;  %1506 = vst [vmem:[#allocation2 + $0xe8] sm:$0x1] %v1471_v55  ;;  %v10462_v35 = vor.u32 %v11842_v28, %v10459_v30  ;;  %v10457_v49 = vld [vmem:[#allocation11 + $0xf0] sm:$0xf] }
  0xf1   : > { %v956_v45 = vadd.f32 %v955_v38, %v927_v36  ;;  %v13130_v44 = vadd.f32 %v900_v41, %v872_v40  ;;  %1862 = vmatmul.bf16.vlgmr.msra.gmra.mxu0 %v1645_v34  ;;  %1911 = vmatmul.bf16.vlgmr.msra.gmra.mxu1 %v1646_v51  ;;  %1505 = vst [vmem:[#allocation2 + $0xc8] sm:$0xfe] %v1471_v55  ;;  %v1479_v38 = vrot.slane %v1426_v21, 7  ;;  %v1358_v41 = vld [vmem:[%s12953_s10 + $0xe8] sm:$0xff] }
  0xf2   : > { %1960 = vmatmul.bf16.vlgmr.msra.gmra.mxu2 %v1645_v34  ;;  %2009 = vmatmul.bf16.vlgmr.msra.gmra.mxu3 %v1646_v51  ;;  %v1473_v3 = vrot.slane %v1414_v26, 7  ;;  %1514 = vst [vmem:[#allocation2 + $0x1e8] sm:$0x1] %v1475_v7  ;;  %v1430_v36 = vadd.f32 %v13094_v15, %v1392_v29  ;;  %v1396_v47 = vmul.f32 %v13076_v13, %v1358_v41  ;;  %v11843_v51 = vld [vmem:[#allocation11 + $0xf4] sm:$0xf0] }
  0xf3   : > { %v1239_v48 = vrot.slane %v956_v45, 7  ;;  %1222 = vst [vmem:[#allocation2 + $0x150] sm:$0xff] %v13130_v44  ;;  %2357 = vmatpush.bf16.msrb.mxu3 %v10462_v35  ;;  %v10458_v55 = vor.u32 %v11843_v51, %v10457_v49  ;;  %v11840_v29 = vld [vmem:[#allocation11 + $0xe4] sm:$0xf]  ;;  %v10385_v21 = vld [vmem:[#allocation11 + $0x60] sm:$0xf] }
  0xf4   : > { %1510 = vst [vmem:[#allocation2 + $0x168] sm:$0x1] %v1473_v3  ;;  %v1481_v40 = vrot.slane %v1430_v36, 7  ;;  %v1434_v54 = vadd.f32 %v13094_v15, %v1396_v47  ;;  %v1337_v47 = vld [vmem:[%s12953_s10 + $0x40] sm:$0xff] }
  0xf5   : > { %1241 = vst [vmem:[#allocation2 + $0xc0] sm:$0xfe] %v1239_v48  ;;  %2259 = vmatpush.bf16.msrb.mxu1 %v10458_v55  ;;  %v1375_v51 = vmul.f32 %v12962_v19, %v1337_v47 }
  0xf6   : > { %v929_v52 = vpop.f32.mrf.mxu2  ;;  %v873_v24 = vpop.f32.mrf.mxu0  ;;  %1242 = vst [vmem:[#allocation2 + $0xe0] sm:$0x1] %v1239_v48  ;;  %v11827_v48 = vld [vmem:[#allocation11 + $0x74] sm:$0xf0] }
  0xf7   : > { %v930_v56 = vadd.f32 %v929_v52, %v13070_v12  ;;  %v958_v57 = vpop.f32.mrf.mxu3  ;;  %v874_v25 = vadd.f32 %v873_v24, %v13042_v2  ;;  %v902_v59 = vpop.f32.mrf.mxu1  ;;  %1509 = vst [vmem:[#allocation2 + $0x148] sm:$0xfe] %v1473_v3  ;;  %v10394_v34 = vor.u32 %v11827_v48, %v10393_v42  ;;  %v1331_v52 = vld [vmem:[%s12953_s10 + $0x10] sm:$0xff]  ;;  %v1413_v55 = vadd.f32 %v12971_v23, %v1375_v51 }
  0xf8   : > { %1513 = vst [vmem:[#allocation2 + $0x1c8] sm:$0xfe] %v1475_v7  ;;  %v1369_v24 = vmul.f32 %v12962_v19, %v1331_v52  ;;  %v11824_v7 = vld [vmem:[#allocation11 + $0x64] sm:$0xf] }
  0xf9   : > { %v959_v60 = vadd.f32 %v958_v57, %v930_v56  ;;  %v13143_v62 = vadd.f32 %v902_v59, %v874_v25  ;;  %1518 = vst [vmem:[#allocation2 + $0x268] sm:$0x1] %v1477_v32  ;;  %v1333_v56 = vld [vmem:[%s12953_s10 + $0x20] sm:$0xff]  ;;  %2210 = vmatpush.bf16.msrb.mxu0 %v10394_v34 }
  0xfa   : > { %1517 = vst [vmem:[#allocation2 + $0x248] sm:$0xfe] %v1477_v32  ;;  %v1371_v25 = vmul.f32 %v12962_v19, %v1333_v56  ;;  %v1407_v26 = vadd.f32 %v12971_v23, %v1369_v24  ;;  %v1336_v32 = vld [vmem:[%s12953_s10 + $0x38] sm:$0xff] }
  0xfb   : > { %v1244_v1 = vrot.slane %v959_v60, 7  ;;  %1224 = vst [vmem:[#allocation2 + $0x1d0] sm:$0xff] %v13143_v62  ;;  %v1483_v60 = vrot.slane %v1434_v54, 7 }
  0xfc   : > { %1522 = vst [vmem:[#allocation2 + $0x2e8] sm:$0x1] %v1479_v38  ;;  %v1409_v61 = vadd.f32 %v12971_v23, %v1371_v25  ;;  %v1340_v25 = vld [vmem:[%s12953_s10 + $0x58] sm:$0xff] }
  0xfd   : > { %1246 = vst [vmem:[#allocation2 + $0x140] sm:$0xfe] %v1244_v1 }
  0xfe   : > { %1247 = vst [vmem:[#allocation2 + $0x160] sm:$0x1] %v1244_v1  ;;  %v931_v6 = vpop.f32.mrf.mxu2  ;;  %v876_v10 = vpop.f32.mrf.mxu0  ;;  %v1648_v0 = vpack.c.bf16 %v1409_v61, %v1407_v26  ;;  %v1332_v1 = vld [vmem:[%s12953_s10 + $0x18] sm:$0xff] }
  0xff   : > { %v932_v9 = vadd.f32 %v931_v6, %v13070_v12  ;;  %v960_v11 = vpop.f32.mrf.mxu3  ;;  %v877_v22 = vadd.f32 %v876_v10, %v13042_v2  ;;  %v905_v27 = vpop.f32.mrf.mxu1  ;;  %1521 = vst [vmem:[#allocation2 + $0x2c8] sm:$0xfe] %v1479_v38  ;;  %v1370_v6 = vmul.f32 %v13076_v13, %v1332_v1  ;;  %v1374_v38 = vmul.f32 %v13076_v13, %v1336_v32  ;;  %v11823_v32 = vld [vmem:[#allocation11 + $0x54] sm:$0xf0] }
 0x100   : > { %1526 = vst [vmem:[#allocation2 + $0x368] sm:$0x1] %v1481_v40 }
 0x101   : > { %v961_v31 = vadd.f32 %v960_v11, %v932_v9  ;;  %v13155_v18 = vadd.f32 %v905_v27, %v877_v22  ;;  %1525 = vst [vmem:[#allocation2 + $0x348] sm:$0xfe] %v1481_v40  ;;  %1916 = vmatmul.bf16.gmra.mxu1 %v1648_v0  ;;  %v10390_v11 = vor.u32 %v11824_v7, %v10387_v8  ;;  %v10449_v40 = vld [vmem:[#allocation11 + $0xe0] sm:$0xf] }
 0x102   : > { %1530 = vst [vmem:[#allocation2 + $0x3e8] sm:$0x1] %v1483_v60  ;;  %2014 = vmatmul.bf16.gmra.mxu3 %v1648_v0  ;;  %v1408_v22 = vadd.f32 %v13094_v15, %v1370_v6  ;;  %v10454_v27 = vor.u32 %v11840_v29, %v10451_v14  ;;  %v1412_v49 = vadd.f32 %v13094_v15, %v1374_v38  ;;  %v10379_v0 = vld [vmem:[#allocation11 + $0x58] sm:$0xf0]  ;;  %v1339_v38 = vld [vmem:[%s12953_s10 + $0x50] sm:$0xff] }
 0x103   : > { %v1249_v37 = vrot.slane %v961_v31, 7  ;;  %1226 = vst [vmem:[#allocation2 + $0x250] sm:$0xff] %v13155_v18  ;;  %2309 = vmatpush.bf16.msrb.mxu2 %v10390_v11  ;;  %v10443_v6 = vld [vmem:[#allocation11 + $0xd8] sm:$0xf0]  ;;  %v13204_v11 = vperm.slane %v13024_v58, 3 }
 0x104   : > { %1529 = vst [vmem:[#allocation2 + $0x3c8] sm:$0xfe] %v1483_v60  ;;  %2358 = vmatpush.bf16.msrb.mxu3 %v10454_v27  ;;  %v1470_v30 = vrot.slane %v1408_v22, 7  ;;  %v1472_v54 = vrot.slane %v1412_v49, 7  ;;  %v1344_v22 = vld [vmem:[%s12953_s10 + $0x78] sm:$0xff] }
 0x105   : > { %1251 = vst [vmem:[#allocation2 + $0x1c0] sm:$0xfe] %v1249_v37  ;;  %v10377_v27 = vld [vmem:[#allocation11 + $0x50] sm:$0xf] }
 0x106   : > { %1252 = vst [vmem:[#allocation2 + $0x1e0] sm:$0x1] %v1249_v37  ;;  %v934_v39 = vpop.f32.mrf.mxu2  ;;  %v878_v43 = vpop.f32.mrf.mxu0 }
 0x107   : > { %v935_v45 = vadd.f32 %v934_v39, %v13070_v12  ;;  %v963_v46 = vpop.f32.mrf.mxu3  ;;  %v879_v50 = vadd.f32 %v878_v43, %v13042_v2  ;;  %v907_v16 = vpop.f32.mrf.mxu1  ;;  %1438 = vst [vmem:[#allocation2 + $0x98] sm:$0xff] %v1407_v26  ;;  %v11825_v39 = vld [vmem:[#allocation11 + $0x64] sm:$0xf0] }
 0x108   : > { %1439 = vst [vmem:[#allocation2 + $0xd8] sm:$0xff] %v1409_v61  ;;  %v11841_v43 = vld [vmem:[#allocation11 + $0xe4] sm:$0xf0]  ;;  %v1378_v61 = vmul.f32 %v13076_v13, %v1340_v25  ;;  %v10371_v25 = vld [vmem:[#allocation11 + $0x48] sm:$0xf0] }
 0x109   : > { %v964_v53 = vadd.f32 %v963_v46, %v935_v45  ;;  %v13167_v57 = vadd.f32 %v907_v16, %v879_v50  ;;  %1504 = vst [vmem:[#allocation2 + $0xa8] sm:$0x1] %v1470_v30  ;;  %v10386_v45 = vor.u32 %v11825_v39, %v10385_v21  ;;  %v1335_v46 = vld [vmem:[%s12953_s10 + $0x30] sm:$0xff]  ;;  %v10450_v50 = vor.u32 %v11841_v43, %v10449_v40  ;;  %v10441_v21 = vld [vmem:[#allocation11 + $0xd0] sm:$0xf]  ;;  %v1341_v39 = vld [vmem:[%s12953_s10 + $0x60] sm:$0xff] }
 0x10a   : > { %1503 = vst [vmem:[#allocation2 + $0x88] sm:$0xfe] %v1470_v30  ;;  %v1373_v16 = vmul.f32 %v12962_v19, %v1335_v46  ;;  %v1379_v46 = vmul.f32 %v12962_v19, %v1341_v39 }
 0x10b   : > { %v1254_v59 = vrot.slane %v964_v53, 7  ;;  %1228 = vst [vmem:[#allocation2 + $0x2d0] sm:$0xff] %v13167_v57  ;;  %2211 = vmatpush.bf16.msrb.mxu0 %v10386_v45  ;;  %2260 = vmatpush.bf16.msrb.mxu1 %v10450_v50  ;;  %v13195_v53 = vperm.slane %v13024_v58, 2  ;;  %v1382_v58 = vmul.f32 %v13076_v13, %v1344_v22  ;;  %v1377_v45 = vmul.f32 %v12962_v19, %v1339_v38  ;;  %v11821_v22 = vld [vmem:[#allocation11 + $0x44] sm:$0xf0] }
 0x10c   : > { %1508 = vst [vmem:[#allocation2 + $0x128] sm:$0x1] %v1472_v54  ;;  %v1417_v50 = vadd.f32 %v12971_v23, %v1379_v46  ;;  %v1356_v46 = vld [vmem:[%s12953_s10 + $0xd8] sm:$0xff] }
 0x10d   : > { %1256 = vst [vmem:[#allocation2 + $0x240] sm:$0xfe] %v1254_v59 }
 0x10e   : > { %1257 = vst [vmem:[#allocation2 + $0x260] sm:$0x1] %v1254_v59  ;;  %v936_v63 = vpop.f32.mrf.mxu2  ;;  %v881_v4 = vpop.f32.mrf.mxu0 }
 0x10f   : > { %v937_v3 = vadd.f32 %v936_v63, %v13070_v12  ;;  %v965_v5 = vpop.f32.mrf.mxu3  ;;  %v882_v9 = vadd.f32 %v881_v4, %v13042_v2  ;;  %v910_v10 = vpop.f32.mrf.mxu1  ;;  %v11822_v63 = vld [vmem:[#allocation11 + $0x54] sm:$0xf]  ;;  %1507 = vst [vmem:[#allocation2 + $0x108] sm:$0xfe] %v1472_v54 }
 0x110   : > { %v10382_v4 = vor.u32 %v11822_v63, %v10379_v0  ;;  %1441 = vst [vmem:[#allocation2 + $0x158] sm:$0xff] %v1413_v55  ;;  %v10435_v63 = vld [vmem:[#allocation11 + $0xc8] sm:$0xf0] }
 0x111   : > { %v966_v20 = vadd.f32 %v965_v5, %v937_v3  ;;  %v13178_v17 = vadd.f32 %v910_v10, %v882_v9  ;;  %v11838_v5 = vld [vmem:[#allocation11 + $0xd4] sm:$0xf]  ;;  %1443 = vst [vmem:[#allocation2 + $0x1d8] sm:$0xff] %v1417_v50 }
 0x112   : > { %v10446_v8 = vor.u32 %v11838_v5, %v10443_v6  ;;  %2310 = vmatpush.bf16.msrb.mxu2 %v10382_v4 }
 0x113   : > { %v1259_v28 = vrot.slane %v966_v20, 7  ;;  %1230 = vst [vmem:[#allocation2 + $0x350] sm:$0xff] %v13178_v17 }
 0x114   : > { %2359 = vmatpush.bf16.msrb.mxu3 %v10446_v8  ;;  %v1352_v8 = vld [vmem:[%s12953_s10 + $0xb8] sm:$0xff] }
 0x115   : > { %1261 = vst [vmem:[#allocation2 + $0x2c0] sm:$0xfe] %v1259_v28 }
 0x116   : > { %1262 = vst [vmem:[#allocation2 + $0x2e0] sm:$0x1] %v1259_v28  ;;  %v939_v31 = vpop.f32.mrf.mxu2  ;;  %v883_v36 = vpop.f32.mrf.mxu0 }
 0x117   : > { %v940_v35 = vadd.f32 %v939_v31, %v13070_v12  ;;  %v968_v37 = vpop.f32.mrf.mxu3  ;;  %v884_v41 = vadd.f32 %v883_v36, %v13042_v2  ;;  %v912_v42 = vpop.f32.mrf.mxu1  ;;  %v1411_v2 = vadd.f32 %v12971_v23, %v1373_v16  ;;  %v10378_v36 = vor.u32 %v11823_v32, %v10377_v27  ;;  %v10433_v27 = vld [vmem:[#allocation11 + $0xc0] sm:$0xf]  ;;  %v1345_v32 = vld [vmem:[%s12953_s10 + $0x80] sm:$0xff] }
 0x118   : > { %v1383_v38 = vmul.f32 %v12962_v19, %v1345_v32 }
 0x119   : > { %v969_v48 = vadd.f32 %v968_v37, %v940_v35  ;;  %v13189_v34 = vadd.f32 %v912_v42, %v884_v41  ;;  %v1650_v24 = vpack.c.bf16 %v1413_v55, %v1411_v2  ;;  %1440 = vst [vmem:[#allocation2 + $0x118] sm:$0xff] %v1411_v2  ;;  %v11839_v37 = vld [vmem:[#allocation11 + $0xd4] sm:$0xf0]  ;;  %v1420_v41 = vadd.f32 %v13094_v15, %v1382_v58  ;;  %v1343_v58 = vld [vmem:[%s12953_s10 + $0x70] sm:$0xff] }
 0x11a   : > { %v10442_v42 = vor.u32 %v11839_v37, %v10441_v21  ;;  %2212 = vmatpush.bf16.msrb.mxu0 %v10378_v36  ;;  %v1381_v36 = vmul.f32 %v12962_v19, %v1343_v58 }
 0x11b   : > { %v1264_v52 = vrot.slane %v969_v48, 7  ;;  %1232 = vst [vmem:[#allocation2 + $0x3d0] sm:$0xff] %v13189_v34  ;;  %2019 = vmatmul.bf16.gmra.mxu3 %v1650_v24  ;;  %1921 = vmatmul.bf16.gmra.mxu1 %v1650_v24  ;;  %v1415_v48 = vadd.f32 %v12971_v23, %v1377_v45  ;;  %v1476_v49 = vrot.slane %v1420_v41, 7  ;;  %v11820_v24 = vld [vmem:[#allocation11 + $0x44] sm:$0xf] }
 0x11c   : > { %2261 = vmatpush.bf16.msrb.mxu1 %v10442_v42  ;;  %v1421_v42 = vadd.f32 %v12971_v23, %v1383_v38 }
 0x11d   : > { %1266 = vst [vmem:[#allocation2 + $0x340] sm:$0xfe] %v1264_v52  ;;  %v1652_v51 = vpack.c.bf16 %v1417_v50, %v1415_v48 }
 0x11e   : > { %1267 = vst [vmem:[#allocation2 + $0x360] sm:$0x1] %v1264_v52  ;;  %v941_v56 = vpop.f32.mrf.mxu2  ;;  %v982_v60 = vpop.f32.mrf.mxu0  ;;  %v1348_v52 = vld [vmem:[%s12953_s10 + $0x98] sm:$0xff] }
 0x11f   : > { %v942_v59 = vadd.f32 %v941_v56, %v13070_v12  ;;  %v970_v26 = vpop.f32.mrf.mxu3  ;;  %v983_v1 = vadd.f32 %v982_v60, %v13195_v53  ;;  %v1011_v3 = vpop.f32.mrf.mxu1  ;;  %v1416_v12 = vadd.f32 %v13094_v15, %v1378_v61  ;;  %1516 = vst [vmem:[#allocation2 + $0x228] sm:$0x1] %v1476_v49  ;;  %v1386_v56 = vmul.f32 %v13076_v13, %v1348_v52  ;;  %v11836_v61 = vld [vmem:[#allocation11 + $0xc4] sm:$0xf]  ;;  %v11818_v52 = vld [vmem:[#allocation11 + $0x34] sm:$0xf] }
 0x120   : > { %1515 = vst [vmem:[#allocation2 + $0x208] sm:$0xfe] %v1476_v49  ;;  %v10374_v60 = vor.u32 %v11820_v24, %v10371_v25  ;;  %v11834_v24 = vld [vmem:[#allocation11 + $0xb4] sm:$0xf]  ;;  %v10427_v25 = vld [vmem:[#allocation11 + $0xb8] sm:$0xf0] }
 0x121   : > { %v971_v7 = vadd.f32 %v970_v26, %v942_v59  ;;  %v1012_v9 = vadd.f32 %v1011_v3, %v983_v1  ;;  %v1474_v14 = vrot.slane %v1416_v12, 7  ;;  %1442 = vst [vmem:[#allocation2 + $0x198] sm:$0xff] %v1415_v48  ;;  %v1424_v1 = vadd.f32 %v13094_v15, %v1386_v56 }
 0x122   : > { %v10438_v3 = vor.u32 %v11836_v61, %v10435_v63  ;;  %2311 = vmatpush.bf16.msrb.mxu2 %v10374_v60  ;;  %v10430_v61 = vor.u32 %v11834_v24, %v10427_v25  ;;  %1445 = vst [vmem:[#allocation2 + $0x258] sm:$0xff] %v1421_v42 }
 0x123   : > { %v1269_v10 = vrot.slane %v971_v7, 7  ;;  %1274 = vst [vmem:[#allocation2 + $0x90] sm:$0xff] %v1012_v9  ;;  %v1647_v29 = vpack.c.bf16 %v13114_v33, %v1012_v9  ;;  %v1478_v7 = vrot.slane %v1424_v1, 7  ;;  %v10369_v9 = vld [vmem:[#allocation11 + $0x40] sm:$0xf] }
 0x124   : > { %1512 = vst [vmem:[#allocation2 + $0x1a8] sm:$0x1] %v1474_v14  ;;  %2360 = vmatpush.bf16.msrb.mxu3 %v10438_v3 }
 0x125   : > { %1271 = vst [vmem:[#allocation2 + $0x3c0] sm:$0xfe] %v1269_v10  ;;  %1867 = vmatmul.bf16.gmra.mxu0 %v1647_v29  ;;  %1965 = vmatmul.bf16.gmra.mxu2 %v1647_v29 }
 0x126   : > { %1272 = vst [vmem:[#allocation2 + $0x3e0] sm:$0x1] %v1269_v10  ;;  %v1040_v20 = vpop.f32.mrf.mxu2  ;;  %v984_v30 = vpop.f32.mrf.mxu0 }
 0x127   : > { %v1041_v28 = vadd.f32 %v1040_v20, %v13204_v11  ;;  %v1069_v31 = vpop.f32.mrf.mxu3  ;;  %v985_v33 = vadd.f32 %v984_v30, %v13195_v53  ;;  %v1013_v35 = vpop.f32.mrf.mxu1  ;;  %1511 = vst [vmem:[#allocation2 + $0x188] sm:$0xfe] %v1474_v14  ;;  %v1390_v20 = vmul.f32 %v13076_v13, %v1352_v8  ;;  %v10370_v30 = vor.u32 %v11821_v22, %v10369_v9 }
 0x128   : > { %1520 = vst [vmem:[#allocation2 + $0x2a8] sm:$0x1] %v1478_v7  ;;  %2361 = vmatpush.bf16.msrb.mxu3 %v10430_v61 }
 0x129   : > { %v1070_v40 = vadd.f32 %v1069_v31, %v1041_v28  ;;  %v1014_v43 = vadd.f32 %v1013_v35, %v985_v33  ;;  %1519 = vst [vmem:[#allocation2 + $0x288] sm:$0xfe] %v1478_v7  ;;  %v11837_v31 = vld [vmem:[#allocation11 + $0xc4] sm:$0xf0]  ;;  %v1428_v33 = vadd.f32 %v13094_v15, %v1390_v20  ;;  %2213 = vmatpush.bf16.msrb.mxu0 %v10370_v30  ;;  %v10361_v7 = vld [vmem:[#allocation11 + $0x30] sm:$0xf] }
 0x12a   : > { %v10434_v35 = vor.u32 %v11837_v31, %v10433_v27  ;;  %v10425_v20 = vld [vmem:[#allocation11 + $0xb0] sm:$0xf] }
 0x12b   : > { %v1290_v47 = vrot.slane %v1070_v40, 7  ;;  %1276 = vst [vmem:[#allocation2 + $0x110] sm:$0xff] %v1014_v43  ;;  %2024 = vmatmul.bf16.gmra.mxu3 %v1652_v51  ;;  %1926 = vmatmul.bf16.gmra.mxu1 %v1652_v51  ;;  %v1649_v6 = vpack.c.bf16 %v13130_v44, %v1014_v43  ;;  %v1419_v40 = vadd.f32 %v12971_v23, %v1381_v36  ;;  %v1480_v41 = vrot.slane %v1428_v33, 7 }
 0x12c   : > { %2262 = vmatpush.bf16.msrb.mxu1 %v10434_v35 }
 0x12d   : > { %1292 = vst [vmem:[#allocation2 + $0x80] sm:$0xfe] %v1290_v47  ;;  %v1654_v43 = vpack.c.bf16 %v1421_v42, %v1419_v40 }
 0x12e   : > { %1293 = vst [vmem:[#allocation2 + $0xa0] sm:$0x1] %v1290_v47  ;;  %v1042_v16 = vpop.f32.mrf.mxu2  ;;  %v987_v54 = vpop.f32.mrf.mxu0  ;;  %v1359_v47 = vld [vmem:[%s12953_s10 + $0xf0] sm:$0xff] }
 0x12f   : > { %v1043_v2 = vadd.f32 %v1042_v16, %v13204_v11  ;;  %v1071_v55 = vpop.f32.mrf.mxu3  ;;  %v988_v59 = vadd.f32 %v987_v54, %v13195_v53  ;;  %v1016_v26 = vpop.f32.mrf.mxu1  ;;  %1524 = vst [vmem:[#allocation2 + $0x328] sm:$0x1] %v1480_v41  ;;  %v1394_v16 = vmul.f32 %v13076_v13, %v1356_v46  ;;  %v1397_v51 = vmul.f32 %v12962_v19, %v1359_v47 }
 0x130   : > { %1523 = vst [vmem:[#allocation2 + $0x308] sm:$0xfe] %v1480_v41 }
 0x131   : > { %v1072_v0 = vadd.f32 %v1071_v55, %v1043_v2  ;;  %v13223_v4 = vadd.f32 %v1016_v26, %v988_v59  ;;  %v10363_v2 = vld [vmem:[#allocation11 + $0x38] sm:$0xf0]  ;;  %1444 = vst [vmem:[#allocation2 + $0x218] sm:$0xff] %v1419_v40  ;;  %v1432_v26 = vadd.f32 %v13094_v15, %v1394_v16  ;;  %v1435_v60 = vadd.f32 %v12971_v23, %v1397_v51  ;;  %v10355_v16 = vld [vmem:[#allocation11 + $0x28] sm:$0xf0] }
 0x132   : > { %v10366_v56 = vor.u32 %v11818_v52, %v10363_v2 }
 0x133   : > { %v1295_v5 = vrot.slane %v1072_v0, 7  ;;  %1278 = vst [vmem:[#allocation2 + $0x190] sm:$0xff] %v13223_v4  ;;  %v1651_v1 = vpack.c.bf16 %v13143_v62, %v13223_v4  ;;  %v1482_v3 = vrot.slane %v1432_v26, 7  ;;  %v1351_v26 = vld [vmem:[%s12953_s10 + $0xb0] sm:$0xff] }
 0x134   : > { %2312 = vmatpush.bf16.msrb.mxu2 %v10366_v56  ;;  %1452 = vst [vmem:[#allocation2 + $0x418] sm:$0xff] %v1435_v60  ;;  %v10419_v56 = vld [vmem:[#allocation11 + $0xa8] sm:$0xf0]  ;;  %v1353_v60 = vld [vmem:[%s12953_s10 + $0xc0] sm:$0xff] }
 0x135   : > { %1297 = vst [vmem:[#allocation2 + $0x100] sm:$0xfe] %v1295_v5  ;;  %1872 = vmatmul.bf16.gmra.mxu0 %v1649_v6  ;;  %1970 = vmatmul.bf16.gmra.mxu2 %v1649_v6  ;;  %v1360_v6 = vld [vmem:[%s12953_s10 + $0xf8] sm:$0xff] }
 0x136   : > { %1298 = vst [vmem:[#allocation2 + $0x120] sm:$0x1] %v1295_v5  ;;  %v1045_v12 = vpop.f32.mrf.mxu2  ;;  %v989_v29 = vpop.f32.mrf.mxu0 }
 0x137   : > { %v1046_v10 = vadd.f32 %v1045_v12, %v13204_v11  ;;  %v1074_v14 = vpop.f32.mrf.mxu3  ;;  %v990_v44 = vadd.f32 %v989_v29, %v13195_v53  ;;  %v1018_v28 = vpop.f32.mrf.mxu1  ;;  %v1347_v12 = vld [vmem:[%s12953_s10 + $0x90] sm:$0xff]  ;;  %1528 = vst [vmem:[#allocation2 + $0x3a8] sm:$0x1] %v1482_v3  ;;  %v1398_v29 = vmul.f32 %v13076_v13, %v1360_v6  ;;  %v10353_v6 = vld [vmem:[#allocation11 + $0x20] sm:$0xf] }
 0x138   : > { %v1385_v62 = vmul.f32 %v12962_v19, %v1347_v12  ;;  %1527 = vst [vmem:[#allocation2 + $0x388] sm:$0xfe] %v1482_v3 }
 0x139   : > { %v1075_v21 = vadd.f32 %v1074_v14, %v1046_v10  ;;  %v13235_v37 = vadd.f32 %v1018_v28, %v990_v44  ;;  %v11819_v14 = vld [vmem:[#allocation11 + $0x34] sm:$0xf0]  ;;  %v1436_v31 = vadd.f32 %v13094_v15, %v1398_v29  ;;  %v11833_v29 = vld [vmem:[#allocation11 + $0xa4] sm:$0xf0] }
 0x13a   : > { %v10362_v27 = vor.u32 %v11819_v14, %v10361_v7  ;;  %v11835_v44 = vld [vmem:[#allocation11 + $0xb4] sm:$0xf0]  ;;  %v1423_v13 = vadd.f32 %v12971_v23, %v1385_v62  ;;  %v11817_v7 = vld [vmem:[#allocation11 + $0x24] sm:$0xf0] }
 0x13b   : > { %v1300_v39 = vrot.slane %v1075_v21, 7  ;;  %1280 = vst [vmem:[#allocation2 + $0x210] sm:$0xff] %v13235_v37  ;;  %2029 = vmatmul.bf16.gmra.mxu3 %v1654_v43  ;;  %1931 = vmatmul.bf16.gmra.mxu1 %v1654_v43  ;;  %v1349_v28 = vld [vmem:[%s12953_s10 + $0xa0] sm:$0xff]  ;;  %v10426_v58 = vor.u32 %v11835_v44, %v10425_v20  ;;  %v1484_v35 = vrot.slane %v1436_v31, 7 }
 0x13c   : > { %v1387_v32 = vmul.f32 %v12962_v19, %v1349_v28  ;;  %2214 = vmatpush.bf16.msrb.mxu0 %v10362_v27  ;;  %1446 = vst [vmem:[#allocation2 + $0x298] sm:$0xff] %v1423_v13  ;;  %v10347_v27 = vld [vmem:[#allocation11 + $0x18] sm:$0xf0]  ;;  %v11830_v28 = vld [vmem:[#allocation11 + $0x94] sm:$0xf] }
 0x13d   : > { %1302 = vst [vmem:[#allocation2 + $0x180] sm:$0xfe] %v1300_v39  ;;  %2263 = vmatpush.bf16.msrb.mxu1 %v10426_v58  ;;  %v10345_v58 = vld [vmem:[#allocation11 + $0x10] sm:$0xf] }
 0x13e   : > { %1303 = vst [vmem:[#allocation2 + $0x1a0] sm:$0x1] %v1300_v39  ;;  %v1047_v45 = vpop.f32.mrf.mxu2  ;;  %v992_v49 = vpop.f32.mrf.mxu0  ;;  %v1425_v36 = vadd.f32 %v12971_v23, %v1387_v32  ;;  %v11815_v32 = vld [vmem:[#allocation11 + $0x14] sm:$0xf0] }
 0x13f   : > { %v1048_v48 = vadd.f32 %v1047_v45, %v13204_v11  ;;  %v1076_v50 = vpop.f32.mrf.mxu3  ;;  %v993_v54 = vadd.f32 %v992_v49, %v13195_v53  ;;  %v1021_v55 = vpop.f32.mrf.mxu1  ;;  %1531 = vst [vmem:[#allocation2 + $0x408] sm:$0xfe] %v1484_v35 }
 0x140   : > { %v1656_v38 = vpack.c.bf16 %v1425_v36, %v1423_v13  ;;  %1532 = vst [vmem:[#allocation2 + $0x428] sm:$0x1] %v1484_v35  ;;  %v10409_v13 = vld [vmem:[#allocation11 + $0x90] sm:$0xf]  ;;  %v11831_v35 = vld [vmem:[#allocation11 + $0x94] sm:$0xf0] }
 0x141   : > { %v1077_v59 = vadd.f32 %v1076_v50, %v1048_v48  ;;  %v13249_v63 = vadd.f32 %v1021_v55, %v993_v54  ;;  %1447 = vst [vmem:[#allocation2 + $0x2d8] sm:$0xff] %v1425_v36  ;;  %v1653_v48 = vpack.c.bf16 %v13155_v18, %v13235_v37  ;;  %v11816_v50 = vld [vmem:[#allocation11 + $0x24] sm:$0xf]  ;;  %v1355_v36 = vld [vmem:[%s12953_s10 + $0xd0] sm:$0xff] }
 0x142   : > { %v10358_v54 = vor.u32 %v11816_v50, %v10355_v16  ;;  %v11832_v55 = vld [vmem:[#allocation11 + $0xa4] sm:$0xf] }
 0x143   : > { %v1305_v0 = vrot.slane %v1077_v59, 7  ;;  %1282 = vst [vmem:[#allocation2 + $0x290] sm:$0xff] %v13249_v63  ;;  %v10422_v18 = vor.u32 %v11832_v55, %v10419_v56 }
 0x144   : > { %2313 = vmatpush.bf16.msrb.mxu2 %v10358_v54 }
 0x145   : > { %1307 = vst [vmem:[#allocation2 + $0x200] sm:$0xfe] %v1305_v0  ;;  %1877 = vmatmul.bf16.gmra.mxu0 %v1651_v1  ;;  %1975 = vmatmul.bf16.gmra.mxu2 %v1651_v1  ;;  %v1391_v1 = vmul.f32 %v12962_v19, %v1353_v60  ;;  %v11891_v60 = vld [vmem:[#allocation11 + $0x274] sm:$0xf0] }
 0x146   : > { %1308 = vst [vmem:[#allocation2 + $0x220] sm:$0x1] %v1305_v0  ;;  %v1050_v5 = vpop.f32.mrf.mxu2  ;;  %v994_v9 = vpop.f32.mrf.mxu0  ;;  %2362 = vmatpush.bf16.msrb.mxu3 %v10422_v18  ;;  %v1389_v0 = vmul.f32 %v12962_v19, %v1351_v26  ;;  %v11906_v18 = vld [vmem:[#allocation11 + $0x2f4] sm:$0xf]  ;;  %v10521_v26 = vld [vmem:[#allocation11 + $0x270] sm:$0xf] }
 0x147   : > { %v1051_v8 = vadd.f32 %v1050_v5, %v13204_v11  ;;  %v1079_v10 = vpop.f32.mrf.mxu3  ;;  %v995_v4 = vadd.f32 %v994_v9, %v13195_v53  ;;  %v1023_v22 = vpop.f32.mrf.mxu1  ;;  %v1429_v5 = vadd.f32 %v12971_v23, %v1391_v1  ;;  %v10354_v9 = vor.u32 %v11817_v7, %v10353_v6  ;;  %v10585_v1 = vld [vmem:[#allocation11 + $0x2f0] sm:$0xf] }
 0x148   : > { %v1427_v3 = vadd.f32 %v12971_v23, %v1389_v0  ;;  %v10522_v0 = vor.u32 %v11891_v60, %v10521_v26  ;;  %v11884_v26 = vld [vmem:[#allocation11 + $0x244] sm:$0xf]  ;;  %v10499_v60 = vld [vmem:[#allocation11 + $0x248] sm:$0xf0] }
 0x149   : > { %v1080_v30 = vadd.f32 %v1079_v10, %v1051_v8  ;;  %v13263_v21 = vadd.f32 %v1023_v22, %v995_v4  ;;  %v10417_v10 = vld [vmem:[#allocation11 + $0xa0] sm:$0xf]  ;;  %1449 = vst [vmem:[#allocation2 + $0x358] sm:$0xff] %v1429_v5  ;;  %2215 = vmatpush.bf16.msrb.mxu0 %v10354_v9  ;;  %v1655_v22 = vpack.c.bf16 %v13167_v57, %v13249_v63  ;;  %v1357_v57 = vld [vmem:[%s12953_s10 + $0xe0] sm:$0xff] }
 0x14a   : > { %1448 = vst [vmem:[#allocation2 + $0x318] sm:$0xff] %v1427_v3  ;;  %v1658_v14 = vpack.c.bf16 %v1429_v5, %v1427_v3  ;;  %v10418_v20 = vor.u32 %v11833_v29, %v10417_v10  ;;  %v10410_v63 = vor.u32 %v11831_v35, %v10409_v13  ;;  %v11907_v3 = vld [vmem:[#allocation11 + $0x2f4] sm:$0xf0]  ;;  %v11888_v10 = vld [vmem:[#allocation11 + $0x264] sm:$0xf] }
 0x14b   : > { %v1310_v33 = vrot.slane %v1080_v30, 7  ;;  %1284 = vst [vmem:[#allocation2 + $0x310] sm:$0xff] %v13263_v21  ;;  %2034 = vmatmul.bf16.gmra.mxu3 %v1656_v38  ;;  %1936 = vmatmul.bf16.gmra.mxu1 %v1656_v38  ;;  %v10411_v30 = vld [vmem:[#allocation11 + $0x98] sm:$0xf0]  ;;  %v1393_v38 = vmul.f32 %v12962_v19, %v1355_v36  ;;  %v1657_v54 = vpack.c.bf16 %v13178_v17, %v13263_v21  ;;  %v1534_v17 = vld [vmem:[#allocation2 + $0x8] sm:$0xff] }
 0x14c   : > { %2264 = vmatpush.bf16.msrb.mxu1 %v10418_v20  ;;  %v10414_v31 = vor.u32 %v11830_v28, %v10411_v30  ;;  %v10586_v5 = vor.u32 %v11907_v3, %v10585_v1  ;;  %v1536_v21 = vld [vmem:[#allocation2 + $0x48] sm:$0xff]  ;;  %v10515_v29 = vld [vmem:[#allocation11 + $0x268] sm:$0xf0]  ;;  %v11889_v28 = vld [vmem:[#allocation11 + $0x264] sm:$0xf0] }
 0x14d   : > { %1312 = vst [vmem:[#allocation2 + $0x280] sm:$0xfe] %v1310_v33  ;;  %v10518_v20 = vor.u32 %v11888_v10, %v10515_v29  ;;  %v10577_v30 = vld [vmem:[#allocation11 + $0x2e0] sm:$0xf]  ;;  %v1533_v13 = vld [vmem:[#allocation2] sm:$0xff] }
 0x14e   : > { %1313 = vst [vmem:[#allocation2 + $0x2a0] sm:$0x1] %v1310_v33  ;;  %v1052_v39 = vpop.f32.mrf.mxu2  ;;  %v997_v40 = vpop.f32.mrf.mxu0  ;;  %v10346_v33 = vor.u32 %v11815_v32, %v10345_v58  ;;  %2363 = vmatpush.bf16.msrb.mxu3 %v10414_v31  ;;  %v11905_v58 = vld [vmem:[#allocation11 + $0x2e4] sm:$0xf0]  ;;  %v10563_v1 = vld [vmem:[#allocation11 + $0x2c8] sm:$0xf0] }
 0x14f   : > { %v1053_v15 = vadd.f32 %v1052_v39, %v13204_v11  ;;  %v1081_v41 = vpop.f32.mrf.mxu3  ;;  %v998_v42 = vadd.f32 %v997_v40, %v13195_v53  ;;  %v1026_v45 = vpop.f32.mrf.mxu1  ;;  %v1395_v39 = vmul.f32 %v12962_v19, %v1357_v57  ;;  %v10339_v40 = vld [vmem:[#allocation11 + $0x8] sm:$0xf0]  ;;  %v10578_v32 = vor.u32 %v11905_v58, %v10577_v30  ;;  %v10497_v10 = vld [vmem:[#allocation11 + $0x240] sm:$0xf]  ;;  %v11885_v29 = vld [vmem:[#allocation11 + $0x244] sm:$0xf0] }
 0x150   : > { %2216 = vmatpush.bf16.msrb.mxu0 %v10346_v33  ;;  %2265 = vmatpush.bf16.msrb.mxu1 %v10410_v63  ;;  %v1535_v33 = vld [vmem:[#allocation2 + $0x40] sm:$0xff]  ;;  %v11886_v63 = vld [vmem:[#allocation11 + $0x254] sm:$0xf] }
 0x151   : > { %v1082_v43 = vadd.f32 %v1081_v41, %v1053_v15  ;;  %v13270_v46 = vadd.f32 %v1026_v45, %v998_v42  ;;  %v11812_v15 = vld [vmem:[#allocation11 + $0x4] sm:$0xf]  ;;  %v10403_v45 = vld [vmem:[#allocation11 + $0x88] sm:$0xf0]  ;;  %v1565_v36 = vpack.c.bf16 %v1535_v33, %v1533_v13  ;;  %v11882_v33 = vld [vmem:[#allocation11 + $0x234] sm:$0xf] }
 0x152   : > { %v11828_v41 = vld [vmem:[#allocation11 + $0x84] sm:$0xf]  ;;  %v10342_v42 = vor.u32 %v11812_v15, %v10339_v40  ;;  %v10571_v40 = vld [vmem:[#allocation11 + $0x2d8] sm:$0xf0] }
 0x153   : > { %v1315_v47 = vrot.slane %v1082_v43, 7  ;;  %1286 = vst [vmem:[#allocation2 + $0x390] sm:$0xff] %v13270_v46  ;;  %v10337_v43 = vld [vmem:[#allocation11] sm:$0xf]  ;;  %v10406_v50 = vor.u32 %v11828_v41, %v10403_v45 }
 0x154   : > { %v1544_v45 = vld [vmem:[#allocation2 + $0x148] sm:$0xff] }
 0x155   : > { %1317 = vst [vmem:[#allocation2 + $0x300] sm:$0xfe] %v1315_v47  ;;  %1882 = vmatmul.bf16.gmra.mxu0 %v1653_v48  ;;  %1980 = vmatmul.bf16.gmra.mxu2 %v1653_v48  ;;  %v1431_v48 = vadd.f32 %v12971_v23, %v1393_v38  ;;  %v10507_v38 = vld [vmem:[#allocation11 + $0x258] sm:$0xf0] }
 0x156   : > { %1318 = vst [vmem:[#allocation2 + $0x320] sm:$0x1] %v1315_v47  ;;  %v1055_v49 = vpop.f32.mrf.mxu2  ;;  %v999_v52 = vpop.f32.mrf.mxu0  ;;  %v11813_v47 = vld [vmem:[#allocation11 + $0x4] sm:$0xf0]  ;;  %2364 = vmatpush.bf16.msrb.mxu3 %v10406_v50  ;;  %v10510_v15 = vor.u32 %v11886_v63, %v10507_v38  ;;  %v10569_v50 = vld [vmem:[#allocation11 + $0x2d0] sm:$0xf] }
 0x157   : > { %v1056_v51 = vadd.f32 %v1055_v49, %v13204_v11  ;;  %v1084_v2 = vpop.f32.mrf.mxu3  ;;  %v1000_v24 = vadd.f32 %v999_v52, %v13195_v53  ;;  %v1028_v25 = vpop.f32.mrf.mxu1  ;;  %v1433_v49 = vadd.f32 %v12971_v23, %v1395_v39  ;;  %v10338_v16 = vor.u32 %v11813_v47, %v10337_v43  ;;  %v11829_v52 = vld [vmem:[#allocation11 + $0x84] sm:$0xf0]  ;;  %1450 = vst [vmem:[#allocation2 + $0x398] sm:$0xff] %v1431_v48  ;;  %v11902_v39 = vld [vmem:[#allocation11 + $0x2d4] sm:$0xf] }
 0x158   : > { %v10574_v41 = vor.u32 %v11902_v39, %v10571_v40  ;;  %v10555_v63 = vld [vmem:[#allocation11 + $0x2b8] sm:$0xf0]  ;;  %v1550_v40 = vld [vmem:[#allocation2 + $0x208] sm:$0xff] }
 0x159   : > { %v1085_v37 = vadd.f32 %v1084_v2, %v1056_v51  ;;  %v1029_v59 = vadd.f32 %v1028_v25, %v1000_v24  ;;  %v10401_v51 = vld [vmem:[#allocation11 + $0x80] sm:$0xf]  ;;  %v1660_v19 = vpack.c.bf16 %v1433_v49, %v1431_v48  ;;  %1451 = vst [vmem:[#allocation2 + $0x3d8] sm:$0xff] %v1433_v49  ;;  %2217 = vmatpush.bf16.msrb.mxu0 %v10338_v16  ;;  %v11890_v24 = vld [vmem:[#allocation11 + $0x274] sm:$0xf] }
 0x15a   : > { %v10402_v2 = vor.u32 %v11829_v52, %v10401_v51  ;;  %v10523_v25 = vld [vmem:[#allocation11 + $0x278] sm:$0xf0]  ;;  %v10505_v48 = vld [vmem:[#allocation11 + $0x250] sm:$0xf]  ;;  %v11887_v49 = vld [vmem:[#allocation11 + $0x254] sm:$0xf0] }
 0x15b   : > { %v1320_v61 = vrot.slane %v1085_v37, 7  ;;  %1288 = vst [vmem:[#allocation2 + $0x410] sm:$0xff] %v1029_v59  ;;  %2039 = vmatmul.bf16.gmra.mxu3 %v1658_v14  ;;  %1941 = vmatmul.bf16.gmra.mxu1 %v1658_v14  ;;  %v10526_v37 = vor.u32 %v11890_v24, %v10523_v25  ;;  %v10587_v59 = vld [vmem:[#allocation11 + $0x2f8] sm:$0xf0]  ;;  %v11904_v14 = vld [vmem:[#allocation11 + $0x2e4] sm:$0xf]  ;;  %v10506_v52 = vor.u32 %v11887_v49, %v10505_v48 }
 0x15c   : > { %2266 = vmatpush.bf16.msrb.mxu1 %v10402_v2  ;;  %v11903_v2 = vld [vmem:[#allocation11 + $0x2d4] sm:$0xf0]  ;;  %v10489_v48 = vld [vmem:[#allocation11 + $0x230] sm:$0xf] }
 0x15d   : > { %1322 = vst [vmem:[#allocation2 + $0x380] sm:$0xfe] %v1320_v61  ;;  %2872 = vmatpush.bf16.msra.mxu0 %v10522_v0  ;;  %v1539_v24 = vld [vmem:[#allocation2 + $0xc0] sm:$0xff]  ;;  %v10502_v0 = vor.u32 %v11884_v26, %v10499_v60 }
 0x15e   : > { %1323 = vst [vmem:[#allocation2 + $0x3a0] sm:$0x1] %v1320_v61  ;;  %v1057_v53 = vpop.f32.mrf.mxu2  ;;  %v10590_v61 = vor.u32 %v11906_v18, %v10587_v59  ;;  %v11883_v49 = vld [vmem:[#allocation11 + $0x234] sm:$0xf0] }
 0x15f   : > { %v1058_v12 = vadd.f32 %v1057_v53, %v13204_v11  ;;  %v1086_v8 = vpop.f32.mrf.mxu3  ;;  %v11814_v11 = vld [vmem:[#allocation11 + $0x14] sm:$0xf] }
 0x160   : > { %v10350_v44 = vor.u32 %v11814_v11, %v10347_v27  ;;  %3019 = vmatpush.bf16.msra.mxu3 %v10590_v61  ;;  %2921 = vmatpush.bf16.msra.mxu1 %v10586_v5  ;;  %v1540_v11 = vld [vmem:[#allocation2 + $0xc8] sm:$0xff] }
 0x161   : > { %v1087_v62 = vadd.f32 %v1086_v8, %v1058_v12  ;;  %v1566_v12 = vpack.c.bf16 %v1536_v21, %v1534_v17  ;;  %v1659_v8 = vpack.c.bf16 %v13189_v34, %v13270_v46  ;;  %v11900_v61 = vld [vmem:[#allocation11 + $0x2c4] sm:$0xf] }
 0x162   : > { %2314 = vmatpush.bf16.msrb.mxu2 %v10350_v44  ;;  %v10513_v44 = vld [vmem:[#allocation11 + $0x260] sm:$0xf]  ;;  %v10566_v3 = vor.u32 %v11900_v61, %v10563_v1  ;;  %v10483_v1 = vld [vmem:[#allocation11 + $0x228] sm:$0xf0] }
 0x163   : > { %v1325_v4 = vrot.slane %v1087_v62, 7  ;;  %v10579_v62 = vld [vmem:[#allocation11 + $0x2e8] sm:$0xf0]  ;;  %v10514_v31 = vor.u32 %v11889_v28, %v10513_v44  ;;  %v1546_v21 = vld [vmem:[#allocation2 + $0x188] sm:$0xff]  ;;  %v1541_v28 = vld [vmem:[#allocation2 + $0x100] sm:$0xff] }
 0x164   : > { %2922 = vmatpush.bf16.msra.mxu1 %v10578_v32 }
 0x165   : > { %1327 = vst [vmem:[#allocation2 + $0x400] sm:$0xfe] %v1325_v4  ;;  %1887 = vmatmul.bf16.gmra.mxu0 %v1655_v22  ;;  %1985 = vmatmul.bf16.gmra.mxu2 %v1655_v22  ;;  %v1538_v22 = vld [vmem:[#allocation2 + $0x88] sm:$0xff] }
 0x166   : > { %1328 = vst [vmem:[#allocation2 + $0x420] sm:$0x1] %v1325_v4  ;;  %2315 = vmatpush.bf16.msrb.mxu2 %v10342_v42  ;;  %v10582_v4 = vor.u32 %v11904_v14, %v10579_v62  ;;  %v1568_v34 = vpack.c.bf16 %v1540_v11, %v1538_v22  ;;  %2873 = vmatpush.bf16.msra.mxu0 %v10514_v31  ;;  %v1542_v42 = vld [vmem:[#allocation2 + $0x108] sm:$0xff]  ;;  %v11901_v22 = vld [vmem:[#allocation11 + $0x2c4] sm:$0xf0] }
 0x167   : > { %v1570_v16 = vpack.c.bf16 %v1544_v45, %v1542_v42  ;;  %v10561_v14 = vld [vmem:[#allocation11 + $0x2c0] sm:$0xf] }
 0x168   : > { %3020 = vmatpush.bf16.msra.mxu3 %v10582_v4  ;;  %v10498_v4 = vor.u32 %v11885_v29, %v10497_v10  ;;  %v10562_v11 = vor.u32 %v11901_v22, %v10561_v14  ;;  %v1554_v10 = vld [vmem:[#allocation2 + $0x288] sm:$0xff]  ;;  %v11881_v22 = vld [vmem:[#allocation11 + $0x224] sm:$0xf0] }
 0x169   : > { %v1556_v29 = vld [vmem:[#allocation2 + $0x2c8] sm:$0xff] }
 0x16a   : > { %2970 = vmatpush.bf16.msra.mxu2 %v10526_v37  ;;  %2874 = vmatpush.bf16.msra.mxu0 %v10506_v52  ;;  %v10490_v52 = vor.u32 %v11883_v49, %v10489_v48  ;;  %v10539_v49 = vld [vmem:[#allocation11 + $0x298] sm:$0xf0] }
 0x16b   : > { %2044 = vmatmul.bf16.gmra.mxu3 %v1660_v19  ;;  %1946 = vmatmul.bf16.gmra.mxu1 %v1660_v19  ;;  %v10570_v19 = vor.u32 %v11903_v2, %v10569_v50  ;;  %v10553_v50 = vld [vmem:[#allocation11 + $0x2b0] sm:$0xf]  ;;  %v11899_v2 = vld [vmem:[#allocation11 + $0x2b4] sm:$0xf0] }
 0x16c   : > { %3021 = vmatpush.bf16.msra.mxu3 %v10574_v41  ;;  %v1552_v41 = vld [vmem:[#allocation2 + $0x248] sm:$0xff] }
 0x16d   : > { %2923 = vmatpush.bf16.msra.mxu1 %v10570_v19  ;;  %v10554_v19 = vor.u32 %v11899_v2, %v10553_v50  ;;  %v1560_v2 = vld [vmem:[#allocation2 + $0x348] sm:$0xff] }
 0x16e   : > { %v1863_v55 = vpop.f32.mrf.mxu0  ;;  %v1912_v56 = vpop.f32.mrf.mxu1  ;;  %2971 = vmatpush.bf16.msra.mxu2 %v10518_v20  ;;  %2875 = vmatpush.bf16.msra.mxu0 %v10498_v4  ;;  %v10481_v4 = vld [vmem:[#allocation11 + $0x220] sm:$0xf] }
 0x16f   : > { %v13294_v23 = vadd.f32 %v1912_v56, %v1863_v55  ;;  %v1537_v55 = vld [vmem:[#allocation2 + $0x80] sm:$0xff] }
 0x170   : > { %v1567_v37 = vpack.c.bf16 %v1539_v24, %v1537_v55  ;;  %3022 = vmatpush.bf16.msra.mxu3 %v10566_v3  ;;  %v11896_v3 = vld [vmem:[#allocation11 + $0x2a4] sm:$0xf] }
 0x171   : > { %2924 = vmatpush.bf16.msra.mxu1 %v10562_v11  ;;  %v10545_v11 = vld [vmem:[#allocation11 + $0x2a0] sm:$0xf] }
 0x172   : > { %2972 = vmatpush.bf16.msra.mxu2 %v10510_v15  ;;  %2876 = vmatpush.bf16.msra.mxu0 %v10490_v52  ;;  %v1558_v52 = vld [vmem:[#allocation2 + $0x308] sm:$0xff] }
 0x175   : > { %1892 = vmatmul.bf16.gmra.mxu0 %v1657_v54  ;;  %1990 = vmatmul.bf16.gmra.mxu2 %v1657_v54  ;;  %v1961_v53 = vpop.f32.mrf.mxu2  ;;  %v2010_v6 = vpop.f32.mrf.mxu3 }
 0x176   : > { %v13296_v7 = vadd.f32 %v2010_v6, %v1961_v53  ;;  %v13300_v9 = vpop.f32.mrf.mxu1  ;;  %v13304_v43 = vpop.f32.mrf.mxu0  ;;  %2973 = vmatpush.bf16.msra.mxu2 %v10502_v0  ;;  %v1548_v53 = vld [vmem:[#allocation2 + $0x1c8] sm:$0xff]  ;;  %2925 = vmatpush.bf16.msra.mxu1 %v10554_v19 }
 0x177   : > { %v1572_v20 = vpack.c.bf16 %v1548_v53, %v1546_v21  ;;  %v11880_v0 = vld [vmem:[#allocation11 + $0x224] sm:$0xf]  ;;  %v10547_v21 = vld [vmem:[#allocation11 + $0x2a8] sm:$0xf0] }
 0x178   : > { %v10550_v53 = vor.u32 %v11896_v3, %v10547_v21 }
 0x17b   : > { %2365 = vmatmul.bf16.vlgmr.msrb.gmra.mxu3 %v1566_v12  ;;  %2267 = vmatmul.bf16.vlgmr.msrb.gmra.mxu1 %v1566_v12 }
 0x17d   : > { %v13302_v27 = vpop.f32.mrf.mxu3  ;;  %v13306_v54 = vpop.f32.mrf.mxu2 }
 0x17e   : > { %v1917_v46 = vpop.f32.mrf.mxu1 }
 0x185   : > { %1897 = vmatmul.bf16.gmra.mxu0 %v1659_v8  ;;  %1995 = vmatmul.bf16.gmra.mxu2 %v1659_v8  ;;  %v2015_v35 = vpop.f32.mrf.mxu3 }
 0x186   : > { %v1919_v57 = vpop.f32.mrf.mxu1 }
 0x18b   : > { %2370 = vmatmul.bf16.gmra.mxu3 %v1568_v34  ;;  %2272 = vmatmul.bf16.gmra.mxu1 %v1568_v34 }
 0x18d   : > { %v2017_v47 = vpop.f32.mrf.mxu3 }
 0x195   : > { %2218 = vmatmul.bf16.vlgmr.msrb.gmra.mxu0 %v1565_v36  ;;  %2316 = vmatmul.bf16.vlgmr.msrb.gmra.mxu2 %v1565_v36  ;;  %v11898_v36 = vld [vmem:[#allocation11 + $0x2b4] sm:$0xf] }
 0x196   : > { %v10558_v38 = vor.u32 %v11898_v36, %v10555_v63 }
 0x198   : > { %v1922_v51 = vpop.f32.mrf.mxu1  ;;  %3023 = vmatpush.bf16.msra.mxu3 %v10558_v38 }
 0x19b   : > { %2375 = vmatmul.bf16.gmra.mxu3 %v1570_v16  ;;  %2277 = vmatmul.bf16.gmra.mxu1 %v1570_v16  ;;  %v1574_v16 = vpack.c.bf16 %v1552_v41, %v1550_v40  ;;  %v11878_v40 = vld [vmem:[#allocation11 + $0x214] sm:$0xf]  ;;  %v10475_v41 = vld [vmem:[#allocation11 + $0x218] sm:$0xf0] }
 0x19c   : > { %3024 = vmatpush.bf16.msra.mxu3 %v10550_v53  ;;  %v10478_v48 = vor.u32 %v11878_v40, %v10475_v41  ;;  %v10465_v40 = vld [vmem:[#allocation11 + $0x200] sm:$0xf]  ;;  %v11877_v41 = vld [vmem:[#allocation11 + $0x204] sm:$0xf0] }
 0x19e   : > { %v2020_v25 = vpop.f32.mrf.mxu3 }
 0x1a0   : > { %v1924_v59 = vpop.f32.mrf.mxu1 }
 0x1a2   : > { %v1868_v56 = vpop.f32.mrf.mxu0 }
 0x1a3   : > { %v13308_v18 = vadd.f32 %v1917_v46, %v1868_v56  ;;  %v1543_v46 = vld [vmem:[#allocation2 + $0x140] sm:$0xff] }
 0x1a4   : > { %v1569_v32 = vpack.c.bf16 %v1543_v46, %v1541_v28  ;;  %v1545_v56 = vld [vmem:[#allocation2 + $0x180] sm:$0xff]  ;;  %v11897_v46 = vld [vmem:[#allocation11 + $0x2a4] sm:$0xf0] }
 0x1a5   : > { %2223 = vmatmul.bf16.gmra.mxu0 %v1567_v37  ;;  %2321 = vmatmul.bf16.gmra.mxu2 %v1567_v37  ;;  %v1547_v37 = vld [vmem:[#allocation2 + $0x1c0] sm:$0xff] }
 0x1a6   : > { %v2022_v12 = vpop.f32.mrf.mxu3  ;;  %v1571_v60 = vpack.c.bf16 %v1547_v37, %v1545_v56  ;;  %v10473_v56 = vld [vmem:[#allocation11 + $0x210] sm:$0xf] }
 0x1a7   : > { %v10537_v37 = vld [vmem:[#allocation11 + $0x290] sm:$0xf] }
 0x1a8   : > { %v1966_v5 = vpop.f32.mrf.mxu2  ;;  %v1927_v62 = vpop.f32.mrf.mxu1 }
 0x1a9   : > { %v13310_v17 = vadd.f32 %v2015_v35, %v1966_v5  ;;  %v10491_v35 = vld [vmem:[#allocation11 + $0x238] sm:$0xf0]  ;;  %v10486_v5 = vor.u32 %v11880_v0, %v10483_v1  ;;  %v11895_v1 = vld [vmem:[#allocation11 + $0x294] sm:$0xf0] }
 0x1aa   : > { %v1870_v6 = vpop.f32.mrf.mxu0  ;;  %v10538_v3 = vor.u32 %v11895_v1, %v10537_v37  ;;  %v2413_v37 = vld [vmem:[#allocation2 + $0x68] sm:$0x1] }
 0x1ab   : > { %v13312_v8 = vadd.f32 %v1919_v57, %v1870_v6  ;;  %2380 = vmatmul.bf16.gmra.mxu3 %v1572_v20  ;;  %2282 = vmatmul.bf16.gmra.mxu1 %v1572_v20  ;;  %v10494_v57 = vor.u32 %v11882_v33, %v10491_v35 }
 0x1ad   : > { %2974 = vmatpush.bf16.msra.mxu2 %v10494_v57  ;;  %v1551_v57 = vld [vmem:[#allocation2 + $0x240] sm:$0xff] }
 0x1ae   : > { %v2025_v31 = vpop.f32.mrf.mxu3 }
 0x1b0   : > { %v1968_v44 = vpop.f32.mrf.mxu2  ;;  %v1929_v13 = vpop.f32.mrf.mxu1 }
 0x1b1   : > { %v13314_v30 = vadd.f32 %v2017_v47, %v1968_v44  ;;  %2975 = vmatpush.bf16.msra.mxu2 %v10486_v5  ;;  %v1576_v44 = vpack.c.bf16 %v1556_v29, %v1554_v10  ;;  %v1555_v10 = vld [vmem:[#allocation2 + $0x2c0] sm:$0xff] }
 0x1b2   : > { %v1873_v34 = vpop.f32.mrf.mxu0 }
 0x1b3   : > { %v13316_v58 = vadd.f32 %v1922_v51, %v1873_v34  ;;  %v10482_v34 = vor.u32 %v11881_v22, %v10481_v4  ;;  %v11876_v4 = vld [vmem:[#allocation11 + $0x204] sm:$0xf]  ;;  %v10467_v22 = vld [vmem:[#allocation11 + $0x208] sm:$0xf0] }
 0x1b5   : > { %2228 = vmatmul.bf16.gmra.mxu0 %v1569_v32  ;;  %2326 = vmatmul.bf16.gmra.mxu2 %v1569_v32  ;;  %v10546_v32 = vor.u32 %v11897_v46, %v10545_v11  ;;  %v11892_v11 = vld [vmem:[#allocation11 + $0x284] sm:$0xf] }
 0x1b6   : > { %v2027_v45 = vpop.f32.mrf.mxu3  ;;  %2877 = vmatpush.bf16.msra.mxu0 %v10482_v34  ;;  %2976 = vmatpush.bf16.msra.mxu2 %v10478_v48  ;;  %v10531_v34 = vld [vmem:[#allocation11 + $0x288] sm:$0xf0] }
 0x1b7   : > { %2926 = vmatpush.bf16.msra.mxu1 %v10546_v32  ;;  %v10534_v32 = vor.u32 %v11892_v11, %v10531_v34 }
 0x1b8   : > { %v1971_v39 = vpop.f32.mrf.mxu2  ;;  %v1932_v51 = vpop.f32.mrf.mxu1 }
 0x1b9   : > { %v13318_v15 = vadd.f32 %v2020_v25, %v1971_v39 }
 0x1ba   : > { %v1875_v42 = vpop.f32.mrf.mxu0 }
 0x1bb   : > { %v13320_v47 = vadd.f32 %v1924_v59, %v1875_v42  ;;  %2385 = vmatmul.bf16.gmra.mxu3 %v1574_v16  ;;  %2287 = vmatmul.bf16.gmra.mxu1 %v1574_v16  ;;  %v11894_v42 = vld [vmem:[#allocation11 + $0x294] sm:$0xf] }
 0x1bc   : > { %v10542_v50 = vor.u32 %v11894_v42, %v10539_v49  ;;  %2927 = vmatpush.bf16.msra.mxu1 %v10538_v3  ;;  %v10529_v42 = vld [vmem:[#allocation11 + $0x280] sm:$0xf]  ;;  %v10466_v49 = vor.u32 %v11877_v41, %v10465_v40 }
 0x1be   : > { %v2030_v26 = vpop.f32.mrf.mxu3  ;;  %3025 = vmatpush.bf16.msra.mxu3 %v10542_v50  ;;  %v11893_v50 = vld [vmem:[#allocation11 + $0x284] sm:$0xf0] }
 0x1c0   : > { %v1973_v55 = vpop.f32.mrf.mxu2  ;;  %v1934_v61 = vpop.f32.mrf.mxu1 }
 0x1c1   : > { %v13322_v24 = vadd.f32 %v2022_v12, %v1973_v55 }
 0x1c2   : > { %v1878_v25 = vpop.f32.mrf.mxu0  ;;  %3026 = vmatpush.bf16.msra.mxu3 %v10534_v32 }
 0x1c3   : > { %v13324_v59 = vadd.f32 %v1927_v62, %v1878_v25  ;;  %v11879_v25 = vld [vmem:[#allocation11 + $0x214] sm:$0xf0] }
 0x1c4   : > { %v10474_v0 = vor.u32 %v11879_v25, %v10473_v56  ;;  %v2409_v25 = vld [vmem:[#allocation2 + $0x28] sm:$0x1] }
 0x1c5   : > { %2233 = vmatmul.bf16.gmra.mxu0 %v1571_v60  ;;  %2331 = vmatmul.bf16.gmra.mxu2 %v1571_v60  ;;  %v1578_v60 = vpack.c.bf16 %v1560_v2, %v1558_v52 }
 0x1c6   : > { %v2032_v20 = vpop.f32.mrf.mxu3  ;;  %2878 = vmatpush.bf16.msra.mxu0 %v10474_v0  ;;  %v1559_v0 = vld [vmem:[#allocation2 + $0x340] sm:$0xff] }
 0x1c8   : > { %v1976_v6 = vpop.f32.mrf.mxu2  ;;  %v1937_v28 = vpop.f32.mrf.mxu1 }
 0x1c9   : > { %v13326_v12 = vadd.f32 %v2025_v31, %v1976_v6  ;;  %v1549_v31 = vld [vmem:[#allocation2 + $0x200] sm:$0xff] }
 0x1ca   : > { %v1880_v14 = vpop.f32.mrf.mxu0  ;;  %v1573_v38 = vpack.c.bf16 %v1551_v57, %v1549_v31  ;;  %v1562_v31 = vld [vmem:[#allocation2 + $0x388] sm:$0xff]  ;;  %2879 = vmatpush.bf16.msra.mxu0 %v10466_v49  ;;  %v11923_v49 = vld [vmem:[#allocation11 + $0x374] sm:$0xf0] }
 0x1cb   : > { %v13328_v62 = vadd.f32 %v1929_v13, %v1880_v14  ;;  %2390 = vmatmul.bf16.gmra.mxu3 %v1576_v44  ;;  %2292 = vmatmul.bf16.gmra.mxu1 %v1576_v44  ;;  %v10470_v44 = vor.u32 %v11876_v4, %v10467_v22  ;;  %v11922_v4 = vld [vmem:[#allocation11 + $0x374] sm:$0xf] }
 0x1cc   : > { %v11938_v22 = vld [vmem:[#allocation11 + $0x3f4] sm:$0xf] }
 0x1cd   : > { %2977 = vmatpush.bf16.msra.mxu2 %v10470_v44  ;;  %v10715_v44 = vld [vmem:[#allocation11 + $0x3f8] sm:$0xf0] }
 0x1ce   : > { %v2035_v63 = vpop.f32.mrf.mxu3  ;;  %v10718_v32 = vor.u32 %v11938_v22, %v10715_v44  ;;  %v10643_v44 = vld [vmem:[#allocation11 + $0x368] sm:$0xf0] }
 0x1d0   : > { %v1978_v33 = vpop.f32.mrf.mxu2  ;;  %v1939_v39 = vpop.f32.mrf.mxu1  ;;  %3712 = vmatpush.bf16.msrb.mxu3 %v10718_v32  ;;  %v11936_v32 = vld [vmem:[#allocation11 + $0x3e4] sm:$0xf] }
 0x1d1   : > { %v13330_v35 = vadd.f32 %v2027_v45, %v1978_v33 }
 0x1d2   : > { %v1883_v36 = vpop.f32.mrf.mxu0 }
 0x1d3   : > { %v13332_v13 = vadd.f32 %v1932_v51, %v1883_v36  ;;  %v1564_v36 = vld [vmem:[#allocation2 + $0x3c8] sm:$0xff] }
 0x1d4   : > { %v1580_v48 = vpack.c.bf16 %v1564_v36, %v1562_v31 }
 0x1d5   : > { %2238 = vmatmul.bf16.gmra.mxu0 %v1573_v38  ;;  %2336 = vmatmul.bf16.gmra.mxu2 %v1573_v38 }
 0x1d6   : > { %v2037_v51 = vpop.f32.mrf.mxu3 }
 0x1d8   : > { %v1981_v16 = vpop.f32.mrf.mxu2  ;;  %v1942_v5 = vpop.f32.mrf.mxu1 }
 0x1d9   : > { %v13334_v45 = vadd.f32 %v2030_v26, %v1981_v16  ;;  %v1553_v26 = vld [vmem:[#allocation2 + $0x280] sm:$0xff]  ;;  %v10530_v16 = vor.u32 %v11893_v50, %v10529_v42  ;;  %v10713_v50 = vld [vmem:[#allocation11 + $0x3f0] sm:$0xf] }
 0x1da   : > { %v1885_v19 = vpop.f32.mrf.mxu0  ;;  %v1575_v29 = vpack.c.bf16 %v1555_v10, %v1553_v26 }
 0x1db   : > { %v13336_v55 = vadd.f32 %v1934_v61, %v1885_v19  ;;  %2395 = vmatmul.bf16.gmra.mxu3 %v1578_v60  ;;  %2297 = vmatmul.bf16.gmra.mxu1 %v1578_v60  ;;  %v2407_v19 = vld [vmem:[#allocation2 + $0x8] sm:$0xfe] }
 0x1dc   : > { %2928 = vmatpush.bf16.msra.mxu1 %v10530_v16  ;;  %v2538_v26 = vrot.slane %v2407_v19, 1 }
 0x1de   : > { %v2040_v14 = vpop.f32.mrf.mxu3 }
 0x1e0   : > { %v1983_v21 = vpop.f32.mrf.mxu2  ;;  %v1944_v46 = vpop.f32.mrf.mxu1 }
 0x1e1   : > { %v13338_v53 = vadd.f32 %v2032_v20, %v1983_v21 }
 0x1e2   : > { %v1888_v6 = vpop.f32.mrf.mxu0 }
 0x1e3   : > { %v13340_v61 = vadd.f32 %v1937_v28, %v1888_v6  ;;  %v2539_v6 = vrot.slane %v2409_v25, 1  ;;  %v1561_v25 = vld [vmem:[#allocation2 + $0x380] sm:$0xff] }
 0x1e5   : > { %2243 = vmatmul.bf16.gmra.mxu0 %v1575_v29  ;;  %2341 = vmatmul.bf16.gmra.mxu2 %v1575_v29  ;;  %v2545_v29 = vrot.slane %v2413_v37, 1  ;;  %v2540_v31 = vsel %vm2534_vm1, %v2538_v26, %v2539_v6  ;;  %v1563_v26 = vld [vmem:[#allocation2 + $0x3c0] sm:$0xff] }
 0x1e6   : > { %v2042_v38 = vpop.f32.mrf.mxu3 }
 0x1e8   : > { %v1986_v33 = vpop.f32.mrf.mxu2  ;;  %v1947_v52 = vpop.f32.mrf.mxu1 }
 0x1e9   : > { %v13342_v20 = vadd.f32 %v2035_v63, %v1986_v33  ;;  %v1557_v63 = vld [vmem:[#allocation2 + $0x300] sm:$0xff] }
 0x1ea   : > { %v1890_v28 = vpop.f32.mrf.mxu0  ;;  %v1577_v3 = vpack.c.bf16 %v1559_v0, %v1557_v63  ;;  %v2421_v0 = vld [vmem:[#allocation2 + $0xe8] sm:$0x1] }
 0x1eb   : > { %v13344_v57 = vadd.f32 %v1939_v39, %v1890_v28  ;;  %2400 = vmatmul.bf16.gmra.mxu3 %v1580_v48  ;;  %v2411_v39 = vld [vmem:[#allocation2 + $0x48] sm:$0xfe]  ;;  %2302 = vmatmul.bf16.gmra.mxu1 %v1580_v48  ;;  %v10649_v48 = vld [vmem:[#allocation11 + $0x370] sm:$0xf] }
 0x1ec   : > { %v2544_v10 = vrot.slane %v2411_v39, 1  ;;  %v10650_v16 = vor.u32 %v11923_v49, %v10649_v48  ;;  %v2415_v39 = vld [vmem:[#allocation2 + $0x88] sm:$0xfe]  ;;  %v2408_v49 = vld [vmem:[#allocation2 + $0x20] sm:$0x1] }
 0x1ee   : > { %v13350_v21 = vpop.f32.mrf.mxu3  ;;  %v2546_v36 = vsel %vm2534_vm1, %v2544_v10, %v2545_v29  ;;  %3565 = vmatpush.bf16.msrb.mxu0 %v10650_v16  ;;  %v1579_v10 = vpack.c.bf16 %v1563_v26, %v1561_v25  ;;  %v2412_v16 = vld [vmem:[#allocation2 + $0x60] sm:$0x1] }
 0x1ef   : > { %v2664_v42 = vpack.c.bf16 %v2546_v36, %v2540_v31  ;;  %v10707_v31 = vld [vmem:[#allocation11 + $0x3e8] sm:$0xf0] }
 0x1f0   : > { %v1988_v2 = vpop.f32.mrf.mxu2  ;;  %v1949_v34 = vpop.f32.mrf.mxu1 }
 0x1f1   : > { %v13346_v56 = vadd.f32 %v2037_v51, %v1988_v2  ;;  %v10651_v51 = vld [vmem:[#allocation11 + $0x378] sm:$0xf0]  ;;  %v11939_v2 = vld [vmem:[#allocation11 + $0x3f4] sm:$0xf0] }
 0x1f2   : > { %v1893_v60 = vpop.f32.mrf.mxu0  ;;  %v10654_v11 = vor.u32 %v11922_v4, %v10651_v51  ;;  %v2550_v4 = vrot.slane %v2415_v39, 1 }
 0x1f3   : > { %v13348_v1 = vadd.f32 %v1942_v5, %v1893_v60  ;;  %v2419_v60 = vld [vmem:[#allocation2 + $0xc8] sm:$0xfe] }
 0x1f4   : > { %3663 = vmatpush.bf16.msrb.mxu2 %v10654_v11  ;;  %v2556_v22 = vrot.slane %v2419_v60, 1  ;;  %v2557_v11 = vrot.slane %v2421_v0, 1  ;;  %v2536_v60 = vrot.slane %v2408_v49, 1 }
 0x1f5   : > { %2248 = vmatmul.bf16.gmra.mxu0 %v1577_v3  ;;  %2346 = vmatmul.bf16.gmra.mxu2 %v1577_v3 }
 0x1f6   : > { %v13358_v41 = vpop.f32.mrf.mxu3 }
 0x1f8   : > { %v1991_v33 = vpop.f32.mrf.mxu2  ;;  %v13360_v63 = vpop.f32.mrf.mxu1 }
 0x1f9   : > { %v13352_v5 = vadd.f32 %v2040_v14, %v1991_v33  ;;  %v10714_v14 = vor.u32 %v11939_v2, %v10713_v50  ;;  %v2410_v50 = vld [vmem:[#allocation2 + $0x40] sm:$0xfe] }
 0x1fa   : > { %v1895_v28 = vpop.f32.mrf.mxu0  ;;  %v2541_v0 = vrot.slane %v2410_v50, 1 }
 0x1fb   : > { %v13356_v40 = vadd.f32 %v1944_v46, %v1895_v28  ;;  %3027 = vmatmul.bf16.vlgmr.msra.gmra.mxu3 %v2664_v42  ;;  %3614 = vmatpush.bf16.msrb.mxu1 %v10714_v14  ;;  %v2417_v46 = vld [vmem:[#allocation2 + $0xa8] sm:$0x1]  ;;  %v10710_v28 = vor.u32 %v11936_v32, %v10707_v31  ;;  %v2558_v14 = vsel %vm2534_vm1, %v2556_v22, %v2557_v11  ;;  %v11937_v32 = vld [vmem:[#allocation11 + $0x3e4] sm:$0xf0]  ;;  %v2423_v11 = vld [vmem:[#allocation2 + $0x108] sm:$0xfe] }
 0x1fc   : > { %2929 = vmatmul.bf16.vlgmr.msra.gmra.mxu1 %v2664_v42  ;;  %v2551_v51 = vrot.slane %v2417_v46, 1 }
 0x1fd   : > { %3713 = vmatpush.bf16.msrb.mxu3 %v10710_v28  ;;  %v2425_v28 = vld [vmem:[#allocation2 + $0x128] sm:$0x1] }
 0x1fe   : > { %v13366_v29 = vpop.f32.mrf.mxu3  ;;  %v2552_v2 = vsel %vm2534_vm1, %v2550_v4, %v2551_v51 }
 0x1ff   : > { %v2666_v26 = vpack.c.bf16 %v2558_v14, %v2552_v2  ;;  %v2562_v14 = vrot.slane %v2423_v11, 1 }
 0x200   : > { %v1993_v19 = vpop.f32.mrf.mxu2  ;;  %v13368_v36 = vpop.f32.mrf.mxu1 }
 0x201   : > { %v13362_v37 = vadd.f32 %v2042_v38, %v1993_v19  ;;  %v11920_v38 = vld [vmem:[#allocation11 + $0x364] sm:$0xf] }
 0x202   : > { %v1898_v3 = vpop.f32.mrf.mxu0  ;;  %v10646_v33 = vor.u32 %v11920_v38, %v10643_v44  ;;  %v10705_v38 = vld [vmem:[#allocation11 + $0x3e0] sm:$0xf] }
 0x203   : > { %v13364_v6 = vadd.f32 %v1947_v52, %v1898_v3  ;;  %v2406_v52 = vld [vmem:[#allocation2] sm:$0xfe]  ;;  %v2542_v3 = vrot.slane %v2412_v16, 1  ;;  %v10706_v4 = vor.u32 %v11937_v32, %v10705_v38  ;;  %v1915_v32 = vadd.f32 %v13300_v9, %v13304_v43 }
 0x204   : > { %3664 = vmatpush.bf16.msrb.mxu2 %v10646_v33  ;;  %v2535_v39 = vrot.slane %v2406_v52, 1  ;;  %v2429_v52 = vld [vmem:[#allocation2 + $0x168] sm:$0x1]  ;;  %v10699_v38 = vld [vmem:[#allocation11 + $0x3d8] sm:$0xf0] }
 0x205   : > { %2253 = vmatmul.bf16.gmra.mxu0 %v1579_v10  ;;  %2351 = vmatmul.bf16.gmra.mxu2 %v1579_v10  ;;  %v11921_v10 = vld [vmem:[#allocation11 + $0x364] sm:$0xf0] }
 0x206   : > { %v13377_v46 = vpop.f32.mrf.mxu3  ;;  %v2537_v22 = vsel %vm2534_vm1, %v2535_v39, %v2536_v60  ;;  %3615 = vmatpush.bf16.msrb.mxu1 %v10706_v4  ;;  %v2569_v60 = vrot.slane %v2429_v52, 1  ;;  %v2418_v52 = vld [vmem:[#allocation2 + $0xc0] sm:$0xfe] }
 0x208   : > { %v1996_v42 = vpop.f32.mrf.mxu2  ;;  %v13379_v33 = vpop.f32.mrf.mxu1 }
 0x209   : > { %v13371_v48 = vadd.f32 %v13350_v21, %v1996_v42  ;;  %v10641_v21 = vld [vmem:[#allocation11 + $0x360] sm:$0xf] }
 0x20a   : > { %v1900_v19 = vpop.f32.mrf.mxu0  ;;  %v10642_v44 = vor.u32 %v11921_v10, %v10641_v21  ;;  %v2427_v42 = vld [vmem:[#allocation2 + $0x148] sm:$0xfe]  ;;  %v11934_v21 = vld [vmem:[#allocation11 + $0x3d4] sm:$0xf] }
 0x20b   : > { %v13375_v25 = vadd.f32 %v1949_v34, %v1900_v19  ;;  %v2543_v34 = vsel %vm2534_vm1, %v2541_v0, %v2542_v3  ;;  %3032 = vmatmul.bf16.gmra.mxu3 %v2666_v26  ;;  %v2563_v19 = vrot.slane %v2425_v28, 1  ;;  %v2568_v39 = vrot.slane %v2427_v42, 1  ;;  %v10635_v3 = vld [vmem:[#allocation11 + $0x358] sm:$0xf0] }
 0x20c   : > { %3566 = vmatpush.bf16.msrb.mxu0 %v10642_v44  ;;  %2934 = vmatmul.bf16.gmra.mxu1 %v2666_v26  ;;  %v2663_v16 = vpack.c.bf16 %v2543_v34, %v2537_v22 }
 0x20d   : > { %v2564_v22 = vsel %vm2534_vm1, %v2562_v14, %v2563_v19  ;;  %v2570_v34 = vsel %vm2534_vm1, %v2568_v39, %v2569_v60  ;;  %v11919_v14 = vld [vmem:[#allocation11 + $0x354] sm:$0xf0]  ;;  %v10697_v19 = vld [vmem:[#allocation11 + $0x3d0] sm:$0xf]  ;;  %v2553_v39 = vrot.slane %v2418_v52, 1 }
 0x20e   : > { %v13387_v2 = vpop.f32.mrf.mxu3  ;;  %v2668_v43 = vpack.c.bf16 %v2570_v34, %v2564_v22 }
 0x210   : > { %v1998_v51 = vpop.f32.mrf.mxu2  ;;  %v13392_v26 = vpop.f32.mrf.mxu1 }
 0x211   : > { %v13384_v31 = vadd.f32 %v13358_v41, %v1998_v51  ;;  %v11918_v41 = vld [vmem:[#allocation11 + $0x354] sm:$0xf]  ;;  %v2414_v51 = vld [vmem:[#allocation2 + $0x80] sm:$0xfe] }
 0x212   : > { %v2219_v49 = vpop.f32.mrf.mxu0  ;;  %v10638_v10 = vor.u32 %v11918_v41, %v10635_v3  ;;  %v10633_v41 = vld [vmem:[#allocation11 + $0x350] sm:$0xf] }
 0x213   : > { %v2220_v50 = vadd.f32 %v2219_v49, %v13294_v23  ;;  %v10702_v23 = vor.u32 %v11934_v21, %v10699_v38  ;;  %v2420_v49 = vld [vmem:[#allocation2 + $0xe0] sm:$0x1]  ;;  %v10634_v3 = vor.u32 %v11919_v14, %v10633_v41  ;;  %v11916_v14 = vld [vmem:[#allocation11 + $0x344] sm:$0xf] }
 0x214   : > { %3665 = vmatpush.bf16.msrb.mxu2 %v10638_v10  ;;  %v2554_v60 = vrot.slane %v2420_v49, 1  ;;  %v11935_v21 = vld [vmem:[#allocation11 + $0x3d4] sm:$0xf0] }
 0x215   : > { %v13390_v0 = vadd.f32 %v13360_v63, %v2220_v50  ;;  %2880 = vmatmul.bf16.vlgmr.msra.gmra.mxu0 %v2663_v16  ;;  %2978 = vmatmul.bf16.vlgmr.msra.gmra.mxu2 %v2663_v16  ;;  %v2416_v63 = vld [vmem:[#allocation2 + $0xa0] sm:$0x1]  ;;  %v2547_v16 = vrot.slane %v2414_v51, 1  ;;  %v10698_v38 = vor.u32 %v11935_v21, %v10697_v19  ;;  %v2435_v51 = vld [vmem:[#allocation2 + $0x1c8] sm:$0xfe] }
 0x216   : > { %3714 = vmatpush.bf16.msrb.mxu3 %v10702_v23  ;;  %v13402_v50 = vpop.f32.mrf.mxu3  ;;  %v2548_v9 = vrot.slane %v2416_v63, 1  ;;  %3567 = vmatpush.bf16.msrb.mxu0 %v10634_v3  ;;  %v2437_v63 = vld [vmem:[#allocation2 + $0x1e8] sm:$0x1]  ;;  %v2555_v34 = vsel %vm2534_vm1, %v2553_v39, %v2554_v60  ;;  %v10627_v19 = vld [vmem:[#allocation11 + $0x348] sm:$0xf0] }
 0x217   : > { %3616 = vmatpush.bf16.msrb.mxu1 %v10698_v38  ;;  %v10630_v39 = vor.u32 %v11916_v14, %v10627_v19  ;;  %v2424_v38 = vld [vmem:[#allocation2 + $0x120] sm:$0x1] }
 0x218   : > { %v2317_v44 = vpop.f32.mrf.mxu2  ;;  %v13409_v10 = vpop.f32.mrf.mxu1 }
 0x219   : > { %v2318_v4 = vadd.f32 %v2317_v44, %v13296_v7  ;;  %v2549_v44 = vsel %vm2534_vm1, %v2547_v16, %v2548_v9  ;;  %v2580_v16 = vrot.slane %v2435_v51, 1  ;;  %v2581_v9 = vrot.slane %v2437_v63, 1  ;;  %3666 = vmatpush.bf16.msrb.mxu2 %v10630_v39  ;;  %v2428_v51 = vld [vmem:[#allocation2 + $0x160] sm:$0x1] }
 0x21a   : > { %v2221_v11 = vpop.f32.mrf.mxu0 }
 0x21b   : > { %v13400_v28 = vadd.f32 %v13366_v29, %v2318_v4  ;;  %v2222_v42 = vadd.f32 %v2221_v11, %v1915_v32  ;;  %v2013_v29 = vadd.f32 %v13302_v27, %v13306_v54  ;;  %3037 = vmatmul.bf16.gmra.mxu3 %v2668_v43  ;;  %v2433_v4 = vld [vmem:[#allocation2 + $0x1a8] sm:$0x1]  ;;  %v2665_v11 = vpack.c.bf16 %v2555_v34, %v2549_v44 }
 0x21c   : > { %2939 = vmatmul.bf16.gmra.mxu1 %v2668_v43  ;;  %v2575_v49 = vrot.slane %v2433_v4, 1  ;;  %v11932_v43 = vld [vmem:[#allocation11 + $0x3c4] sm:$0xf]  ;;  %v2426_v4 = vld [vmem:[#allocation2 + $0x140] sm:$0xfe]  ;;  %v2560_v34 = vrot.slane %v2424_v38, 1 }
 0x21d   : > { %v13405_v7 = vadd.f32 %v13368_v36, %v2222_v42  ;;  %v2431_v36 = vld [vmem:[#allocation2 + $0x188] sm:$0xfe] }
 0x21e   : > { %v13417_v42 = vpop.f32.mrf.mxu3  ;;  %v2574_v52 = vrot.slane %v2431_v36, 1 }
 0x220   : > { %v2319_v23 = vpop.f32.mrf.mxu2  ;;  %v13422_v60 = vpop.f32.mrf.mxu1 }
 0x221   : > { %v2320_v32 = vadd.f32 %v2319_v23, %v2013_v29  ;;  %v2422_v29 = vld [vmem:[#allocation2 + $0x100] sm:$0xfe]  ;;  %v2576_v23 = vsel %vm2534_vm1, %v2574_v52, %v2575_v49  ;;  %v11917_v52 = vld [vmem:[#allocation11 + $0x344] sm:$0xf0]  ;;  %v10689_v49 = vld [vmem:[#allocation11 + $0x3c0] sm:$0xf] }
 0x222   : > { %v2224_v22 = vpop.f32.mrf.mxu0 }
 0x223   : > { %v13414_v27 = vadd.f32 %v13377_v46, %v2320_v32  ;;  %v2225_v54 = vadd.f32 %v2224_v22, %v13308_v18  ;;  %v10691_v46 = vld [vmem:[#allocation11 + $0x3c8] sm:$0xf0]  ;;  %v2559_v22 = vrot.slane %v2422_v29, 1 }
 0x224   : > { %v10694_v18 = vor.u32 %v11932_v43, %v10691_v46  ;;  %v2439_v46 = vld [vmem:[#allocation2 + $0x208] sm:$0xfe] }
 0x225   : > { %v13420_v41 = vadd.f32 %v13379_v33, %v2225_v54  ;;  %2885 = vmatmul.bf16.gmra.mxu0 %v2665_v11  ;;  %2983 = vmatmul.bf16.gmra.mxu2 %v2665_v11  ;;  %v2582_v33 = vsel %vm2534_vm1, %v2580_v16, %v2581_v9  ;;  %v10625_v11 = vld [vmem:[#allocation11 + $0x340] sm:$0xf]  ;;  %v2565_v16 = vrot.slane %v2426_v4, 1  ;;  %v2566_v9 = vrot.slane %v2428_v51, 1 }
 0x226   : > { %3715 = vmatpush.bf16.msrb.mxu3 %v10694_v18  ;;  %v13431_v63 = vpop.f32.mrf.mxu3  ;;  %v10626_v14 = vor.u32 %v11917_v52, %v10625_v11  ;;  %v2561_v39 = vsel %vm2534_vm1, %v2559_v22, %v2560_v34  ;;  %v2586_v4 = vrot.slane %v2439_v46, 1  ;;  %v11914_v11 = vld [vmem:[#allocation11 + $0x334] sm:$0xf]  ;;  %v10619_v52 = vld [vmem:[#allocation11 + $0x338] sm:$0xf0] }
 0x227   : > { %v2567_v38 = vsel %vm2534_vm1, %v2565_v16, %v2566_v9 }
 0x228   : > { %v2322_v3 = vpop.f32.mrf.mxu2  ;;  %v13436_v19 = vpop.f32.mrf.mxu1  ;;  %3568 = vmatpush.bf16.msrb.mxu0 %v10626_v14 }
 0x229   : > { %v2323_v21 = vadd.f32 %v2322_v3, %v13310_v17  ;;  %v2670_v17 = vpack.c.bf16 %v2582_v33, %v2576_v23  ;;  %v2443_v3 = vld [vmem:[#allocation2 + $0x248] sm:$0xfe] }
 0x22a   : > { %v2226_v44 = vpop.f32.mrf.mxu0  ;;  %v2592_v22 = vrot.slane %v2443_v3, 1  ;;  %v2436_v3 = vld [vmem:[#allocation2 + $0x1e0] sm:$0x1] }
 0x22b   : > { %v13428_v36 = vadd.f32 %v13387_v2, %v2323_v21  ;;  %v2227_v32 = vadd.f32 %v2226_v44, %v13312_v8  ;;  %v11933_v2 = vld [vmem:[#allocation11 + $0x3c4] sm:$0xf0]  ;;  %3042 = vmatmul.bf16.gmra.mxu3 %v2670_v17  ;;  %v2445_v21 = vld [vmem:[#allocation2 + $0x268] sm:$0x1]  ;;  %v2667_v44 = vpack.c.bf16 %v2567_v38, %v2561_v39 }
 0x22c   : > { %v10690_v8 = vor.u32 %v11933_v2, %v10689_v49  ;;  %2944 = vmatmul.bf16.gmra.mxu1 %v2670_v17  ;;  %v11930_v17 = vld [vmem:[#allocation11 + $0x3b4] sm:$0xf]  ;;  %v10622_v49 = vor.u32 %v11914_v11, %v10619_v52  ;;  %v2430_v2 = vld [vmem:[#allocation2 + $0x180] sm:$0xfe] }
 0x22d   : > { %v13434_v54 = vadd.f32 %v13392_v26, %v2227_v32  ;;  %v2441_v26 = vld [vmem:[#allocation2 + $0x228] sm:$0x1] }
 0x22e   : > { %3617 = vmatpush.bf16.msrb.mxu1 %v10690_v8  ;;  %v13445_v32 = vpop.f32.mrf.mxu3  ;;  %v2587_v51 = vrot.slane %v2441_v26, 1  ;;  %3667 = vmatpush.bf16.msrb.mxu2 %v10622_v49  ;;  %v2432_v8 = vld [vmem:[#allocation2 + $0x1a0] sm:$0x1]  ;;  %v2434_v26 = vld [vmem:[#allocation2 + $0x1c0] sm:$0xfe] }
 0x22f   : > { %v2572_v38 = vrot.slane %v2432_v8, 1 }
 0x230   : > { %v2324_v43 = vpop.f32.mrf.mxu2  ;;  %v13450_v16 = vpop.f32.mrf.mxu1 }
 0x231   : > { %v2325_v18 = vadd.f32 %v2324_v43, %v13314_v30  ;;  %v2593_v30 = vrot.slane %v2445_v21, 1  ;;  %v2588_v43 = vsel %vm2534_vm1, %v2586_v4, %v2587_v51  ;;  %v11915_v4 = vld [vmem:[#allocation11 + $0x334] sm:$0xf0]  ;;  %v10681_v51 = vld [vmem:[#allocation11 + $0x3b0] sm:$0xf] }
 0x232   : > { %v2229_v29 = vpop.f32.mrf.mxu0 }
 0x233   : > { %v13442_v23 = vadd.f32 %v13402_v50, %v2325_v18  ;;  %v2230_v33 = vadd.f32 %v2229_v29, %v13316_v58  ;;  %v10683_v50 = vld [vmem:[#allocation11 + $0x3b8] sm:$0xf0]  ;;  %v2571_v29 = vrot.slane %v2430_v2, 1 }
 0x234   : > { %v10686_v58 = vor.u32 %v11930_v17, %v10683_v50  ;;  %v2447_v50 = vld [vmem:[#allocation2 + $0x288] sm:$0xfe] }
 0x235   : > { %v13448_v34 = vadd.f32 %v13409_v10, %v2230_v33  ;;  %2890 = vmatmul.bf16.gmra.mxu0 %v2667_v44  ;;  %2988 = vmatmul.bf16.gmra.mxu2 %v2667_v44  ;;  %v2594_v10 = vsel %vm2534_vm1, %v2592_v22, %v2593_v30  ;;  %v10617_v44 = vld [vmem:[#allocation11 + $0x330] sm:$0xf]  ;;  %v2577_v22 = vrot.slane %v2434_v26, 1  ;;  %v2578_v30 = vrot.slane %v2436_v3, 1 }
 0x236   : > { %3716 = vmatpush.bf16.msrb.mxu3 %v10686_v58  ;;  %v13459_v21 = vpop.f32.mrf.mxu3  ;;  %v10618_v11 = vor.u32 %v11915_v4, %v10617_v44  ;;  %v2573_v49 = vsel %vm2534_vm1, %v2571_v29, %v2572_v38  ;;  %v2598_v26 = vrot.slane %v2447_v50, 1  ;;  %v11912_v44 = vld [vmem:[#allocation11 + $0x324] sm:$0xf]  ;;  %v10611_v4 = vld [vmem:[#allocation11 + $0x328] sm:$0xf0] }
 0x237   : > { %v2579_v8 = vsel %vm2534_vm1, %v2577_v22, %v2578_v30 }
 0x238   : > { %v2327_v9 = vpop.f32.mrf.mxu2  ;;  %v13464_v52 = vpop.f32.mrf.mxu1  ;;  %3569 = vmatpush.bf16.msrb.mxu0 %v10618_v11 }
 0x239   : > { %v2328_v14 = vadd.f32 %v2327_v9, %v13318_v15  ;;  %v2672_v15 = vpack.c.bf16 %v2594_v10, %v2588_v43  ;;  %v2451_v9 = vld [vmem:[#allocation2 + $0x2c8] sm:$0xfe] }
 0x23a   : > { %v2231_v39 = vpop.f32.mrf.mxu0  ;;  %v2604_v29 = vrot.slane %v2451_v9, 1  ;;  %v2444_v9 = vld [vmem:[#allocation2 + $0x260] sm:$0x1] }
 0x23b   : > { %v13456_v46 = vadd.f32 %v13417_v42, %v2328_v14  ;;  %v2232_v18 = vadd.f32 %v2231_v39, %v13320_v47  ;;  %v11931_v42 = vld [vmem:[#allocation11 + $0x3b4] sm:$0xf0]  ;;  %3047 = vmatmul.bf16.gmra.mxu3 %v2672_v15  ;;  %v2453_v14 = vld [vmem:[#allocation2 + $0x2e8] sm:$0x1]  ;;  %v2669_v39 = vpack.c.bf16 %v2579_v8, %v2573_v49 }
 0x23c   : > { %v10682_v47 = vor.u32 %v11931_v42, %v10681_v51  ;;  %2949 = vmatmul.bf16.gmra.mxu1 %v2672_v15  ;;  %v11928_v15 = vld [vmem:[#allocation11 + $0x3a4] sm:$0xf]  ;;  %v10614_v51 = vor.u32 %v11912_v44, %v10611_v4  ;;  %v2438_v42 = vld [vmem:[#allocation2 + $0x200] sm:$0xfe] }
 0x23d   : > { %v13462_v33 = vadd.f32 %v13422_v60, %v2232_v18  ;;  %v2449_v60 = vld [vmem:[#allocation2 + $0x2a8] sm:$0x1] }
 0x23e   : > { %3618 = vmatpush.bf16.msrb.mxu1 %v10682_v47  ;;  %v13473_v18 = vpop.f32.mrf.mxu3  ;;  %v2599_v3 = vrot.slane %v2449_v60, 1  ;;  %3668 = vmatpush.bf16.msrb.mxu2 %v10614_v51  ;;  %v2440_v47 = vld [vmem:[#allocation2 + $0x220] sm:$0x1]  ;;  %v2442_v60 = vld [vmem:[#allocation2 + $0x240] sm:$0xfe] }
 0x23f   : > { %v2584_v8 = vrot.slane %v2440_v47, 1 }
 0x240   : > { %v2329_v17 = vpop.f32.mrf.mxu2  ;;  %v13478_v22 = vpop.f32.mrf.mxu1 }
 0x241   : > { %v2330_v58 = vadd.f32 %v2329_v17, %v13322_v24  ;;  %v2605_v24 = vrot.slane %v2453_v14, 1  ;;  %v2600_v17 = vsel %vm2534_vm1, %v2598_v26, %v2599_v3  ;;  %v11913_v26 = vld [vmem:[#allocation11 + $0x324] sm:$0xf0]  ;;  %v10673_v3 = vld [vmem:[#allocation11 + $0x3a0] sm:$0xf] }
 0x242   : > { %v2234_v2 = vpop.f32.mrf.mxu0 }
 0x243   : > { %v13470_v43 = vadd.f32 %v13431_v63, %v2330_v58  ;;  %v2235_v10 = vadd.f32 %v2234_v2, %v13324_v59  ;;  %v10675_v63 = vld [vmem:[#allocation11 + $0x3a8] sm:$0xf0]  ;;  %v2583_v2 = vrot.slane %v2438_v42, 1 }
 0x244   : > { %v10678_v59 = vor.u32 %v11928_v15, %v10675_v63  ;;  %v2455_v63 = vld [vmem:[#allocation2 + $0x308] sm:$0xfe] }
 0x245   : > { %v13476_v38 = vadd.f32 %v13436_v19, %v2235_v10  ;;  %2895 = vmatmul.bf16.gmra.mxu0 %v2669_v39  ;;  %2993 = vmatmul.bf16.gmra.mxu2 %v2669_v39  ;;  %v2606_v19 = vsel %vm2534_vm1, %v2604_v29, %v2605_v24  ;;  %v10609_v39 = vld [vmem:[#allocation11 + $0x320] sm:$0xf]  ;;  %v2589_v29 = vrot.slane %v2442_v60, 1  ;;  %v2590_v24 = vrot.slane %v2444_v9, 1 }
 0x246   : > { %3717 = vmatpush.bf16.msrb.mxu3 %v10678_v59  ;;  %v13487_v14 = vpop.f32.mrf.mxu3  ;;  %v10610_v44 = vor.u32 %v11913_v26, %v10609_v39  ;;  %v2585_v51 = vsel %vm2534_vm1, %v2583_v2, %v2584_v8  ;;  %v2610_v60 = vrot.slane %v2455_v63, 1  ;;  %v11910_v39 = vld [vmem:[#allocation11 + $0x314] sm:$0xf]  ;;  %v10603_v26 = vld [vmem:[#allocation11 + $0x318] sm:$0xf0] }
 0x247   : > { %v2591_v47 = vsel %vm2534_vm1, %v2589_v29, %v2590_v24 }
 0x248   : > { %v2332_v30 = vpop.f32.mrf.mxu2  ;;  %v13492_v4 = vpop.f32.mrf.mxu1  ;;  %3570 = vmatpush.bf16.msrb.mxu0 %v10610_v44 }
 0x249   : > { %v2333_v11 = vadd.f32 %v2332_v30, %v13326_v12  ;;  %v2674_v12 = vpack.c.bf16 %v2606_v19, %v2600_v17  ;;  %v2459_v30 = vld [vmem:[#allocation2 + $0x348] sm:$0xfe] }
 0x24a   : > { %v2236_v49 = vpop.f32.mrf.mxu0  ;;  %v2616_v2 = vrot.slane %v2459_v30, 1  ;;  %v2452_v30 = vld [vmem:[#allocation2 + $0x2e0] sm:$0x1] }
 0x24b   : > { %v13484_v50 = vadd.f32 %v13445_v32, %v2333_v11  ;;  %v2237_v58 = vadd.f32 %v2236_v49, %v13328_v62  ;;  %v11929_v32 = vld [vmem:[#allocation11 + $0x3a4] sm:$0xf0]  ;;  %3052 = vmatmul.bf16.gmra.mxu3 %v2674_v12  ;;  %v2461_v11 = vld [vmem:[#allocation2 + $0x368] sm:$0x1]  ;;  %v2671_v49 = vpack.c.bf16 %v2591_v47, %v2585_v51 }
 0x24c   : > { %v10674_v62 = vor.u32 %v11929_v32, %v10673_v3  ;;  %2954 = vmatmul.bf16.gmra.mxu1 %v2674_v12  ;;  %v11926_v12 = vld [vmem:[#allocation11 + $0x394] sm:$0xf]  ;;  %v10606_v3 = vor.u32 %v11910_v39, %v10603_v26  ;;  %v2446_v32 = vld [vmem:[#allocation2 + $0x280] sm:$0xfe] }
 0x24d   : > { %v13490_v10 = vadd.f32 %v13450_v16, %v2237_v58  ;;  %v2457_v16 = vld [vmem:[#allocation2 + $0x328] sm:$0x1] }
 0x24e   : > { %3619 = vmatpush.bf16.msrb.mxu1 %v10674_v62  ;;  %v13501_v58 = vpop.f32.mrf.mxu3  ;;  %v2611_v9 = vrot.slane %v2457_v16, 1  ;;  %3669 = vmatpush.bf16.msrb.mxu2 %v10606_v3  ;;  %v2448_v62 = vld [vmem:[#allocation2 + $0x2a0] sm:$0x1]  ;;  %v2450_v16 = vld [vmem:[#allocation2 + $0x2c0] sm:$0xfe] }
 0x24f   : > { %v2596_v47 = vrot.slane %v2448_v62, 1 }
 0x250   : > { %v2334_v15 = vpop.f32.mrf.mxu2  ;;  %v13506_v29 = vpop.f32.mrf.mxu1 }
 0x251   : > { %v2335_v59 = vadd.f32 %v2334_v15, %v13330_v35  ;;  %v2617_v35 = vrot.slane %v2461_v11, 1  ;;  %v2612_v15 = vsel %vm2534_vm1, %v2610_v60, %v2611_v9  ;;  %v11911_v60 = vld [vmem:[#allocation11 + $0x314] sm:$0xf0]  ;;  %v10665_v9 = vld [vmem:[#allocation11 + $0x390] sm:$0xf] }
 0x252   : > { %v2239_v42 = vpop.f32.mrf.mxu0 }
 0x253   : > { %v13498_v17 = vadd.f32 %v13459_v21, %v2335_v59  ;;  %v2240_v19 = vadd.f32 %v2239_v42, %v13332_v13  ;;  %v10667_v21 = vld [vmem:[#allocation11 + $0x398] sm:$0xf0]  ;;  %v2595_v42 = vrot.slane %v2446_v32, 1 }
 0x254   : > { %v10670_v13 = vor.u32 %v11926_v12, %v10667_v21  ;;  %v2463_v21 = vld [vmem:[#allocation2 + $0x388] sm:$0xfe] }
 0x255   : > { %v13504_v8 = vadd.f32 %v13464_v52, %v2240_v19  ;;  %2900 = vmatmul.bf16.gmra.mxu0 %v2671_v49  ;;  %2998 = vmatmul.bf16.gmra.mxu2 %v2671_v49  ;;  %v2618_v52 = vsel %vm2534_vm1, %v2616_v2, %v2617_v35  ;;  %v10601_v49 = vld [vmem:[#allocation11 + $0x310] sm:$0xf]  ;;  %v2601_v2 = vrot.slane %v2450_v16, 1  ;;  %v2602_v35 = vrot.slane %v2452_v30, 1 }
 0x256   : > { %3718 = vmatpush.bf16.msrb.mxu3 %v10670_v13  ;;  %v13515_v11 = vpop.f32.mrf.mxu3  ;;  %v10602_v39 = vor.u32 %v11911_v60, %v10601_v49  ;;  %v2597_v3 = vsel %vm2534_vm1, %v2595_v42, %v2596_v47  ;;  %v2622_v16 = vrot.slane %v2463_v21, 1  ;;  %v11908_v49 = vld [vmem:[#allocation11 + $0x304] sm:$0xf]  ;;  %v10595_v60 = vld [vmem:[#allocation11 + $0x308] sm:$0xf0] }
 0x257   : > { %v2603_v62 = vsel %vm2534_vm1, %v2601_v2, %v2602_v35 }
 0x258   : > { %v2337_v24 = vpop.f32.mrf.mxu2  ;;  %v13520_v26 = vpop.f32.mrf.mxu1  ;;  %3571 = vmatpush.bf16.msrb.mxu0 %v10602_v39 }
 0x259   : > { %v2338_v44 = vadd.f32 %v2337_v24, %v13334_v45  ;;  %v2676_v45 = vpack.c.bf16 %v2618_v52, %v2612_v15  ;;  %v2467_v24 = vld [vmem:[#allocation2 + $0x3c8] sm:$0xfe] }
 0x25a   : > { %v2241_v51 = vpop.f32.mrf.mxu0  ;;  %v2628_v42 = vrot.slane %v2467_v24, 1  ;;  %v2460_v24 = vld [vmem:[#allocation2 + $0x360] sm:$0x1] }
 0x25b   : > { %v13512_v63 = vadd.f32 %v13473_v18, %v2338_v44  ;;  %v2242_v59 = vadd.f32 %v2241_v51, %v13336_v55  ;;  %v11927_v18 = vld [vmem:[#allocation11 + $0x394] sm:$0xf0]  ;;  %3057 = vmatmul.bf16.gmra.mxu3 %v2676_v45  ;;  %v2469_v44 = vld [vmem:[#allocation2 + $0x3e8] sm:$0x1]  ;;  %v2673_v51 = vpack.c.bf16 %v2603_v62, %v2597_v3 }
 0x25c   : > { %v10666_v55 = vor.u32 %v11927_v18, %v10665_v9  ;;  %2959 = vmatmul.bf16.gmra.mxu1 %v2676_v45  ;;  %v11924_v45 = vld [vmem:[#allocation11 + $0x384] sm:$0xf]  ;;  %v10598_v9 = vor.u32 %v11908_v49, %v10595_v60  ;;  %v2454_v18 = vld [vmem:[#allocation2 + $0x300] sm:$0xfe] }
 0x25d   : > { %v13518_v19 = vadd.f32 %v13478_v22, %v2242_v59  ;;  %v2465_v22 = vld [vmem:[#allocation2 + $0x3a8] sm:$0x1] }
 0x25e   : > { %3620 = vmatpush.bf16.msrb.mxu1 %v10666_v55  ;;  %v13529_v59 = vpop.f32.mrf.mxu3  ;;  %v2623_v30 = vrot.slane %v2465_v22, 1  ;;  %3670 = vmatpush.bf16.msrb.mxu2 %v10598_v9  ;;  %v2456_v55 = vld [vmem:[#allocation2 + $0x320] sm:$0x1]  ;;  %v2458_v22 = vld [vmem:[#allocation2 + $0x340] sm:$0xfe] }
 0x25f   : > { %v2608_v62 = vrot.slane %v2456_v55, 1 }
 0x260   : > { %v2339_v12 = vpop.f32.mrf.mxu2  ;;  %v13534_v2 = vpop.f32.mrf.mxu1 }
 0x261   : > { %v2340_v13 = vadd.f32 %v2339_v12, %v13338_v53  ;;  %v2629_v53 = vrot.slane %v2469_v44, 1  ;;  %v2624_v12 = vsel %vm2534_vm1, %v2622_v16, %v2623_v30  ;;  %v11909_v16 = vld [vmem:[#allocation11 + $0x304] sm:$0xf0]  ;;  %v10657_v30 = vld [vmem:[#allocation11 + $0x380] sm:$0xf] }
 0x262   : > { %v2244_v32 = vpop.f32.mrf.mxu0 }
 0x263   : > { %v13526_v15 = vadd.f32 %v13487_v14, %v2340_v13  ;;  %v2245_v52 = vadd.f32 %v2244_v32, %v13340_v61  ;;  %v10659_v14 = vld [vmem:[#allocation11 + $0x388] sm:$0xf0]  ;;  %v2607_v32 = vrot.slane %v2454_v18, 1 }
 0x264   : > { %v10662_v61 = vor.u32 %v11924_v45, %v10659_v14  ;;  %v3101_v14 = vld [vmem:[#allocation2 + $0x18] sm:$0xfe] }
 0x265   : > { %v13532_v47 = vadd.f32 %v13492_v4, %v2245_v52  ;;  %2905 = vmatmul.bf16.gmra.mxu0 %v2673_v51  ;;  %3003 = vmatmul.bf16.gmra.mxu2 %v2673_v51  ;;  %v2630_v4 = vsel %vm2534_vm1, %v2628_v42, %v2629_v53  ;;  %v10593_v51 = vld [vmem:[#allocation11 + $0x300] sm:$0xf]  ;;  %v2613_v42 = vrot.slane %v2458_v22, 1  ;;  %v2614_v53 = vrot.slane %v2460_v24, 1 }
 0x266   : > { %3719 = vmatpush.bf16.msrb.mxu3 %v10662_v61  ;;  %v13543_v44 = vpop.f32.mrf.mxu3  ;;  %v10594_v49 = vor.u32 %v11909_v16, %v10593_v51  ;;  %v2609_v9 = vsel %vm2534_vm1, %v2607_v32, %v2608_v62  ;;  %v3231_v22 = vrot.slane %v3101_v14, 1  ;;  %v11954_v51 = vld [vmem:[#allocation11 + $0x474] sm:$0xf]  ;;  %v10779_v16 = vld [vmem:[#allocation11 + $0x478] sm:$0xf0] }
 0x267   : > { %v2615_v55 = vsel %vm2534_vm1, %v2613_v42, %v2614_v53 }
 0x268   : > { %v2342_v35 = vpop.f32.mrf.mxu2  ;;  %v13548_v60 = vpop.f32.mrf.mxu1  ;;  %3572 = vmatpush.bf16.msrb.mxu0 %v10594_v49 }
 0x269   : > { %v2343_v39 = vadd.f32 %v2342_v35, %v13342_v20  ;;  %v2678_v20 = vpack.c.bf16 %v2630_v4, %v2624_v12  ;;  %v3105_v35 = vld [vmem:[#allocation2 + $0x58] sm:$0xfe] }
 0x26a   : > { %v2246_v3 = vpop.f32.mrf.mxu0  ;;  %v3237_v32 = vrot.slane %v3105_v35, 1  ;;  %v2468_v35 = vld [vmem:[#allocation2 + $0x3e0] sm:$0x1] }
 0x26b   : > { %v13540_v21 = vadd.f32 %v13501_v58, %v2343_v39  ;;  %v2247_v13 = vadd.f32 %v2246_v3, %v13344_v57  ;;  %v11925_v58 = vld [vmem:[#allocation11 + $0x384] sm:$0xf0]  ;;  %3062 = vmatmul.bf16.gmra.mxu3 %v2678_v20  ;;  %v3107_v39 = vld [vmem:[#allocation2 + $0x78] sm:$0x1]  ;;  %v2675_v3 = vpack.c.bf16 %v2615_v55, %v2609_v9 }
 0x26c   : > { %v10658_v57 = vor.u32 %v11925_v58, %v10657_v30  ;;  %2964 = vmatmul.bf16.gmra.mxu1 %v2678_v20  ;;  %v11970_v20 = vld [vmem:[#allocation11 + $0x4f4] sm:$0xf]  ;;  %v10782_v30 = vor.u32 %v11954_v51, %v10779_v16  ;;  %v2462_v58 = vld [vmem:[#allocation2 + $0x380] sm:$0xfe] }
 0x26d   : > { %v13546_v52 = vadd.f32 %v13506_v29, %v2247_v13  ;;  %v3103_v29 = vld [vmem:[#allocation2 + $0x38] sm:$0x1] }
 0x26e   : > { %3621 = vmatpush.bf16.msrb.mxu1 %v10658_v57  ;;  %v13557_v13 = vpop.f32.mrf.mxu3  ;;  %v3232_v24 = vrot.slane %v3103_v29, 1  ;;  %4132 = vmatpush.bf16.msra.mxu2 %v10782_v30  ;;  %v2464_v57 = vld [vmem:[#allocation2 + $0x3a0] sm:$0x1]  ;;  %v2466_v29 = vld [vmem:[#allocation2 + $0x3c0] sm:$0xfe] }
 0x26f   : > { %v2620_v55 = vrot.slane %v2464_v57, 1 }
 0x270   : > { %v2344_v45 = vpop.f32.mrf.mxu2  ;;  %v13562_v42 = vpop.f32.mrf.mxu1 }
 0x271   : > { %v2345_v61 = vadd.f32 %v2344_v45, %v13346_v56  ;;  %v3238_v56 = vrot.slane %v3107_v39, 1  ;;  %v3233_v45 = vsel %vm2534_vm1, %v3231_v22, %v3232_v24  ;;  %v11955_v22 = vld [vmem:[#allocation11 + $0x474] sm:$0xf0]  ;;  %v10841_v24 = vld [vmem:[#allocation11 + $0x4f0] sm:$0xf] }
 0x272   : > { %v2249_v18 = vpop.f32.mrf.mxu0 }
 0x273   : > { %v13554_v12 = vadd.f32 %v13515_v11, %v2345_v61  ;;  %v2250_v4 = vadd.f32 %v2249_v18, %v13348_v1  ;;  %v10843_v11 = vld [vmem:[#allocation11 + $0x4f8] sm:$0xf0]  ;;  %v2619_v18 = vrot.slane %v2462_v58, 1 }
 0x274   : > { %v10846_v1 = vor.u32 %v11970_v20, %v10843_v11  ;;  %v3109_v11 = vld [vmem:[#allocation2 + $0x98] sm:$0xfe] }
 0x275   : > { %v13560_v62 = vadd.f32 %v13520_v26, %v2250_v4  ;;  %2910 = vmatmul.bf16.gmra.mxu0 %v2675_v3  ;;  %3008 = vmatmul.bf16.gmra.mxu2 %v2675_v3  ;;  %v3239_v26 = vsel %vm2534_vm1, %v3237_v32, %v3238_v56  ;;  %v10777_v3 = vld [vmem:[#allocation11 + $0x470] sm:$0xf]  ;;  %v2625_v32 = vrot.slane %v2466_v29, 1  ;;  %v2626_v56 = vrot.slane %v2468_v35, 1 }
 0x276   : > { %4181 = vmatpush.bf16.msra.mxu3 %v10846_v1  ;;  %v13571_v39 = vpop.f32.mrf.mxu3  ;;  %v10778_v51 = vor.u32 %v11955_v22, %v10777_v3  ;;  %v2621_v30 = vsel %vm2534_vm1, %v2619_v18, %v2620_v55  ;;  %v3243_v29 = vrot.slane %v3109_v11, 1  ;;  %v11952_v3 = vld [vmem:[#allocation11 + $0x464] sm:$0xf]  ;;  %v10771_v22 = vld [vmem:[#allocation11 + $0x468] sm:$0xf0] }
 0x277   : > { %v2627_v57 = vsel %vm2534_vm1, %v2625_v32, %v2626_v56 }
 0x278   : > { %v2347_v53 = vpop.f32.mrf.mxu2  ;;  %4034 = vmatpush.bf16.msra.mxu0 %v10778_v51  ;;  %v3100_v51 = vld [vmem:[#allocation2 + $0x10] sm:$0xfe] }
 0x279   : > { %v2348_v49 = vadd.f32 %v2347_v53, %v13352_v5  ;;  %v3357_v5 = vpack.c.bf16 %v3239_v26, %v3233_v45  ;;  %v13576_v16 = vpop.f32.mrf.mxu1  ;;  %v3113_v53 = vld [vmem:[#allocation2 + $0xd8] sm:$0xfe] }
 0x27a   : > { %v2251_v9 = vpop.f32.mrf.mxu0  ;;  %v3249_v18 = vrot.slane %v3113_v53, 1 }
 0x27b   : > { %v13568_v14 = vadd.f32 %v13529_v59, %v2348_v49  ;;  %v2252_v61 = vadd.f32 %v2251_v9, %v13356_v40  ;;  %v11971_v59 = vld [vmem:[#allocation11 + $0x4f4] sm:$0xf0]  ;;  %3720 = vmatmul.bf16.vlgmr.msrb.gmra.mxu3 %v3357_v5  ;;  %v3115_v49 = vld [vmem:[#allocation2 + $0xf8] sm:$0x1]  ;;  %v2677_v9 = vpack.c.bf16 %v2627_v57, %v2621_v30  ;;  %v3106_v30 = vld [vmem:[#allocation2 + $0x70] sm:$0x1] }
 0x27c   : > { %v10842_v40 = vor.u32 %v11971_v59, %v10841_v24  ;;  %3622 = vmatmul.bf16.vlgmr.msrb.gmra.mxu1 %v3357_v5  ;;  %v11968_v5 = vld [vmem:[#allocation11 + $0x4e4] sm:$0xf]  ;;  %v10774_v24 = vor.u32 %v11952_v3, %v10771_v22  ;;  %v11969_v22 = vld [vmem:[#allocation11 + $0x4e4] sm:$0xf0] }
 0x27d   : > { %v13574_v4 = vadd.f32 %v13534_v2, %v2252_v61  ;;  %v3111_v2 = vld [vmem:[#allocation2 + $0xb8] sm:$0x1] }
 0x27e   : > { %4083 = vmatpush.bf16.msra.mxu1 %v10842_v40  ;;  %v13585_v61 = vpop.f32.mrf.mxu3  ;;  %v3244_v35 = vrot.slane %v3111_v2, 1  ;;  %4133 = vmatpush.bf16.msra.mxu2 %v10774_v24  ;;  %v3102_v40 = vld [vmem:[#allocation2 + $0x30] sm:$0x1] }
 0x27f   : > { %v3229_v57 = vrot.slane %v3102_v40, 1 }
 0x280   : > { %v2349_v20 = vpop.f32.mrf.mxu2 }
 0x281   : > { %v2350_v1 = vadd.f32 %v2349_v20, %v13362_v37  ;;  %v3250_v37 = vrot.slane %v3115_v49, 1  ;;  %v13590_v32 = vpop.f32.mrf.mxu1  ;;  %v3104_v20 = vld [vmem:[#allocation2 + $0x50] sm:$0xfe]  ;;  %v3228_v49 = vrot.slane %v3100_v51, 1  ;;  %v3121_v51 = vld [vmem:[#allocation2 + $0x158] sm:$0xfe] }
 0x282   : > { %v2254_v58 = vpop.f32.mrf.mxu0 }
 0x283   : > { %v13582_v45 = vadd.f32 %v13543_v44, %v2350_v1  ;;  %v2255_v26 = vadd.f32 %v2254_v58, %v13364_v6  ;;  %v10835_v44 = vld [vmem:[#allocation11 + $0x4e8] sm:$0xf0]  ;;  %v3251_v11 = vsel %vm2534_vm1, %v3249_v18, %v3250_v37  ;;  %v10833_v18 = vld [vmem:[#allocation11 + $0x4e0] sm:$0xf] }
 0x284   : > { %v10838_v6 = vor.u32 %v11968_v5, %v10835_v44 }
 0x285   : > { %v13588_v55 = vadd.f32 %v13548_v60, %v2255_v26  ;;  %2915 = vmatmul.bf16.gmra.mxu0 %v2677_v9  ;;  %3013 = vmatmul.bf16.gmra.mxu2 %v2677_v9  ;;  %v3245_v60 = vsel %vm2534_vm1, %v3243_v29, %v3244_v35  ;;  %v3234_v26 = vrot.slane %v3104_v20, 1  ;;  %v10769_v29 = vld [vmem:[#allocation11 + $0x460] sm:$0xf]  ;;  %v11953_v35 = vld [vmem:[#allocation11 + $0x464] sm:$0xf0] }
 0x286   : > { %4182 = vmatpush.bf16.msra.mxu3 %v10838_v6  ;;  %v13599_v58 = vpop.f32.mrf.mxu3  ;;  %v3359_v9 = vpack.c.bf16 %v3251_v11, %v3245_v60  ;;  %v10770_v37 = vor.u32 %v11953_v35, %v10769_v29  ;;  %v3117_v6 = vld [vmem:[#allocation2 + $0x118] sm:$0xfe] }
 0x288   : > { %v2352_v56 = vpop.f32.mrf.mxu2  ;;  %4035 = vmatpush.bf16.msra.mxu0 %v10770_v37 }
 0x289   : > { %v2353_v59 = vadd.f32 %v2352_v56, %v13371_v48  ;;  %v3235_v48 = vrot.slane %v3106_v30, 1  ;;  %v13604_v5 = vpop.f32.mrf.mxu1 }
 0x28a   : > { %v2256_v1 = vpop.f32.mrf.mxu0 }
 0x28b   : > { %v13596_v2 = vadd.f32 %v13557_v13, %v2353_v59  ;;  %v2257_v53 = vadd.f32 %v2256_v1, %v13375_v25  ;;  %v10834_v13 = vor.u32 %v11969_v22, %v10833_v18  ;;  %v3230_v25 = vsel %vm2534_vm1, %v3228_v49, %v3229_v57  ;;  %3725 = vmatmul.bf16.gmra.mxu3 %v3359_v9  ;;  %v3123_v59 = vld [vmem:[#allocation2 + $0x178] sm:$0x1]  ;;  %v3108_v22 = vld [vmem:[#allocation2 + $0x90] sm:$0xfe] }
 0x28c   : > { %v3236_v44 = vsel %vm2534_vm1, %v3234_v26, %v3235_v48  ;;  %3627 = vmatmul.bf16.gmra.mxu1 %v3359_v9  ;;  %v3255_v1 = vrot.slane %v3117_v6, 1  ;;  %v3261_v49 = vrot.slane %v3121_v51, 1  ;;  %v3262_v57 = vrot.slane %v3123_v59, 1  ;;  %v11950_v26 = vld [vmem:[#allocation11 + $0x454] sm:$0xf] }
 0x28d   : > { %v13602_v3 = vadd.f32 %v13562_v42, %v2257_v53  ;;  %4084 = vmatpush.bf16.msra.mxu1 %v10834_v13  ;;  %v3119_v42 = vld [vmem:[#allocation2 + $0x138] sm:$0x1]  ;;  %v3356_v60 = vpack.c.bf16 %v3236_v44, %v3230_v25  ;;  %v10763_v48 = vld [vmem:[#allocation11 + $0x458] sm:$0xf0]  ;;  %v11966_v9 = vld [vmem:[#allocation11 + $0x4d4] sm:$0xf] }
 0x28e   : > { %v13613_v11 = vpop.f32.mrf.mxu3  ;;  %v3256_v53 = vrot.slane %v3119_v42, 1  ;;  %v10766_v29 = vor.u32 %v11950_v26, %v10763_v48  ;;  %v3110_v13 = vld [vmem:[#allocation2 + $0xb0] sm:$0x1]  ;;  %v3240_v59 = vrot.slane %v3108_v22, 1 }
 0x28f   : > { %v3114_v42 = vld [vmem:[#allocation2 + $0xf0] sm:$0x1] }
 0x290   : > { %v2354_v24 = vpop.f32.mrf.mxu2  ;;  %4134 = vmatpush.bf16.msra.mxu2 %v10766_v29 }
 0x291   : > { %v2355_v56 = vadd.f32 %v2354_v24, %v13384_v31  ;;  %v13618_v35 = vpop.f32.mrf.mxu1  ;;  %v3257_v24 = vsel %vm2534_vm1, %v3255_v1, %v3256_v53  ;;  %v11951_v1 = vld [vmem:[#allocation11 + $0x454] sm:$0xf0]  ;;  %v10825_v53 = vld [vmem:[#allocation11 + $0x4d0] sm:$0xf] }
 0x292   : > { %v2881_v40 = vpop.f32.mrf.mxu0 }
 0x293   : > { %v13610_v20 = vadd.f32 %v13571_v39, %v2355_v56  ;;  %v2931_v30 = vadd.f32 %v13576_v16, %v2881_v40  ;;  %v10827_v39 = vld [vmem:[#allocation11 + $0x4d8] sm:$0xf0]  ;;  %v3112_v56 = vld [vmem:[#allocation2 + $0xd0] sm:$0xfe]  ;;  %v3241_v40 = vrot.slane %v3110_v13, 1 }
 0x294   : > { %v10830_v16 = vor.u32 %v11966_v9, %v10827_v39  ;;  %v3125_v39 = vld [vmem:[#allocation2 + $0x198] sm:$0xfe] }
 0x295   : > { %v13616_v31 = vadd.f32 %v2931_v30, %v13390_v0  ;;  %3573 = vmatmul.bf16.vlgmr.msrb.gmra.mxu0 %v3356_v60  ;;  %3671 = vmatmul.bf16.vlgmr.msrb.gmra.mxu2 %v3356_v60  ;;  %v3263_v0 = vsel %vm2534_vm1, %v3261_v49, %v3262_v57  ;;  %v10761_v60 = vld [vmem:[#allocation11 + $0x450] sm:$0xf]  ;;  %v3246_v49 = vrot.slane %v3112_v56, 1  ;;  %v3247_v57 = vrot.slane %v3114_v42, 1 }
 0x296   : > { %4183 = vmatpush.bf16.msra.mxu3 %v10830_v16  ;;  %v13627_v51 = vpop.f32.mrf.mxu3  ;;  %v10762_v26 = vor.u32 %v11951_v1, %v10761_v60  ;;  %v3242_v29 = vsel %vm2534_vm1, %v3240_v59, %v3241_v40  ;;  %v3267_v56 = vrot.slane %v3125_v39, 1  ;;  %v11948_v60 = vld [vmem:[#allocation11 + $0x444] sm:$0xf]  ;;  %v10755_v1 = vld [vmem:[#allocation11 + $0x448] sm:$0xf0] }
 0x297   : > { %v3248_v13 = vsel %vm2534_vm1, %v3246_v49, %v3247_v57 }
 0x298   : > { %v2979_v18 = vpop.f32.mrf.mxu2  ;;  %4036 = vmatpush.bf16.msra.mxu0 %v10762_v26 }
 0x299   : > { %v3029_v37 = vadd.f32 %v13585_v61, %v2979_v18  ;;  %v3361_v61 = vpack.c.bf16 %v3263_v0, %v3257_v24  ;;  %v13632_v48 = vpop.f32.mrf.mxu1  ;;  %v3129_v18 = vld [vmem:[#allocation2 + $0x1d8] sm:$0xfe] }
 0x29a   : > { %v2883_v25 = vpop.f32.mrf.mxu0  ;;  %v3273_v59 = vrot.slane %v3129_v18, 1  ;;  %v3122_v18 = vld [vmem:[#allocation2 + $0x170] sm:$0x1] }
 0x29b   : > { %v13624_v44 = vadd.f32 %v3029_v37, %v13400_v28  ;;  %v2933_v6 = vadd.f32 %v13590_v32, %v2883_v25  ;;  %v11967_v28 = vld [vmem:[#allocation11 + $0x4d4] sm:$0xf0]  ;;  %3730 = vmatmul.bf16.gmra.mxu3 %v3361_v61  ;;  %v3131_v37 = vld [vmem:[#allocation2 + $0x1f8] sm:$0x1]  ;;  %v3358_v25 = vpack.c.bf16 %v3248_v13, %v3242_v29 }
 0x29c   : > { %v10826_v32 = vor.u32 %v11967_v28, %v10825_v53  ;;  %3632 = vmatmul.bf16.gmra.mxu1 %v3361_v61  ;;  %v11964_v61 = vld [vmem:[#allocation11 + $0x4c4] sm:$0xf]  ;;  %v10758_v53 = vor.u32 %v11948_v60, %v10755_v1  ;;  %v3116_v28 = vld [vmem:[#allocation2 + $0x110] sm:$0xfe] }
 0x29d   : > { %v13630_v30 = vadd.f32 %v2933_v6, %v13405_v7  ;;  %v3127_v7 = vld [vmem:[#allocation2 + $0x1b8] sm:$0x1] }
 0x29e   : > { %4085 = vmatpush.bf16.msra.mxu1 %v10826_v32  ;;  %v13641_v6 = vpop.f32.mrf.mxu3  ;;  %v3268_v42 = vrot.slane %v3127_v7, 1  ;;  %4135 = vmatpush.bf16.msra.mxu2 %v10758_v53  ;;  %v3118_v32 = vld [vmem:[#allocation2 + $0x130] sm:$0x1]  ;;  %v3120_v7 = vld [vmem:[#allocation2 + $0x150] sm:$0xfe] }
 0x29f   : > { %v3253_v13 = vrot.slane %v3118_v32, 1 }
 0x2a0   : > { %v2981_v9 = vpop.f32.mrf.mxu2 }
 0x2a1   : > { %v3031_v16 = vadd.f32 %v13599_v58, %v2981_v9  ;;  %v3274_v58 = vrot.slane %v3131_v37, 1  ;;  %v13646_v49 = vpop.f32.mrf.mxu1  ;;  %v3269_v9 = vsel %vm2534_vm1, %v3267_v56, %v3268_v42  ;;  %v11949_v56 = vld [vmem:[#allocation11 + $0x444] sm:$0xf0]  ;;  %v10817_v42 = vld [vmem:[#allocation11 + $0x4c0] sm:$0xf] }
 0x2a2   : > { %v2886_v22 = vpop.f32.mrf.mxu0 }
 0x2a3   : > { %v13638_v24 = vadd.f32 %v3031_v16, %v13414_v27  ;;  %v2936_v0 = vadd.f32 %v13604_v5, %v2886_v22  ;;  %v10819_v27 = vld [vmem:[#allocation11 + $0x4c8] sm:$0xf0]  ;;  %v3252_v22 = vrot.slane %v3116_v28, 1 }
 0x2a4   : > { %v10822_v5 = vor.u32 %v11964_v61, %v10819_v27  ;;  %v3133_v27 = vld [vmem:[#allocation2 + $0x218] sm:$0xfe] }
 0x2a5   : > { %v13644_v40 = vadd.f32 %v2936_v0, %v13420_v41  ;;  %3578 = vmatmul.bf16.gmra.mxu0 %v3358_v25  ;;  %3676 = vmatmul.bf16.gmra.mxu2 %v3358_v25  ;;  %v3275_v41 = vsel %vm2534_vm1, %v3273_v59, %v3274_v58  ;;  %v10753_v25 = vld [vmem:[#allocation11 + $0x440] sm:$0xf]  ;;  %v3258_v59 = vrot.slane %v3120_v7, 1  ;;  %v3259_v58 = vrot.slane %v3122_v18, 1 }
 0x2a6   : > { %4184 = vmatpush.bf16.msra.mxu3 %v10822_v5  ;;  %v13655_v37 = vpop.f32.mrf.mxu3  ;;  %v10754_v60 = vor.u32 %v11949_v56, %v10753_v25  ;;  %v3254_v53 = vsel %vm2534_vm1, %v3252_v22, %v3253_v13  ;;  %v3279_v7 = vrot.slane %v3133_v27, 1  ;;  %v11946_v25 = vld [vmem:[#allocation11 + $0x434] sm:$0xf]  ;;  %v10747_v56 = vld [vmem:[#allocation11 + $0x438] sm:$0xf0] }
 0x2a7   : > { %v3260_v32 = vsel %vm2534_vm1, %v3258_v59, %v3259_v58 }
 0x2a8   : > { %v2984_v57 = vpop.f32.mrf.mxu2  ;;  %4037 = vmatpush.bf16.msra.mxu0 %v10754_v60 }
 0x2a9   : > { %v3034_v26 = vadd.f32 %v13613_v11, %v2984_v57  ;;  %v3363_v11 = vpack.c.bf16 %v3275_v41, %v3269_v9  ;;  %v13660_v1 = vpop.f32.mrf.mxu1  ;;  %v3137_v57 = vld [vmem:[#allocation2 + $0x258] sm:$0xfe] }
 0x2aa   : > { %v2888_v29 = vpop.f32.mrf.mxu0  ;;  %v3285_v22 = vrot.slane %v3137_v57, 1  ;;  %v3130_v57 = vld [vmem:[#allocation2 + $0x1f0] sm:$0x1] }
 0x2ab   : > { %v13652_v39 = vadd.f32 %v3034_v26, %v13428_v36  ;;  %v2938_v16 = vadd.f32 %v13618_v35, %v2888_v29  ;;  %v11965_v36 = vld [vmem:[#allocation11 + $0x4c4] sm:$0xf0]  ;;  %3735 = vmatmul.bf16.gmra.mxu3 %v3363_v11  ;;  %v3139_v26 = vld [vmem:[#allocation2 + $0x278] sm:$0x1]  ;;  %v3360_v29 = vpack.c.bf16 %v3260_v32, %v3254_v53 }
 0x2ac   : > { %v10818_v35 = vor.u32 %v11965_v36, %v10817_v42  ;;  %3637 = vmatmul.bf16.gmra.mxu1 %v3363_v11  ;;  %v11962_v11 = vld [vmem:[#allocation11 + $0x4b4] sm:$0xf]  ;;  %v10750_v42 = vor.u32 %v11946_v25, %v10747_v56  ;;  %v3124_v36 = vld [vmem:[#allocation2 + $0x190] sm:$0xfe] }
 0x2ad   : > { %v13658_v0 = vadd.f32 %v2938_v16, %v13434_v54  ;;  %v3135_v54 = vld [vmem:[#allocation2 + $0x238] sm:$0x1] }
 0x2ae   : > { %4086 = vmatpush.bf16.msra.mxu1 %v10818_v35  ;;  %v13669_v16 = vpop.f32.mrf.mxu3  ;;  %v3280_v18 = vrot.slane %v3135_v54, 1  ;;  %4136 = vmatpush.bf16.msra.mxu2 %v10750_v42  ;;  %v3126_v35 = vld [vmem:[#allocation2 + $0x1b0] sm:$0x1]  ;;  %v3128_v54 = vld [vmem:[#allocation2 + $0x1d0] sm:$0xfe] }
 0x2af   : > { %v3265_v32 = vrot.slane %v3126_v35, 1 }
 0x2b0   : > { %v2986_v61 = vpop.f32.mrf.mxu2 }
 0x2b1   : > { %v3036_v5 = vadd.f32 %v13627_v51, %v2986_v61  ;;  %v3286_v51 = vrot.slane %v3139_v26, 1  ;;  %v13674_v59 = vpop.f32.mrf.mxu1  ;;  %v3281_v61 = vsel %vm2534_vm1, %v3279_v7, %v3280_v18  ;;  %v11947_v7 = vld [vmem:[#allocation11 + $0x434] sm:$0xf0]  ;;  %v10809_v18 = vld [vmem:[#allocation11 + $0x4b0] sm:$0xf] }
 0x2b2   : > { %v2891_v28 = vpop.f32.mrf.mxu0 }
 0x2b3   : > { %v13666_v9 = vadd.f32 %v3036_v5, %v13442_v23  ;;  %v2941_v41 = vadd.f32 %v13632_v48, %v2891_v28  ;;  %v10811_v23 = vld [vmem:[#allocation11 + $0x4b8] sm:$0xf0]  ;;  %v3264_v28 = vrot.slane %v3124_v36, 1 }
 0x2b4   : > { %v10814_v48 = vor.u32 %v11962_v11, %v10811_v23  ;;  %v3141_v23 = vld [vmem:[#allocation2 + $0x298] sm:$0xfe] }
 0x2b5   : > { %v13672_v13 = vadd.f32 %v2941_v41, %v13448_v34  ;;  %3583 = vmatmul.bf16.gmra.mxu0 %v3360_v29  ;;  %3681 = vmatmul.bf16.gmra.mxu2 %v3360_v29  ;;  %v3287_v34 = vsel %vm2534_vm1, %v3285_v22, %v3286_v51  ;;  %v10745_v29 = vld [vmem:[#allocation11 + $0x430] sm:$0xf]  ;;  %v3270_v22 = vrot.slane %v3128_v54, 1  ;;  %v3271_v51 = vrot.slane %v3130_v57, 1 }
 0x2b6   : > { %4185 = vmatpush.bf16.msra.mxu3 %v10814_v48  ;;  %v13683_v26 = vpop.f32.mrf.mxu3  ;;  %v10746_v25 = vor.u32 %v11947_v7, %v10745_v29  ;;  %v3266_v42 = vsel %vm2534_vm1, %v3264_v28, %v3265_v32  ;;  %v3291_v54 = vrot.slane %v3141_v23, 1  ;;  %v11944_v29 = vld [vmem:[#allocation11 + $0x424] sm:$0xf]  ;;  %v10739_v7 = vld [vmem:[#allocation11 + $0x428] sm:$0xf0] }
 0x2b7   : > { %v3272_v35 = vsel %vm2534_vm1, %v3270_v22, %v3271_v51 }
 0x2b8   : > { %v2989_v58 = vpop.f32.mrf.mxu2  ;;  %4038 = vmatpush.bf16.msra.mxu0 %v10746_v25 }
 0x2b9   : > { %v3039_v60 = vadd.f32 %v13641_v6, %v2989_v58  ;;  %v3365_v6 = vpack.c.bf16 %v3287_v34, %v3281_v61  ;;  %v13688_v56 = vpop.f32.mrf.mxu1  ;;  %v3145_v58 = vld [vmem:[#allocation2 + $0x2d8] sm:$0xfe] }
 0x2ba   : > { %v2893_v53 = vpop.f32.mrf.mxu0  ;;  %v3297_v28 = vrot.slane %v3145_v58, 1  ;;  %v3138_v58 = vld [vmem:[#allocation2 + $0x270] sm:$0x1] }
 0x2bb   : > { %v13680_v27 = vadd.f32 %v3039_v60, %v13456_v46  ;;  %v2943_v5 = vadd.f32 %v13646_v49, %v2893_v53  ;;  %v11963_v46 = vld [vmem:[#allocation11 + $0x4b4] sm:$0xf0]  ;;  %3740 = vmatmul.bf16.gmra.mxu3 %v3365_v6  ;;  %v3147_v60 = vld [vmem:[#allocation2 + $0x2f8] sm:$0x1]  ;;  %v3362_v53 = vpack.c.bf16 %v3272_v35, %v3266_v42 }
 0x2bc   : > { %v10810_v49 = vor.u32 %v11963_v46, %v10809_v18  ;;  %3642 = vmatmul.bf16.gmra.mxu1 %v3365_v6  ;;  %v11960_v6 = vld [vmem:[#allocation11 + $0x4a4] sm:$0xf]  ;;  %v10742_v18 = vor.u32 %v11944_v29, %v10739_v7  ;;  %v3132_v46 = vld [vmem:[#allocation2 + $0x210] sm:$0xfe] }
 0x2bd   : > { %v13686_v41 = vadd.f32 %v2943_v5, %v13462_v33  ;;  %v3143_v33 = vld [vmem:[#allocation2 + $0x2b8] sm:$0x1] }
 0x2be   : > { %4087 = vmatpush.bf16.msra.mxu1 %v10810_v49  ;;  %v13697_v5 = vpop.f32.mrf.mxu3  ;;  %v3292_v57 = vrot.slane %v3143_v33, 1  ;;  %4137 = vmatpush.bf16.msra.mxu2 %v10742_v18  ;;  %v3134_v49 = vld [vmem:[#allocation2 + $0x230] sm:$0x1]  ;;  %v3136_v33 = vld [vmem:[#allocation2 + $0x250] sm:$0xfe] }
 0x2bf   : > { %v3277_v35 = vrot.slane %v3134_v49, 1 }
 0x2c0   : > { %v2991_v11 = vpop.f32.mrf.mxu2 }
 0x2c1   : > { %v3041_v48 = vadd.f32 %v13655_v37, %v2991_v11  ;;  %v3298_v37 = vrot.slane %v3147_v60, 1  ;;  %v13702_v22 = vpop.f32.mrf.mxu1  ;;  %v3293_v11 = vsel %vm2534_vm1, %v3291_v54, %v3292_v57  ;;  %v11945_v54 = vld [vmem:[#allocation11 + $0x424] sm:$0xf0]  ;;  %v10801_v57 = vld [vmem:[#allocation11 + $0x4a0] sm:$0xf] }
 0x2c2   : > { %v2896_v36 = vpop.f32.mrf.mxu0 }
 0x2c3   : > { %v13694_v61 = vadd.f32 %v3041_v48, %v13470_v43  ;;  %v2946_v34 = vadd.f32 %v13660_v1, %v2896_v36  ;;  %v10803_v43 = vld [vmem:[#allocation11 + $0x4a8] sm:$0xf0]  ;;  %v3276_v36 = vrot.slane %v3132_v46, 1 }
 0x2c4   : > { %v10806_v1 = vor.u32 %v11960_v6, %v10803_v43  ;;  %v3149_v43 = vld [vmem:[#allocation2 + $0x318] sm:$0xfe] }
 0x2c5   : > { %v13700_v32 = vadd.f32 %v2946_v34, %v13476_v38  ;;  %3588 = vmatmul.bf16.gmra.mxu0 %v3362_v53  ;;  %3686 = vmatmul.bf16.gmra.mxu2 %v3362_v53  ;;  %v3299_v38 = vsel %vm2534_vm1, %v3297_v28, %v3298_v37  ;;  %v10737_v53 = vld [vmem:[#allocation11 + $0x420] sm:$0xf]  ;;  %v3282_v28 = vrot.slane %v3136_v33, 1  ;;  %v3283_v37 = vrot.slane %v3138_v58, 1 }
 0x2c6   : > { %4186 = vmatpush.bf16.msra.mxu3 %v10806_v1  ;;  %v13711_v60 = vpop.f32.mrf.mxu3  ;;  %v10738_v29 = vor.u32 %v11945_v54, %v10737_v53  ;;  %v3278_v18 = vsel %vm2534_vm1, %v3276_v36, %v3277_v35  ;;  %v3303_v33 = vrot.slane %v3149_v43, 1  ;;  %v11942_v53 = vld [vmem:[#allocation11 + $0x414] sm:$0xf]  ;;  %v10731_v54 = vld [vmem:[#allocation11 + $0x418] sm:$0xf0] }
 0x2c7   : > { %v3284_v49 = vsel %vm2534_vm1, %v3282_v28, %v3283_v37 }
 0x2c8   : > { %v2994_v51 = vpop.f32.mrf.mxu2  ;;  %4039 = vmatpush.bf16.msra.mxu0 %v10738_v29 }
 0x2c9   : > { %v3044_v25 = vadd.f32 %v13669_v16, %v2994_v51  ;;  %v3367_v16 = vpack.c.bf16 %v3299_v38, %v3293_v11  ;;  %v13716_v7 = vpop.f32.mrf.mxu1  ;;  %v3153_v51 = vld [vmem:[#allocation2 + $0x358] sm:$0xfe] }
 0x2ca   : > { %v2898_v42 = vpop.f32.mrf.mxu0  ;;  %v3309_v36 = vrot.slane %v3153_v51, 1  ;;  %v3146_v51 = vld [vmem:[#allocation2 + $0x2f0] sm:$0x1] }
 0x2cb   : > { %v13708_v23 = vadd.f32 %v3044_v25, %v13484_v50  ;;  %v2948_v48 = vadd.f32 %v13674_v59, %v2898_v42  ;;  %v11961_v50 = vld [vmem:[#allocation11 + $0x4a4] sm:$0xf0]  ;;  %3745 = vmatmul.bf16.gmra.mxu3 %v3367_v16  ;;  %v3155_v25 = vld [vmem:[#allocation2 + $0x378] sm:$0x1]  ;;  %v3364_v42 = vpack.c.bf16 %v3284_v49, %v3278_v18 }
 0x2cc   : > { %v10802_v59 = vor.u32 %v11961_v50, %v10801_v57  ;;  %3647 = vmatmul.bf16.gmra.mxu1 %v3367_v16  ;;  %v11958_v16 = vld [vmem:[#allocation11 + $0x494] sm:$0xf]  ;;  %v10734_v57 = vor.u32 %v11942_v53, %v10731_v54  ;;  %v3140_v50 = vld [vmem:[#allocation2 + $0x290] sm:$0xfe] }
 0x2cd   : > { %v13714_v34 = vadd.f32 %v2948_v48, %v13490_v10  ;;  %v3151_v10 = vld [vmem:[#allocation2 + $0x338] sm:$0x1] }
 0x2ce   : > { %4088 = vmatpush.bf16.msra.mxu1 %v10802_v59  ;;  %v13725_v48 = vpop.f32.mrf.mxu3  ;;  %v3304_v58 = vrot.slane %v3151_v10, 1  ;;  %4138 = vmatpush.bf16.msra.mxu2 %v10734_v57  ;;  %v3142_v59 = vld [vmem:[#allocation2 + $0x2b0] sm:$0x1]  ;;  %v3144_v10 = vld [vmem:[#allocation2 + $0x2d0] sm:$0xfe] }
 0x2cf   : > { %v3289_v49 = vrot.slane %v3142_v59, 1 }
 0x2d0   : > { %v2996_v6 = vpop.f32.mrf.mxu2 }
 0x2d1   : > { %v3046_v1 = vadd.f32 %v13683_v26, %v2996_v6  ;;  %v3310_v26 = vrot.slane %v3155_v25, 1  ;;  %v13730_v28 = vpop.f32.mrf.mxu1  ;;  %v3305_v6 = vsel %vm2534_vm1, %v3303_v33, %v3304_v58  ;;  %v11943_v33 = vld [vmem:[#allocation11 + $0x414] sm:$0xf0]  ;;  %v10793_v58 = vld [vmem:[#allocation11 + $0x490] sm:$0xf] }
 0x2d2   : > { %v2901_v46 = vpop.f32.mrf.mxu0 }
 0x2d3   : > { %v13722_v11 = vadd.f32 %v3046_v1, %v13498_v17  ;;  %v2951_v38 = vadd.f32 %v13688_v56, %v2901_v46  ;;  %v10795_v17 = vld [vmem:[#allocation11 + $0x498] sm:$0xf0]  ;;  %v3288_v46 = vrot.slane %v3140_v50, 1 }
 0x2d4   : > { %v10798_v56 = vor.u32 %v11958_v16, %v10795_v17  ;;  %v3157_v17 = vld [vmem:[#allocation2 + $0x398] sm:$0xfe] }
 0x2d5   : > { %v13728_v35 = vadd.f32 %v2951_v38, %v13504_v8  ;;  %3593 = vmatmul.bf16.gmra.mxu0 %v3364_v42  ;;  %3691 = vmatmul.bf16.gmra.mxu2 %v3364_v42  ;;  %v3311_v8 = vsel %vm2534_vm1, %v3309_v36, %v3310_v26  ;;  %v10729_v42 = vld [vmem:[#allocation11 + $0x410] sm:$0xf]  ;;  %v3294_v36 = vrot.slane %v3144_v10, 1  ;;  %v3295_v26 = vrot.slane %v3146_v51, 1 }
 0x2d6   : > { %4187 = vmatpush.bf16.msra.mxu3 %v10798_v56  ;;  %v13739_v25 = vpop.f32.mrf.mxu3  ;;  %v10730_v53 = vor.u32 %v11943_v33, %v10729_v42  ;;  %v3290_v57 = vsel %vm2534_vm1, %v3288_v46, %v3289_v49  ;;  %v3315_v10 = vrot.slane %v3157_v17, 1  ;;  %v11940_v42 = vld [vmem:[#allocation11 + $0x404] sm:$0xf]  ;;  %v10723_v33 = vld [vmem:[#allocation11 + $0x408] sm:$0xf0] }
 0x2d7   : > { %v3296_v59 = vsel %vm2534_vm1, %v3294_v36, %v3295_v26 }
 0x2d8   : > { %v2999_v37 = vpop.f32.mrf.mxu2  ;;  %4040 = vmatpush.bf16.msra.mxu0 %v10730_v53 }
 0x2d9   : > { %v3049_v29 = vadd.f32 %v13697_v5, %v2999_v37  ;;  %v3369_v5 = vpack.c.bf16 %v3311_v8, %v3305_v6  ;;  %v13744_v54 = vpop.f32.mrf.mxu1  ;;  %v3161_v37 = vld [vmem:[#allocation2 + $0x3d8] sm:$0xfe] }
 0x2da   : > { %v2903_v18 = vpop.f32.mrf.mxu0  ;;  %v3321_v46 = vrot.slane %v3161_v37, 1  ;;  %v3154_v37 = vld [vmem:[#allocation2 + $0x370] sm:$0x1] }
 0x2db   : > { %v13736_v43 = vadd.f32 %v3049_v29, %v13512_v63  ;;  %v2953_v1 = vadd.f32 %v13702_v22, %v2903_v18  ;;  %v11959_v63 = vld [vmem:[#allocation11 + $0x494] sm:$0xf0]  ;;  %3750 = vmatmul.bf16.gmra.mxu3 %v3369_v5  ;;  %v3163_v29 = vld [vmem:[#allocation2 + $0x3f8] sm:$0x1]  ;;  %v3366_v18 = vpack.c.bf16 %v3296_v59, %v3290_v57 }
 0x2dc   : > { %v10794_v22 = vor.u32 %v11959_v63, %v10793_v58  ;;  %3652 = vmatmul.bf16.gmra.mxu1 %v3369_v5  ;;  %v11956_v5 = vld [vmem:[#allocation11 + $0x484] sm:$0xf]  ;;  %v10726_v58 = vor.u32 %v11940_v42, %v10723_v33  ;;  %v3148_v63 = vld [vmem:[#allocation2 + $0x310] sm:$0xfe] }
 0x2dd   : > { %v13742_v38 = vadd.f32 %v2953_v1, %v13518_v19  ;;  %v3159_v19 = vld [vmem:[#allocation2 + $0x3b8] sm:$0x1] }
 0x2de   : > { %4089 = vmatpush.bf16.msra.mxu1 %v10794_v22  ;;  %v13753_v1 = vpop.f32.mrf.mxu3  ;;  %v3316_v51 = vrot.slane %v3159_v19, 1  ;;  %4139 = vmatpush.bf16.msra.mxu2 %v10726_v58  ;;  %v3150_v22 = vld [vmem:[#allocation2 + $0x330] sm:$0x1]  ;;  %v3152_v19 = vld [vmem:[#allocation2 + $0x350] sm:$0xfe] }
 0x2df   : > { %v3301_v59 = vrot.slane %v3150_v22, 1 }
 0x2e0   : > { %v3001_v16 = vpop.f32.mrf.mxu2 }
 0x2e1   : > { %v3051_v56 = vadd.f32 %v13711_v60, %v3001_v16  ;;  %v3322_v60 = vrot.slane %v3163_v29, 1  ;;  %v2962_v36 = vpop.f32.mrf.mxu1  ;;  %v3317_v16 = vsel %vm2534_vm1, %v3315_v10, %v3316_v51  ;;  %v11941_v10 = vld [vmem:[#allocation11 + $0x404] sm:$0xf0]  ;;  %v10785_v51 = vld [vmem:[#allocation11 + $0x480] sm:$0xf] }
 0x2e2   : > { %v2906_v50 = vpop.f32.mrf.mxu0 }
 0x2e3   : > { %v13750_v6 = vadd.f32 %v3051_v56, %v13526_v15  ;;  %v2956_v8 = vadd.f32 %v13716_v7, %v2906_v50  ;;  %v10787_v15 = vld [vmem:[#allocation11 + $0x488] sm:$0xf0]  ;;  %v3300_v50 = vrot.slane %v3148_v63, 1 }
 0x2e4   : > { %v10790_v26 = vor.u32 %v11956_v5, %v10787_v15 }
 0x2e5   : > { %v13756_v49 = vadd.f32 %v2956_v8, %v13532_v47  ;;  %3598 = vmatmul.bf16.gmra.mxu0 %v3366_v18  ;;  %3696 = vmatmul.bf16.gmra.mxu2 %v3366_v18  ;;  %v3323_v47 = vsel %vm2534_vm1, %v3321_v46, %v3322_v60  ;;  %v10721_v18 = vld [vmem:[#allocation11 + $0x400] sm:$0xf]  ;;  %v3306_v46 = vrot.slane %v3152_v19, 1  ;;  %v3307_v60 = vrot.slane %v3154_v37, 1  ;;  %v10971_v19 = vld [vmem:[#allocation11 + $0x5f8] sm:$0xf0] }
 0x2e6   : > { %4188 = vmatpush.bf16.msra.mxu3 %v10790_v26  ;;  %v13765_v29 = vpop.f32.mrf.mxu3  ;;  %v10722_v42 = vor.u32 %v11941_v10, %v10721_v18  ;;  %v3302_v58 = vsel %vm2534_vm1, %v3300_v50, %v3301_v59  ;;  %v3794_v18 = vld [vmem:[#allocation2 + $0x48] sm:$0xff] }
 0x2e7   : > { %v3796_v10 = vld [vmem:[#allocation2 + $0x88] sm:$0xff] }
 0x2e8   : > { %v3004_v7 = vpop.f32.mrf.mxu2  ;;  %4041 = vmatpush.bf16.msra.mxu0 %v10722_v42  ;;  %v3162_v42 = vld [vmem:[#allocation2 + $0x3f0] sm:$0x1] }
 0x2e9   : > { %v3054_v53 = vadd.f32 %v13725_v48, %v3004_v7  ;;  %v3371_v48 = vpack.c.bf16 %v3323_v47, %v3317_v16  ;;  %v2965_v33 = vpop.f32.mrf.mxu1  ;;  %v11986_v47 = vld [vmem:[#allocation11 + $0x574] sm:$0xf] }
 0x2ea   : > { %v2908_v57 = vpop.f32.mrf.mxu0 }
 0x2eb   : > { %v13762_v17 = vadd.f32 %v3054_v53, %v13540_v21  ;;  %v2958_v56 = vadd.f32 %v13730_v28, %v2908_v57  ;;  %v11957_v21 = vld [vmem:[#allocation11 + $0x484] sm:$0xf0]  ;;  %3755 = vmatmul.bf16.gmra.mxu3 %v3371_v48  ;;  %v12002_v57 = vld [vmem:[#allocation11 + $0x5f4] sm:$0xf] }
 0x2ec   : > { %v10786_v5 = vor.u32 %v11957_v21, %v10785_v51  ;;  %3657 = vmatmul.bf16.gmra.mxu1 %v3371_v48  ;;  %v10974_v50 = vor.u32 %v12002_v57, %v10971_v19  ;;  %v3156_v48 = vld [vmem:[#allocation2 + $0x390] sm:$0xfe] }
 0x2ed   : > { %v13768_v8 = vadd.f32 %v2958_v56, %v13546_v52  ;;  %v3308_v52 = vsel %vm2534_vm1, %v3306_v46, %v3307_v60  ;;  %v3160_v60 = vld [vmem:[#allocation2 + $0x3d0] sm:$0xfe] }
 0x2ee   : > { %4090 = vmatpush.bf16.msra.mxu1 %v10786_v5  ;;  %v3368_v63 = vpack.c.bf16 %v3308_v52, %v3302_v58  ;;  %v13777_v22 = vpop.f32.mrf.mxu3  ;;  %4650 = vmatpush.bf16.msrb.mxu3 %v10974_v50  ;;  %v3312_v5 = vrot.slane %v3156_v48, 1  ;;  %v3826_v58 = vpack.c.bf16 %v3796_v10, %v3794_v18  ;;  %v10969_v52 = vld [vmem:[#allocation11 + $0x5f0] sm:$0xf]  ;;  %v11984_v10 = vld [vmem:[#allocation11 + $0x564] sm:$0xf] }
 0x2f0   : > { %v3006_v28 = vpop.f32.mrf.mxu2 }
 0x2f1   : > { %v3056_v15 = vadd.f32 %v13739_v25, %v3006_v28  ;;  %v10907_v25 = vld [vmem:[#allocation11 + $0x578] sm:$0xf0]  ;;  %v2967_v37 = vpop.f32.mrf.mxu1 }
 0x2f2   : > { %v2911_v26 = vpop.f32.mrf.mxu0  ;;  %v10910_v56 = vor.u32 %v11986_v47, %v10907_v25  ;;  %v12003_v25 = vld [vmem:[#allocation11 + $0x5f4] sm:$0xf0] }
 0x2f3   : > { %v13774_v7 = vadd.f32 %v3056_v15, %v13554_v12  ;;  %v2961_v53 = vadd.f32 %v13744_v54, %v2911_v26  ;;  %v3158_v12 = vld [vmem:[#allocation2 + $0x3b0] sm:$0x1]  ;;  %v10905_v26 = vld [vmem:[#allocation11 + $0x570] sm:$0xf] }
 0x2f4   : > { %4601 = vmatpush.bf16.msrb.mxu2 %v10910_v56  ;;  %v3313_v28 = vrot.slane %v3158_v12, 1 }
 0x2f5   : > { %v13780_v16 = vadd.f32 %v2961_v53, %v13560_v62  ;;  %3603 = vmatmul.bf16.gmra.mxu0 %v3368_v63  ;;  %3701 = vmatmul.bf16.gmra.mxu2 %v3368_v63  ;;  %v3318_v53 = vrot.slane %v3160_v60, 1  ;;  %v3319_v63 = vrot.slane %v3162_v42, 1  ;;  %v10963_v60 = vld [vmem:[#allocation11 + $0x5e8] sm:$0xf0] }
 0x2f6   : > { %v3065_v21 = vpop.f32.mrf.mxu3 }
 0x2f8   : > { %v3009_v59 = vpop.f32.mrf.mxu2 }
 0x2f9   : > { %v3059_v54 = vadd.f32 %v13753_v1, %v3009_v59  ;;  %v11987_v1 = vld [vmem:[#allocation11 + $0x574] sm:$0xf0]  ;;  %v3623_v57 = vpop.f32.mrf.mxu1 }
 0x2fa   : > { %v2913_v62 = vpop.f32.mrf.mxu0  ;;  %v10906_v47 = vor.u32 %v11987_v1, %v10905_v26 }
 0x2fb   : > { %v13784_v51 = vadd.f32 %v3059_v54, %v13568_v14  ;;  %v2963_v46 = vadd.f32 %v2962_v36, %v2913_v62  ;;  %v10970_v14 = vor.u32 %v12003_v25, %v10969_v52  ;;  %v3314_v36 = vsel %vm2534_vm1, %v3312_v5, %v3313_v28  ;;  %4189 = vmatmul.bf16.vlgmr.msra.gmra.mxu3 %v3826_v58  ;;  %v10899_v62 = vld [vmem:[#allocation11 + $0x568] sm:$0xf0]  ;;  %v11985_v25 = vld [vmem:[#allocation11 + $0x564] sm:$0xf0] }
 0x2fc   : > { %4503 = vmatpush.bf16.msrb.mxu0 %v10906_v47  ;;  %4091 = vmatmul.bf16.vlgmr.msra.gmra.mxu1 %v3826_v58  ;;  %v3798_v58 = vld [vmem:[#allocation2 + $0xc8] sm:$0xff] }
 0x2fd   : > { %v13787_v15 = vadd.f32 %v2963_v46, %v13574_v4  ;;  %4552 = vmatpush.bf16.msrb.mxu1 %v10970_v14  ;;  %v3320_v4 = vsel %vm2534_vm1, %v3318_v53, %v3319_v63  ;;  %v12000_v46 = vld [vmem:[#allocation11 + $0x5e4] sm:$0xf]  ;;  %v10897_v47 = vld [vmem:[#allocation11 + $0x560] sm:$0xf] }
 0x2fe   : > { %v3370_v54 = vpack.c.bf16 %v3320_v4, %v3314_v36  ;;  %v3721_v48 = vpop.f32.mrf.mxu3  ;;  %v10966_v5 = vor.u32 %v12000_v46, %v10963_v60  ;;  %v10961_v14 = vld [vmem:[#allocation11 + $0x5e0] sm:$0xf]  ;;  %v12001_v36 = vld [vmem:[#allocation11 + $0x5e4] sm:$0xf0]  ;;  %v3795_v4 = vld [vmem:[#allocation2 + $0x80] sm:$0xff] }
 0x2ff   : > { %v10891_v60 = vld [vmem:[#allocation11 + $0x558] sm:$0xf0] }
 0x300   : > { %v3011_v56 = vpop.f32.mrf.mxu2  ;;  %4651 = vmatpush.bf16.msrb.mxu3 %v10966_v5  ;;  %v11998_v5 = vld [vmem:[#allocation11 + $0x5d4] sm:$0xf] }
 0x301   : > { %v3061_v19 = vadd.f32 %v13765_v29, %v3011_v56  ;;  %v10902_v29 = vor.u32 %v11984_v10, %v10899_v62  ;;  %v3625_v42 = vpop.f32.mrf.mxu1  ;;  %v10898_v56 = vor.u32 %v11985_v25, %v10897_v47 }
 0x302   : > { %v2916_v50 = vpop.f32.mrf.mxu0 }
 0x303   : > { %v13793_v59 = vadd.f32 %v3061_v19, %v13582_v45  ;;  %v2966_v12 = vadd.f32 %v2965_v33, %v2916_v50  ;;  %4602 = vmatpush.bf16.msrb.mxu2 %v10902_v29  ;;  %v3800_v33 = vld [vmem:[#allocation2 + $0x108] sm:$0xff]  ;;  %4504 = vmatpush.bf16.msrb.mxu0 %v10898_v56  ;;  %v11982_v29 = vld [vmem:[#allocation11 + $0x554] sm:$0xf]  ;;  %v10889_v56 = vld [vmem:[#allocation11 + $0x550] sm:$0xf] }
 0x304   : > { %v3828_v53 = vpack.c.bf16 %v3800_v33, %v3798_v58 }
 0x305   : > { %v13796_v18 = vadd.f32 %v2966_v12, %v13588_v55  ;;  %3608 = vmatmul.bf16.gmra.mxu0 %v3370_v54  ;;  %3706 = vmatmul.bf16.gmra.mxu2 %v3370_v54 }
 0x306   : > { %v3723_v52 = vpop.f32.mrf.mxu3 }
 0x308   : > { %v3014_v28 = vpop.f32.mrf.mxu2 }
 0x309   : > { %v3064_v45 = vadd.f32 %v13777_v22, %v3014_v28  ;;  %v3628_v19 = vpop.f32.mrf.mxu1  ;;  %v10962_v22 = vor.u32 %v12001_v36, %v10961_v14  ;;  %v10894_v28 = vor.u32 %v11982_v29, %v10891_v60  ;;  %v11983_v36 = vld [vmem:[#allocation11 + $0x554] sm:$0xf0] }
 0x30a   : > { %v2918_v26 = vpop.f32.mrf.mxu0 }
 0x30b   : > { %v13800_v55 = vadd.f32 %v3064_v45, %v13596_v2  ;;  %v2968_v1 = vadd.f32 %v2967_v37, %v2918_v26  ;;  %4194 = vmatmul.bf16.gmra.mxu3 %v3828_v53  ;;  %4553 = vmatpush.bf16.msrb.mxu1 %v10962_v22  ;;  %v3793_v37 = vld [vmem:[#allocation2 + $0x40] sm:$0xff]  ;;  %v10953_v22 = vld [vmem:[#allocation11 + $0x5d0] sm:$0xf] }
 0x30c   : > { %4096 = vmatmul.bf16.gmra.mxu1 %v3828_v53  ;;  %v3825_v10 = vpack.c.bf16 %v3795_v4, %v3793_v37  ;;  %4603 = vmatpush.bf16.msrb.mxu2 %v10894_v28  ;;  %v11999_v4 = vld [vmem:[#allocation11 + $0x5d4] sm:$0xf0]  ;;  %v11980_v28 = vld [vmem:[#allocation11 + $0x544] sm:$0xf] }
 0x30d   : > { %v13803_v63 = vadd.f32 %v2968_v1, %v13602_v3  ;;  %v3804_v1 = vld [vmem:[#allocation2 + $0x188] sm:$0xff]  ;;  %v3799_v37 = vld [vmem:[#allocation2 + $0x100] sm:$0xff] }
 0x30e   : > { %v3726_v62 = vpop.f32.mrf.mxu3 }
 0x310   : > { %v3016_v50 = vpop.f32.mrf.mxu2 }
 0x311   : > { %v3066_v12 = vadd.f32 %v3065_v21, %v3016_v50  ;;  %v10955_v21 = vld [vmem:[#allocation11 + $0x5d8] sm:$0xf0]  ;;  %v3630_v45 = vpop.f32.mrf.mxu1  ;;  %v10890_v50 = vor.u32 %v11983_v36, %v10889_v56 }
 0x312   : > { %v3574_v2 = vpop.f32.mrf.mxu0  ;;  %v10958_v58 = vor.u32 %v11998_v5, %v10955_v21  ;;  %v10883_v21 = vld [vmem:[#allocation11 + $0x548] sm:$0xf0] }
 0x313   : > { %v13806_v54 = vadd.f32 %v3066_v12, %v13610_v20  ;;  %v3624_v3 = vadd.f32 %v3623_v57, %v3574_v2  ;;  %v3802_v20 = vld [vmem:[#allocation2 + $0x148] sm:$0xff]  ;;  %4505 = vmatpush.bf16.msrb.mxu0 %v10890_v50 }
 0x314   : > { %4652 = vmatpush.bf16.msrb.mxu3 %v10958_v58  ;;  %v3830_v25 = vpack.c.bf16 %v3804_v1, %v3802_v20  ;;  %v11996_v58 = vld [vmem:[#allocation11 + $0x5c4] sm:$0xf]  ;;  %v10881_v50 = vld [vmem:[#allocation11 + $0x540] sm:$0xf] }
 0x315   : > { %v13809_v46 = vadd.f32 %v3624_v3, %v13616_v31  ;;  %4042 = vmatmul.bf16.vlgmr.msra.gmra.mxu0 %v3825_v10  ;;  %4140 = vmatmul.bf16.vlgmr.msra.gmra.mxu2 %v3825_v10 }
 0x316   : > { %v3728_v47 = vpop.f32.mrf.mxu3 }
 0x318   : > { %v3672_v33 = vpop.f32.mrf.mxu2 }
 0x319   : > { %v3722_v26 = vadd.f32 %v3721_v48, %v3672_v33  ;;  %v3633_v12 = vpop.f32.mrf.mxu1  ;;  %v10954_v48 = vor.u32 %v11999_v4, %v10953_v22  ;;  %v10886_v33 = vor.u32 %v11980_v28, %v10883_v21  ;;  %v11981_v4 = vld [vmem:[#allocation11 + $0x544] sm:$0xf0] }
 0x31a   : > { %v3576_v57 = vpop.f32.mrf.mxu0 }
 0x31b   : > { %v13812_v53 = vadd.f32 %v3722_v26, %v13624_v44  ;;  %v3626_v31 = vadd.f32 %v3625_v42, %v3576_v57  ;;  %4199 = vmatmul.bf16.gmra.mxu3 %v3830_v25  ;;  %4554 = vmatpush.bf16.msrb.mxu1 %v10954_v48  ;;  %v3797_v42 = vld [vmem:[#allocation2 + $0xc0] sm:$0xff]  ;;  %v10945_v48 = vld [vmem:[#allocation11 + $0x5c0] sm:$0xf] }
 0x31c   : > { %4101 = vmatmul.bf16.gmra.mxu1 %v3830_v25  ;;  %v3827_v29 = vpack.c.bf16 %v3799_v37, %v3797_v42  ;;  %4604 = vmatpush.bf16.msrb.mxu2 %v10886_v33  ;;  %v11997_v37 = vld [vmem:[#allocation11 + $0x5c4] sm:$0xf0]  ;;  %v3803_v42 = vld [vmem:[#allocation2 + $0x180] sm:$0xff]  ;;  %v11978_v33 = vld [vmem:[#allocation11 + $0x534] sm:$0xf] }
 0x31d   : > { %v13815_v14 = vadd.f32 %v3626_v31, %v13630_v30  ;;  %v3808_v31 = vld [vmem:[#allocation2 + $0x208] sm:$0xff] }
 0x31e   : > { %v3731_v60 = vpop.f32.mrf.mxu3 }
 0x320   : > { %v3674_v2 = vpop.f32.mrf.mxu2 }
 0x321   : > { %v3724_v3 = vadd.f32 %v3723_v52, %v3674_v2  ;;  %v10947_v52 = vld [vmem:[#allocation11 + $0x5c8] sm:$0xf0]  ;;  %v3635_v26 = vpop.f32.mrf.mxu1  ;;  %v10882_v2 = vor.u32 %v11981_v4, %v10881_v50 }
 0x322   : > { %v3579_v44 = vpop.f32.mrf.mxu0  ;;  %v10950_v20 = vor.u32 %v11996_v58, %v10947_v52  ;;  %v10875_v52 = vld [vmem:[#allocation11 + $0x538] sm:$0xf0] }
 0x323   : > { %v13818_v10 = vadd.f32 %v3724_v3, %v13638_v24  ;;  %v3629_v30 = vadd.f32 %v3628_v19, %v3579_v44  ;;  %v3806_v24 = vld [vmem:[#allocation2 + $0x1c8] sm:$0xff]  ;;  %4506 = vmatpush.bf16.msrb.mxu0 %v10882_v2  ;;  %v10873_v2 = vld [vmem:[#allocation11 + $0x530] sm:$0xf] }
 0x324   : > { %4653 = vmatpush.bf16.msrb.mxu3 %v10950_v20  ;;  %v3832_v36 = vpack.c.bf16 %v3808_v31, %v3806_v24  ;;  %v11994_v20 = vld [vmem:[#allocation11 + $0x5b4] sm:$0xf] }
 0x325   : > { %v13821_v5 = vadd.f32 %v3629_v30, %v13644_v40  ;;  %4047 = vmatmul.bf16.gmra.mxu0 %v3827_v29  ;;  %4145 = vmatmul.bf16.gmra.mxu2 %v3827_v29 }
 0x326   : > { %v3733_v56 = vpop.f32.mrf.mxu3 }
 0x328   : > { %v3677_v1 = vpop.f32.mrf.mxu2 }
 0x329   : > { %v3727_v57 = vadd.f32 %v3726_v62, %v3677_v1  ;;  %v3638_v3 = vpop.f32.mrf.mxu1  ;;  %v10946_v62 = vor.u32 %v11997_v37, %v10945_v48  ;;  %v10878_v1 = vor.u32 %v11978_v33, %v10875_v52  ;;  %v11979_v37 = vld [vmem:[#allocation11 + $0x534] sm:$0xf0] }
 0x32a   : > { %v3581_v19 = vpop.f32.mrf.mxu0 }
 0x32b   : > { %v13824_v25 = vadd.f32 %v3727_v57, %v13652_v39  ;;  %v3631_v40 = vadd.f32 %v3630_v45, %v3581_v19  ;;  %4204 = vmatmul.bf16.gmra.mxu3 %v3832_v36  ;;  %4555 = vmatpush.bf16.msrb.mxu1 %v10946_v62  ;;  %v3801_v45 = vld [vmem:[#allocation2 + $0x140] sm:$0xff]  ;;  %v10937_v62 = vld [vmem:[#allocation11 + $0x5b0] sm:$0xf] }
 0x32c   : > { %4106 = vmatmul.bf16.gmra.mxu1 %v3832_v36  ;;  %v3829_v28 = vpack.c.bf16 %v3803_v42, %v3801_v45  ;;  %4605 = vmatpush.bf16.msrb.mxu2 %v10878_v1  ;;  %v11995_v42 = vld [vmem:[#allocation11 + $0x5b4] sm:$0xf0]  ;;  %v11976_v1 = vld [vmem:[#allocation11 + $0x524] sm:$0xf] }
 0x32d   : > { %v13827_v22 = vadd.f32 %v3631_v40, %v13658_v0  ;;  %v3812_v40 = vld [vmem:[#allocation2 + $0x288] sm:$0xff]  ;;  %v3807_v45 = vld [vmem:[#allocation2 + $0x200] sm:$0xff] }
 0x32e   : > { %v3736_v21 = vpop.f32.mrf.mxu3 }
 0x330   : > { %v3679_v44 = vpop.f32.mrf.mxu2 }
 0x331   : > { %v3729_v30 = vadd.f32 %v3728_v47, %v3679_v44  ;;  %v10939_v47 = vld [vmem:[#allocation11 + $0x5b8] sm:$0xf0]  ;;  %v3640_v57 = vpop.f32.mrf.mxu1  ;;  %v10874_v44 = vor.u32 %v11979_v37, %v10873_v2 }
 0x332   : > { %v3584_v39 = vpop.f32.mrf.mxu0  ;;  %v10942_v24 = vor.u32 %v11994_v20, %v10939_v47  ;;  %v10867_v47 = vld [vmem:[#allocation11 + $0x528] sm:$0xf0] }
 0x333   : > { %v13830_v29 = vadd.f32 %v3729_v30, %v13666_v9  ;;  %v3634_v0 = vadd.f32 %v3633_v12, %v3584_v39  ;;  %v3810_v9 = vld [vmem:[#allocation2 + $0x248] sm:$0xff]  ;;  %4507 = vmatpush.bf16.msrb.mxu0 %v10874_v44 }
 0x334   : > { %4654 = vmatpush.bf16.msrb.mxu3 %v10942_v24  ;;  %v3834_v4 = vpack.c.bf16 %v3812_v40, %v3810_v9  ;;  %v11992_v24 = vld [vmem:[#allocation11 + $0x5a4] sm:$0xf]  ;;  %v10865_v44 = vld [vmem:[#allocation11 + $0x520] sm:$0xf] }
 0x335   : > { %v13833_v58 = vadd.f32 %v3634_v0, %v13672_v13  ;;  %4052 = vmatmul.bf16.gmra.mxu0 %v3829_v28  ;;  %4150 = vmatmul.bf16.gmra.mxu2 %v3829_v28 }
 0x336   : > { %v3738_v50 = vpop.f32.mrf.mxu3 }
 0x338   : > { %v3682_v31 = vpop.f32.mrf.mxu2 }
 0x339   : > { %v3732_v19 = vadd.f32 %v3731_v60, %v3682_v31  ;;  %v3643_v30 = vpop.f32.mrf.mxu1  ;;  %v10938_v60 = vor.u32 %v11995_v42, %v10937_v62  ;;  %v10870_v31 = vor.u32 %v11976_v1, %v10867_v47  ;;  %v11977_v42 = vld [vmem:[#allocation11 + $0x524] sm:$0xf0] }
 0x33a   : > { %v3586_v12 = vpop.f32.mrf.mxu0 }
 0x33b   : > { %v13836_v36 = vadd.f32 %v3732_v19, %v13680_v27  ;;  %v3636_v13 = vadd.f32 %v3635_v26, %v3586_v12  ;;  %4209 = vmatmul.bf16.gmra.mxu3 %v3834_v4  ;;  %4556 = vmatpush.bf16.msrb.mxu1 %v10938_v60  ;;  %v3805_v26 = vld [vmem:[#allocation2 + $0x1c0] sm:$0xff]  ;;  %v10929_v60 = vld [vmem:[#allocation11 + $0x5a0] sm:$0xf] }
 0x33c   : > { %4111 = vmatmul.bf16.gmra.mxu1 %v3834_v4  ;;  %v3831_v33 = vpack.c.bf16 %v3807_v45, %v3805_v26  ;;  %4606 = vmatpush.bf16.msrb.mxu2 %v10870_v31  ;;  %v11993_v45 = vld [vmem:[#allocation11 + $0x5a4] sm:$0xf0]  ;;  %v3811_v26 = vld [vmem:[#allocation2 + $0x280] sm:$0xff]  ;;  %v11974_v31 = vld [vmem:[#allocation11 + $0x514] sm:$0xf] }
 0x33d   : > { %v13839_v48 = vadd.f32 %v3636_v13, %v13686_v41  ;;  %v3816_v13 = vld [vmem:[#allocation2 + $0x308] sm:$0xff] }
 0x33e   : > { %v3741_v52 = vpop.f32.mrf.mxu3 }
 0x340   : > { %v3684_v39 = vpop.f32.mrf.mxu2 }
 0x341   : > { %v3734_v0 = vadd.f32 %v3733_v56, %v3684_v39  ;;  %v10931_v56 = vld [vmem:[#allocation11 + $0x5a8] sm:$0xf0]  ;;  %v3645_v19 = vpop.f32.mrf.mxu1  ;;  %v10866_v39 = vor.u32 %v11977_v42, %v10865_v44 }
 0x342   : > { %v3589_v27 = vpop.f32.mrf.mxu0  ;;  %v10934_v9 = vor.u32 %v11992_v24, %v10931_v56  ;;  %v10859_v56 = vld [vmem:[#allocation11 + $0x518] sm:$0xf0] }
 0x343   : > { %v13842_v28 = vadd.f32 %v3734_v0, %v13694_v61  ;;  %v3639_v41 = vadd.f32 %v3638_v3, %v3589_v27  ;;  %v3814_v61 = vld [vmem:[#allocation2 + $0x2c8] sm:$0xff]  ;;  %4508 = vmatpush.bf16.msrb.mxu0 %v10866_v39  ;;  %v10857_v39 = vld [vmem:[#allocation11 + $0x510] sm:$0xf] }
 0x344   : > { %4655 = vmatpush.bf16.msrb.mxu3 %v10934_v9  ;;  %v3836_v37 = vpack.c.bf16 %v3816_v13, %v3814_v61  ;;  %v11990_v9 = vld [vmem:[#allocation11 + $0x594] sm:$0xf] }
 0x345   : > { %v13845_v20 = vadd.f32 %v3639_v41, %v13700_v32  ;;  %4057 = vmatmul.bf16.gmra.mxu0 %v3831_v33  ;;  %4155 = vmatmul.bf16.gmra.mxu2 %v3831_v33 }
 0x346   : > { %v3743_v2 = vpop.f32.mrf.mxu3 }
 0x348   : > { %v3687_v40 = vpop.f32.mrf.mxu2 }
 0x349   : > { %v3737_v12 = vadd.f32 %v3736_v21, %v3687_v40  ;;  %v3648_v0 = vpop.f32.mrf.mxu1  ;;  %v10930_v21 = vor.u32 %v11993_v45, %v10929_v60  ;;  %v10862_v40 = vor.u32 %v11974_v31, %v10859_v56  ;;  %v11975_v45 = vld [vmem:[#allocation11 + $0x514] sm:$0xf0] }
 0x34a   : > { %v3591_v3 = vpop.f32.mrf.mxu0 }
 0x34b   : > { %v13848_v4 = vadd.f32 %v3737_v12, %v13708_v23  ;;  %v3641_v32 = vadd.f32 %v3640_v57, %v3591_v3  ;;  %4214 = vmatmul.bf16.gmra.mxu3 %v3836_v37  ;;  %4557 = vmatpush.bf16.msrb.mxu1 %v10930_v21  ;;  %v3809_v57 = vld [vmem:[#allocation2 + $0x240] sm:$0xff]  ;;  %v10921_v21 = vld [vmem:[#allocation11 + $0x590] sm:$0xf] }
 0x34c   : > { %4116 = vmatmul.bf16.gmra.mxu1 %v3836_v37  ;;  %v3833_v1 = vpack.c.bf16 %v3811_v26, %v3809_v57  ;;  %4607 = vmatpush.bf16.msrb.mxu2 %v10862_v40  ;;  %v11991_v26 = vld [vmem:[#allocation11 + $0x594] sm:$0xf0]  ;;  %v11972_v40 = vld [vmem:[#allocation11 + $0x504] sm:$0xf] }
 0x34d   : > { %v13851_v62 = vadd.f32 %v3641_v32, %v13714_v34  ;;  %v3820_v32 = vld [vmem:[#allocation2 + $0x388] sm:$0xff]  ;;  %v3815_v57 = vld [vmem:[#allocation2 + $0x300] sm:$0xff] }
 0x34e   : > { %v3746_v47 = vpop.f32.mrf.mxu3 }
 0x350   : > { %v3689_v27 = vpop.f32.mrf.mxu2 }
 0x351   : > { %v3739_v41 = vadd.f32 %v3738_v50, %v3689_v27  ;;  %v10923_v50 = vld [vmem:[#allocation11 + $0x598] sm:$0xf0]  ;;  %v3650_v12 = vpop.f32.mrf.mxu1  ;;  %v10858_v27 = vor.u32 %v11975_v45, %v10857_v39 }
 0x352   : > { %v3594_v23 = vpop.f32.mrf.mxu0  ;;  %v10926_v61 = vor.u32 %v11990_v9, %v10923_v50  ;;  %v10851_v50 = vld [vmem:[#allocation11 + $0x508] sm:$0xf0] }
 0x353   : > { %v13854_v33 = vadd.f32 %v3739_v41, %v13722_v11  ;;  %v3644_v34 = vadd.f32 %v3643_v30, %v3594_v23  ;;  %v3818_v11 = vld [vmem:[#allocation2 + $0x348] sm:$0xff]  ;;  %4509 = vmatpush.bf16.msrb.mxu0 %v10858_v27 }
 0x354   : > { %4656 = vmatpush.bf16.msrb.mxu3 %v10926_v61  ;;  %v3838_v42 = vpack.c.bf16 %v3820_v32, %v3818_v11  ;;  %v11988_v61 = vld [vmem:[#allocation11 + $0x584] sm:$0xf]  ;;  %v10849_v27 = vld [vmem:[#allocation11 + $0x500] sm:$0xf] }
 0x355   : > { %v13857_v24 = vadd.f32 %v3644_v34, %v13728_v35  ;;  %4062 = vmatmul.bf16.gmra.mxu0 %v3833_v1  ;;  %4160 = vmatmul.bf16.gmra.mxu2 %v3833_v1 }
 0x356   : > { %v3748_v44 = vpop.f32.mrf.mxu3 }
 0x358   : > { %v3692_v13 = vpop.f32.mrf.mxu2 }
 0x359   : > { %v3742_v3 = vadd.f32 %v3741_v52, %v3692_v13  ;;  %v3653_v41 = vpop.f32.mrf.mxu1  ;;  %v10922_v52 = vor.u32 %v11991_v26, %v10921_v21  ;;  %v10854_v13 = vor.u32 %v11972_v40, %v10851_v50  ;;  %v11973_v26 = vld [vmem:[#allocation11 + $0x504] sm:$0xf0] }
 0x35a   : > { %v3596_v30 = vpop.f32.mrf.mxu0 }
 0x35b   : > { %v13860_v37 = vadd.f32 %v3742_v3, %v13736_v43  ;;  %v3646_v35 = vadd.f32 %v3645_v19, %v3596_v30  ;;  %4219 = vmatmul.bf16.gmra.mxu3 %v3838_v42  ;;  %4558 = vmatpush.bf16.msrb.mxu1 %v10922_v52  ;;  %v3813_v19 = vld [vmem:[#allocation2 + $0x2c0] sm:$0xff]  ;;  %v10913_v52 = vld [vmem:[#allocation11 + $0x580] sm:$0xf] }
 0x35c   : > { %4121 = vmatmul.bf16.gmra.mxu1 %v3838_v42  ;;  %v3835_v31 = vpack.c.bf16 %v3815_v57, %v3813_v19  ;;  %4608 = vmatpush.bf16.msrb.mxu2 %v10854_v13  ;;  %v11989_v57 = vld [vmem:[#allocation11 + $0x584] sm:$0xf0]  ;;  %v3819_v19 = vld [vmem:[#allocation2 + $0x380] sm:$0xff]  ;;  %v12018_v13 = vld [vmem:[#allocation11 + $0x674] sm:$0xf] }
 0x35d   : > { %v13863_v60 = vadd.f32 %v3646_v35, %v13742_v38  ;;  %v3824_v35 = vld [vmem:[#allocation2 + $0x408] sm:$0xff] }
 0x35e   : > { %v3751_v56 = vpop.f32.mrf.mxu3 }
 0x360   : > { %v3694_v23 = vpop.f32.mrf.mxu2 }
 0x361   : > { %v3744_v34 = vadd.f32 %v3743_v2, %v3694_v23  ;;  %v10915_v2 = vld [vmem:[#allocation11 + $0x588] sm:$0xf0]  ;;  %v3655_v3 = vpop.f32.mrf.mxu1  ;;  %v10850_v23 = vor.u32 %v11973_v26, %v10849_v27 }
 0x362   : > { %v3599_v43 = vpop.f32.mrf.mxu0  ;;  %v10918_v11 = vor.u32 %v11988_v61, %v10915_v2  ;;  %v11035_v2 = vld [vmem:[#allocation11 + $0x678] sm:$0xf0] }
 0x363   : > { %v13866_v1 = vadd.f32 %v3744_v34, %v13750_v6  ;;  %v3649_v38 = vadd.f32 %v3648_v0, %v3599_v43  ;;  %v3822_v6 = vld [vmem:[#allocation2 + $0x3c8] sm:$0xff]  ;;  %4510 = vmatpush.bf16.msrb.mxu0 %v10850_v23  ;;  %v11033_v23 = vld [vmem:[#allocation11 + $0x670] sm:$0xf] }
 0x364   : > { %4657 = vmatpush.bf16.msrb.mxu3 %v10918_v11  ;;  %v3840_v45 = vpack.c.bf16 %v3824_v35, %v3822_v6  ;;  %v12034_v11 = vld [vmem:[#allocation11 + $0x6f4] sm:$0xf] }
 0x365   : > { %v13869_v9 = vadd.f32 %v3649_v38, %v13756_v49  ;;  %4067 = vmatmul.bf16.gmra.mxu0 %v3835_v31  ;;  %4165 = vmatmul.bf16.gmra.mxu2 %v3835_v31 }
 0x366   : > { %v3753_v39 = vpop.f32.mrf.mxu3 }
 0x368   : > { %v3697_v32 = vpop.f32.mrf.mxu2 }
 0x369   : > { %v3747_v30 = vadd.f32 %v3746_v47, %v3697_v32  ;;  %v3658_v34 = vpop.f32.mrf.mxu1  ;;  %v10914_v47 = vor.u32 %v11989_v57, %v10913_v52  ;;  %v11038_v32 = vor.u32 %v12018_v13, %v11035_v2  ;;  %v12019_v57 = vld [vmem:[#allocation11 + $0x674] sm:$0xf0] }
 0x36a   : > { %v3601_v0 = vpop.f32.mrf.mxu0 }
 0x36b   : > { %v13872_v42 = vadd.f32 %v3747_v30, %v13762_v17  ;;  %v3651_v49 = vadd.f32 %v3650_v12, %v3601_v0  ;;  %4224 = vmatmul.bf16.gmra.mxu3 %v3840_v45  ;;  %4559 = vmatpush.bf16.msrb.mxu1 %v10914_v47  ;;  %v3817_v12 = vld [vmem:[#allocation2 + $0x340] sm:$0xff]  ;;  %v11097_v47 = vld [vmem:[#allocation11 + $0x6f0] sm:$0xf] }
 0x36c   : > { %4126 = vmatmul.bf16.gmra.mxu1 %v3840_v45  ;;  %v3837_v40 = vpack.c.bf16 %v3819_v19, %v3817_v12  ;;  %5294 = vmatpush.bf16.msra.mxu2 %v11038_v32  ;;  %v12035_v19 = vld [vmem:[#allocation11 + $0x6f4] sm:$0xf0]  ;;  %v12016_v32 = vld [vmem:[#allocation11 + $0x664] sm:$0xf] }
 0x36d   : > { %v13875_v21 = vadd.f32 %v3651_v49, %v13768_v8  ;;  %v4265_v49 = vld [vmem:[#allocation2 + $0x98] sm:$0xff]  ;;  %v3823_v12 = vld [vmem:[#allocation2 + $0x400] sm:$0xff] }
 0x36e   : > { %v3756_v50 = vpop.f32.mrf.mxu3 }
 0x370   : > { %v3699_v43 = vpop.f32.mrf.mxu2 }
 0x371   : > { %v3749_v38 = vadd.f32 %v3748_v44, %v3699_v43  ;;  %v11099_v44 = vld [vmem:[#allocation11 + $0x6f8] sm:$0xf0]  ;;  %v3660_v30 = vpop.f32.mrf.mxu1  ;;  %v11034_v43 = vor.u32 %v12019_v57, %v11033_v23 }
 0x372   : > { %v3604_v17 = vpop.f32.mrf.mxu0  ;;  %v11102_v6 = vor.u32 %v12034_v11, %v11099_v44  ;;  %v11027_v44 = vld [vmem:[#allocation11 + $0x668] sm:$0xf0] }
 0x373   : > { %v13878_v31 = vadd.f32 %v3749_v38, %v13774_v7  ;;  %v3654_v8 = vadd.f32 %v3653_v41, %v3604_v17  ;;  %v4263_v7 = vld [vmem:[#allocation2 + $0x58] sm:$0xff]  ;;  %5196 = vmatpush.bf16.msra.mxu0 %v11034_v43  ;;  %v11025_v43 = vld [vmem:[#allocation11 + $0x660] sm:$0xf] }
 0x374   : > { %5343 = vmatpush.bf16.msra.mxu3 %v11102_v6  ;;  %v4295_v26 = vpack.c.bf16 %v4265_v49, %v4263_v7  ;;  %v12032_v6 = vld [vmem:[#allocation11 + $0x6e4] sm:$0xf] }
 0x375   : > { %v13881_v61 = vadd.f32 %v3654_v8, %v13780_v16  ;;  %4072 = vmatmul.bf16.gmra.mxu0 %v3837_v40  ;;  %4170 = vmatmul.bf16.gmra.mxu2 %v3837_v40 }
 0x376   : > { %v3758_v27 = vpop.f32.mrf.mxu3 }
 0x378   : > { %v3702_v35 = vpop.f32.mrf.mxu2 }
 0x379   : > { %v3752_v0 = vadd.f32 %v3751_v56, %v3702_v35  ;;  %v4092_v38 = vpop.f32.mrf.mxu1  ;;  %v11098_v56 = vor.u32 %v12035_v19, %v11097_v47  ;;  %v11030_v35 = vor.u32 %v12016_v32, %v11027_v44  ;;  %v12017_v19 = vld [vmem:[#allocation11 + $0x664] sm:$0xf0] }
 0x37a   : > { %v3606_v41 = vpop.f32.mrf.mxu0 }
 0x37b   : > { %v13884_v45 = vadd.f32 %v3752_v0, %v13784_v51  ;;  %v3656_v16 = vadd.f32 %v3655_v3, %v3606_v41  ;;  %4658 = vmatmul.bf16.vlgmr.msrb.gmra.mxu3 %v4295_v26  ;;  %5245 = vmatpush.bf16.msra.mxu1 %v11098_v56  ;;  %v3821_v3 = vld [vmem:[#allocation2 + $0x3c0] sm:$0xff]  ;;  %v11089_v56 = vld [vmem:[#allocation11 + $0x6e0] sm:$0xf] }
 0x37c   : > { %4560 = vmatmul.bf16.vlgmr.msrb.gmra.mxu1 %v4295_v26  ;;  %v3839_v13 = vpack.c.bf16 %v3823_v12, %v3821_v3  ;;  %5295 = vmatpush.bf16.msra.mxu2 %v11030_v35  ;;  %v12033_v12 = vld [vmem:[#allocation11 + $0x6e4] sm:$0xf0]  ;;  %v12014_v35 = vld [vmem:[#allocation11 + $0x654] sm:$0xf] }
 0x37d   : > { %v13887_v52 = vadd.f32 %v3656_v16, %v13787_v15  ;;  %v4269_v16 = vld [vmem:[#allocation2 + $0x118] sm:$0xff]  ;;  %v4264_v3 = vld [vmem:[#allocation2 + $0x90] sm:$0xff] }
 0x37e   : > { %v4190_v2 = vpop.f32.mrf.mxu3 }
 0x380   : > { %v3704_v17 = vpop.f32.mrf.mxu2 }
 0x381   : > { %v3754_v8 = vadd.f32 %v3753_v39, %v3704_v17  ;;  %v11091_v39 = vld [vmem:[#allocation11 + $0x6e8] sm:$0xf0]  ;;  %v4094_v0 = vpop.f32.mrf.mxu1  ;;  %v11026_v17 = vor.u32 %v12017_v19, %v11025_v43 }
 0x382   : > { %v3609_v51 = vpop.f32.mrf.mxu0  ;;  %v11094_v7 = vor.u32 %v12032_v6, %v11091_v39  ;;  %v11019_v39 = vld [vmem:[#allocation11 + $0x658] sm:$0xf0] }
 0x383   : > { %v13890_v40 = vadd.f32 %v3754_v8, %v13793_v59  ;;  %v3659_v15 = vadd.f32 %v3658_v34, %v3609_v51  ;;  %v4267_v59 = vld [vmem:[#allocation2 + $0xd8] sm:$0xff]  ;;  %5197 = vmatpush.bf16.msra.mxu0 %v11026_v17 }
 0x384   : > { %5344 = vmatpush.bf16.msra.mxu3 %v11094_v7  ;;  %v4297_v57 = vpack.c.bf16 %v4269_v16, %v4267_v59  ;;  %v12030_v7 = vld [vmem:[#allocation11 + $0x6d4] sm:$0xf]  ;;  %v11017_v17 = vld [vmem:[#allocation11 + $0x650] sm:$0xf] }
 0x385   : > { %v13893_v11 = vadd.f32 %v3659_v15, %v13796_v18  ;;  %4077 = vmatmul.bf16.gmra.mxu0 %v3839_v13  ;;  %4175 = vmatmul.bf16.gmra.mxu2 %v3839_v13 }
 0x386   : > { %v4192_v23 = vpop.f32.mrf.mxu3 }
 0x388   : > { %v3707_v49 = vpop.f32.mrf.mxu2 }
 0x389   : > { %v3757_v41 = vadd.f32 %v3756_v50, %v3707_v49  ;;  %v4097_v8 = vpop.f32.mrf.mxu1  ;;  %v11090_v50 = vor.u32 %v12033_v12, %v11089_v56  ;;  %v11022_v49 = vor.u32 %v12014_v35, %v11019_v39  ;;  %v12015_v12 = vld [vmem:[#allocation11 + $0x654] sm:$0xf0] }
 0x38a   : > { %v3611_v34 = vpop.f32.mrf.mxu0 }
 0x38b   : > { %v13896_v26 = vadd.f32 %v3757_v41, %v13800_v55  ;;  %v3661_v18 = vadd.f32 %v3660_v30, %v3611_v34  ;;  %4663 = vmatmul.bf16.gmra.mxu3 %v4297_v57  ;;  %5246 = vmatpush.bf16.msra.mxu1 %v11090_v50  ;;  %v4262_v30 = vld [vmem:[#allocation2 + $0x50] sm:$0xff]  ;;  %v11081_v50 = vld [vmem:[#allocation11 + $0x6d0] sm:$0xf] }
 0x38c   : > { %4565 = vmatmul.bf16.gmra.mxu1 %v4297_v57  ;;  %v4294_v32 = vpack.c.bf16 %v4264_v3, %v4262_v30  ;;  %5296 = vmatpush.bf16.msra.mxu2 %v11022_v49  ;;  %v12031_v3 = vld [vmem:[#allocation11 + $0x6d4] sm:$0xf0]  ;;  %v4268_v30 = vld [vmem:[#allocation2 + $0x110] sm:$0xff]  ;;  %v12012_v49 = vld [vmem:[#allocation11 + $0x644] sm:$0xf] }
 0x38d   : > { %v13899_v47 = vadd.f32 %v3661_v18, %v13803_v63  ;;  %v4273_v18 = vld [vmem:[#allocation2 + $0x198] sm:$0xff] }
 0x38e   : > { %v4195_v44 = vpop.f32.mrf.mxu3 }
 0x390   : > { %v3709_v51 = vpop.f32.mrf.mxu2 }
 0x391   : > { %v3759_v15 = vadd.f32 %v3758_v27, %v3709_v51  ;;  %v11083_v27 = vld [vmem:[#allocation11 + $0x6d8] sm:$0xf0]  ;;  %v4099_v41 = vpop.f32.mrf.mxu1  ;;  %v11018_v51 = vor.u32 %v12015_v12, %v11017_v17 }
 0x392   : > { %v4043_v55 = vpop.f32.mrf.mxu0  ;;  %v11086_v59 = vor.u32 %v12030_v7, %v11083_v27  ;;  %v11011_v27 = vld [vmem:[#allocation11 + $0x648] sm:$0xf0] }
 0x393   : > { %v13902_v13 = vadd.f32 %v3759_v15, %v13806_v54  ;;  %v4093_v63 = vadd.f32 %v4092_v38, %v4043_v55  ;;  %v4271_v54 = vld [vmem:[#allocation2 + $0x158] sm:$0xff]  ;;  %5198 = vmatpush.bf16.msra.mxu0 %v11018_v51  ;;  %v11009_v51 = vld [vmem:[#allocation11 + $0x640] sm:$0xf] }
 0x394   : > { %5345 = vmatpush.bf16.msra.mxu3 %v11086_v59  ;;  %v4299_v19 = vpack.c.bf16 %v4273_v18, %v4271_v54  ;;  %v12028_v59 = vld [vmem:[#allocation11 + $0x6c4] sm:$0xf] }
 0x395   : > { %v13905_v6 = vadd.f32 %v4093_v63, %v13809_v46  ;;  %4511 = vmatmul.bf16.vlgmr.msrb.gmra.mxu0 %v4294_v32  ;;  %4609 = vmatmul.bf16.vlgmr.msrb.gmra.mxu2 %v4294_v32 }
 0x396   : > { %v4197_v43 = vpop.f32.mrf.mxu3 }
 0x398   : > { %v4141_v16 = vpop.f32.mrf.mxu2 }
 0x399   : > { %v4191_v34 = vadd.f32 %v4190_v2, %v4141_v16  ;;  %v4102_v15 = vpop.f32.mrf.mxu1  ;;  %v11082_v2 = vor.u32 %v12031_v3, %v11081_v50  ;;  %v11014_v16 = vor.u32 %v12012_v49, %v11011_v27  ;;  %v12013_v3 = vld [vmem:[#allocation11 + $0x644] sm:$0xf0] }
 0x39a   : > { %v4045_v38 = vpop.f32.mrf.mxu0 }
 0x39b   : > { %v13908_v57 = vadd.f32 %v4191_v34, %v13812_v53  ;;  %v4095_v46 = vadd.f32 %v4094_v0, %v4045_v38  ;;  %4668 = vmatmul.bf16.gmra.mxu3 %v4299_v19  ;;  %5247 = vmatpush.bf16.msra.mxu1 %v11082_v2  ;;  %v4266_v0 = vld [vmem:[#allocation2 + $0xd0] sm:$0xff]  ;;  %v11073_v2 = vld [vmem:[#allocation11 + $0x6c0] sm:$0xf] }
 0x39c   : > { %4570 = vmatmul.bf16.gmra.mxu1 %v4299_v19  ;;  %v4296_v35 = vpack.c.bf16 %v4268_v30, %v4266_v0  ;;  %5297 = vmatpush.bf16.msra.mxu2 %v11014_v16  ;;  %v12029_v30 = vld [vmem:[#allocation11 + $0x6c4] sm:$0xf0]  ;;  %v12010_v16 = vld [vmem:[#allocation11 + $0x634] sm:$0xf] }
 0x39d   : > { %v13911_v56 = vadd.f32 %v4095_v46, %v13815_v14  ;;  %v4277_v46 = vld [vmem:[#allocation2 + $0x218] sm:$0xff]  ;;  %v4272_v0 = vld [vmem:[#allocation2 + $0x190] sm:$0xff] }
 0x39e   : > { %v4200_v39 = vpop.f32.mrf.mxu3 }
 0x3a0   : > { %v4143_v55 = vpop.f32.mrf.mxu2 }
 0x3a1   : > { %v4193_v63 = vadd.f32 %v4192_v23, %v4143_v55  ;;  %v11075_v23 = vld [vmem:[#allocation11 + $0x6c8] sm:$0xf0]  ;;  %v4104_v34 = vpop.f32.mrf.mxu1  ;;  %v11010_v55 = vor.u32 %v12013_v3, %v11009_v51 }
 0x3a2   : > { %v4048_v53 = vpop.f32.mrf.mxu0  ;;  %v11078_v54 = vor.u32 %v12028_v59, %v11075_v23  ;;  %v11003_v23 = vld [vmem:[#allocation11 + $0x638] sm:$0xf0] }
 0x3a3   : > { %v13914_v32 = vadd.f32 %v4193_v63, %v13818_v10  ;;  %v4098_v14 = vadd.f32 %v4097_v8, %v4048_v53  ;;  %v4275_v10 = vld [vmem:[#allocation2 + $0x1d8] sm:$0xff]  ;;  %5199 = vmatpush.bf16.msra.mxu0 %v11010_v55 }
 0x3a4   : > { %5346 = vmatpush.bf16.msra.mxu3 %v11078_v54  ;;  %v4301_v12 = vpack.c.bf16 %v4277_v46, %v4275_v10  ;;  %v12026_v54 = vld [vmem:[#allocation11 + $0x6b4] sm:$0xf]  ;;  %v11001_v55 = vld [vmem:[#allocation11 + $0x630] sm:$0xf] }
 0x3a5   : > { %v13917_v7 = vadd.f32 %v4098_v14, %v13821_v5  ;;  %4516 = vmatmul.bf16.gmra.mxu0 %v4296_v35  ;;  %4614 = vmatmul.bf16.gmra.mxu2 %v4296_v35 }
 0x3a6   : > { %v4202_v17 = vpop.f32.mrf.mxu3 }
 0x3a8   : > { %v4146_v18 = vpop.f32.mrf.mxu2 }
 0x3a9   : > { %v4196_v38 = vadd.f32 %v4195_v44, %v4146_v18  ;;  %v4107_v63 = vpop.f32.mrf.mxu1  ;;  %v11074_v44 = vor.u32 %v12029_v30, %v11073_v2  ;;  %v11006_v18 = vor.u32 %v12010_v16, %v11003_v23  ;;  %v12011_v30 = vld [vmem:[#allocation11 + $0x634] sm:$0xf0] }
 0x3aa   : > { %v4050_v8 = vpop.f32.mrf.mxu0 }
 0x3ab   : > { %v13920_v19 = vadd.f32 %v4196_v38, %v13824_v25  ;;  %v4100_v5 = vadd.f32 %v4099_v41, %v4050_v8  ;;  %4673 = vmatmul.bf16.gmra.mxu3 %v4301_v12  ;;  %5248 = vmatpush.bf16.msra.mxu1 %v11074_v44  ;;  %v4270_v41 = vld [vmem:[#allocation2 + $0x150] sm:$0xff]  ;;  %v11065_v44 = vld [vmem:[#allocation11 + $0x6b0] sm:$0xf] }
 0x3ac   : > { %4575 = vmatmul.bf16.gmra.mxu1 %v4301_v12  ;;  %v4298_v49 = vpack.c.bf16 %v4272_v0, %v4270_v41  ;;  %5298 = vmatpush.bf16.msra.mxu2 %v11006_v18  ;;  %v12027_v0 = vld [vmem:[#allocation11 + $0x6b4] sm:$0xf0]  ;;  %v4276_v41 = vld [vmem:[#allocation2 + $0x210] sm:$0xff]  ;;  %v12008_v18 = vld [vmem:[#allocation11 + $0x624] sm:$0xf] }
 0x3ad   : > { %v13923_v50 = vadd.f32 %v4100_v5, %v13827_v22  ;;  %v4281_v5 = vld [vmem:[#allocation2 + $0x298] sm:$0xff] }
 0x3ae   : > { %v4205_v27 = vpop.f32.mrf.mxu3 }
 0x3b0   : > { %v4148_v53 = vpop.f32.mrf.mxu2 }
 0x3b1   : > { %v4198_v14 = vadd.f32 %v4197_v43, %v4148_v53  ;;  %v11067_v43 = vld [vmem:[#allocation11 + $0x6b8] sm:$0xf0]  ;;  %v4109_v38 = vpop.f32.mrf.mxu1  ;;  %v11002_v53 = vor.u32 %v12011_v30, %v11001_v55 }
 0x3b2   : > { %v4053_v25 = vpop.f32.mrf.mxu0  ;;  %v11070_v10 = vor.u32 %v12026_v54, %v11067_v43  ;;  %v10995_v43 = vld [vmem:[#allocation11 + $0x628] sm:$0xf0] }
 0x3b3   : > { %v13926_v35 = vadd.f32 %v4198_v14, %v13830_v29  ;;  %v4103_v22 = vadd.f32 %v4102_v15, %v4053_v25  ;;  %v4279_v29 = vld [vmem:[#allocation2 + $0x258] sm:$0xff]  ;;  %5200 = vmatpush.bf16.msra.mxu0 %v11002_v53  ;;  %v10993_v53 = vld [vmem:[#allocation11 + $0x620] sm:$0xf] }
 0x3b4   : > { %5347 = vmatpush.bf16.msra.mxu3 %v11070_v10  ;;  %v4303_v3 = vpack.c.bf16 %v4281_v5, %v4279_v29  ;;  %v12024_v10 = vld [vmem:[#allocation11 + $0x6a4] sm:$0xf] }
 0x3b5   : > { %v13929_v59 = vadd.f32 %v4103_v22, %v13833_v58  ;;  %4521 = vmatmul.bf16.gmra.mxu0 %v4298_v49  ;;  %4619 = vmatmul.bf16.gmra.mxu2 %v4298_v49 }
 0x3b6   : > { %v4207_v51 = vpop.f32.mrf.mxu3 }
 0x3b8   : > { %v4151_v46 = vpop.f32.mrf.mxu2 }
 0x3b9   : > { %v4201_v8 = vadd.f32 %v4200_v39, %v4151_v46  ;;  %v4112_v14 = vpop.f32.mrf.mxu1  ;;  %v11066_v39 = vor.u32 %v12027_v0, %v11065_v44  ;;  %v10998_v46 = vor.u32 %v12008_v18, %v10995_v43  ;;  %v12009_v0 = vld [vmem:[#allocation11 + $0x624] sm:$0xf0] }
 0x3ba   : > { %v4055_v15 = vpop.f32.mrf.mxu0 }
 0x3bb   : > { %v13932_v12 = vadd.f32 %v4201_v8, %v13836_v36  ;;  %v4105_v58 = vadd.f32 %v4104_v34, %v4055_v15  ;;  %4678 = vmatmul.bf16.gmra.mxu3 %v4303_v3  ;;  %5249 = vmatpush.bf16.msra.mxu1 %v11066_v39  ;;  %v4274_v34 = vld [vmem:[#allocation2 + $0x1d0] sm:$0xff]  ;;  %v11057_v39 = vld [vmem:[#allocation11 + $0x6a0] sm:$0xf] }
 0x3bc   : > { %4580 = vmatmul.bf16.gmra.mxu1 %v4303_v3  ;;  %v4300_v16 = vpack.c.bf16 %v4276_v41, %v4274_v34  ;;  %5299 = vmatpush.bf16.msra.mxu2 %v10998_v46  ;;  %v12025_v41 = vld [vmem:[#allocation11 + $0x6a4] sm:$0xf0]  ;;  %v12006_v46 = vld [vmem:[#allocation11 + $0x614] sm:$0xf] }
 0x3bd   : > { %v13935_v2 = vadd.f32 %v4105_v58, %v13839_v48  ;;  %v4285_v58 = vld [vmem:[#allocation2 + $0x318] sm:$0xff]  ;;  %v4280_v34 = vld [vmem:[#allocation2 + $0x290] sm:$0xff] }
 0x3be   : > { %v4210_v23 = vpop.f32.mrf.mxu3 }
 0x3c0   : > { %v4153_v25 = vpop.f32.mrf.mxu2 }
 0x3c1   : > { %v4203_v22 = vadd.f32 %v4202_v17, %v4153_v25  ;;  %v11059_v17 = vld [vmem:[#allocation11 + $0x6a8] sm:$0xf0]  ;;  %v4114_v8 = vpop.f32.mrf.mxu1  ;;  %v10994_v25 = vor.u32 %v12009_v0, %v10993_v53 }
 0x3c2   : > { %v4058_v36 = vpop.f32.mrf.mxu0  ;;  %v11062_v29 = vor.u32 %v12024_v10, %v11059_v17  ;;  %v10987_v17 = vld [vmem:[#allocation11 + $0x618] sm:$0xf0] }
 0x3c3   : > { %v13938_v49 = vadd.f32 %v4203_v22, %v13842_v28  ;;  %v4108_v48 = vadd.f32 %v4107_v63, %v4058_v36  ;;  %v4283_v28 = vld [vmem:[#allocation2 + $0x2d8] sm:$0xff]  ;;  %5201 = vmatpush.bf16.msra.mxu0 %v10994_v25 }
 0x3c4   : > { %5348 = vmatpush.bf16.msra.mxu3 %v11062_v29  ;;  %v4305_v30 = vpack.c.bf16 %v4285_v58, %v4283_v28  ;;  %v12022_v29 = vld [vmem:[#allocation11 + $0x694] sm:$0xf]  ;;  %v10985_v25 = vld [vmem:[#allocation11 + $0x610] sm:$0xf] }
 0x3c5   : > { %v13941_v54 = vadd.f32 %v4108_v48, %v13845_v20  ;;  %4526 = vmatmul.bf16.gmra.mxu0 %v4300_v16  ;;  %4624 = vmatmul.bf16.gmra.mxu2 %v4300_v16 }
 0x3c6   : > { %v4212_v55 = vpop.f32.mrf.mxu3 }
 0x3c8   : > { %v4156_v5 = vpop.f32.mrf.mxu2 }
 0x3c9   : > { %v4206_v15 = vadd.f32 %v4205_v27, %v4156_v5  ;;  %v4117_v22 = vpop.f32.mrf.mxu1  ;;  %v11058_v27 = vor.u32 %v12025_v41, %v11057_v39  ;;  %v10990_v5 = vor.u32 %v12006_v46, %v10987_v17  ;;  %v12007_v41 = vld [vmem:[#allocation11 + $0x614] sm:$0xf0] }
 0x3ca   : > { %v4060_v63 = vpop.f32.mrf.mxu0 }
 0x3cb   : > { %v13944_v3 = vadd.f32 %v4206_v15, %v13848_v4  ;;  %v4110_v20 = vadd.f32 %v4109_v38, %v4060_v63  ;;  %4683 = vmatmul.bf16.gmra.mxu3 %v4305_v30  ;;  %5250 = vmatpush.bf16.msra.mxu1 %v11058_v27  ;;  %v4278_v38 = vld [vmem:[#allocation2 + $0x250] sm:$0xff]  ;;  %v11049_v27 = vld [vmem:[#allocation11 + $0x690] sm:$0xf] }
 0x3cc   : > { %4585 = vmatmul.bf16.gmra.mxu1 %v4305_v30  ;;  %v4302_v18 = vpack.c.bf16 %v4280_v34, %v4278_v38  ;;  %5300 = vmatpush.bf16.msra.mxu2 %v10990_v5  ;;  %v12023_v34 = vld [vmem:[#allocation11 + $0x694] sm:$0xf0]  ;;  %v4284_v38 = vld [vmem:[#allocation2 + $0x310] sm:$0xff]  ;;  %v12004_v5 = vld [vmem:[#allocation11 + $0x604] sm:$0xf] }
 0x3cd   : > { %v13947_v44 = vadd.f32 %v4110_v20, %v13851_v62  ;;  %v4289_v20 = vld [vmem:[#allocation2 + $0x398] sm:$0xff] }
 0x3ce   : > { %v4215_v43 = vpop.f32.mrf.mxu3 }
 0x3d0   : > { %v4158_v36 = vpop.f32.mrf.mxu2 }
 0x3d1   : > { %v4208_v48 = vadd.f32 %v4207_v51, %v4158_v36  ;;  %v11051_v51 = vld [vmem:[#allocation11 + $0x698] sm:$0xf0]  ;;  %v4119_v15 = vpop.f32.mrf.mxu1  ;;  %v10986_v36 = vor.u32 %v12007_v41, %v10985_v25 }
 0x3d2   : > { %v4063_v4 = vpop.f32.mrf.mxu0  ;;  %v11054_v28 = vor.u32 %v12022_v29, %v11051_v51  ;;  %v10979_v51 = vld [vmem:[#allocation11 + $0x608] sm:$0xf0] }
 0x3d3   : > { %v13950_v16 = vadd.f32 %v4208_v48, %v13854_v33  ;;  %v4113_v62 = vadd.f32 %v4112_v14, %v4063_v4  ;;  %v4287_v33 = vld [vmem:[#allocation2 + $0x358] sm:$0xff]  ;;  %5202 = vmatpush.bf16.msra.mxu0 %v10986_v36  ;;  %v10977_v36 = vld [vmem:[#allocation11 + $0x600] sm:$0xf] }
 0x3d4   : > { %5349 = vmatpush.bf16.msra.mxu3 %v11054_v28  ;;  %v4307_v0 = vpack.c.bf16 %v4289_v20, %v4287_v33  ;;  %v12020_v28 = vld [vmem:[#allocation11 + $0x684] sm:$0xf] }
 0x3d5   : > { %v13953_v10 = vadd.f32 %v4113_v62, %v13857_v24  ;;  %4531 = vmatmul.bf16.gmra.mxu0 %v4302_v18  ;;  %4629 = vmatmul.bf16.gmra.mxu2 %v4302_v18 }
 0x3d6   : > { %v4217_v53 = vpop.f32.mrf.mxu3 }
 0x3d8   : > { %v4161_v58 = vpop.f32.mrf.mxu2 }
 0x3d9   : > { %v4211_v63 = vadd.f32 %v4210_v23, %v4161_v58  ;;  %v4122_v48 = vpop.f32.mrf.mxu1  ;;  %v11050_v23 = vor.u32 %v12023_v34, %v11049_v27  ;;  %v11043_v58 = vld [vmem:[#allocation11 + $0x688] sm:$0xf0]  ;;  %v12005_v34 = vld [vmem:[#allocation11 + $0x604] sm:$0xf0] }
 0x3da   : > { %v4065_v14 = vpop.f32.mrf.mxu0  ;;  %v11046_v33 = vor.u32 %v12020_v28, %v11043_v58 }
 0x3db   : > { %v13956_v30 = vadd.f32 %v4211_v63, %v13860_v37  ;;  %v4115_v24 = vadd.f32 %v4114_v8, %v4065_v14  ;;  %4688 = vmatmul.bf16.gmra.mxu3 %v4307_v0  ;;  %5251 = vmatpush.bf16.msra.mxu1 %v11050_v23  ;;  %v4282_v8 = vld [vmem:[#allocation2 + $0x2d0] sm:$0xff]  ;;  %v4291_v14 = vld [vmem:[#allocation2 + $0x3d8] sm:$0xff]  ;;  %v11041_v23 = vld [vmem:[#allocation11 + $0x680] sm:$0xf] }
 0x3dc   : > { %4590 = vmatmul.bf16.gmra.mxu1 %v4307_v0  ;;  %v4304_v46 = vpack.c.bf16 %v4284_v38, %v4282_v8  ;;  %5350 = vmatpush.bf16.msra.mxu3 %v11046_v33  ;;  %v12021_v38 = vld [vmem:[#allocation11 + $0x684] sm:$0xf0] }
 0x3dd   : > { %v13959_v39 = vadd.f32 %v4115_v24, %v13863_v60  ;;  %v4288_v8 = vld [vmem:[#allocation2 + $0x390] sm:$0xff] }
 0x3de   : > { %v13964_v17 = vpop.f32.mrf.mxu3 }
 0x3e0   : > { %v4163_v4 = vpop.f32.mrf.mxu2 }
 0x3e1   : > { %v4213_v62 = vadd.f32 %v4212_v55, %v4163_v4  ;;  %v10982_v55 = vor.u32 %v12004_v5, %v10979_v51  ;;  %v4124_v63 = vpop.f32.mrf.mxu1  ;;  %v10978_v4 = vor.u32 %v12005_v34, %v10977_v36  ;;  %v4738_v5 = vld [vmem:[#allocation2 + $0xa8] sm:$0x1]  ;;  %v4286_v51 = vld [vmem:[#allocation2 + $0x350] sm:$0xff]  ;;  %v12066_v36 = vld [vmem:[#allocation11 + $0x7f4] sm:$0xf] }
 0x3e2   : > { %v4068_v37 = vpop.f32.mrf.mxu0  ;;  %v4306_v58 = vpack.c.bf16 %v4288_v8, %v4286_v51  ;;  %v11227_v34 = vld [vmem:[#allocation11 + $0x7f8] sm:$0xf0]  ;;  %v12067_v51 = vld [vmem:[#allocation11 + $0x7f4] sm:$0xf0] }
 0x3e3   : > { %v13962_v18 = vadd.f32 %v4213_v62, %v13866_v1  ;;  %v4118_v60 = vadd.f32 %v4117_v22, %v4068_v37  ;;  %5301 = vmatpush.bf16.msra.mxu2 %v10982_v55  ;;  %v4293_v22 = vld [vmem:[#allocation2 + $0x418] sm:$0xff]  ;;  %v11042_v62 = vor.u32 %v12021_v38, %v11041_v23  ;;  %5203 = vmatpush.bf16.msra.mxu0 %v10978_v4 }
 0x3e4   : > { %v4309_v41 = vpack.c.bf16 %v4293_v22, %v4291_v14  ;;  %v4869_v22 = vrot.slane %v4738_v5, 1  ;;  %v11230_v23 = vor.u32 %v12066_v36, %v11227_v34  ;;  %v12051_v5 = vld [vmem:[#allocation11 + $0x774] sm:$0xf0] }
 0x3e5   : > { %v13967_v29 = vadd.f32 %v4118_v60, %v13869_v9  ;;  %4536 = vmatmul.bf16.gmra.mxu0 %v4304_v46  ;;  %4634 = vmatmul.bf16.gmra.mxu2 %v4304_v46  ;;  %v4734_v60 = vld [vmem:[#allocation2 + $0x68] sm:$0x1]  ;;  %v4736_v46 = vld [vmem:[#allocation2 + $0x88] sm:$0xfe] }
 0x3e6   : > { %v13972_v25 = vpop.f32.mrf.mxu3  ;;  %5252 = vmatpush.bf16.msra.mxu1 %v11042_v62  ;;  %v4868_v14 = vrot.slane %v4736_v46, 1  ;;  %6036 = vmatpush.bf16.msrb.mxu3 %v11230_v23  ;;  %v11161_v46 = vld [vmem:[#allocation11 + $0x770] sm:$0xf] }
 0x3e8   : > { %v4166_v20 = vpop.f32.mrf.mxu2  ;;  %v4870_v62 = vsel %vm2534_vm1, %v4868_v14, %v4869_v22  ;;  %v4742_v14 = vld [vmem:[#allocation2 + $0xe8] sm:$0x1]  ;;  %v4744_v22 = vld [vmem:[#allocation2 + $0x108] sm:$0xfe] }
 0x3e9   : > { %v4216_v1 = vadd.f32 %v4215_v43, %v4166_v20  ;;  %v13977_v43 = vpop.f32.mrf.mxu1 }
 0x3ea   : > { %v4070_v24 = vpop.f32.mrf.mxu0 }
 0x3eb   : > { %v13970_v0 = vadd.f32 %v4216_v1, %v13872_v42  ;;  %v4120_v9 = vadd.f32 %v4119_v15, %v4070_v24  ;;  %4693 = vmatmul.bf16.gmra.mxu3 %v4309_v41  ;;  %v4732_v42 = vld [vmem:[#allocation2 + $0x48] sm:$0xfe]  ;;  %v4863_v1 = vrot.slane %v4734_v60, 1  ;;  %v12050_v24 = vld [vmem:[#allocation11 + $0x774] sm:$0xf] }
 0x3ec   : > { %4595 = vmatmul.bf16.gmra.mxu1 %v4309_v41  ;;  %v4862_v20 = vrot.slane %v4732_v42, 1 }
 0x3ed   : > { %v13975_v27 = vadd.f32 %v4120_v9, %v13875_v21  ;;  %v11163_v9 = vld [vmem:[#allocation11 + $0x778] sm:$0xf0] }
 0x3ee   : > { %v13982_v33 = vpop.f32.mrf.mxu3  ;;  %v11166_v41 = vor.u32 %v12050_v24, %v11163_v9  ;;  %v4864_v38 = vsel %vm2534_vm1, %v4862_v20, %v4863_v1  ;;  %v4292_v1 = vld [vmem:[#allocation2 + $0x410] sm:$0xff] }
 0x3ef   : > { %v4290_v9 = vld [vmem:[#allocation2 + $0x3d0] sm:$0xff] }
 0x3f0   : > { %v4168_v37 = vpop.f32.mrf.mxu2  ;;  %5987 = vmatpush.bf16.msrb.mxu2 %v11166_v41  ;;  %v4308_v34 = vpack.c.bf16 %v4292_v1, %v4290_v9 }
 0x3f1   : > { %v4218_v15 = vadd.f32 %v4217_v53, %v4168_v37 }
 0x3f2   : > { %v4073_v21 = vpop.f32.mrf.mxu0 }
 0x3f3   : > { %v13980_v28 = vadd.f32 %v4218_v15, %v13878_v31  ;;  %v4123_v55 = vadd.f32 %v4122_v48, %v4073_v21  ;;  %v4129_v31 = vpop.f32.mrf.mxu1  ;;  %v4988_v15 = vpack.c.bf16 %v4870_v62, %v4864_v38  ;;  %v11225_v21 = vld [vmem:[#allocation11 + $0x7f0] sm:$0xf]  ;;  %v4880_v38 = vrot.slane %v4744_v22, 1  ;;  %v4733_v22 = vld [vmem:[#allocation2 + $0x60] sm:$0x1] }
 0x3f5   : > { %v13985_v53 = vadd.f32 %v4123_v55, %v13881_v61  ;;  %4541 = vmatmul.bf16.gmra.mxu0 %v4306_v58  ;;  %4639 = vmatmul.bf16.gmra.mxu2 %v4306_v58  ;;  %v11226_v58 = vor.u32 %v12067_v51, %v11225_v21  ;;  %v4735_v51 = vld [vmem:[#allocation2 + $0x80] sm:$0xfe] }
 0x3f6   : > { %v13993_v42 = vpop.f32.mrf.mxu3 }
 0x3f7   : > { %5938 = vmatpush.bf16.msrb.mxu1 %v11226_v58  ;;  %v4737_v58 = vld [vmem:[#allocation2 + $0xa0] sm:$0x1] }
 0x3f8   : > { %v4171_v48 = vpop.f32.mrf.mxu2  ;;  %v4866_v9 = vrot.slane %v4737_v58, 1 }
 0x3f9   : > { %v4221_v4 = vadd.f32 %v13964_v17, %v4171_v48  ;;  %v11162_v17 = vor.u32 %v12051_v5, %v11161_v46 }
 0x3fa   : > { %v4075_v61 = vpop.f32.mrf.mxu0 }
 0x3fb   : > { %v13991_v37 = vadd.f32 %v4221_v4, %v13884_v45  ;;  %v4125_v8 = vadd.f32 %v4124_v63, %v4075_v61  ;;  %v13998_v55 = vpop.f32.mrf.mxu1  ;;  %5351 = vmatmul.bf16.vlgmr.msra.gmra.mxu3 %v4988_v15  ;;  %5889 = vmatpush.bf16.msrb.mxu0 %v11162_v17  ;;  %v4740_v45 = vld [vmem:[#allocation2 + $0xc8] sm:$0xfe]  ;;  %v4875_v4 = vrot.slane %v4742_v14, 1  ;;  %v4731_v14 = vld [vmem:[#allocation2 + $0x40] sm:$0xfe] }
 0x3fc   : > { %5253 = vmatmul.bf16.vlgmr.msra.gmra.mxu1 %v4988_v15  ;;  %v4874_v48 = vrot.slane %v4740_v45, 1  ;;  %v12048_v61 = vld [vmem:[#allocation11 + $0x764] sm:$0xf] }
 0x3fd   : > { %v13996_v60 = vadd.f32 %v4125_v8, %v13887_v52  ;;  %v4746_v52 = vld [vmem:[#allocation2 + $0x128] sm:$0x1]  ;;  %v11155_v8 = vld [vmem:[#allocation11 + $0x768] sm:$0xf0]  ;;  %v12064_v15 = vld [vmem:[#allocation11 + $0x7e4] sm:$0xf] }
 0x3fe   : > { %v14005_v23 = vpop.f32.mrf.mxu3  ;;  %v4881_v62 = vrot.slane %v4746_v52, 1  ;;  %v11158_v46 = vor.u32 %v12048_v61, %v11155_v8  ;;  %v12065_v8 = vld [vmem:[#allocation11 + $0x7e4] sm:$0xf0] }
 0x400   : > { %v4173_v20 = vpop.f32.mrf.mxu2  ;;  %5988 = vmatpush.bf16.msrb.mxu2 %v11158_v46 }
 0x401   : > { %v4223_v63 = vadd.f32 %v13972_v25, %v4173_v20  ;;  %v4876_v20 = vsel %vm2534_vm1, %v4874_v48, %v4875_v4  ;;  %v12049_v48 = vld [vmem:[#allocation11 + $0x764] sm:$0xf0]  ;;  %v11217_v4 = vld [vmem:[#allocation11 + $0x7e0] sm:$0xf] }
 0x402   : > { %v4078_v24 = vpop.f32.mrf.mxu0 }
 0x403   : > { %v14002_v36 = vadd.f32 %v4223_v63, %v13890_v40  ;;  %v4128_v41 = vadd.f32 %v13977_v43, %v4078_v24  ;;  %v11219_v40 = vld [vmem:[#allocation11 + $0x7e8] sm:$0xf0]  ;;  %v14010_v5 = vpop.f32.mrf.mxu1  ;;  %v4865_v24 = vrot.slane %v4735_v51, 1 }
 0x404   : > { %v11222_v43 = vor.u32 %v12064_v15, %v11219_v40  ;;  %v4748_v40 = vld [vmem:[#allocation2 + $0x148] sm:$0xfe] }
 0x405   : > { %v14008_v25 = vadd.f32 %v4128_v41, %v13893_v11  ;;  %4546 = vmatmul.bf16.gmra.mxu0 %v4308_v34  ;;  %4644 = vmatmul.bf16.gmra.mxu2 %v4308_v34  ;;  %v4882_v11 = vsel %vm2534_vm1, %v4880_v38, %v4881_v62  ;;  %v11153_v34 = vld [vmem:[#allocation11 + $0x760] sm:$0xf]  ;;  %v4859_v38 = vrot.slane %v4731_v14, 1  ;;  %v4860_v62 = vrot.slane %v4733_v22, 1 }
 0x406   : > { %6037 = vmatpush.bf16.msrb.mxu3 %v11222_v43  ;;  %v14018_v52 = vpop.f32.mrf.mxu3  ;;  %v4990_v41 = vpack.c.bf16 %v4882_v11, %v4876_v20  ;;  %v11154_v61 = vor.u32 %v12049_v48, %v11153_v34  ;;  %v4867_v46 = vsel %vm2534_vm1, %v4865_v24, %v4866_v9  ;;  %v4886_v14 = vrot.slane %v4748_v40, 1  ;;  %v12046_v34 = vld [vmem:[#allocation11 + $0x754] sm:$0xf]  ;;  %v11147_v48 = vld [vmem:[#allocation11 + $0x758] sm:$0xf0] }
 0x407   : > { %v4861_v58 = vsel %vm2534_vm1, %v4859_v38, %v4860_v62 }
 0x408   : > { %v4176_v21 = vpop.f32.mrf.mxu2  ;;  %5890 = vmatpush.bf16.msrb.mxu0 %v11154_v61 }
 0x409   : > { %v4226_v17 = vadd.f32 %v13982_v33, %v4176_v21  ;;  %v4752_v21 = vld [vmem:[#allocation2 + $0x188] sm:$0xfe] }
 0x40a   : > { %v4080_v1 = vpop.f32.mrf.mxu0  ;;  %v4892_v24 = vrot.slane %v4752_v21, 1  ;;  %v4741_v21 = vld [vmem:[#allocation2 + $0xe0] sm:$0x1] }
 0x40b   : > { %v14016_v45 = vadd.f32 %v4226_v17, %v13896_v26  ;;  %v4130_v63 = vadd.f32 %v4129_v31, %v4080_v1  ;;  %v14023_v26 = vpop.f32.mrf.mxu1  ;;  %v11218_v31 = vor.u32 %v12065_v8, %v11217_v4  ;;  %5356 = vmatmul.bf16.gmra.mxu3 %v4990_v41  ;;  %v4754_v17 = vld [vmem:[#allocation2 + $0x1a8] sm:$0x1]  ;;  %v4987_v1 = vpack.c.bf16 %v4867_v46, %v4861_v58  ;;  %v4743_v8 = vld [vmem:[#allocation2 + $0x100] sm:$0xfe] }
 0x40c   : > { %5258 = vmatmul.bf16.gmra.mxu1 %v4990_v41  ;;  %v12062_v41 = vld [vmem:[#allocation11 + $0x7d4] sm:$0xf]  ;;  %v11150_v4 = vor.u32 %v12046_v34, %v11147_v48 }
 0x40d   : > { %v14021_v33 = vadd.f32 %v4130_v63, %v13899_v47  ;;  %5939 = vmatpush.bf16.msrb.mxu1 %v11218_v31  ;;  %v4750_v47 = vld [vmem:[#allocation2 + $0x168] sm:$0x1]  ;;  %v4745_v31 = vld [vmem:[#allocation2 + $0x120] sm:$0x1] }
 0x40e   : > { %v14032_v63 = vpop.f32.mrf.mxu3  ;;  %v4887_v22 = vrot.slane %v4750_v47, 1  ;;  %5989 = vmatpush.bf16.msrb.mxu2 %v11150_v4  ;;  %v4739_v47 = vld [vmem:[#allocation2 + $0xc0] sm:$0xfe]  ;;  %v4878_v58 = vrot.slane %v4745_v31, 1 }
 0x410   : > { %v4178_v15 = vpop.f32.mrf.mxu2 }
 0x411   : > { %v4228_v43 = vadd.f32 %v13993_v42, %v4178_v15  ;;  %v4893_v42 = vrot.slane %v4754_v17, 1  ;;  %v4888_v15 = vsel %vm2534_vm1, %v4886_v14, %v4887_v22  ;;  %v12047_v14 = vld [vmem:[#allocation11 + $0x754] sm:$0xf0]  ;;  %v11209_v22 = vld [vmem:[#allocation11 + $0x7d0] sm:$0xf] }
 0x412   : > { %v4512_v51 = vpop.f32.mrf.mxu0 }
 0x413   : > { %v14029_v20 = vadd.f32 %v4228_v43, %v13902_v13  ;;  %v4562_v11 = vadd.f32 %v13998_v55, %v4512_v51  ;;  %v11211_v13 = vld [vmem:[#allocation11 + $0x7d8] sm:$0xf0]  ;;  %v14037_v38 = vpop.f32.mrf.mxu1  ;;  %v4877_v51 = vrot.slane %v4743_v8, 1 }
 0x414   : > { %v11214_v55 = vor.u32 %v12062_v41, %v11211_v13  ;;  %v4756_v13 = vld [vmem:[#allocation2 + $0x1c8] sm:$0xfe] }
 0x415   : > { %v14035_v9 = vadd.f32 %v4562_v11, %v13905_v6  ;;  %5204 = vmatmul.bf16.vlgmr.msra.gmra.mxu0 %v4987_v1  ;;  %5302 = vmatmul.bf16.vlgmr.msra.gmra.mxu2 %v4987_v1  ;;  %v4894_v6 = vsel %vm2534_vm1, %v4892_v24, %v4893_v42  ;;  %v11145_v1 = vld [vmem:[#allocation11 + $0x750] sm:$0xf]  ;;  %v4871_v24 = vrot.slane %v4739_v47, 1  ;;  %v4872_v42 = vrot.slane %v4741_v21, 1 }
 0x416   : > { %6038 = vmatpush.bf16.msrb.mxu3 %v11214_v55  ;;  %v14046_v17 = vpop.f32.mrf.mxu3  ;;  %v11146_v34 = vor.u32 %v12047_v14, %v11145_v1  ;;  %v4879_v4 = vsel %vm2534_vm1, %v4877_v51, %v4878_v58  ;;  %v4898_v47 = vrot.slane %v4756_v13, 1  ;;  %v12044_v1 = vld [vmem:[#allocation11 + $0x744] sm:$0xf]  ;;  %v11139_v14 = vld [vmem:[#allocation11 + $0x748] sm:$0xf0] }
 0x417   : > { %v4873_v31 = vsel %vm2534_vm1, %v4871_v24, %v4872_v42 }
 0x418   : > { %v4610_v62 = vpop.f32.mrf.mxu2  ;;  %5891 = vmatpush.bf16.msrb.mxu0 %v11146_v34 }
 0x419   : > { %v4660_v61 = vadd.f32 %v14005_v23, %v4610_v62  ;;  %v4992_v23 = vpack.c.bf16 %v4894_v6, %v4888_v15  ;;  %v4760_v62 = vld [vmem:[#allocation2 + $0x208] sm:$0xfe] }
 0x41a   : > { %v4514_v46 = vpop.f32.mrf.mxu0  ;;  %v4904_v51 = vrot.slane %v4760_v62, 1  ;;  %v4749_v62 = vld [vmem:[#allocation2 + $0x160] sm:$0x1] }
 0x41b   : > { %v14043_v40 = vadd.f32 %v4660_v61, %v13908_v57  ;;  %v4564_v43 = vadd.f32 %v14010_v5, %v4514_v46  ;;  %v12063_v57 = vld [vmem:[#allocation11 + $0x7d4] sm:$0xf0]  ;;  %v14051_v48 = vpop.f32.mrf.mxu1  ;;  %5361 = vmatmul.bf16.gmra.mxu3 %v4992_v23  ;;  %v4762_v61 = vld [vmem:[#allocation2 + $0x228] sm:$0x1]  ;;  %v4989_v46 = vpack.c.bf16 %v4879_v4, %v4873_v31 }
 0x41c   : > { %v11210_v5 = vor.u32 %v12063_v57, %v11209_v22  ;;  %5263 = vmatmul.bf16.gmra.mxu1 %v4992_v23  ;;  %v12060_v23 = vld [vmem:[#allocation11 + $0x7c4] sm:$0xf]  ;;  %v11142_v22 = vor.u32 %v12044_v1, %v11139_v14  ;;  %v4751_v57 = vld [vmem:[#allocation2 + $0x180] sm:$0xfe] }
 0x41d   : > { %v14049_v11 = vadd.f32 %v4564_v43, %v13911_v56  ;;  %v4758_v56 = vld [vmem:[#allocation2 + $0x1e8] sm:$0x1] }
 0x41e   : > { %5940 = vmatpush.bf16.msrb.mxu1 %v11210_v5  ;;  %v14060_v43 = vpop.f32.mrf.mxu3  ;;  %v4899_v21 = vrot.slane %v4758_v56, 1  ;;  %5990 = vmatpush.bf16.msrb.mxu2 %v11142_v22  ;;  %v4753_v5 = vld [vmem:[#allocation2 + $0x1a0] sm:$0x1]  ;;  %v4747_v56 = vld [vmem:[#allocation2 + $0x140] sm:$0xfe] }
 0x41f   : > { %v4890_v31 = vrot.slane %v4753_v5, 1 }
 0x420   : > { %v4612_v41 = vpop.f32.mrf.mxu2 }
 0x421   : > { %v4662_v55 = vadd.f32 %v14018_v52, %v4612_v41  ;;  %v4905_v52 = vrot.slane %v4762_v61, 1  ;;  %v4900_v41 = vsel %vm2534_vm1, %v4898_v47, %v4899_v21  ;;  %v12045_v47 = vld [vmem:[#allocation11 + $0x744] sm:$0xf0]  ;;  %v11201_v21 = vld [vmem:[#allocation11 + $0x7c0] sm:$0xf] }
 0x422   : > { %v4517_v8 = vpop.f32.mrf.mxu0 }
 0x423   : > { %v14057_v15 = vadd.f32 %v4662_v55, %v13914_v32  ;;  %v4567_v6 = vadd.f32 %v14023_v26, %v4517_v8  ;;  %v11203_v32 = vld [vmem:[#allocation11 + $0x7c8] sm:$0xf0]  ;;  %v14065_v24 = vpop.f32.mrf.mxu1  ;;  %v4889_v8 = vrot.slane %v4751_v57, 1 }
 0x424   : > { %v11206_v26 = vor.u32 %v12060_v23, %v11203_v32  ;;  %v4764_v32 = vld [vmem:[#allocation2 + $0x248] sm:$0xfe] }
 0x425   : > { %v14063_v58 = vadd.f32 %v4567_v6, %v13917_v7  ;;  %5209 = vmatmul.bf16.gmra.mxu0 %v4989_v46  ;;  %5307 = vmatmul.bf16.gmra.mxu2 %v4989_v46  ;;  %v4906_v7 = vsel %vm2534_vm1, %v4904_v51, %v4905_v52  ;;  %v11137_v46 = vld [vmem:[#allocation11 + $0x740] sm:$0xf]  ;;  %v4883_v51 = vrot.slane %v4747_v56, 1  ;;  %v4884_v52 = vrot.slane %v4749_v62, 1 }
 0x426   : > { %6039 = vmatpush.bf16.msrb.mxu3 %v11206_v26  ;;  %v14074_v61 = vpop.f32.mrf.mxu3  ;;  %v11138_v1 = vor.u32 %v12045_v47, %v11137_v46  ;;  %v4891_v22 = vsel %vm2534_vm1, %v4889_v8, %v4890_v31  ;;  %v4910_v56 = vrot.slane %v4764_v32, 1  ;;  %v12042_v46 = vld [vmem:[#allocation11 + $0x734] sm:$0xf]  ;;  %v11131_v47 = vld [vmem:[#allocation11 + $0x738] sm:$0xf0] }
 0x427   : > { %v4885_v5 = vsel %vm2534_vm1, %v4883_v51, %v4884_v52 }
 0x428   : > { %v4615_v42 = vpop.f32.mrf.mxu2  ;;  %5892 = vmatpush.bf16.msrb.mxu0 %v11138_v1 }
 0x429   : > { %v4665_v34 = vadd.f32 %v14032_v63, %v4615_v42  ;;  %v4994_v63 = vpack.c.bf16 %v4906_v7, %v4900_v41  ;;  %v4768_v42 = vld [vmem:[#allocation2 + $0x288] sm:$0xfe] }
 0x42a   : > { %v4519_v4 = vpop.f32.mrf.mxu0  ;;  %v4916_v8 = vrot.slane %v4768_v42, 1  ;;  %v4757_v42 = vld [vmem:[#allocation2 + $0x1e0] sm:$0x1] }
 0x42b   : > { %v14071_v13 = vadd.f32 %v4665_v34, %v13920_v19  ;;  %v4569_v55 = vadd.f32 %v14037_v38, %v4519_v4  ;;  %v12061_v19 = vld [vmem:[#allocation11 + $0x7c4] sm:$0xf0]  ;;  %v14079_v14 = vpop.f32.mrf.mxu1  ;;  %5366 = vmatmul.bf16.gmra.mxu3 %v4994_v63  ;;  %v4770_v34 = vld [vmem:[#allocation2 + $0x2a8] sm:$0x1]  ;;  %v4991_v4 = vpack.c.bf16 %v4891_v22, %v4885_v5 }
 0x42c   : > { %v11202_v38 = vor.u32 %v12061_v19, %v11201_v21  ;;  %5268 = vmatmul.bf16.gmra.mxu1 %v4994_v63  ;;  %v12058_v63 = vld [vmem:[#allocation11 + $0x7b4] sm:$0xf]  ;;  %v11134_v21 = vor.u32 %v12042_v46, %v11131_v47  ;;  %v4759_v19 = vld [vmem:[#allocation2 + $0x200] sm:$0xfe] }
 0x42d   : > { %v14077_v6 = vadd.f32 %v4569_v55, %v13923_v50  ;;  %v4766_v50 = vld [vmem:[#allocation2 + $0x268] sm:$0x1] }
 0x42e   : > { %5941 = vmatpush.bf16.msrb.mxu1 %v11202_v38  ;;  %v14088_v55 = vpop.f32.mrf.mxu3  ;;  %v4911_v62 = vrot.slane %v4766_v50, 1  ;;  %5991 = vmatpush.bf16.msrb.mxu2 %v11134_v21  ;;  %v4761_v38 = vld [vmem:[#allocation2 + $0x220] sm:$0x1]  ;;  %v4755_v50 = vld [vmem:[#allocation2 + $0x1c0] sm:$0xfe] }
 0x42f   : > { %v4902_v5 = vrot.slane %v4761_v38, 1 }
 0x430   : > { %v4617_v23 = vpop.f32.mrf.mxu2 }
 0x431   : > { %v4667_v26 = vadd.f32 %v14046_v17, %v4617_v23  ;;  %v4917_v17 = vrot.slane %v4770_v34, 1  ;;  %v4912_v23 = vsel %vm2534_vm1, %v4910_v56, %v4911_v62  ;;  %v12043_v56 = vld [vmem:[#allocation11 + $0x734] sm:$0xf0]  ;;  %v11193_v62 = vld [vmem:[#allocation11 + $0x7b0] sm:$0xf] }
 0x432   : > { %v4522_v57 = vpop.f32.mrf.mxu0 }
 0x433   : > { %v14085_v41 = vadd.f32 %v4667_v26, %v13926_v35  ;;  %v4572_v7 = vadd.f32 %v14051_v48, %v4522_v57  ;;  %v11195_v35 = vld [vmem:[#allocation11 + $0x7b8] sm:$0xf0]  ;;  %v14093_v51 = vpop.f32.mrf.mxu1  ;;  %v4901_v57 = vrot.slane %v4759_v19, 1 }
 0x434   : > { %v11198_v48 = vor.u32 %v12058_v63, %v11195_v35  ;;  %v4772_v35 = vld [vmem:[#allocation2 + $0x2c8] sm:$0xfe] }
 0x435   : > { %v14091_v31 = vadd.f32 %v4572_v7, %v13929_v59  ;;  %5214 = vmatmul.bf16.gmra.mxu0 %v4991_v4  ;;  %5312 = vmatmul.bf16.gmra.mxu2 %v4991_v4  ;;  %v4918_v59 = vsel %vm2534_vm1, %v4916_v8, %v4917_v17  ;;  %v11129_v4 = vld [vmem:[#allocation11 + $0x730] sm:$0xf]  ;;  %v4895_v8 = vrot.slane %v4755_v50, 1  ;;  %v4896_v17 = vrot.slane %v4757_v42, 1 }
 0x436   : > { %6040 = vmatpush.bf16.msrb.mxu3 %v11198_v48  ;;  %v14102_v34 = vpop.f32.mrf.mxu3  ;;  %v11130_v46 = vor.u32 %v12043_v56, %v11129_v4  ;;  %v4903_v21 = vsel %vm2534_vm1, %v4901_v57, %v4902_v5  ;;  %v4922_v50 = vrot.slane %v4772_v35, 1  ;;  %v12040_v4 = vld [vmem:[#allocation11 + $0x724] sm:$0xf]  ;;  %v11123_v56 = vld [vmem:[#allocation11 + $0x728] sm:$0xf0] }
 0x437   : > { %v4897_v38 = vsel %vm2534_vm1, %v4895_v8, %v4896_v17 }
 0x438   : > { %v4620_v52 = vpop.f32.mrf.mxu2  ;;  %5893 = vmatpush.bf16.msrb.mxu0 %v11130_v46 }
 0x439   : > { %v4670_v1 = vadd.f32 %v14060_v43, %v4620_v52  ;;  %v4996_v43 = vpack.c.bf16 %v4918_v59, %v4912_v23  ;;  %v4776_v52 = vld [vmem:[#allocation2 + $0x308] sm:$0xfe] }
 0x43a   : > { %v4524_v22 = vpop.f32.mrf.mxu0  ;;  %v4928_v57 = vrot.slane %v4776_v52, 1  ;;  %v4765_v52 = vld [vmem:[#allocation2 + $0x260] sm:$0x1] }
 0x43b   : > { %v14099_v32 = vadd.f32 %v4670_v1, %v13932_v12  ;;  %v4574_v26 = vadd.f32 %v14065_v24, %v4524_v22  ;;  %v12059_v12 = vld [vmem:[#allocation11 + $0x7b4] sm:$0xf0]  ;;  %v14107_v47 = vpop.f32.mrf.mxu1  ;;  %5371 = vmatmul.bf16.gmra.mxu3 %v4996_v43  ;;  %v4778_v1 = vld [vmem:[#allocation2 + $0x328] sm:$0x1]  ;;  %v4993_v22 = vpack.c.bf16 %v4903_v21, %v4897_v38 }
 0x43c   : > { %v11194_v24 = vor.u32 %v12059_v12, %v11193_v62  ;;  %5273 = vmatmul.bf16.gmra.mxu1 %v4996_v43  ;;  %v12056_v43 = vld [vmem:[#allocation11 + $0x7a4] sm:$0xf]  ;;  %v11126_v62 = vor.u32 %v12040_v4, %v11123_v56  ;;  %v4767_v12 = vld [vmem:[#allocation2 + $0x280] sm:$0xfe] }
 0x43d   : > { %v14105_v7 = vadd.f32 %v4574_v26, %v13935_v2  ;;  %v4774_v2 = vld [vmem:[#allocation2 + $0x2e8] sm:$0x1] }
 0x43e   : > { %5942 = vmatpush.bf16.msrb.mxu1 %v11194_v24  ;;  %v14116_v26 = vpop.f32.mrf.mxu3  ;;  %v4923_v42 = vrot.slane %v4774_v2, 1  ;;  %5992 = vmatpush.bf16.msrb.mxu2 %v11126_v62  ;;  %v4769_v24 = vld [vmem:[#allocation2 + $0x2a0] sm:$0x1]  ;;  %v4763_v2 = vld [vmem:[#allocation2 + $0x240] sm:$0xfe] }
 0x43f   : > { %v4914_v38 = vrot.slane %v4769_v24, 1 }
 0x440   : > { %v4622_v63 = vpop.f32.mrf.mxu2 }
 0x441   : > { %v4672_v48 = vadd.f32 %v14074_v61, %v4622_v63  ;;  %v4929_v61 = vrot.slane %v4778_v1, 1  ;;  %v4924_v63 = vsel %vm2534_vm1, %v4922_v50, %v4923_v42  ;;  %v12041_v50 = vld [vmem:[#allocation11 + $0x724] sm:$0xf0]  ;;  %v11185_v42 = vld [vmem:[#allocation11 + $0x7a0] sm:$0xf] }
 0x442   : > { %v4527_v19 = vpop.f32.mrf.mxu0 }
 0x443   : > { %v14113_v23 = vadd.f32 %v4672_v48, %v13938_v49  ;;  %v4577_v59 = vadd.f32 %v14079_v14, %v4527_v19  ;;  %v11187_v49 = vld [vmem:[#allocation11 + $0x7a8] sm:$0xf0]  ;;  %v14121_v8 = vpop.f32.mrf.mxu1  ;;  %v4913_v19 = vrot.slane %v4767_v12, 1 }
 0x444   : > { %v11190_v14 = vor.u32 %v12056_v43, %v11187_v49  ;;  %v4780_v49 = vld [vmem:[#allocation2 + $0x348] sm:$0xfe] }
 0x445   : > { %v14119_v5 = vadd.f32 %v4577_v59, %v13941_v54  ;;  %5219 = vmatmul.bf16.gmra.mxu0 %v4993_v22  ;;  %5317 = vmatmul.bf16.gmra.mxu2 %v4993_v22  ;;  %v4930_v54 = vsel %vm2534_vm1, %v4928_v57, %v4929_v61  ;;  %v11121_v22 = vld [vmem:[#allocation11 + $0x720] sm:$0xf]  ;;  %v4907_v57 = vrot.slane %v4763_v2, 1  ;;  %v4908_v61 = vrot.slane %v4765_v52, 1 }
 0x446   : > { %6041 = vmatpush.bf16.msrb.mxu3 %v11190_v14  ;;  %v14130_v1 = vpop.f32.mrf.mxu3  ;;  %v11122_v4 = vor.u32 %v12041_v50, %v11121_v22  ;;  %v4915_v62 = vsel %vm2534_vm1, %v4913_v19, %v4914_v38  ;;  %v4934_v2 = vrot.slane %v4780_v49, 1  ;;  %v12038_v22 = vld [vmem:[#allocation11 + $0x714] sm:$0xf]  ;;  %v11115_v50 = vld [vmem:[#allocation11 + $0x718] sm:$0xf0] }
 0x447   : > { %v4909_v24 = vsel %vm2534_vm1, %v4907_v57, %v4908_v61 }
 0x448   : > { %v4625_v17 = vpop.f32.mrf.mxu2  ;;  %5894 = vmatpush.bf16.msrb.mxu0 %v11122_v4 }
 0x449   : > { %v4675_v46 = vadd.f32 %v14088_v55, %v4625_v17  ;;  %v4998_v55 = vpack.c.bf16 %v4930_v54, %v4924_v63  ;;  %v4784_v17 = vld [vmem:[#allocation2 + $0x388] sm:$0xfe] }
 0x44a   : > { %v4529_v21 = vpop.f32.mrf.mxu0  ;;  %v4940_v19 = vrot.slane %v4784_v17, 1  ;;  %v4773_v17 = vld [vmem:[#allocation2 + $0x2e0] sm:$0x1] }
 0x44b   : > { %v14127_v35 = vadd.f32 %v4675_v46, %v13944_v3  ;;  %v4579_v48 = vadd.f32 %v14093_v51, %v4529_v21  ;;  %v12057_v3 = vld [vmem:[#allocation11 + $0x7a4] sm:$0xf0]  ;;  %v14135_v56 = vpop.f32.mrf.mxu1  ;;  %5376 = vmatmul.bf16.gmra.mxu3 %v4998_v55  ;;  %v4786_v46 = vld [vmem:[#allocation2 + $0x3a8] sm:$0x1]  ;;  %v4995_v21 = vpack.c.bf16 %v4915_v62, %v4909_v24 }
 0x44c   : > { %v11186_v51 = vor.u32 %v12057_v3, %v11185_v42  ;;  %5278 = vmatmul.bf16.gmra.mxu1 %v4998_v55  ;;  %v12054_v55 = vld [vmem:[#allocation11 + $0x794] sm:$0xf]  ;;  %v11118_v42 = vor.u32 %v12038_v22, %v11115_v50  ;;  %v4775_v3 = vld [vmem:[#allocation2 + $0x300] sm:$0xfe] }
 0x44d   : > { %v14133_v59 = vadd.f32 %v4579_v48, %v13947_v44  ;;  %v4782_v44 = vld [vmem:[#allocation2 + $0x368] sm:$0x1] }
 0x44e   : > { %5943 = vmatpush.bf16.msrb.mxu1 %v11186_v51  ;;  %v14144_v48 = vpop.f32.mrf.mxu3  ;;  %v4935_v52 = vrot.slane %v4782_v44, 1  ;;  %5993 = vmatpush.bf16.msrb.mxu2 %v11118_v42  ;;  %v4777_v51 = vld [vmem:[#allocation2 + $0x320] sm:$0x1]  ;;  %v4771_v44 = vld [vmem:[#allocation2 + $0x2c0] sm:$0xfe] }
 0x44f   : > { %v4926_v24 = vrot.slane %v4777_v51, 1 }
 0x450   : > { %v4627_v43 = vpop.f32.mrf.mxu2 }
 0x451   : > { %v4677_v14 = vadd.f32 %v14102_v34, %v4627_v43  ;;  %v4941_v34 = vrot.slane %v4786_v46, 1  ;;  %v4936_v43 = vsel %vm2534_vm1, %v4934_v2, %v4935_v52  ;;  %v12039_v2 = vld [vmem:[#allocation11 + $0x714] sm:$0xf0]  ;;  %v11177_v52 = vld [vmem:[#allocation11 + $0x790] sm:$0xf] }
 0x452   : > { %v4532_v12 = vpop.f32.mrf.mxu0 }
 0x453   : > { %v14141_v63 = vadd.f32 %v4677_v14, %v13950_v16  ;;  %v4582_v54 = vadd.f32 %v14107_v47, %v4532_v12  ;;  %v11179_v16 = vld [vmem:[#allocation11 + $0x798] sm:$0xf0]  ;;  %v14149_v57 = vpop.f32.mrf.mxu1  ;;  %v4925_v12 = vrot.slane %v4775_v3, 1 }
 0x454   : > { %v11182_v47 = vor.u32 %v12054_v55, %v11179_v16  ;;  %v4788_v16 = vld [vmem:[#allocation2 + $0x3c8] sm:$0xfe] }
 0x455   : > { %v14147_v38 = vadd.f32 %v4582_v54, %v13953_v10  ;;  %5224 = vmatmul.bf16.gmra.mxu0 %v4995_v21  ;;  %5322 = vmatmul.bf16.gmra.mxu2 %v4995_v21  ;;  %v4942_v10 = vsel %vm2534_vm1, %v4940_v19, %v4941_v34  ;;  %v11113_v21 = vld [vmem:[#allocation11 + $0x710] sm:$0xf]  ;;  %v4919_v19 = vrot.slane %v4771_v44, 1  ;;  %v4920_v34 = vrot.slane %v4773_v17, 1 }
 0x456   : > { %6042 = vmatpush.bf16.msrb.mxu3 %v11182_v47  ;;  %v14158_v46 = vpop.f32.mrf.mxu3  ;;  %v11114_v22 = vor.u32 %v12039_v2, %v11113_v21  ;;  %v4927_v42 = vsel %vm2534_vm1, %v4925_v12, %v4926_v24  ;;  %v4946_v44 = vrot.slane %v4788_v16, 1  ;;  %v12036_v21 = vld [vmem:[#allocation11 + $0x704] sm:$0xf]  ;;  %v11107_v2 = vld [vmem:[#allocation11 + $0x708] sm:$0xf0] }
 0x457   : > { %v4921_v51 = vsel %vm2534_vm1, %v4919_v19, %v4920_v34 }
 0x458   : > { %v4630_v61 = vpop.f32.mrf.mxu2  ;;  %5895 = vmatpush.bf16.msrb.mxu0 %v11114_v22 }
 0x459   : > { %v4680_v4 = vadd.f32 %v14116_v26, %v4630_v61  ;;  %v5000_v26 = vpack.c.bf16 %v4942_v10, %v4936_v43  ;;  %v4792_v61 = vld [vmem:[#allocation2 + $0x408] sm:$0xfe] }
 0x45a   : > { %v4534_v62 = vpop.f32.mrf.mxu0  ;;  %v4952_v12 = vrot.slane %v4792_v61, 1  ;;  %v4781_v61 = vld [vmem:[#allocation2 + $0x360] sm:$0x1] }
 0x45b   : > { %v14155_v49 = vadd.f32 %v4680_v4, %v13956_v30  ;;  %v4584_v14 = vadd.f32 %v14121_v8, %v4534_v62  ;;  %v12055_v30 = vld [vmem:[#allocation11 + $0x794] sm:$0xf0]  ;;  %v14163_v50 = vpop.f32.mrf.mxu1  ;;  %5381 = vmatmul.bf16.gmra.mxu3 %v5000_v26  ;;  %v4794_v4 = vld [vmem:[#allocation2 + $0x428] sm:$0x1]  ;;  %v4997_v62 = vpack.c.bf16 %v4927_v42, %v4921_v51 }
 0x45c   : > { %v11178_v8 = vor.u32 %v12055_v30, %v11177_v52  ;;  %5283 = vmatmul.bf16.gmra.mxu1 %v5000_v26  ;;  %v12052_v26 = vld [vmem:[#allocation11 + $0x784] sm:$0xf]  ;;  %v11110_v52 = vor.u32 %v12036_v21, %v11107_v2  ;;  %v4783_v30 = vld [vmem:[#allocation2 + $0x380] sm:$0xfe] }
 0x45d   : > { %v14161_v54 = vadd.f32 %v4584_v14, %v13959_v39  ;;  %v4790_v39 = vld [vmem:[#allocation2 + $0x3e8] sm:$0x1] }
 0x45e   : > { %5944 = vmatpush.bf16.msrb.mxu1 %v11178_v8  ;;  %v14172_v14 = vpop.f32.mrf.mxu3  ;;  %v4947_v17 = vrot.slane %v4790_v39, 1  ;;  %5994 = vmatpush.bf16.msrb.mxu2 %v11110_v52  ;;  %v4785_v8 = vld [vmem:[#allocation2 + $0x3a0] sm:$0x1]  ;;  %v4779_v39 = vld [vmem:[#allocation2 + $0x340] sm:$0xfe] }
 0x45f   : > { %v4938_v51 = vrot.slane %v4785_v8, 1 }
 0x460   : > { %v4632_v55 = vpop.f32.mrf.mxu2 }
 0x461   : > { %v4682_v47 = vadd.f32 %v14130_v1, %v4632_v55  ;;  %v4953_v1 = vrot.slane %v4794_v4, 1  ;;  %v4948_v55 = vsel %vm2534_vm1, %v4946_v44, %v4947_v17  ;;  %v12037_v44 = vld [vmem:[#allocation11 + $0x704] sm:$0xf0]  ;;  %v11169_v17 = vld [vmem:[#allocation11 + $0x780] sm:$0xf] }
 0x462   : > { %v4537_v3 = vpop.f32.mrf.mxu0 }
 0x463   : > { %v14169_v43 = vadd.f32 %v4682_v47, %v13962_v18  ;;  %v4587_v10 = vadd.f32 %v14135_v56, %v4537_v3  ;;  %v11171_v18 = vld [vmem:[#allocation11 + $0x788] sm:$0xf0]  ;;  %v14177_v19 = vpop.f32.mrf.mxu1  ;;  %v4937_v3 = vrot.slane %v4783_v30, 1 }
 0x464   : > { %v11174_v56 = vor.u32 %v12052_v26, %v11171_v18  ;;  %v5425_v18 = vld [vmem:[#allocation2 + $0x58] sm:$0xfe] }
 0x465   : > { %v14175_v24 = vadd.f32 %v4587_v10, %v13967_v29  ;;  %5229 = vmatmul.bf16.gmra.mxu0 %v4997_v62  ;;  %5327 = vmatmul.bf16.gmra.mxu2 %v4997_v62  ;;  %v4954_v29 = vsel %vm2534_vm1, %v4952_v12, %v4953_v1  ;;  %v11105_v62 = vld [vmem:[#allocation11 + $0x700] sm:$0xf]  ;;  %v4931_v12 = vrot.slane %v4779_v39, 1  ;;  %v4932_v1 = vrot.slane %v4781_v61, 1 }
 0x466   : > { %6043 = vmatpush.bf16.msrb.mxu3 %v11174_v56  ;;  %v14186_v4 = vpop.f32.mrf.mxu3  ;;  %v11106_v21 = vor.u32 %v12037_v44, %v11105_v62  ;;  %v4939_v52 = vsel %vm2534_vm1, %v4937_v3, %v4938_v51  ;;  %v5555_v39 = vrot.slane %v5425_v18, 1  ;;  %v12082_v62 = vld [vmem:[#allocation11 + $0x874] sm:$0xf]  ;;  %v11291_v44 = vld [vmem:[#allocation11 + $0x878] sm:$0xf0] }
 0x467   : > { %v4933_v8 = vsel %vm2534_vm1, %v4931_v12, %v4932_v1 }
 0x468   : > { %v4635_v34 = vpop.f32.mrf.mxu2  ;;  %5896 = vmatpush.bf16.msrb.mxu0 %v11106_v21 }
 0x469   : > { %v4685_v22 = vadd.f32 %v14144_v48, %v4635_v34  ;;  %v5002_v48 = vpack.c.bf16 %v4954_v29, %v4948_v55  ;;  %v5429_v34 = vld [vmem:[#allocation2 + $0x98] sm:$0xfe] }
 0x46a   : > { %v4539_v42 = vpop.f32.mrf.mxu0  ;;  %v5561_v3 = vrot.slane %v5429_v34, 1  ;;  %v4789_v34 = vld [vmem:[#allocation2 + $0x3e0] sm:$0x1] }
 0x46b   : > { %v14183_v16 = vadd.f32 %v4685_v22, %v13970_v0  ;;  %v4589_v47 = vadd.f32 %v14149_v57, %v4539_v42  ;;  %v12053_v0 = vld [vmem:[#allocation11 + $0x784] sm:$0xf0]  ;;  %v14191_v2 = vpop.f32.mrf.mxu1  ;;  %5386 = vmatmul.bf16.gmra.mxu3 %v5002_v48  ;;  %v5431_v22 = vld [vmem:[#allocation2 + $0xb8] sm:$0x1]  ;;  %v4999_v42 = vpack.c.bf16 %v4939_v52, %v4933_v8 }
 0x46c   : > { %v11170_v57 = vor.u32 %v12053_v0, %v11169_v17  ;;  %5288 = vmatmul.bf16.gmra.mxu1 %v5002_v48  ;;  %v12098_v48 = vld [vmem:[#allocation11 + $0x8f4] sm:$0xf]  ;;  %v11294_v17 = vor.u32 %v12082_v62, %v11291_v44  ;;  %v4791_v0 = vld [vmem:[#allocation2 + $0x400] sm:$0xfe] }
 0x46d   : > { %v14189_v10 = vadd.f32 %v4589_v47, %v13975_v27  ;;  %v5427_v27 = vld [vmem:[#allocation2 + $0x78] sm:$0x1] }
 0x46e   : > { %5945 = vmatpush.bf16.msrb.mxu1 %v11170_v57  ;;  %v14200_v47 = vpop.f32.mrf.mxu3  ;;  %v5556_v61 = vrot.slane %v5427_v27, 1  ;;  %6456 = vmatpush.bf16.msra.mxu2 %v11294_v17  ;;  %v4793_v57 = vld [vmem:[#allocation2 + $0x420] sm:$0x1]  ;;  %v4787_v27 = vld [vmem:[#allocation2 + $0x3c0] sm:$0xfe] }
 0x46f   : > { %v4950_v8 = vrot.slane %v4793_v57, 1 }
 0x470   : > { %v4637_v26 = vpop.f32.mrf.mxu2 }
 0x471   : > { %v4687_v56 = vadd.f32 %v14158_v46, %v4637_v26  ;;  %v5562_v46 = vrot.slane %v5431_v22, 1  ;;  %v5557_v26 = vsel %vm2534_vm1, %v5555_v39, %v5556_v61  ;;  %v12083_v39 = vld [vmem:[#allocation11 + $0x874] sm:$0xf0]  ;;  %v11353_v61 = vld [vmem:[#allocation11 + $0x8f0] sm:$0xf] }
 0x472   : > { %v4542_v30 = vpop.f32.mrf.mxu0 }
 0x473   : > { %v14197_v55 = vadd.f32 %v4687_v56, %v13980_v28  ;;  %v4592_v29 = vadd.f32 %v14163_v50, %v4542_v30  ;;  %v11355_v28 = vld [vmem:[#allocation11 + $0x8f8] sm:$0xf0]  ;;  %v14205_v12 = vpop.f32.mrf.mxu1  ;;  %v4949_v30 = vrot.slane %v4791_v0, 1 }
 0x474   : > { %v11358_v50 = vor.u32 %v12098_v48, %v11355_v28  ;;  %v5433_v28 = vld [vmem:[#allocation2 + $0xd8] sm:$0xfe] }
 0x475   : > { %v14203_v51 = vadd.f32 %v4592_v29, %v13985_v53  ;;  %5234 = vmatmul.bf16.gmra.mxu0 %v4999_v42  ;;  %5332 = vmatmul.bf16.gmra.mxu2 %v4999_v42  ;;  %v5563_v53 = vsel %vm2534_vm1, %v5561_v3, %v5562_v46  ;;  %v11289_v42 = vld [vmem:[#allocation11 + $0x870] sm:$0xf]  ;;  %v4943_v3 = vrot.slane %v4787_v27, 1  ;;  %v4944_v46 = vrot.slane %v4789_v34, 1 }
 0x476   : > { %6505 = vmatpush.bf16.msra.mxu3 %v11358_v50  ;;  %v14214_v22 = vpop.f32.mrf.mxu3  ;;  %v11290_v62 = vor.u32 %v12083_v39, %v11289_v42  ;;  %v4951_v17 = vsel %vm2534_vm1, %v4949_v30, %v4950_v8  ;;  %v5567_v27 = vrot.slane %v5433_v28, 1  ;;  %v12080_v42 = vld [vmem:[#allocation11 + $0x864] sm:$0xf]  ;;  %v11283_v39 = vld [vmem:[#allocation11 + $0x868] sm:$0xf0] }
 0x477   : > { %v4945_v57 = vsel %vm2534_vm1, %v4943_v3, %v4944_v46 }
 0x478   : > { %v4640_v1 = vpop.f32.mrf.mxu2  ;;  %6358 = vmatpush.bf16.msra.mxu0 %v11290_v62 }
 0x479   : > { %v4690_v21 = vadd.f32 %v14172_v14, %v4640_v1  ;;  %v5681_v14 = vpack.c.bf16 %v5563_v53, %v5557_v26  ;;  %v5437_v1 = vld [vmem:[#allocation2 + $0x118] sm:$0xfe] }
 0x47a   : > { %v4544_v52 = vpop.f32.mrf.mxu0  ;;  %v5573_v30 = vrot.slane %v5437_v1, 1  ;;  %v5426_v1 = vld [vmem:[#allocation2 + $0x70] sm:$0x1] }
 0x47b   : > { %v14211_v18 = vadd.f32 %v4690_v21, %v13991_v37  ;;  %v4594_v56 = vadd.f32 %v14177_v19, %v4544_v52  ;;  %v12099_v37 = vld [vmem:[#allocation11 + $0x8f4] sm:$0xf0]  ;;  %v14219_v44 = vpop.f32.mrf.mxu1  ;;  %6044 = vmatmul.bf16.vlgmr.msrb.gmra.mxu3 %v5681_v14  ;;  %v5439_v21 = vld [vmem:[#allocation2 + $0x138] sm:$0x1]  ;;  %v5001_v52 = vpack.c.bf16 %v4951_v17, %v4945_v57 }
 0x47c   : > { %v11354_v19 = vor.u32 %v12099_v37, %v11353_v61  ;;  %5946 = vmatmul.bf16.vlgmr.msrb.gmra.mxu1 %v5681_v14  ;;  %v12096_v14 = vld [vmem:[#allocation11 + $0x8e4] sm:$0xf]  ;;  %v11286_v61 = vor.u32 %v12080_v42, %v11283_v39  ;;  %v5428_v37 = vld [vmem:[#allocation2 + $0x90] sm:$0xfe] }
 0x47d   : > { %v14217_v29 = vadd.f32 %v4594_v56, %v13996_v60  ;;  %v5435_v60 = vld [vmem:[#allocation2 + $0xf8] sm:$0x1] }
 0x47e   : > { %6407 = vmatpush.bf16.msra.mxu1 %v11354_v19  ;;  %v14228_v56 = vpop.f32.mrf.mxu3  ;;  %v5568_v34 = vrot.slane %v5435_v60, 1  ;;  %6457 = vmatpush.bf16.msra.mxu2 %v11286_v61  ;;  %v5430_v19 = vld [vmem:[#allocation2 + $0xb0] sm:$0x1]  ;;  %v5424_v60 = vld [vmem:[#allocation2 + $0x50] sm:$0xfe] }
 0x47f   : > { %v5559_v57 = vrot.slane %v5430_v19, 1 }
 0x480   : > { %v4642_v48 = vpop.f32.mrf.mxu2 }
 0x481   : > { %v4692_v50 = vadd.f32 %v14186_v4, %v4642_v48  ;;  %v5574_v4 = vrot.slane %v5439_v21, 1  ;;  %v5569_v48 = vsel %vm2534_vm1, %v5567_v27, %v5568_v34  ;;  %v12081_v27 = vld [vmem:[#allocation11 + $0x864] sm:$0xf0]  ;;  %v11345_v34 = vld [vmem:[#allocation11 + $0x8e0] sm:$0xf] }
 0x482   : > { %v4547_v0 = vpop.f32.mrf.mxu0 }
 0x483   : > { %v14225_v26 = vadd.f32 %v4692_v50, %v14002_v36  ;;  %v4597_v53 = vadd.f32 %v14191_v2, %v4547_v0  ;;  %v11347_v36 = vld [vmem:[#allocation11 + $0x8e8] sm:$0xf0]  ;;  %v14233_v3 = vpop.f32.mrf.mxu1  ;;  %v5558_v0 = vrot.slane %v5428_v37, 1 }
 0x484   : > { %v11350_v2 = vor.u32 %v12096_v14, %v11347_v36  ;;  %v5441_v36 = vld [vmem:[#allocation2 + $0x158] sm:$0xfe] }
 0x485   : > { %v14231_v8 = vadd.f32 %v4597_v53, %v14008_v25  ;;  %5239 = vmatmul.bf16.gmra.mxu0 %v5001_v52  ;;  %5337 = vmatmul.bf16.gmra.mxu2 %v5001_v52  ;;  %v5575_v25 = vsel %vm2534_vm1, %v5573_v30, %v5574_v4  ;;  %v11281_v52 = vld [vmem:[#allocation11 + $0x860] sm:$0xf]  ;;  %v5552_v30 = vrot.slane %v5424_v60, 1  ;;  %v5553_v4 = vrot.slane %v5426_v1, 1 }
 0x486   : > { %6506 = vmatpush.bf16.msra.mxu3 %v11350_v2  ;;  %v14242_v21 = vpop.f32.mrf.mxu3  ;;  %v11282_v42 = vor.u32 %v12081_v27, %v11281_v52  ;;  %v5560_v61 = vsel %vm2534_vm1, %v5558_v0, %v5559_v57  ;;  %v5579_v60 = vrot.slane %v5441_v36, 1  ;;  %v12078_v52 = vld [vmem:[#allocation11 + $0x854] sm:$0xf]  ;;  %v11275_v27 = vld [vmem:[#allocation11 + $0x858] sm:$0xf0] }
 0x487   : > { %v5554_v19 = vsel %vm2534_vm1, %v5552_v30, %v5553_v4 }
 0x488   : > { %v4645_v46 = vpop.f32.mrf.mxu2  ;;  %6359 = vmatpush.bf16.msra.mxu0 %v11282_v42 }
 0x489   : > { %v4695_v62 = vadd.f32 %v14200_v47, %v4645_v46  ;;  %v5683_v47 = vpack.c.bf16 %v5575_v25, %v5569_v48  ;;  %v5445_v46 = vld [vmem:[#allocation2 + $0x198] sm:$0xfe] }
 0x48a   : > { %v4549_v17 = vpop.f32.mrf.mxu0  ;;  %v5585_v0 = vrot.slane %v5445_v46, 1  ;;  %v5434_v46 = vld [vmem:[#allocation2 + $0xf0] sm:$0x1] }
 0x48b   : > { %v14239_v28 = vadd.f32 %v4695_v62, %v14016_v45  ;;  %v4599_v50 = vadd.f32 %v14205_v12, %v4549_v17  ;;  %v12097_v45 = vld [vmem:[#allocation11 + $0x8e4] sm:$0xf0]  ;;  %v14247_v39 = vpop.f32.mrf.mxu1  ;;  %6049 = vmatmul.bf16.gmra.mxu3 %v5683_v47  ;;  %v5447_v62 = vld [vmem:[#allocation2 + $0x1b8] sm:$0x1]  ;;  %v5680_v17 = vpack.c.bf16 %v5560_v61, %v5554_v19 }
 0x48c   : > { %v11346_v12 = vor.u32 %v12097_v45, %v11345_v34  ;;  %5951 = vmatmul.bf16.gmra.mxu1 %v5683_v47  ;;  %v12094_v47 = vld [vmem:[#allocation11 + $0x8d4] sm:$0xf]  ;;  %v11278_v34 = vor.u32 %v12078_v52, %v11275_v27  ;;  %v5436_v45 = vld [vmem:[#allocation2 + $0x110] sm:$0xfe] }
 0x48d   : > { %v14245_v53 = vadd.f32 %v4599_v50, %v14021_v33  ;;  %v5443_v33 = vld [vmem:[#allocation2 + $0x178] sm:$0x1] }
 0x48e   : > { %6408 = vmatpush.bf16.msra.mxu1 %v11346_v12  ;;  %v14256_v50 = vpop.f32.mrf.mxu3  ;;  %v5580_v1 = vrot.slane %v5443_v33, 1  ;;  %6458 = vmatpush.bf16.msra.mxu2 %v11278_v34  ;;  %v5438_v12 = vld [vmem:[#allocation2 + $0x130] sm:$0x1]  ;;  %v5432_v33 = vld [vmem:[#allocation2 + $0xd0] sm:$0xfe] }
 0x48f   : > { %v5571_v19 = vrot.slane %v5438_v12, 1 }
 0x490   : > { %v4647_v14 = vpop.f32.mrf.mxu2 }
 0x491   : > { %v4697_v2 = vadd.f32 %v14214_v22, %v4647_v14  ;;  %v5586_v22 = vrot.slane %v5447_v62, 1  ;;  %v5581_v14 = vsel %vm2534_vm1, %v5579_v60, %v5580_v1  ;;  %v12079_v60 = vld [vmem:[#allocation11 + $0x854] sm:$0xf0]  ;;  %v11337_v1 = vld [vmem:[#allocation11 + $0x8d0] sm:$0xf] }
 0x492   : > { %v5205_v37 = vpop.f32.mrf.mxu0 }
 0x493   : > { %v14253_v48 = vadd.f32 %v4697_v2, %v14029_v20  ;;  %v5255_v25 = vadd.f32 %v14219_v44, %v5205_v37  ;;  %v11339_v20 = vld [vmem:[#allocation11 + $0x8d8] sm:$0xf0]  ;;  %v14261_v30 = vpop.f32.mrf.mxu1  ;;  %v5570_v37 = vrot.slane %v5436_v45, 1 }
 0x494   : > { %v11342_v44 = vor.u32 %v12094_v47, %v11339_v20  ;;  %v5449_v20 = vld [vmem:[#allocation2 + $0x1d8] sm:$0xfe] }
 0x495   : > { %v14259_v57 = vadd.f32 %v5255_v25, %v14035_v9  ;;  %5897 = vmatmul.bf16.vlgmr.msrb.gmra.mxu0 %v5680_v17  ;;  %5995 = vmatmul.bf16.vlgmr.msrb.gmra.mxu2 %v5680_v17  ;;  %v5587_v9 = vsel %vm2534_vm1, %v5585_v0, %v5586_v22  ;;  %v11273_v17 = vld [vmem:[#allocation11 + $0x850] sm:$0xf]  ;;  %v5564_v0 = vrot.slane %v5432_v33, 1  ;;  %v5565_v22 = vrot.slane %v5434_v46, 1 }
 0x496   : > { %6507 = vmatpush.bf16.msra.mxu3 %v11342_v44  ;;  %v14270_v62 = vpop.f32.mrf.mxu3  ;;  %v11274_v52 = vor.u32 %v12079_v60, %v11273_v17  ;;  %v5572_v34 = vsel %vm2534_vm1, %v5570_v37, %v5571_v19  ;;  %v5591_v33 = vrot.slane %v5449_v20, 1  ;;  %v12076_v17 = vld [vmem:[#allocation11 + $0x844] sm:$0xf]  ;;  %v11267_v60 = vld [vmem:[#allocation11 + $0x848] sm:$0xf0] }
 0x497   : > { %v5566_v12 = vsel %vm2534_vm1, %v5564_v0, %v5565_v22 }
 0x498   : > { %v5303_v4 = vpop.f32.mrf.mxu2  ;;  %6360 = vmatpush.bf16.msra.mxu0 %v11274_v52 }
 0x499   : > { %v5353_v42 = vadd.f32 %v14228_v56, %v5303_v4  ;;  %v5685_v56 = vpack.c.bf16 %v5587_v9, %v5581_v14  ;;  %v5453_v4 = vld [vmem:[#allocation2 + $0x218] sm:$0xfe] }
 0x49a   : > { %v5207_v61 = vpop.f32.mrf.mxu0  ;;  %v5597_v37 = vrot.slane %v5453_v4, 1  ;;  %v5442_v4 = vld [vmem:[#allocation2 + $0x170] sm:$0x1] }
 0x49b   : > { %v14267_v36 = vadd.f32 %v5353_v42, %v14043_v40  ;;  %v5257_v2 = vadd.f32 %v14233_v3, %v5207_v61  ;;  %v12095_v40 = vld [vmem:[#allocation11 + $0x8d4] sm:$0xf0]  ;;  %v14275_v27 = vpop.f32.mrf.mxu1  ;;  %6054 = vmatmul.bf16.gmra.mxu3 %v5685_v56  ;;  %v5455_v42 = vld [vmem:[#allocation2 + $0x238] sm:$0x1]  ;;  %v5682_v61 = vpack.c.bf16 %v5572_v34, %v5566_v12 }
 0x49c   : > { %v11338_v3 = vor.u32 %v12095_v40, %v11337_v1  ;;  %5956 = vmatmul.bf16.gmra.mxu1 %v5685_v56  ;;  %v12092_v56 = vld [vmem:[#allocation11 + $0x8c4] sm:$0xf]  ;;  %v11270_v1 = vor.u32 %v12076_v17, %v11267_v60  ;;  %v5444_v40 = vld [vmem:[#allocation2 + $0x190] sm:$0xfe] }
 0x49d   : > { %v14273_v25 = vadd.f32 %v5257_v2, %v14049_v11  ;;  %v5451_v11 = vld [vmem:[#allocation2 + $0x1f8] sm:$0x1] }
 0x49e   : > { %6409 = vmatpush.bf16.msra.mxu1 %v11338_v3  ;;  %v14284_v2 = vpop.f32.mrf.mxu3  ;;  %v5592_v46 = vrot.slane %v5451_v11, 1  ;;  %6459 = vmatpush.bf16.msra.mxu2 %v11270_v1  ;;  %v5446_v3 = vld [vmem:[#allocation2 + $0x1b0] sm:$0x1]  ;;  %v5440_v11 = vld [vmem:[#allocation2 + $0x150] sm:$0xfe] }
 0x49f   : > { %v5583_v12 = vrot.slane %v5446_v3, 1 }
 0x4a0   : > { %v5305_v47 = vpop.f32.mrf.mxu2 }
 0x4a1   : > { %v5355_v44 = vadd.f32 %v14242_v21, %v5305_v47  ;;  %v5598_v21 = vrot.slane %v5455_v42, 1  ;;  %v5593_v47 = vsel %vm2534_vm1, %v5591_v33, %v5592_v46  ;;  %v12077_v33 = vld [vmem:[#allocation11 + $0x844] sm:$0xf0]  ;;  %v11329_v46 = vld [vmem:[#allocation11 + $0x8c0] sm:$0xf] }
 0x4a2   : > { %v5210_v45 = vpop.f32.mrf.mxu0 }
 0x4a3   : > { %v14281_v14 = vadd.f32 %v5355_v44, %v14057_v15  ;;  %v5260_v9 = vadd.f32 %v14247_v39, %v5210_v45  ;;  %v11331_v15 = vld [vmem:[#allocation11 + $0x8c8] sm:$0xf0]  ;;  %v14289_v0 = vpop.f32.mrf.mxu1  ;;  %v5582_v45 = vrot.slane %v5444_v40, 1 }
 0x4a4   : > { %v11334_v39 = vor.u32 %v12092_v56, %v11331_v15  ;;  %v5457_v15 = vld [vmem:[#allocation2 + $0x258] sm:$0xfe] }
 0x4a5   : > { %v14287_v19 = vadd.f32 %v5260_v9, %v14063_v58  ;;  %5902 = vmatmul.bf16.gmra.mxu0 %v5682_v61  ;;  %6000 = vmatmul.bf16.gmra.mxu2 %v5682_v61  ;;  %v5599_v58 = vsel %vm2534_vm1, %v5597_v37, %v5598_v21  ;;  %v11265_v61 = vld [vmem:[#allocation11 + $0x840] sm:$0xf]  ;;  %v5576_v37 = vrot.slane %v5440_v11, 1  ;;  %v5577_v21 = vrot.slane %v5442_v4, 1 }
 0x4a6   : > { %6508 = vmatpush.bf16.msra.mxu3 %v11334_v39  ;;  %v14298_v42 = vpop.f32.mrf.mxu3  ;;  %v11266_v17 = vor.u32 %v12077_v33, %v11265_v61  ;;  %v5584_v1 = vsel %vm2534_vm1, %v5582_v45, %v5583_v12  ;;  %v5603_v11 = vrot.slane %v5457_v15, 1  ;;  %v12074_v61 = vld [vmem:[#allocation11 + $0x834] sm:$0xf]  ;;  %v11259_v33 = vld [vmem:[#allocation11 + $0x838] sm:$0xf0] }
 0x4a7   : > { %v5578_v3 = vsel %vm2534_vm1, %v5576_v37, %v5577_v21 }
 0x4a8   : > { %v5308_v22 = vpop.f32.mrf.mxu2  ;;  %6361 = vmatpush.bf16.msra.mxu0 %v11266_v17 }
 0x4a9   : > { %v5358_v52 = vadd.f32 %v14256_v50, %v5308_v22  ;;  %v5687_v50 = vpack.c.bf16 %v5599_v58, %v5593_v47  ;;  %v5461_v22 = vld [vmem:[#allocation2 + $0x298] sm:$0xfe] }
 0x4aa   : > { %v5212_v34 = vpop.f32.mrf.mxu0  ;;  %v5609_v45 = vrot.slane %v5461_v22, 1  ;;  %v5450_v22 = vld [vmem:[#allocation2 + $0x1f0] sm:$0x1] }
 0x4ab   : > { %v14295_v20 = vadd.f32 %v5358_v52, %v14071_v13  ;;  %v5262_v44 = vadd.f32 %v14261_v30, %v5212_v34  ;;  %v12093_v13 = vld [vmem:[#allocation11 + $0x8c4] sm:$0xf0]  ;;  %v14303_v60 = vpop.f32.mrf.mxu1  ;;  %6059 = vmatmul.bf16.gmra.mxu3 %v5687_v50  ;;  %v5463_v52 = vld [vmem:[#allocation2 + $0x2b8] sm:$0x1]  ;;  %v5684_v34 = vpack.c.bf16 %v5584_v1, %v5578_v3 }
 0x4ac   : > { %v11330_v30 = vor.u32 %v12093_v13, %v11329_v46  ;;  %5961 = vmatmul.bf16.gmra.mxu1 %v5687_v50  ;;  %v12090_v50 = vld [vmem:[#allocation11 + $0x8b4] sm:$0xf]  ;;  %v11262_v46 = vor.u32 %v12074_v61, %v11259_v33  ;;  %v5452_v13 = vld [vmem:[#allocation2 + $0x210] sm:$0xfe] }
 0x4ad   : > { %v14301_v9 = vadd.f32 %v5262_v44, %v14077_v6  ;;  %v5459_v6 = vld [vmem:[#allocation2 + $0x278] sm:$0x1] }
 0x4ae   : > { %6410 = vmatpush.bf16.msra.mxu1 %v11330_v30  ;;  %v14312_v44 = vpop.f32.mrf.mxu3  ;;  %v5604_v4 = vrot.slane %v5459_v6, 1  ;;  %6460 = vmatpush.bf16.msra.mxu2 %v11262_v46  ;;  %v5454_v30 = vld [vmem:[#allocation2 + $0x230] sm:$0x1]  ;;  %v5448_v6 = vld [vmem:[#allocation2 + $0x1d0] sm:$0xfe] }
 0x4af   : > { %v5595_v3 = vrot.slane %v5454_v30, 1 }
 0x4b0   : > { %v5310_v56 = vpop.f32.mrf.mxu2 }
 0x4b1   : > { %v5360_v39 = vadd.f32 %v14270_v62, %v5310_v56  ;;  %v5610_v62 = vrot.slane %v5463_v52, 1  ;;  %v5605_v56 = vsel %vm2534_vm1, %v5603_v11, %v5604_v4  ;;  %v12075_v11 = vld [vmem:[#allocation11 + $0x834] sm:$0xf0]  ;;  %v11321_v4 = vld [vmem:[#allocation11 + $0x8b0] sm:$0xf] }
 0x4b2   : > { %v5215_v40 = vpop.f32.mrf.mxu0 }
 0x4b3   : > { %v14309_v47 = vadd.f32 %v5360_v39, %v14085_v41  ;;  %v5265_v58 = vadd.f32 %v14275_v27, %v5215_v40  ;;  %v11323_v41 = vld [vmem:[#allocation11 + $0x8b8] sm:$0xf0]  ;;  %v14317_v37 = vpop.f32.mrf.mxu1  ;;  %v5594_v40 = vrot.slane %v5452_v13, 1 }
 0x4b4   : > { %v11326_v27 = vor.u32 %v12090_v50, %v11323_v41  ;;  %v5465_v41 = vld [vmem:[#allocation2 + $0x2d8] sm:$0xfe] }
 0x4b5   : > { %v14315_v12 = vadd.f32 %v5265_v58, %v14091_v31  ;;  %5907 = vmatmul.bf16.gmra.mxu0 %v5684_v34  ;;  %6005 = vmatmul.bf16.gmra.mxu2 %v5684_v34  ;;  %v5611_v31 = vsel %vm2534_vm1, %v5609_v45, %v5610_v62  ;;  %v11257_v34 = vld [vmem:[#allocation11 + $0x830] sm:$0xf]  ;;  %v5588_v45 = vrot.slane %v5448_v6, 1  ;;  %v5589_v62 = vrot.slane %v5450_v22, 1 }
 0x4b6   : > { %6509 = vmatpush.bf16.msra.mxu3 %v11326_v27  ;;  %v14326_v52 = vpop.f32.mrf.mxu3  ;;  %v11258_v61 = vor.u32 %v12075_v11, %v11257_v34  ;;  %v5596_v46 = vsel %vm2534_vm1, %v5594_v40, %v5595_v3  ;;  %v5615_v6 = vrot.slane %v5465_v41, 1  ;;  %v12072_v34 = vld [vmem:[#allocation11 + $0x824] sm:$0xf]  ;;  %v11251_v11 = vld [vmem:[#allocation11 + $0x828] sm:$0xf0] }
 0x4b7   : > { %v5590_v30 = vsel %vm2534_vm1, %v5588_v45, %v5589_v62 }
 0x4b8   : > { %v5313_v21 = vpop.f32.mrf.mxu2  ;;  %6362 = vmatpush.bf16.msra.mxu0 %v11258_v61 }
 0x4b9   : > { %v5363_v17 = vadd.f32 %v14284_v2, %v5313_v21  ;;  %v5689_v2 = vpack.c.bf16 %v5611_v31, %v5605_v56  ;;  %v5469_v21 = vld [vmem:[#allocation2 + $0x318] sm:$0xfe] }
 0x4ba   : > { %v5217_v1 = vpop.f32.mrf.mxu0  ;;  %v5621_v40 = vrot.slane %v5469_v21, 1  ;;  %v5458_v21 = vld [vmem:[#allocation2 + $0x270] sm:$0x1] }
 0x4bb   : > { %v14323_v15 = vadd.f32 %v5363_v17, %v14099_v32  ;;  %v5267_v39 = vadd.f32 %v14289_v0, %v5217_v1  ;;  %v12091_v32 = vld [vmem:[#allocation11 + $0x8b4] sm:$0xf0]  ;;  %v14331_v33 = vpop.f32.mrf.mxu1  ;;  %6064 = vmatmul.bf16.gmra.mxu3 %v5689_v2  ;;  %v5471_v17 = vld [vmem:[#allocation2 + $0x338] sm:$0x1]  ;;  %v5686_v1 = vpack.c.bf16 %v5596_v46, %v5590_v30 }
 0x4bc   : > { %v11322_v0 = vor.u32 %v12091_v32, %v11321_v4  ;;  %5966 = vmatmul.bf16.gmra.mxu1 %v5689_v2  ;;  %v12088_v2 = vld [vmem:[#allocation11 + $0x8a4] sm:$0xf]  ;;  %v11254_v4 = vor.u32 %v12072_v34, %v11251_v11  ;;  %v5460_v32 = vld [vmem:[#allocation2 + $0x290] sm:$0xfe] }
 0x4bd   : > { %v14329_v58 = vadd.f32 %v5267_v39, %v14105_v7  ;;  %v5467_v7 = vld [vmem:[#allocation2 + $0x2f8] sm:$0x1] }
 0x4be   : > { %6411 = vmatpush.bf16.msra.mxu1 %v11322_v0  ;;  %v14340_v39 = vpop.f32.mrf.mxu3  ;;  %v5616_v22 = vrot.slane %v5467_v7, 1  ;;  %6461 = vmatpush.bf16.msra.mxu2 %v11254_v4  ;;  %v5462_v0 = vld [vmem:[#allocation2 + $0x2b0] sm:$0x1]  ;;  %v5456_v7 = vld [vmem:[#allocation2 + $0x250] sm:$0xfe] }
 0x4bf   : > { %v5607_v30 = vrot.slane %v5462_v0, 1 }
 0x4c0   : > { %v5315_v50 = vpop.f32.mrf.mxu2 }
 0x4c1   : > { %v5365_v27 = vadd.f32 %v14298_v42, %v5315_v50  ;;  %v5622_v42 = vrot.slane %v5471_v17, 1  ;;  %v5617_v50 = vsel %vm2534_vm1, %v5615_v6, %v5616_v22  ;;  %v12073_v6 = vld [vmem:[#allocation11 + $0x824] sm:$0xf0]  ;;  %v11313_v22 = vld [vmem:[#allocation11 + $0x8a0] sm:$0xf] }
 0x4c2   : > { %v5220_v13 = vpop.f32.mrf.mxu0 }
 0x4c3   : > { %v14337_v56 = vadd.f32 %v5365_v27, %v14113_v23  ;;  %v5270_v31 = vadd.f32 %v14303_v60, %v5220_v13  ;;  %v11315_v23 = vld [vmem:[#allocation11 + $0x8a8] sm:$0xf0]  ;;  %v14345_v45 = vpop.f32.mrf.mxu1  ;;  %v5606_v13 = vrot.slane %v5460_v32, 1 }
 0x4c4   : > { %v11318_v60 = vor.u32 %v12088_v2, %v11315_v23  ;;  %v5473_v23 = vld [vmem:[#allocation2 + $0x358] sm:$0xfe] }
 0x4c5   : > { %v14343_v3 = vadd.f32 %v5270_v31, %v14119_v5  ;;  %5912 = vmatmul.bf16.gmra.mxu0 %v5686_v1  ;;  %6010 = vmatmul.bf16.gmra.mxu2 %v5686_v1  ;;  %v5623_v5 = vsel %vm2534_vm1, %v5621_v40, %v5622_v42  ;;  %v11249_v1 = vld [vmem:[#allocation11 + $0x820] sm:$0xf]  ;;  %v5600_v40 = vrot.slane %v5456_v7, 1  ;;  %v5601_v42 = vrot.slane %v5458_v21, 1 }
 0x4c6   : > { %6510 = vmatpush.bf16.msra.mxu3 %v11318_v60  ;;  %v14354_v17 = vpop.f32.mrf.mxu3  ;;  %v11250_v34 = vor.u32 %v12073_v6, %v11249_v1  ;;  %v5608_v4 = vsel %vm2534_vm1, %v5606_v13, %v5607_v30  ;;  %v5627_v7 = vrot.slane %v5473_v23, 1  ;;  %v12070_v1 = vld [vmem:[#allocation11 + $0x814] sm:$0xf]  ;;  %v11243_v6 = vld [vmem:[#allocation11 + $0x818] sm:$0xf0] }
 0x4c7   : > { %v5602_v0 = vsel %vm2534_vm1, %v5600_v40, %v5601_v42 }
 0x4c8   : > { %v5318_v62 = vpop.f32.mrf.mxu2  ;;  %6363 = vmatpush.bf16.msra.mxu0 %v11250_v34 }
 0x4c9   : > { %v5368_v61 = vadd.f32 %v14312_v44, %v5318_v62  ;;  %v5691_v44 = vpack.c.bf16 %v5623_v5, %v5617_v50  ;;  %v5477_v62 = vld [vmem:[#allocation2 + $0x398] sm:$0xfe] }
 0x4ca   : > { %v5222_v46 = vpop.f32.mrf.mxu0  ;;  %v5633_v13 = vrot.slane %v5477_v62, 1  ;;  %v5466_v62 = vld [vmem:[#allocation2 + $0x2f0] sm:$0x1] }
 0x4cb   : > { %v14351_v41 = vadd.f32 %v5368_v61, %v14127_v35  ;;  %v5272_v27 = vadd.f32 %v14317_v37, %v5222_v46  ;;  %v12089_v35 = vld [vmem:[#allocation11 + $0x8a4] sm:$0xf0]  ;;  %v14359_v11 = vpop.f32.mrf.mxu1  ;;  %6069 = vmatmul.bf16.gmra.mxu3 %v5691_v44  ;;  %v5479_v61 = vld [vmem:[#allocation2 + $0x3b8] sm:$0x1]  ;;  %v5688_v46 = vpack.c.bf16 %v5608_v4, %v5602_v0 }
 0x4cc   : > { %v11314_v37 = vor.u32 %v12089_v35, %v11313_v22  ;;  %5971 = vmatmul.bf16.gmra.mxu1 %v5691_v44  ;;  %v12086_v44 = vld [vmem:[#allocation11 + $0x894] sm:$0xf]  ;;  %v11246_v22 = vor.u32 %v12070_v1, %v11243_v6  ;;  %v5468_v35 = vld [vmem:[#allocation2 + $0x310] sm:$0xfe] }
 0x4cd   : > { %v14357_v31 = vadd.f32 %v5272_v27, %v14133_v59  ;;  %v5475_v59 = vld [vmem:[#allocation2 + $0x378] sm:$0x1] }
 0x4ce   : > { %6412 = vmatpush.bf16.msra.mxu1 %v11314_v37  ;;  %v14368_v27 = vpop.f32.mrf.mxu3  ;;  %v5628_v21 = vrot.slane %v5475_v59, 1  ;;  %6462 = vmatpush.bf16.msra.mxu2 %v11246_v22  ;;  %v5470_v37 = vld [vmem:[#allocation2 + $0x330] sm:$0x1]  ;;  %v5464_v59 = vld [vmem:[#allocation2 + $0x2d0] sm:$0xfe] }
 0x4cf   : > { %v5619_v0 = vrot.slane %v5470_v37, 1 }
 0x4d0   : > { %v5320_v2 = vpop.f32.mrf.mxu2 }
 0x4d1   : > { %v5370_v60 = vadd.f32 %v14326_v52, %v5320_v2  ;;  %v5634_v52 = vrot.slane %v5479_v61, 1  ;;  %v5629_v2 = vsel %vm2534_vm1, %v5627_v7, %v5628_v21  ;;  %v12071_v7 = vld [vmem:[#allocation11 + $0x814] sm:$0xf0]  ;;  %v11305_v21 = vld [vmem:[#allocation11 + $0x890] sm:$0xf] }
 0x4d2   : > { %v5225_v32 = vpop.f32.mrf.mxu0 }
 0x4d3   : > { %v14365_v50 = vadd.f32 %v5370_v60, %v14141_v63  ;;  %v5275_v5 = vadd.f32 %v14331_v33, %v5225_v32  ;;  %v11307_v63 = vld [vmem:[#allocation11 + $0x898] sm:$0xf0]  ;;  %v14373_v40 = vpop.f32.mrf.mxu1  ;;  %v5618_v32 = vrot.slane %v5468_v35, 1 }
 0x4d4   : > { %v11310_v33 = vor.u32 %v12086_v44, %v11307_v63  ;;  %v5481_v63 = vld [vmem:[#allocation2 + $0x3d8] sm:$0xfe] }
 0x4d5   : > { %v14371_v30 = vadd.f32 %v5275_v5, %v14147_v38  ;;  %5917 = vmatmul.bf16.gmra.mxu0 %v5688_v46  ;;  %6015 = vmatmul.bf16.gmra.mxu2 %v5688_v46  ;;  %v5635_v38 = vsel %vm2534_vm1, %v5633_v13, %v5634_v52  ;;  %v11241_v46 = vld [vmem:[#allocation11 + $0x810] sm:$0xf]  ;;  %v5612_v13 = vrot.slane %v5464_v59, 1  ;;  %v5613_v52 = vrot.slane %v5466_v62, 1 }
 0x4d6   : > { %6511 = vmatpush.bf16.msra.mxu3 %v11310_v33  ;;  %v14382_v61 = vpop.f32.mrf.mxu3  ;;  %v11242_v1 = vor.u32 %v12071_v7, %v11241_v46  ;;  %v5620_v22 = vsel %vm2534_vm1, %v5618_v32, %v5619_v0  ;;  %v5639_v59 = vrot.slane %v5481_v63, 1  ;;  %v12068_v46 = vld [vmem:[#allocation11 + $0x804] sm:$0xf]  ;;  %v11235_v7 = vld [vmem:[#allocation11 + $0x808] sm:$0xf0] }
 0x4d7   : > { %v5614_v37 = vsel %vm2534_vm1, %v5612_v13, %v5613_v52 }
 0x4d8   : > { %v5323_v42 = vpop.f32.mrf.mxu2  ;;  %6364 = vmatpush.bf16.msra.mxu0 %v11242_v1 }
 0x4d9   : > { %v5373_v34 = vadd.f32 %v14340_v39, %v5323_v42  ;;  %v5693_v39 = vpack.c.bf16 %v5635_v38, %v5629_v2  ;;  %v5485_v42 = vld [vmem:[#allocation2 + $0x418] sm:$0xfe] }
 0x4da   : > { %v5227_v4 = vpop.f32.mrf.mxu0  ;;  %v5645_v32 = vrot.slane %v5485_v42, 1  ;;  %v5474_v42 = vld [vmem:[#allocation2 + $0x370] sm:$0x1] }
 0x4db   : > { %v14379_v23 = vadd.f32 %v5373_v34, %v14155_v49  ;;  %v5277_v60 = vadd.f32 %v14345_v45, %v5227_v4  ;;  %v12087_v49 = vld [vmem:[#allocation11 + $0x894] sm:$0xf0]  ;;  %v14387_v6 = vpop.f32.mrf.mxu1  ;;  %6074 = vmatmul.bf16.gmra.mxu3 %v5693_v39  ;;  %v5487_v34 = vld [vmem:[#allocation2 + $0x438] sm:$0x1]  ;;  %v5690_v4 = vpack.c.bf16 %v5620_v22, %v5614_v37 }
 0x4dc   : > { %v11306_v45 = vor.u32 %v12087_v49, %v11305_v21  ;;  %5976 = vmatmul.bf16.gmra.mxu1 %v5693_v39  ;;  %v12084_v39 = vld [vmem:[#allocation11 + $0x884] sm:$0xf]  ;;  %v11238_v21 = vor.u32 %v12068_v46, %v11235_v7  ;;  %v5476_v49 = vld [vmem:[#allocation2 + $0x390] sm:$0xfe] }
 0x4dd   : > { %v14385_v5 = vadd.f32 %v5277_v60, %v14161_v54  ;;  %v5483_v54 = vld [vmem:[#allocation2 + $0x3f8] sm:$0x1] }
 0x4de   : > { %6413 = vmatpush.bf16.msra.mxu1 %v11306_v45  ;;  %v14396_v60 = vpop.f32.mrf.mxu3  ;;  %v5640_v62 = vrot.slane %v5483_v54, 1  ;;  %6463 = vmatpush.bf16.msra.mxu2 %v11238_v21  ;;  %v5478_v45 = vld [vmem:[#allocation2 + $0x3b0] sm:$0x1]  ;;  %v5472_v54 = vld [vmem:[#allocation2 + $0x350] sm:$0xfe] }
 0x4df   : > { %v5631_v37 = vrot.slane %v5478_v45, 1 }
 0x4e0   : > { %v5325_v44 = vpop.f32.mrf.mxu2 }
 0x4e1   : > { %v5375_v33 = vadd.f32 %v14354_v17, %v5325_v44  ;;  %v5646_v17 = vrot.slane %v5487_v34, 1  ;;  %v5641_v44 = vsel %vm2534_vm1, %v5639_v59, %v5640_v62  ;;  %v12069_v59 = vld [vmem:[#allocation11 + $0x804] sm:$0xf0]  ;;  %v11297_v62 = vld [vmem:[#allocation11 + $0x880] sm:$0xf] }
 0x4e2   : > { %v5230_v35 = vpop.f32.mrf.mxu0 }
 0x4e3   : > { %v14393_v2 = vadd.f32 %v5375_v33, %v14169_v43  ;;  %v5280_v38 = vadd.f32 %v14359_v11, %v5230_v35  ;;  %v11299_v43 = vld [vmem:[#allocation11 + $0x888] sm:$0xf0]  ;;  %v5286_v13 = vpop.f32.mrf.mxu1  ;;  %v5630_v35 = vrot.slane %v5476_v49, 1 }
 0x4e4   : > { %v11302_v52 = vor.u32 %v12084_v39, %v11299_v43 }
 0x4e5   : > { %v14399_v0 = vadd.f32 %v5280_v38, %v14175_v24  ;;  %5922 = vmatmul.bf16.gmra.mxu0 %v5690_v4  ;;  %6020 = vmatmul.bf16.gmra.mxu2 %v5690_v4  ;;  %v5647_v24 = vsel %vm2534_vm1, %v5645_v32, %v5646_v17  ;;  %v11233_v4 = vld [vmem:[#allocation11 + $0x800] sm:$0xf]  ;;  %v5624_v32 = vrot.slane %v5472_v54, 1  ;;  %v5625_v17 = vrot.slane %v5474_v42, 1  ;;  %v11483_v54 = vld [vmem:[#allocation11 + $0x9f8] sm:$0xf0] }
 0x4e6   : > { %6512 = vmatpush.bf16.msra.mxu3 %v11302_v52  ;;  %v14408_v34 = vpop.f32.mrf.mxu3  ;;  %v11234_v46 = vor.u32 %v12069_v59, %v11233_v4  ;;  %v5632_v21 = vsel %vm2534_vm1, %v5630_v35, %v5631_v37  ;;  %v6118_v4 = vld [vmem:[#allocation2 + $0x88] sm:$0xff] }
 0x4e7   : > { %v6120_v59 = vld [vmem:[#allocation2 + $0xc8] sm:$0xff] }
 0x4e8   : > { %v5328_v11 = vpop.f32.mrf.mxu2  ;;  %6365 = vmatpush.bf16.msra.mxu0 %v11234_v46  ;;  %v5482_v46 = vld [vmem:[#allocation2 + $0x3f0] sm:$0x1] }
 0x4e9   : > { %v5378_v1 = vadd.f32 %v14368_v27, %v5328_v11  ;;  %v5695_v27 = vpack.c.bf16 %v5647_v24, %v5641_v44  ;;  %v12114_v24 = vld [vmem:[#allocation11 + $0x974] sm:$0xf] }
 0x4ea   : > { %v5232_v22 = vpop.f32.mrf.mxu0 }
 0x4eb   : > { %v14405_v63 = vadd.f32 %v5378_v1, %v14183_v16  ;;  %v5282_v33 = vadd.f32 %v14373_v40, %v5232_v22  ;;  %v12085_v16 = vld [vmem:[#allocation11 + $0x884] sm:$0xf0]  ;;  %v5289_v7 = vpop.f32.mrf.mxu1  ;;  %6079 = vmatmul.bf16.gmra.mxu3 %v5695_v27  ;;  %v12130_v22 = vld [vmem:[#allocation11 + $0x9f4] sm:$0xf] }
 0x4ec   : > { %v11298_v39 = vor.u32 %v12085_v16, %v11297_v62  ;;  %5981 = vmatmul.bf16.gmra.mxu1 %v5695_v27  ;;  %v11486_v35 = vor.u32 %v12130_v22, %v11483_v54  ;;  %v5486_v27 = vld [vmem:[#allocation2 + $0x430] sm:$0x1] }
 0x4ed   : > { %v14411_v38 = vadd.f32 %v5282_v33, %v14189_v10  ;;  %v5626_v10 = vsel %vm2534_vm1, %v5624_v32, %v5625_v17  ;;  %v5480_v17 = vld [vmem:[#allocation2 + $0x3d0] sm:$0xfe] }
 0x4ee   : > { %6414 = vmatpush.bf16.msra.mxu1 %v11298_v39  ;;  %v5692_v49 = vpack.c.bf16 %v5632_v21, %v5626_v10  ;;  %v14420_v45 = vpop.f32.mrf.mxu3  ;;  %6974 = vmatpush.bf16.msrb.mxu3 %v11486_v35  ;;  %v6150_v21 = vpack.c.bf16 %v6120_v59, %v6118_v4  ;;  %v11481_v10 = vld [vmem:[#allocation11 + $0x9f0] sm:$0xf]  ;;  %v12112_v59 = vld [vmem:[#allocation11 + $0x964] sm:$0xf] }
 0x4f0   : > { %v5330_v40 = vpop.f32.mrf.mxu2 }
 0x4f1   : > { %v5380_v43 = vadd.f32 %v14382_v61, %v5330_v40  ;;  %v11419_v61 = vld [vmem:[#allocation11 + $0x978] sm:$0xf0]  ;;  %v5643_v40 = vrot.slane %v5486_v27, 1 }
 0x4f2   : > { %v5235_v52 = vpop.f32.mrf.mxu0  ;;  %v11422_v33 = vor.u32 %v12114_v24, %v11419_v61  ;;  %v12131_v61 = vld [vmem:[#allocation11 + $0x9f4] sm:$0xf0] }
 0x4f3   : > { %v14417_v11 = vadd.f32 %v5380_v43, %v14197_v55  ;;  %v5285_v1 = vadd.f32 %v14387_v6, %v5235_v52  ;;  %v5291_v42 = vpop.f32.mrf.mxu1  ;;  %v5484_v55 = vld [vmem:[#allocation2 + $0x410] sm:$0xfe]  ;;  %v11417_v52 = vld [vmem:[#allocation11 + $0x970] sm:$0xf] }
 0x4f4   : > { %6925 = vmatpush.bf16.msrb.mxu2 %v11422_v33  ;;  %v5642_v39 = vrot.slane %v5484_v55, 1 }
 0x4f5   : > { %v14423_v44 = vadd.f32 %v5285_v1, %v14203_v51  ;;  %5927 = vmatmul.bf16.gmra.mxu0 %v5692_v49  ;;  %6025 = vmatmul.bf16.gmra.mxu2 %v5692_v49  ;;  %v5636_v1 = vrot.slane %v5480_v17, 1  ;;  %v5637_v49 = vrot.slane %v5482_v46, 1  ;;  %v11475_v17 = vld [vmem:[#allocation11 + $0x9e8] sm:$0xf0] }
 0x4f6   : > { %v5389_v16 = vpop.f32.mrf.mxu3 }
 0x4f8   : > { %v5333_v37 = vpop.f32.mrf.mxu2 }
 0x4f9   : > { %v5383_v6 = vadd.f32 %v14396_v60, %v5333_v37  ;;  %v12115_v60 = vld [vmem:[#allocation11 + $0x974] sm:$0xf0] }
 0x4fa   : > { %v5237_v51 = vpop.f32.mrf.mxu0  ;;  %v11418_v24 = vor.u32 %v12115_v60, %v11417_v52 }
 0x4fb   : > { %v14427_v62 = vadd.f32 %v5383_v6, %v14211_v18  ;;  %v5287_v32 = vadd.f32 %v5286_v13, %v5237_v51  ;;  %v5947_v22 = vpop.f32.mrf.mxu1  ;;  %v11482_v18 = vor.u32 %v12131_v61, %v11481_v10  ;;  %v5644_v13 = vsel %vm2534_vm1, %v5642_v39, %v5643_v40  ;;  %6513 = vmatmul.bf16.vlgmr.msra.gmra.mxu3 %v6150_v21  ;;  %v11411_v51 = vld [vmem:[#allocation11 + $0x968] sm:$0xf0]  ;;  %v12113_v61 = vld [vmem:[#allocation11 + $0x964] sm:$0xf0] }
 0x4fc   : > { %6827 = vmatpush.bf16.msrb.mxu0 %v11418_v24  ;;  %6415 = vmatmul.bf16.vlgmr.msra.gmra.mxu1 %v6150_v21  ;;  %v6122_v21 = vld [vmem:[#allocation2 + $0x108] sm:$0xff] }
 0x4fd   : > { %v14430_v43 = vadd.f32 %v5287_v32, %v14217_v29  ;;  %6876 = vmatpush.bf16.msrb.mxu1 %v11482_v18  ;;  %v5638_v29 = vsel %vm2534_vm1, %v5636_v1, %v5637_v49  ;;  %v12128_v32 = vld [vmem:[#allocation11 + $0x9e4] sm:$0xf]  ;;  %v11409_v24 = vld [vmem:[#allocation11 + $0x960] sm:$0xf] }
 0x4fe   : > { %v5694_v6 = vpack.c.bf16 %v5644_v13, %v5638_v29  ;;  %v6045_v27 = vpop.f32.mrf.mxu3  ;;  %v11478_v39 = vor.u32 %v12128_v32, %v11475_v17  ;;  %v11473_v18 = vld [vmem:[#allocation11 + $0x9e0] sm:$0xf]  ;;  %v12129_v13 = vld [vmem:[#allocation11 + $0x9e4] sm:$0xf0]  ;;  %v6117_v29 = vld [vmem:[#allocation2 + $0x80] sm:$0xff] }
 0x4ff   : > { %v11403_v17 = vld [vmem:[#allocation11 + $0x958] sm:$0xf0] }
 0x500   : > { %v5335_v33 = vpop.f32.mrf.mxu2  ;;  %6975 = vmatpush.bf16.msrb.mxu3 %v11478_v39  ;;  %v12126_v39 = vld [vmem:[#allocation11 + $0x9d4] sm:$0xf] }
 0x501   : > { %v5385_v54 = vadd.f32 %v14408_v34, %v5335_v33  ;;  %v11414_v34 = vor.u32 %v12112_v59, %v11411_v51  ;;  %v11410_v33 = vor.u32 %v12113_v61, %v11409_v24 }
 0x502   : > { %v5240_v35 = vpop.f32.mrf.mxu0 }
 0x503   : > { %v14436_v37 = vadd.f32 %v5385_v54, %v14225_v26  ;;  %v5290_v55 = vadd.f32 %v5289_v7, %v5240_v35  ;;  %v5949_v46 = vpop.f32.mrf.mxu1  ;;  %6926 = vmatpush.bf16.msrb.mxu2 %v11414_v34  ;;  %v6124_v7 = vld [vmem:[#allocation2 + $0x148] sm:$0xff]  ;;  %6828 = vmatpush.bf16.msrb.mxu0 %v11410_v33  ;;  %v12110_v34 = vld [vmem:[#allocation11 + $0x954] sm:$0xf]  ;;  %v11401_v33 = vld [vmem:[#allocation11 + $0x950] sm:$0xf] }
 0x504   : > { %v6152_v1 = vpack.c.bf16 %v6124_v7, %v6122_v21 }
 0x505   : > { %v14439_v4 = vadd.f32 %v5290_v55, %v14231_v8  ;;  %5932 = vmatmul.bf16.gmra.mxu0 %v5694_v6  ;;  %6030 = vmatmul.bf16.gmra.mxu2 %v5694_v6 }
 0x506   : > { %v6047_v10 = vpop.f32.mrf.mxu3 }
 0x508   : > { %v5338_v40 = vpop.f32.mrf.mxu2 }
 0x509   : > { %v5388_v26 = vadd.f32 %v14420_v45, %v5338_v40  ;;  %v11474_v45 = vor.u32 %v12129_v13, %v11473_v18  ;;  %v11406_v40 = vor.u32 %v12110_v34, %v11403_v17  ;;  %v12111_v13 = vld [vmem:[#allocation11 + $0x954] sm:$0xf0] }
 0x50a   : > { %v5242_v52 = vpop.f32.mrf.mxu0 }
 0x50b   : > { %v14443_v8 = vadd.f32 %v5388_v26, %v14239_v28  ;;  %v5292_v60 = vadd.f32 %v5291_v42, %v5242_v52  ;;  %v5952_v54 = vpop.f32.mrf.mxu1  ;;  %6518 = vmatmul.bf16.gmra.mxu3 %v6152_v1  ;;  %6877 = vmatpush.bf16.msrb.mxu1 %v11474_v45  ;;  %v6119_v42 = vld [vmem:[#allocation2 + $0xc0] sm:$0xff]  ;;  %v11465_v45 = vld [vmem:[#allocation11 + $0x9d0] sm:$0xf] }
 0x50c   : > { %6420 = vmatmul.bf16.gmra.mxu1 %v6152_v1  ;;  %v6149_v59 = vpack.c.bf16 %v6119_v42, %v6117_v29  ;;  %6927 = vmatpush.bf16.msrb.mxu2 %v11406_v40  ;;  %v12127_v29 = vld [vmem:[#allocation11 + $0x9d4] sm:$0xf0]  ;;  %v12108_v40 = vld [vmem:[#allocation11 + $0x944] sm:$0xf] }
 0x50d   : > { %v14446_v49 = vadd.f32 %v5292_v60, %v14245_v53  ;;  %v6128_v60 = vld [vmem:[#allocation2 + $0x1c8] sm:$0xff]  ;;  %v6121_v42 = vld [vmem:[#allocation2 + $0x100] sm:$0xff] }
 0x50e   : > { %v6050_v51 = vpop.f32.mrf.mxu3 }
 0x510   : > { %v5340_v35 = vpop.f32.mrf.mxu2 }
 0x511   : > { %v5390_v55 = vadd.f32 %v5389_v16, %v5340_v35  ;;  %v11467_v16 = vld [vmem:[#allocation11 + $0x9d8] sm:$0xf0]  ;;  %v11402_v35 = vor.u32 %v12111_v13, %v11401_v33 }
 0x512   : > { %v5898_v28 = vpop.f32.mrf.mxu0  ;;  %v11470_v21 = vor.u32 %v12126_v39, %v11467_v16  ;;  %v11395_v16 = vld [vmem:[#allocation11 + $0x948] sm:$0xf0] }
 0x513   : > { %v14449_v6 = vadd.f32 %v5390_v55, %v14253_v48  ;;  %v5948_v53 = vadd.f32 %v5947_v22, %v5898_v28  ;;  %v5954_v26 = vpop.f32.mrf.mxu1  ;;  %v6126_v48 = vld [vmem:[#allocation2 + $0x188] sm:$0xff]  ;;  %6829 = vmatpush.bf16.msrb.mxu0 %v11402_v35 }
 0x514   : > { %6976 = vmatpush.bf16.msrb.mxu3 %v11470_v21  ;;  %v6154_v61 = vpack.c.bf16 %v6128_v60, %v6126_v48  ;;  %v12124_v21 = vld [vmem:[#allocation11 + $0x9c4] sm:$0xf]  ;;  %v11393_v35 = vld [vmem:[#allocation11 + $0x940] sm:$0xf] }
 0x515   : > { %v14452_v32 = vadd.f32 %v5948_v53, %v14259_v57  ;;  %6366 = vmatmul.bf16.vlgmr.msra.gmra.mxu0 %v6149_v59  ;;  %6464 = vmatmul.bf16.vlgmr.msra.gmra.mxu2 %v6149_v59 }
 0x516   : > { %v6052_v24 = vpop.f32.mrf.mxu3 }
 0x518   : > { %v5996_v7 = vpop.f32.mrf.mxu2 }
 0x519   : > { %v6046_v52 = vadd.f32 %v6045_v27, %v5996_v7  ;;  %v11466_v27 = vor.u32 %v12127_v29, %v11465_v45  ;;  %v11398_v7 = vor.u32 %v12108_v40, %v11395_v16  ;;  %v12109_v29 = vld [vmem:[#allocation11 + $0x944] sm:$0xf0] }
 0x51a   : > { %v5900_v22 = vpop.f32.mrf.mxu0 }
 0x51b   : > { %v14455_v1 = vadd.f32 %v6046_v52, %v14267_v36  ;;  %v5950_v57 = vadd.f32 %v5949_v46, %v5900_v22  ;;  %v5957_v55 = vpop.f32.mrf.mxu1  ;;  %6523 = vmatmul.bf16.gmra.mxu3 %v6154_v61  ;;  %6878 = vmatpush.bf16.msrb.mxu1 %v11466_v27  ;;  %v6123_v46 = vld [vmem:[#allocation2 + $0x140] sm:$0xff]  ;;  %v11457_v27 = vld [vmem:[#allocation11 + $0x9c0] sm:$0xf] }
 0x51c   : > { %6425 = vmatmul.bf16.gmra.mxu1 %v6154_v61  ;;  %v6151_v34 = vpack.c.bf16 %v6123_v46, %v6121_v42  ;;  %6928 = vmatpush.bf16.msrb.mxu2 %v11398_v7  ;;  %v12125_v42 = vld [vmem:[#allocation11 + $0x9c4] sm:$0xf0]  ;;  %v6125_v46 = vld [vmem:[#allocation2 + $0x180] sm:$0xff]  ;;  %v12106_v7 = vld [vmem:[#allocation11 + $0x934] sm:$0xf] }
 0x51d   : > { %v14458_v18 = vadd.f32 %v5950_v57, %v14273_v25  ;;  %v6132_v57 = vld [vmem:[#allocation2 + $0x248] sm:$0xff] }
 0x51e   : > { %v6055_v17 = vpop.f32.mrf.mxu3 }
 0x520   : > { %v5998_v28 = vpop.f32.mrf.mxu2 }
 0x521   : > { %v6048_v53 = vadd.f32 %v6047_v10, %v5998_v28  ;;  %v11459_v10 = vld [vmem:[#allocation11 + $0x9c8] sm:$0xf0]  ;;  %v11394_v28 = vor.u32 %v12109_v29, %v11393_v35 }
 0x522   : > { %v5903_v36 = vpop.f32.mrf.mxu0  ;;  %v11462_v48 = vor.u32 %v12124_v21, %v11459_v10  ;;  %v11387_v10 = vld [vmem:[#allocation11 + $0x938] sm:$0xf0] }
 0x523   : > { %v14461_v59 = vadd.f32 %v6048_v53, %v14281_v14  ;;  %v5953_v25 = vadd.f32 %v5952_v54, %v5903_v36  ;;  %v5959_v52 = vpop.f32.mrf.mxu1  ;;  %v6130_v14 = vld [vmem:[#allocation2 + $0x208] sm:$0xff]  ;;  %6830 = vmatpush.bf16.msrb.mxu0 %v11394_v28  ;;  %v11385_v28 = vld [vmem:[#allocation11 + $0x930] sm:$0xf] }
 0x524   : > { %6977 = vmatpush.bf16.msrb.mxu3 %v11462_v48  ;;  %v6156_v13 = vpack.c.bf16 %v6132_v57, %v6130_v14  ;;  %v12122_v48 = vld [vmem:[#allocation11 + $0x9b4] sm:$0xf] }
 0x525   : > { %v14464_v39 = vadd.f32 %v5953_v25, %v14287_v19  ;;  %6371 = vmatmul.bf16.gmra.mxu0 %v6151_v34  ;;  %6469 = vmatmul.bf16.gmra.mxu2 %v6151_v34 }
 0x526   : > { %v6057_v33 = vpop.f32.mrf.mxu3 }
 0x528   : > { %v6001_v60 = vpop.f32.mrf.mxu2 }
 0x529   : > { %v6051_v22 = vadd.f32 %v6050_v51, %v6001_v60  ;;  %v11458_v51 = vor.u32 %v12125_v42, %v11457_v27  ;;  %v11390_v60 = vor.u32 %v12106_v7, %v11387_v10  ;;  %v12107_v42 = vld [vmem:[#allocation11 + $0x934] sm:$0xf0] }
 0x52a   : > { %v5905_v54 = vpop.f32.mrf.mxu0 }
 0x52b   : > { %v14467_v61 = vadd.f32 %v6051_v22, %v14295_v20  ;;  %v5955_v19 = vadd.f32 %v5954_v26, %v5905_v54  ;;  %v5962_v53 = vpop.f32.mrf.mxu1  ;;  %6528 = vmatmul.bf16.gmra.mxu3 %v6156_v13  ;;  %6879 = vmatpush.bf16.msrb.mxu1 %v11458_v51  ;;  %v6127_v26 = vld [vmem:[#allocation2 + $0x1c0] sm:$0xff]  ;;  %v11449_v51 = vld [vmem:[#allocation11 + $0x9b0] sm:$0xf] }
 0x52c   : > { %6430 = vmatmul.bf16.gmra.mxu1 %v6156_v13  ;;  %v6153_v40 = vpack.c.bf16 %v6127_v26, %v6125_v46  ;;  %6929 = vmatpush.bf16.msrb.mxu2 %v11390_v60  ;;  %v12123_v46 = vld [vmem:[#allocation11 + $0x9b4] sm:$0xf0]  ;;  %v12104_v60 = vld [vmem:[#allocation11 + $0x924] sm:$0xf] }
 0x52d   : > { %v14470_v45 = vadd.f32 %v5955_v19, %v14301_v9  ;;  %v6136_v19 = vld [vmem:[#allocation2 + $0x2c8] sm:$0xff]  ;;  %v6129_v26 = vld [vmem:[#allocation2 + $0x200] sm:$0xff] }
 0x52e   : > { %v6060_v16 = vpop.f32.mrf.mxu3 }
 0x530   : > { %v6003_v36 = vpop.f32.mrf.mxu2 }
 0x531   : > { %v6053_v25 = vadd.f32 %v6052_v24, %v6003_v36  ;;  %v11451_v24 = vld [vmem:[#allocation11 + $0x9b8] sm:$0xf0]  ;;  %v11386_v36 = vor.u32 %v12107_v42, %v11385_v28 }
 0x532   : > { %v5908_v20 = vpop.f32.mrf.mxu0  ;;  %v11454_v14 = vor.u32 %v12122_v48, %v11451_v24  ;;  %v11379_v24 = vld [vmem:[#allocation11 + $0x928] sm:$0xf0] }
 0x533   : > { %v14473_v34 = vadd.f32 %v6053_v25, %v14309_v47  ;;  %v5958_v9 = vadd.f32 %v5957_v55, %v5908_v20  ;;  %v5964_v22 = vpop.f32.mrf.mxu1  ;;  %v6134_v47 = vld [vmem:[#allocation2 + $0x288] sm:$0xff]  ;;  %6831 = vmatpush.bf16.msrb.mxu0 %v11386_v36 }
 0x534   : > { %6978 = vmatpush.bf16.msrb.mxu3 %v11454_v14  ;;  %v6158_v29 = vpack.c.bf16 %v6136_v19, %v6134_v47  ;;  %v12120_v14 = vld [vmem:[#allocation11 + $0x9a4] sm:$0xf]  ;;  %v11377_v36 = vld [vmem:[#allocation11 + $0x920] sm:$0xf] }
 0x535   : > { %v14476_v21 = vadd.f32 %v5958_v9, %v14315_v12  ;;  %6376 = vmatmul.bf16.gmra.mxu0 %v6153_v40  ;;  %6474 = vmatmul.bf16.gmra.mxu2 %v6153_v40 }
 0x536   : > { %v6062_v35 = vpop.f32.mrf.mxu3 }
 0x538   : > { %v6006_v57 = vpop.f32.mrf.mxu2 }
 0x539   : > { %v6056_v54 = vadd.f32 %v6055_v17, %v6006_v57  ;;  %v11450_v17 = vor.u32 %v12123_v46, %v11449_v51  ;;  %v11382_v57 = vor.u32 %v12104_v60, %v11379_v24  ;;  %v12105_v46 = vld [vmem:[#allocation11 + $0x924] sm:$0xf0] }
 0x53a   : > { %v5910_v55 = vpop.f32.mrf.mxu0 }
 0x53b   : > { %v14479_v13 = vadd.f32 %v6056_v54, %v14323_v15  ;;  %v5960_v12 = vadd.f32 %v5959_v52, %v5910_v55  ;;  %v5967_v25 = vpop.f32.mrf.mxu1  ;;  %6533 = vmatmul.bf16.gmra.mxu3 %v6158_v29  ;;  %6880 = vmatpush.bf16.msrb.mxu1 %v11450_v17  ;;  %v6131_v52 = vld [vmem:[#allocation2 + $0x240] sm:$0xff]  ;;  %v11441_v17 = vld [vmem:[#allocation11 + $0x9a0] sm:$0xf] }
 0x53c   : > { %6435 = vmatmul.bf16.gmra.mxu1 %v6158_v29  ;;  %v6155_v7 = vpack.c.bf16 %v6131_v52, %v6129_v26  ;;  %6930 = vmatpush.bf16.msrb.mxu2 %v11382_v57  ;;  %v12121_v26 = vld [vmem:[#allocation11 + $0x9a4] sm:$0xf0]  ;;  %v6133_v52 = vld [vmem:[#allocation2 + $0x280] sm:$0xff]  ;;  %v12102_v57 = vld [vmem:[#allocation11 + $0x914] sm:$0xf] }
 0x53d   : > { %v14482_v27 = vadd.f32 %v5960_v12, %v14329_v58  ;;  %v6140_v12 = vld [vmem:[#allocation2 + $0x348] sm:$0xff] }
 0x53e   : > { %v6065_v10 = vpop.f32.mrf.mxu3 }
 0x540   : > { %v6008_v20 = vpop.f32.mrf.mxu2 }
 0x541   : > { %v6058_v9 = vadd.f32 %v6057_v33, %v6008_v20  ;;  %v11443_v33 = vld [vmem:[#allocation11 + $0x9a8] sm:$0xf0]  ;;  %v11378_v20 = vor.u32 %v12105_v46, %v11377_v36 }
 0x542   : > { %v5913_v15 = vpop.f32.mrf.mxu0  ;;  %v11446_v47 = vor.u32 %v12120_v14, %v11443_v33  ;;  %v11371_v33 = vld [vmem:[#allocation11 + $0x918] sm:$0xf0] }
 0x543   : > { %v14485_v40 = vadd.f32 %v6058_v9, %v14337_v56  ;;  %v5963_v58 = vadd.f32 %v5962_v53, %v5913_v15  ;;  %v5969_v54 = vpop.f32.mrf.mxu1  ;;  %v6138_v56 = vld [vmem:[#allocation2 + $0x308] sm:$0xff]  ;;  %6832 = vmatpush.bf16.msrb.mxu0 %v11378_v20  ;;  %v11369_v20 = vld [vmem:[#allocation11 + $0x910] sm:$0xf] }
 0x544   : > { %6979 = vmatpush.bf16.msrb.mxu3 %v11446_v47  ;;  %v6160_v42 = vpack.c.bf16 %v6140_v12, %v6138_v56  ;;  %v12118_v47 = vld [vmem:[#allocation11 + $0x994] sm:$0xf] }
 0x545   : > { %v14488_v48 = vadd.f32 %v5963_v58, %v14343_v3  ;;  %6381 = vmatmul.bf16.gmra.mxu0 %v6155_v7  ;;  %6479 = vmatmul.bf16.gmra.mxu2 %v6155_v7 }
 0x546   : > { %v6067_v28 = vpop.f32.mrf.mxu3 }
 0x548   : > { %v6011_v19 = vpop.f32.mrf.mxu2 }
 0x549   : > { %v6061_v55 = vadd.f32 %v6060_v16, %v6011_v19  ;;  %v11442_v16 = vor.u32 %v12121_v26, %v11441_v17  ;;  %v11374_v19 = vor.u32 %v12102_v57, %v11371_v33  ;;  %v12103_v26 = vld [vmem:[#allocation11 + $0x914] sm:$0xf0] }
 0x54a   : > { %v5915_v53 = vpop.f32.mrf.mxu0 }
 0x54b   : > { %v14491_v29 = vadd.f32 %v6061_v55, %v14351_v41  ;;  %v5965_v3 = vadd.f32 %v5964_v22, %v5915_v53  ;;  %v5972_v9 = vpop.f32.mrf.mxu1  ;;  %6538 = vmatmul.bf16.gmra.mxu3 %v6160_v42  ;;  %6881 = vmatpush.bf16.msrb.mxu1 %v11442_v16  ;;  %v6135_v22 = vld [vmem:[#allocation2 + $0x2c0] sm:$0xff]  ;;  %v11433_v16 = vld [vmem:[#allocation11 + $0x990] sm:$0xf] }
 0x54c   : > { %6440 = vmatmul.bf16.gmra.mxu1 %v6160_v42  ;;  %v6157_v60 = vpack.c.bf16 %v6135_v22, %v6133_v52  ;;  %6931 = vmatpush.bf16.msrb.mxu2 %v11374_v19  ;;  %v12119_v52 = vld [vmem:[#allocation11 + $0x994] sm:$0xf0]  ;;  %v12100_v19 = vld [vmem:[#allocation11 + $0x904] sm:$0xf] }
 0x54d   : > { %v14494_v51 = vadd.f32 %v5965_v3, %v14357_v31  ;;  %v6144_v3 = vld [vmem:[#allocation2 + $0x3c8] sm:$0xff]  ;;  %v6137_v22 = vld [vmem:[#allocation2 + $0x300] sm:$0xff] }
 0x54e   : > { %v6070_v24 = vpop.f32.mrf.mxu3 }
 0x550   : > { %v6013_v15 = vpop.f32.mrf.mxu2 }
 0x551   : > { %v6063_v58 = vadd.f32 %v6062_v35, %v6013_v15  ;;  %v11435_v35 = vld [vmem:[#allocation11 + $0x998] sm:$0xf0]  ;;  %v11370_v15 = vor.u32 %v12103_v26, %v11369_v20 }
 0x552   : > { %v5918_v41 = vpop.f32.mrf.mxu0  ;;  %v11438_v56 = vor.u32 %v12118_v47, %v11435_v35  ;;  %v11363_v35 = vld [vmem:[#allocation11 + $0x908] sm:$0xf0] }
 0x553   : > { %v14497_v7 = vadd.f32 %v6063_v58, %v14365_v50  ;;  %v5968_v31 = vadd.f32 %v5967_v25, %v5918_v41  ;;  %v5974_v55 = vpop.f32.mrf.mxu1  ;;  %v6142_v50 = vld [vmem:[#allocation2 + $0x388] sm:$0xff]  ;;  %6833 = vmatpush.bf16.msrb.mxu0 %v11370_v15 }
 0x554   : > { %6980 = vmatpush.bf16.msrb.mxu3 %v11438_v56  ;;  %v6162_v46 = vpack.c.bf16 %v6144_v3, %v6142_v50  ;;  %v12116_v56 = vld [vmem:[#allocation11 + $0x984] sm:$0xf]  ;;  %v11361_v15 = vld [vmem:[#allocation11 + $0x900] sm:$0xf] }
 0x555   : > { %v14500_v14 = vadd.f32 %v5968_v31, %v14371_v30  ;;  %6386 = vmatmul.bf16.gmra.mxu0 %v6157_v60  ;;  %6484 = vmatmul.bf16.gmra.mxu2 %v6157_v60 }
 0x556   : > { %v6072_v36 = vpop.f32.mrf.mxu3 }
 0x558   : > { %v6016_v12 = vpop.f32.mrf.mxu2 }
 0x559   : > { %v6066_v53 = vadd.f32 %v6065_v10, %v6016_v12  ;;  %v11434_v10 = vor.u32 %v12119_v52, %v11433_v16  ;;  %v11366_v12 = vor.u32 %v12100_v19, %v11363_v35  ;;  %v12101_v52 = vld [vmem:[#allocation11 + $0x904] sm:$0xf0] }
 0x55a   : > { %v5920_v25 = vpop.f32.mrf.mxu0 }
 0x55b   : > { %v14503_v42 = vadd.f32 %v6066_v53, %v14379_v23  ;;  %v5970_v30 = vadd.f32 %v5969_v54, %v5920_v25  ;;  %v5977_v58 = vpop.f32.mrf.mxu1  ;;  %6543 = vmatmul.bf16.gmra.mxu3 %v6162_v46  ;;  %6882 = vmatpush.bf16.msrb.mxu1 %v11434_v10  ;;  %v6139_v54 = vld [vmem:[#allocation2 + $0x340] sm:$0xff]  ;;  %v11425_v10 = vld [vmem:[#allocation11 + $0x980] sm:$0xf] }
 0x55c   : > { %6445 = vmatmul.bf16.gmra.mxu1 %v6162_v46  ;;  %v6159_v57 = vpack.c.bf16 %v6139_v54, %v6137_v22  ;;  %6932 = vmatpush.bf16.msrb.mxu2 %v11366_v12  ;;  %v12117_v22 = vld [vmem:[#allocation11 + $0x984] sm:$0xf0]  ;;  %v6141_v54 = vld [vmem:[#allocation2 + $0x380] sm:$0xff]  ;;  %v12146_v12 = vld [vmem:[#allocation11 + $0xa74] sm:$0xf] }
 0x55d   : > { %v14506_v17 = vadd.f32 %v5970_v30, %v14385_v5  ;;  %v6148_v30 = vld [vmem:[#allocation2 + $0x448] sm:$0xff] }
 0x55e   : > { %v6075_v33 = vpop.f32.mrf.mxu3 }
 0x560   : > { %v6018_v41 = vpop.f32.mrf.mxu2 }
 0x561   : > { %v6068_v31 = vadd.f32 %v6067_v28, %v6018_v41  ;;  %v11427_v28 = vld [vmem:[#allocation11 + $0x988] sm:$0xf0]  ;;  %v11362_v41 = vor.u32 %v12101_v52, %v11361_v15 }
 0x562   : > { %v5923_v23 = vpop.f32.mrf.mxu0  ;;  %v11430_v50 = vor.u32 %v12116_v56, %v11427_v28  ;;  %v11547_v28 = vld [vmem:[#allocation11 + $0xa78] sm:$0xf0] }
 0x563   : > { %v14509_v60 = vadd.f32 %v6068_v31, %v14393_v2  ;;  %v5973_v5 = vadd.f32 %v5972_v9, %v5923_v23  ;;  %v5979_v53 = vpop.f32.mrf.mxu1  ;;  %v6146_v2 = vld [vmem:[#allocation2 + $0x408] sm:$0xff]  ;;  %6834 = vmatpush.bf16.msrb.mxu0 %v11362_v41  ;;  %v11545_v41 = vld [vmem:[#allocation11 + $0xa70] sm:$0xf] }
 0x564   : > { %6981 = vmatpush.bf16.msrb.mxu3 %v11430_v50  ;;  %v6164_v26 = vpack.c.bf16 %v6148_v30, %v6146_v2  ;;  %v12162_v50 = vld [vmem:[#allocation11 + $0xaf4] sm:$0xf] }
 0x565   : > { %v14512_v47 = vadd.f32 %v5973_v5, %v14399_v0  ;;  %6391 = vmatmul.bf16.gmra.mxu0 %v6159_v57  ;;  %6489 = vmatmul.bf16.gmra.mxu2 %v6159_v57 }
 0x566   : > { %v6077_v20 = vpop.f32.mrf.mxu3 }
 0x568   : > { %v6021_v3 = vpop.f32.mrf.mxu2 }
 0x569   : > { %v6071_v25 = vadd.f32 %v6070_v24, %v6021_v3  ;;  %v11426_v24 = vor.u32 %v12117_v22, %v11425_v10  ;;  %v11550_v3 = vor.u32 %v12146_v12, %v11547_v28  ;;  %v12147_v22 = vld [vmem:[#allocation11 + $0xa74] sm:$0xf0] }
 0x56a   : > { %v5925_v9 = vpop.f32.mrf.mxu0 }
 0x56b   : > { %v14515_v46 = vadd.f32 %v6071_v25, %v14405_v63  ;;  %v5975_v0 = vadd.f32 %v5974_v55, %v5925_v9  ;;  %v5982_v31 = vpop.f32.mrf.mxu1  ;;  %6548 = vmatmul.bf16.gmra.mxu3 %v6164_v26  ;;  %6883 = vmatpush.bf16.msrb.mxu1 %v11426_v24  ;;  %v6143_v55 = vld [vmem:[#allocation2 + $0x3c0] sm:$0xff]  ;;  %v11609_v24 = vld [vmem:[#allocation11 + $0xaf0] sm:$0xf] }
 0x56c   : > { %6450 = vmatmul.bf16.gmra.mxu1 %v6164_v26  ;;  %v6161_v19 = vpack.c.bf16 %v6143_v55, %v6141_v54  ;;  %7618 = vmatpush.bf16.msra.mxu2 %v11550_v3  ;;  %v12163_v54 = vld [vmem:[#allocation11 + $0xaf4] sm:$0xf0]  ;;  %v12144_v3 = vld [vmem:[#allocation11 + $0xa64] sm:$0xf] }
 0x56d   : > { %v14518_v16 = vadd.f32 %v5975_v0, %v14411_v38  ;;  %v6589_v0 = vld [vmem:[#allocation2 + $0xd8] sm:$0xff]  ;;  %v6145_v55 = vld [vmem:[#allocation2 + $0x400] sm:$0xff] }
 0x56e   : > { %v6080_v35 = vpop.f32.mrf.mxu3 }
 0x570   : > { %v6023_v23 = vpop.f32.mrf.mxu2 }
 0x571   : > { %v6073_v5 = vadd.f32 %v6072_v36, %v6023_v23  ;;  %v11611_v36 = vld [vmem:[#allocation11 + $0xaf8] sm:$0xf0]  ;;  %v11546_v23 = vor.u32 %v12147_v22, %v11545_v41 }
 0x572   : > { %v5928_v63 = vpop.f32.mrf.mxu0  ;;  %v11614_v2 = vor.u32 %v12162_v50, %v11611_v36  ;;  %v11539_v36 = vld [vmem:[#allocation11 + $0xa68] sm:$0xf0] }
 0x573   : > { %v14521_v57 = vadd.f32 %v6073_v5, %v14417_v11  ;;  %v5978_v38 = vadd.f32 %v5977_v58, %v5928_v63  ;;  %v5984_v25 = vpop.f32.mrf.mxu1  ;;  %v6587_v11 = vld [vmem:[#allocation2 + $0x98] sm:$0xff]  ;;  %7520 = vmatpush.bf16.msra.mxu0 %v11546_v23  ;;  %v11537_v23 = vld [vmem:[#allocation11 + $0xa60] sm:$0xf] }
 0x574   : > { %7667 = vmatpush.bf16.msra.mxu3 %v11614_v2  ;;  %v6619_v52 = vpack.c.bf16 %v6589_v0, %v6587_v11  ;;  %v12160_v2 = vld [vmem:[#allocation11 + $0xae4] sm:$0xf] }
 0x575   : > { %v14524_v56 = vadd.f32 %v5978_v38, %v14423_v44  ;;  %6396 = vmatmul.bf16.gmra.mxu0 %v6161_v19  ;;  %6494 = vmatmul.bf16.gmra.mxu2 %v6161_v19  ;;  %v6147_v38 = vld [vmem:[#allocation2 + $0x440] sm:$0xff] }
 0x576   : > { %v6082_v15 = vpop.f32.mrf.mxu3  ;;  %v6163_v12 = vpack.c.bf16 %v6147_v38, %v6145_v55  ;;  %v12161_v55 = vld [vmem:[#allocation11 + $0xae4] sm:$0xf0] }
 0x578   : > { %v6026_v30 = vpop.f32.mrf.mxu2 }
 0x579   : > { %v6076_v9 = vadd.f32 %v6075_v33, %v6026_v30  ;;  %v11610_v33 = vor.u32 %v12163_v54, %v11609_v24  ;;  %v11542_v30 = vor.u32 %v12144_v3, %v11539_v36  ;;  %v12145_v54 = vld [vmem:[#allocation11 + $0xa64] sm:$0xf0] }
 0x57a   : > { %v5930_v58 = vpop.f32.mrf.mxu0 }
 0x57b   : > { %v14527_v26 = vadd.f32 %v6076_v9, %v14427_v62  ;;  %v5980_v44 = vadd.f32 %v5979_v53, %v5930_v58  ;;  %v6416_v5 = vpop.f32.mrf.mxu1  ;;  %6982 = vmatmul.bf16.vlgmr.msrb.gmra.mxu3 %v6619_v52  ;;  %7569 = vmatpush.bf16.msra.mxu1 %v11610_v33  ;;  %v11603_v9 = vld [vmem:[#allocation11 + $0xae8] sm:$0xf0]  ;;  %v11601_v33 = vld [vmem:[#allocation11 + $0xae0] sm:$0xf] }
 0x57c   : > { %6884 = vmatmul.bf16.vlgmr.msrb.gmra.mxu1 %v6619_v52  ;;  %v11606_v11 = vor.u32 %v12160_v2, %v11603_v9  ;;  %7619 = vmatpush.bf16.msra.mxu2 %v11542_v30  ;;  %v12142_v30 = vld [vmem:[#allocation11 + $0xa54] sm:$0xf]  ;;  %v11531_v9 = vld [vmem:[#allocation11 + $0xa58] sm:$0xf0] }
 0x57d   : > { %v14530_v10 = vadd.f32 %v5980_v44, %v14430_v43  ;;  %v6593_v44 = vld [vmem:[#allocation2 + $0x158] sm:$0xff] }
 0x57e   : > { %v6514_v28 = vpop.f32.mrf.mxu3  ;;  %7668 = vmatpush.bf16.msra.mxu3 %v11606_v11  ;;  %v12158_v11 = vld [vmem:[#allocation11 + $0xad4] sm:$0xf] }
 0x580   : > { %v6028_v63 = vpop.f32.mrf.mxu2 }
 0x581   : > { %v6078_v62 = vadd.f32 %v6077_v20, %v6028_v63  ;;  %v11538_v63 = vor.u32 %v12145_v54, %v11537_v23 }
 0x582   : > { %v5933_v53 = vpop.f32.mrf.mxu0 }
 0x583   : > { %v14533_v19 = vadd.f32 %v6078_v62, %v14436_v37  ;;  %v5983_v43 = vadd.f32 %v5982_v31, %v5933_v53  ;;  %v6418_v20 = vpop.f32.mrf.mxu1  ;;  %v6591_v37 = vld [vmem:[#allocation2 + $0x118] sm:$0xff]  ;;  %v6586_v53 = vld [vmem:[#allocation2 + $0x90] sm:$0xff]  ;;  %7521 = vmatpush.bf16.msra.mxu0 %v11538_v63 }
 0x584   : > { %v6621_v22 = vpack.c.bf16 %v6593_v44, %v6591_v37  ;;  %v11529_v63 = vld [vmem:[#allocation11 + $0xa50] sm:$0xf] }
 0x585   : > { %v14536_v50 = vadd.f32 %v5983_v43, %v14439_v4  ;;  %6401 = vmatmul.bf16.gmra.mxu0 %v6163_v12  ;;  %6499 = vmatmul.bf16.gmra.mxu2 %v6163_v12 }
 0x586   : > { %v6516_v41 = vpop.f32.mrf.mxu3 }
 0x588   : > { %v6031_v0 = vpop.f32.mrf.mxu2 }
 0x589   : > { %v6081_v58 = vadd.f32 %v6080_v35, %v6031_v0  ;;  %v11602_v35 = vor.u32 %v12161_v55, %v11601_v33  ;;  %v11534_v0 = vor.u32 %v12142_v30, %v11531_v9  ;;  %v12143_v55 = vld [vmem:[#allocation11 + $0xa54] sm:$0xf0] }
 0x58a   : > { %v5935_v31 = vpop.f32.mrf.mxu0 }
 0x58b   : > { %v14539_v52 = vadd.f32 %v6081_v58, %v14443_v8  ;;  %v5985_v4 = vadd.f32 %v5984_v25, %v5935_v31  ;;  %v6421_v38 = vpop.f32.mrf.mxu1  ;;  %6987 = vmatmul.bf16.gmra.mxu3 %v6621_v22  ;;  %7570 = vmatpush.bf16.msra.mxu1 %v11602_v35  ;;  %v6588_v25 = vld [vmem:[#allocation2 + $0xd0] sm:$0xff]  ;;  %v11593_v35 = vld [vmem:[#allocation11 + $0xad0] sm:$0xf] }
 0x58c   : > { %6889 = vmatmul.bf16.gmra.mxu1 %v6621_v22  ;;  %v6618_v3 = vpack.c.bf16 %v6588_v25, %v6586_v53  ;;  %7620 = vmatpush.bf16.msra.mxu2 %v11534_v0  ;;  %v12159_v53 = vld [vmem:[#allocation11 + $0xad4] sm:$0xf0]  ;;  %v6590_v25 = vld [vmem:[#allocation2 + $0x110] sm:$0xff]  ;;  %v12140_v0 = vld [vmem:[#allocation11 + $0xa44] sm:$0xf] }
 0x58d   : > { %v14542_v24 = vadd.f32 %v5985_v4, %v14446_v49  ;;  %v6597_v4 = vld [vmem:[#allocation2 + $0x1d8] sm:$0xff] }
 0x58e   : > { %v6519_v36 = vpop.f32.mrf.mxu3 }
 0x590   : > { %v6033_v62 = vpop.f32.mrf.mxu2 }
 0x591   : > { %v6083_v43 = vadd.f32 %v6082_v15, %v6033_v62  ;;  %v11595_v15 = vld [vmem:[#allocation11 + $0xad8] sm:$0xf0]  ;;  %v11530_v62 = vor.u32 %v12143_v55, %v11529_v63 }
 0x592   : > { %v6367_v8 = vpop.f32.mrf.mxu0  ;;  %v11598_v37 = vor.u32 %v12158_v11, %v11595_v15  ;;  %v11523_v15 = vld [vmem:[#allocation11 + $0xa48] sm:$0xf0] }
 0x593   : > { %v14545_v12 = vadd.f32 %v6083_v43, %v14449_v6  ;;  %v6417_v49 = vadd.f32 %v6416_v5, %v6367_v8  ;;  %v6423_v58 = vpop.f32.mrf.mxu1  ;;  %v6595_v6 = vld [vmem:[#allocation2 + $0x198] sm:$0xff]  ;;  %7522 = vmatpush.bf16.msra.mxu0 %v11530_v62  ;;  %v11521_v62 = vld [vmem:[#allocation11 + $0xa40] sm:$0xf] }
 0x594   : > { %7669 = vmatpush.bf16.msra.mxu3 %v11598_v37  ;;  %v6623_v54 = vpack.c.bf16 %v6597_v4, %v6595_v6  ;;  %v12156_v37 = vld [vmem:[#allocation11 + $0xac4] sm:$0xf] }
 0x595   : > { %v14548_v2 = vadd.f32 %v6417_v49, %v14452_v32  ;;  %6835 = vmatmul.bf16.vlgmr.msrb.gmra.mxu0 %v6618_v3  ;;  %6933 = vmatmul.bf16.vlgmr.msrb.gmra.mxu2 %v6618_v3 }
 0x596   : > { %v6521_v23 = vpop.f32.mrf.mxu3 }
 0x598   : > { %v6465_v44 = vpop.f32.mrf.mxu2 }
 0x599   : > { %v6515_v31 = vadd.f32 %v6514_v28, %v6465_v44  ;;  %v11594_v28 = vor.u32 %v12159_v53, %v11593_v35  ;;  %v11526_v44 = vor.u32 %v12140_v0, %v11523_v15  ;;  %v12141_v53 = vld [vmem:[#allocation11 + $0xa44] sm:$0xf0] }
 0x59a   : > { %v6369_v5 = vpop.f32.mrf.mxu0 }
 0x59b   : > { %v14551_v22 = vadd.f32 %v6515_v31, %v14455_v1  ;;  %v6419_v32 = vadd.f32 %v6418_v20, %v6369_v5  ;;  %v6426_v43 = vpop.f32.mrf.mxu1  ;;  %6992 = vmatmul.bf16.gmra.mxu3 %v6623_v54  ;;  %7571 = vmatpush.bf16.msra.mxu1 %v11594_v28  ;;  %v6592_v20 = vld [vmem:[#allocation2 + $0x150] sm:$0xff]  ;;  %v11585_v28 = vld [vmem:[#allocation11 + $0xac0] sm:$0xf] }
 0x59c   : > { %6894 = vmatmul.bf16.gmra.mxu1 %v6623_v54  ;;  %v6620_v30 = vpack.c.bf16 %v6592_v20, %v6590_v25  ;;  %7621 = vmatpush.bf16.msra.mxu2 %v11526_v44  ;;  %v12157_v25 = vld [vmem:[#allocation11 + $0xac4] sm:$0xf0]  ;;  %v12138_v44 = vld [vmem:[#allocation11 + $0xa34] sm:$0xf] }
 0x59d   : > { %v14554_v33 = vadd.f32 %v6419_v32, %v14458_v18  ;;  %v6601_v32 = vld [vmem:[#allocation2 + $0x258] sm:$0xff]  ;;  %v6594_v20 = vld [vmem:[#allocation2 + $0x190] sm:$0xff] }
 0x59e   : > { %v6524_v9 = vpop.f32.mrf.mxu3 }
 0x5a0   : > { %v6467_v8 = vpop.f32.mrf.mxu2 }
 0x5a1   : > { %v6517_v49 = vadd.f32 %v6516_v41, %v6467_v8  ;;  %v11587_v41 = vld [vmem:[#allocation11 + $0xac8] sm:$0xf0]  ;;  %v11522_v8 = vor.u32 %v12141_v53, %v11521_v62 }
 0x5a2   : > { %v6372_v1 = vpop.f32.mrf.mxu0  ;;  %v11590_v6 = vor.u32 %v12156_v37, %v11587_v41  ;;  %v11515_v41 = vld [vmem:[#allocation11 + $0xa38] sm:$0xf0] }
 0x5a3   : > { %v14557_v3 = vadd.f32 %v6517_v49, %v14461_v59  ;;  %v6422_v18 = vadd.f32 %v6421_v38, %v6372_v1  ;;  %v6428_v31 = vpop.f32.mrf.mxu1  ;;  %v6599_v59 = vld [vmem:[#allocation2 + $0x218] sm:$0xff]  ;;  %7523 = vmatpush.bf16.msra.mxu0 %v11522_v8 }
 0x5a4   : > { %7670 = vmatpush.bf16.msra.mxu3 %v11590_v6  ;;  %v6625_v55 = vpack.c.bf16 %v6601_v32, %v6599_v59  ;;  %v12154_v6 = vld [vmem:[#allocation11 + $0xab4] sm:$0xf]  ;;  %v11513_v8 = vld [vmem:[#allocation11 + $0xa30] sm:$0xf] }
 0x5a5   : > { %v14560_v11 = vadd.f32 %v6422_v18, %v14464_v39  ;;  %6840 = vmatmul.bf16.gmra.mxu0 %v6620_v30  ;;  %6938 = vmatmul.bf16.gmra.mxu2 %v6620_v30 }
 0x5a6   : > { %v6526_v63 = vpop.f32.mrf.mxu3 }
 0x5a8   : > { %v6470_v4 = vpop.f32.mrf.mxu2 }
 0x5a9   : > { %v6520_v5 = vadd.f32 %v6519_v36, %v6470_v4  ;;  %v11586_v36 = vor.u32 %v12157_v25, %v11585_v28  ;;  %v11518_v4 = vor.u32 %v12138_v44, %v11515_v41  ;;  %v12139_v25 = vld [vmem:[#allocation11 + $0xa34] sm:$0xf0] }
 0x5aa   : > { %v6374_v38 = vpop.f32.mrf.mxu0 }
 0x5ab   : > { %v14563_v54 = vadd.f32 %v6520_v5, %v14467_v61  ;;  %v6424_v39 = vadd.f32 %v6423_v58, %v6374_v38  ;;  %v6431_v49 = vpop.f32.mrf.mxu1  ;;  %6997 = vmatmul.bf16.gmra.mxu3 %v6625_v55  ;;  %7572 = vmatpush.bf16.msra.mxu1 %v11586_v36  ;;  %v6596_v58 = vld [vmem:[#allocation2 + $0x1d0] sm:$0xff]  ;;  %v11577_v36 = vld [vmem:[#allocation11 + $0xab0] sm:$0xf] }
 0x5ac   : > { %6899 = vmatmul.bf16.gmra.mxu1 %v6625_v55  ;;  %v6622_v0 = vpack.c.bf16 %v6596_v58, %v6594_v20  ;;  %7622 = vmatpush.bf16.msra.mxu2 %v11518_v4  ;;  %v12155_v20 = vld [vmem:[#allocation11 + $0xab4] sm:$0xf0]  ;;  %v6598_v58 = vld [vmem:[#allocation2 + $0x210] sm:$0xff]  ;;  %v12136_v4 = vld [vmem:[#allocation11 + $0xa24] sm:$0xf] }
 0x5ad   : > { %v14566_v35 = vadd.f32 %v6424_v39, %v14470_v45  ;;  %v6605_v39 = vld [vmem:[#allocation2 + $0x2d8] sm:$0xff] }
 0x5ae   : > { %v6529_v15 = vpop.f32.mrf.mxu3 }
 0x5b0   : > { %v6472_v1 = vpop.f32.mrf.mxu2 }
 0x5b1   : > { %v6522_v18 = vadd.f32 %v6521_v23, %v6472_v1  ;;  %v11579_v23 = vld [vmem:[#allocation11 + $0xab8] sm:$0xf0]  ;;  %v11514_v1 = vor.u32 %v12139_v25, %v11513_v8 }
 0x5b2   : > { %v6377_v61 = vpop.f32.mrf.mxu0  ;;  %v11582_v59 = vor.u32 %v12154_v6, %v11579_v23  ;;  %v11507_v23 = vld [vmem:[#allocation11 + $0xa28] sm:$0xf0] }
 0x5b3   : > { %v14569_v30 = vadd.f32 %v6522_v18, %v14473_v34  ;;  %v6427_v45 = vadd.f32 %v6426_v43, %v6377_v61  ;;  %v6433_v5 = vpop.f32.mrf.mxu1  ;;  %v6603_v34 = vld [vmem:[#allocation2 + $0x298] sm:$0xff]  ;;  %7524 = vmatpush.bf16.msra.mxu0 %v11514_v1  ;;  %v11505_v1 = vld [vmem:[#allocation11 + $0xa20] sm:$0xf] }
 0x5b4   : > { %7671 = vmatpush.bf16.msra.mxu3 %v11582_v59  ;;  %v6627_v53 = vpack.c.bf16 %v6605_v39, %v6603_v34  ;;  %v12152_v59 = vld [vmem:[#allocation11 + $0xaa4] sm:$0xf] }
 0x5b5   : > { %v14572_v37 = vadd.f32 %v6427_v45, %v14476_v21  ;;  %6845 = vmatmul.bf16.gmra.mxu0 %v6622_v0  ;;  %6943 = vmatmul.bf16.gmra.mxu2 %v6622_v0 }
 0x5b6   : > { %v6531_v62 = vpop.f32.mrf.mxu3 }
 0x5b8   : > { %v6475_v32 = vpop.f32.mrf.mxu2 }
 0x5b9   : > { %v6525_v38 = vadd.f32 %v6524_v9, %v6475_v32  ;;  %v11578_v9 = vor.u32 %v12155_v20, %v11577_v36  ;;  %v11510_v32 = vor.u32 %v12136_v4, %v11507_v23  ;;  %v12137_v20 = vld [vmem:[#allocation11 + $0xa24] sm:$0xf0] }
 0x5ba   : > { %v6379_v43 = vpop.f32.mrf.mxu0 }
 0x5bb   : > { %v14575_v55 = vadd.f32 %v6525_v38, %v14479_v13  ;;  %v6429_v21 = vadd.f32 %v6428_v31, %v6379_v43  ;;  %v6436_v18 = vpop.f32.mrf.mxu1  ;;  %7002 = vmatmul.bf16.gmra.mxu3 %v6627_v53  ;;  %7573 = vmatpush.bf16.msra.mxu1 %v11578_v9  ;;  %v6600_v31 = vld [vmem:[#allocation2 + $0x250] sm:$0xff]  ;;  %v11569_v9 = vld [vmem:[#allocation11 + $0xaa0] sm:$0xf] }
 0x5bc   : > { %6904 = vmatmul.bf16.gmra.mxu1 %v6627_v53  ;;  %v6624_v44 = vpack.c.bf16 %v6600_v31, %v6598_v58  ;;  %7623 = vmatpush.bf16.msra.mxu2 %v11510_v32  ;;  %v12153_v58 = vld [vmem:[#allocation11 + $0xaa4] sm:$0xf0]  ;;  %v12134_v32 = vld [vmem:[#allocation11 + $0xa14] sm:$0xf] }
 0x5bd   : > { %v14578_v28 = vadd.f32 %v6429_v21, %v14482_v27  ;;  %v6609_v21 = vld [vmem:[#allocation2 + $0x358] sm:$0xff]  ;;  %v6602_v31 = vld [vmem:[#allocation2 + $0x290] sm:$0xff] }
 0x5be   : > { %v6534_v41 = vpop.f32.mrf.mxu3 }
 0x5c0   : > { %v6477_v61 = vpop.f32.mrf.mxu2 }
 0x5c1   : > { %v6527_v45 = vadd.f32 %v6526_v63, %v6477_v61  ;;  %v11571_v63 = vld [vmem:[#allocation11 + $0xaa8] sm:$0xf0]  ;;  %v11506_v61 = vor.u32 %v12137_v20, %v11505_v1 }
 0x5c2   : > { %v6382_v13 = vpop.f32.mrf.mxu0  ;;  %v11574_v34 = vor.u32 %v12152_v59, %v11571_v63  ;;  %v11499_v63 = vld [vmem:[#allocation11 + $0xa18] sm:$0xf0] }
 0x5c3   : > { %v14581_v0 = vadd.f32 %v6527_v45, %v14485_v40  ;;  %v6432_v27 = vadd.f32 %v6431_v49, %v6382_v13  ;;  %v6438_v38 = vpop.f32.mrf.mxu1  ;;  %v6607_v40 = vld [vmem:[#allocation2 + $0x318] sm:$0xff]  ;;  %7525 = vmatpush.bf16.msra.mxu0 %v11506_v61 }
 0x5c4   : > { %7672 = vmatpush.bf16.msra.mxu3 %v11574_v34  ;;  %v6629_v25 = vpack.c.bf16 %v6609_v21, %v6607_v40  ;;  %v12150_v34 = vld [vmem:[#allocation11 + $0xa94] sm:$0xf]  ;;  %v11497_v61 = vld [vmem:[#allocation11 + $0xa10] sm:$0xf] }
 0x5c5   : > { %v14584_v6 = vadd.f32 %v6432_v27, %v14488_v48  ;;  %6850 = vmatmul.bf16.gmra.mxu0 %v6624_v44  ;;  %6948 = vmatmul.bf16.gmra.mxu2 %v6624_v44 }
 0x5c6   : > { %v6536_v8 = vpop.f32.mrf.mxu3 }
 0x5c8   : > { %v6480_v39 = vpop.f32.mrf.mxu2 }
 0x5c9   : > { %v6530_v43 = vadd.f32 %v6529_v15, %v6480_v39  ;;  %v11570_v15 = vor.u32 %v12153_v58, %v11569_v9  ;;  %v11502_v39 = vor.u32 %v12134_v32, %v11499_v63  ;;  %v12135_v58 = vld [vmem:[#allocation11 + $0xa14] sm:$0xf0] }
 0x5ca   : > { %v6384_v49 = vpop.f32.mrf.mxu0 }
 0x5cb   : > { %v14587_v53 = vadd.f32 %v6530_v43, %v14491_v29  ;;  %v6434_v48 = vadd.f32 %v6433_v5, %v6384_v49  ;;  %v6441_v45 = vpop.f32.mrf.mxu1  ;;  %7007 = vmatmul.bf16.gmra.mxu3 %v6629_v25  ;;  %7574 = vmatpush.bf16.msra.mxu1 %v11570_v15  ;;  %v6604_v5 = vld [vmem:[#allocation2 + $0x2d0] sm:$0xff]  ;;  %v11561_v15 = vld [vmem:[#allocation11 + $0xa90] sm:$0xf] }
 0x5cc   : > { %6909 = vmatmul.bf16.gmra.mxu1 %v6629_v25  ;;  %v6626_v4 = vpack.c.bf16 %v6604_v5, %v6602_v31  ;;  %7624 = vmatpush.bf16.msra.mxu2 %v11502_v39  ;;  %v12151_v31 = vld [vmem:[#allocation11 + $0xa94] sm:$0xf0]  ;;  %v6606_v5 = vld [vmem:[#allocation2 + $0x310] sm:$0xff]  ;;  %v12132_v39 = vld [vmem:[#allocation11 + $0xa04] sm:$0xf] }
 0x5cd   : > { %v14590_v36 = vadd.f32 %v6434_v48, %v14494_v51  ;;  %v6613_v48 = vld [vmem:[#allocation2 + $0x3d8] sm:$0xff] }
 0x5ce   : > { %v6539_v23 = vpop.f32.mrf.mxu3 }
 0x5d0   : > { %v6482_v13 = vpop.f32.mrf.mxu2 }
 0x5d1   : > { %v6532_v27 = vadd.f32 %v6531_v62, %v6482_v13  ;;  %v11563_v62 = vld [vmem:[#allocation11 + $0xa98] sm:$0xf0]  ;;  %v11498_v13 = vor.u32 %v12135_v58, %v11497_v61 }
 0x5d2   : > { %v6387_v29 = vpop.f32.mrf.mxu0  ;;  %v11566_v40 = vor.u32 %v12150_v34, %v11563_v62  ;;  %v11491_v62 = vld [vmem:[#allocation11 + $0xa08] sm:$0xf0] }
 0x5d3   : > { %v14593_v44 = vadd.f32 %v6532_v27, %v14497_v7  ;;  %v6437_v51 = vadd.f32 %v6436_v18, %v6387_v29  ;;  %v6443_v43 = vpop.f32.mrf.mxu1  ;;  %v6611_v7 = vld [vmem:[#allocation2 + $0x398] sm:$0xff]  ;;  %7526 = vmatpush.bf16.msra.mxu0 %v11498_v13  ;;  %v11489_v13 = vld [vmem:[#allocation11 + $0xa00] sm:$0xf] }
 0x5d4   : > { %7673 = vmatpush.bf16.msra.mxu3 %v11566_v40  ;;  %v6631_v20 = vpack.c.bf16 %v6613_v48, %v6611_v7  ;;  %v12148_v40 = vld [vmem:[#allocation11 + $0xa84] sm:$0xf] }
 0x5d5   : > { %v14596_v59 = vadd.f32 %v6437_v51, %v14500_v14  ;;  %6855 = vmatmul.bf16.gmra.mxu0 %v6626_v4  ;;  %6953 = vmatmul.bf16.gmra.mxu2 %v6626_v4 }
 0x5d6   : > { %v6541_v1 = vpop.f32.mrf.mxu3 }
 0x5d8   : > { %v6485_v21 = vpop.f32.mrf.mxu2 }
 0x5d9   : > { %v6535_v49 = vadd.f32 %v6534_v41, %v6485_v21  ;;  %v11562_v41 = vor.u32 %v12151_v31, %v11561_v15  ;;  %v11555_v21 = vld [vmem:[#allocation11 + $0xa88] sm:$0xf0]  ;;  %v12133_v31 = vld [vmem:[#allocation11 + $0xa04] sm:$0xf0] }
 0x5da   : > { %v6389_v18 = vpop.f32.mrf.mxu0  ;;  %v11558_v7 = vor.u32 %v12148_v40, %v11555_v21 }
 0x5db   : > { %v14599_v25 = vadd.f32 %v6535_v49, %v14503_v42  ;;  %v6439_v14 = vadd.f32 %v6438_v38, %v6389_v18  ;;  %v6446_v27 = vpop.f32.mrf.mxu1  ;;  %7012 = vmatmul.bf16.gmra.mxu3 %v6631_v20  ;;  %7575 = vmatpush.bf16.msra.mxu1 %v11562_v41  ;;  %v6608_v38 = vld [vmem:[#allocation2 + $0x350] sm:$0xff]  ;;  %v6615_v18 = vld [vmem:[#allocation2 + $0x418] sm:$0xff]  ;;  %v11553_v41 = vld [vmem:[#allocation11 + $0xa80] sm:$0xf] }
 0x5dc   : > { %6914 = vmatmul.bf16.gmra.mxu1 %v6631_v20  ;;  %v6628_v32 = vpack.c.bf16 %v6608_v38, %v6606_v5  ;;  %7674 = vmatpush.bf16.msra.mxu3 %v11558_v7  ;;  %v12149_v5 = vld [vmem:[#allocation11 + $0xa84] sm:$0xf0] }
 0x5dd   : > { %v14602_v9 = vadd.f32 %v6439_v14, %v14506_v17  ;;  %v6610_v38 = vld [vmem:[#allocation2 + $0x390] sm:$0xff] }
 0x5de   : > { %v14607_v63 = vpop.f32.mrf.mxu3 }
 0x5e0   : > { %v6487_v29 = vpop.f32.mrf.mxu2 }
 0x5e1   : > { %v6537_v51 = vadd.f32 %v6536_v8, %v6487_v29  ;;  %v11494_v8 = vor.u32 %v12132_v39, %v11491_v62  ;;  %v11490_v29 = vor.u32 %v12133_v31, %v11489_v13  ;;  %v7062_v39 = vld [vmem:[#allocation2 + $0xe8] sm:$0x1]  ;;  %v6612_v62 = vld [vmem:[#allocation2 + $0x3d0] sm:$0xff]  ;;  %v12194_v13 = vld [vmem:[#allocation11 + $0xbf4] sm:$0xf] }
 0x5e2   : > { %v6392_v42 = vpop.f32.mrf.mxu0  ;;  %v6630_v21 = vpack.c.bf16 %v6612_v62, %v6610_v38  ;;  %v11739_v31 = vld [vmem:[#allocation11 + $0xbf8] sm:$0xf0]  ;;  %v12195_v62 = vld [vmem:[#allocation11 + $0xbf4] sm:$0xf0] }
 0x5e3   : > { %v14605_v4 = vadd.f32 %v6537_v51, %v14509_v60  ;;  %v6442_v17 = vadd.f32 %v6441_v45, %v6392_v42  ;;  %v6448_v49 = vpop.f32.mrf.mxu1  ;;  %7625 = vmatpush.bf16.msra.mxu2 %v11494_v8  ;;  %v6617_v45 = vld [vmem:[#allocation2 + $0x458] sm:$0xff]  ;;  %v11554_v51 = vor.u32 %v12149_v5, %v11553_v41  ;;  %7527 = vmatpush.bf16.msra.mxu0 %v11490_v29 }
 0x5e4   : > { %v6633_v58 = vpack.c.bf16 %v6617_v45, %v6615_v18  ;;  %v7193_v45 = vrot.slane %v7062_v39, 1  ;;  %v11742_v41 = vor.u32 %v12194_v13, %v11739_v31  ;;  %v12179_v39 = vld [vmem:[#allocation11 + $0xb74] sm:$0xf0] }
 0x5e5   : > { %v14610_v34 = vadd.f32 %v6442_v17, %v14512_v47  ;;  %6860 = vmatmul.bf16.gmra.mxu0 %v6628_v32  ;;  %6958 = vmatmul.bf16.gmra.mxu2 %v6628_v32  ;;  %v7058_v17 = vld [vmem:[#allocation2 + $0xa8] sm:$0x1]  ;;  %v7060_v32 = vld [vmem:[#allocation2 + $0xc8] sm:$0xfe] }
 0x5e6   : > { %v14615_v61 = vpop.f32.mrf.mxu3  ;;  %7576 = vmatpush.bf16.msra.mxu1 %v11554_v51  ;;  %v7192_v18 = vrot.slane %v7060_v32, 1  ;;  %8360 = vmatpush.bf16.msrb.mxu3 %v11742_v41  ;;  %v11673_v32 = vld [vmem:[#allocation11 + $0xb70] sm:$0xf] }
 0x5e8   : > { %v6490_v48 = vpop.f32.mrf.mxu2  ;;  %v7194_v51 = vsel %vm2534_vm1, %v7192_v18, %v7193_v45  ;;  %v6616_v18 = vld [vmem:[#allocation2 + $0x450] sm:$0xff]  ;;  %v7066_v45 = vld [vmem:[#allocation2 + $0x128] sm:$0x1] }
 0x5e9   : > { %v6540_v60 = vadd.f32 %v6539_v23, %v6490_v48 }
 0x5ea   : > { %v6394_v14 = vpop.f32.mrf.mxu0 }
 0x5eb   : > { %v14613_v20 = vadd.f32 %v6540_v60, %v14515_v46  ;;  %v6444_v47 = vadd.f32 %v6443_v43, %v6394_v14  ;;  %v14620_v23 = vpop.f32.mrf.mxu1  ;;  %7017 = vmatmul.bf16.gmra.mxu3 %v6633_v58  ;;  %v7056_v46 = vld [vmem:[#allocation2 + $0x88] sm:$0xfe]  ;;  %v7187_v60 = vrot.slane %v7058_v17, 1  ;;  %v12178_v14 = vld [vmem:[#allocation11 + $0xb74] sm:$0xf] }
 0x5ec   : > { %6919 = vmatmul.bf16.gmra.mxu1 %v6633_v58  ;;  %v7186_v48 = vrot.slane %v7056_v46, 1 }
 0x5ed   : > { %v14618_v15 = vadd.f32 %v6444_v47, %v14518_v16  ;;  %v11675_v47 = vld [vmem:[#allocation11 + $0xb78] sm:$0xf0] }
 0x5ee   : > { %v14625_v7 = vpop.f32.mrf.mxu3  ;;  %v11678_v58 = vor.u32 %v12178_v14, %v11675_v47  ;;  %v7188_v5 = vsel %vm2534_vm1, %v7186_v48, %v7187_v60  ;;  %v6614_v60 = vld [vmem:[#allocation2 + $0x410] sm:$0xff]  ;;  %v7070_v14 = vld [vmem:[#allocation2 + $0x168] sm:$0x1] }
 0x5ef   : > { %v6632_v31 = vpack.c.bf16 %v6616_v18, %v6614_v60 }
 0x5f0   : > { %v6492_v42 = vpop.f32.mrf.mxu2  ;;  %8311 = vmatpush.bf16.msrb.mxu2 %v11678_v58 }
 0x5f1   : > { %v6542_v43 = vadd.f32 %v6541_v1, %v6492_v42 }
 0x5f2   : > { %v6397_v16 = vpop.f32.mrf.mxu0 }
 0x5f3   : > { %v14623_v40 = vadd.f32 %v6542_v43, %v14521_v57  ;;  %v6447_v8 = vadd.f32 %v6446_v27, %v6397_v16  ;;  %v6453_v57 = vpop.f32.mrf.mxu1  ;;  %v7312_v43 = vpack.c.bf16 %v7194_v51, %v7188_v5  ;;  %v11737_v16 = vld [vmem:[#allocation11 + $0xbf0] sm:$0xf]  ;;  %v7205_v51 = vrot.slane %v7070_v14, 1 }
 0x5f5   : > { %v14628_v1 = vadd.f32 %v6447_v8, %v14524_v56  ;;  %6865 = vmatmul.bf16.gmra.mxu0 %v6630_v21  ;;  %6963 = vmatmul.bf16.gmra.mxu2 %v6630_v21  ;;  %v11738_v21 = vor.u32 %v12195_v62, %v11737_v16  ;;  %v7055_v62 = vld [vmem:[#allocation2 + $0x80] sm:$0xfe] }
 0x5f6   : > { %v14636_v46 = vpop.f32.mrf.mxu3  ;;  %v7183_v14 = vrot.slane %v7055_v62, 1 }
 0x5f7   : > { %8262 = vmatpush.bf16.msrb.mxu1 %v11738_v21  ;;  %v7057_v21 = vld [vmem:[#allocation2 + $0xa0] sm:$0x1] }
 0x5f8   : > { %v6495_v27 = vpop.f32.mrf.mxu2 }
 0x5f9   : > { %v6545_v29 = vadd.f32 %v14607_v63, %v6495_v27  ;;  %v11674_v63 = vor.u32 %v12179_v39, %v11673_v32 }
 0x5fa   : > { %v6399_v56 = vpop.f32.mrf.mxu0 }
 0x5fb   : > { %v14634_v42 = vadd.f32 %v6545_v29, %v14527_v26  ;;  %v6449_v38 = vadd.f32 %v6448_v49, %v6399_v56  ;;  %v14641_v8 = vpop.f32.mrf.mxu1  ;;  %7675 = vmatmul.bf16.vlgmr.msra.gmra.mxu3 %v7312_v43  ;;  %8213 = vmatpush.bf16.msrb.mxu0 %v11674_v63  ;;  %v7064_v26 = vld [vmem:[#allocation2 + $0x108] sm:$0xfe]  ;;  %v7199_v29 = vrot.slane %v7066_v45, 1  ;;  %v7061_v45 = vld [vmem:[#allocation2 + $0xe0] sm:$0x1] }
 0x5fc   : > { %7577 = vmatmul.bf16.vlgmr.msra.gmra.mxu1 %v7312_v43  ;;  %v7198_v27 = vrot.slane %v7064_v26, 1  ;;  %v12176_v56 = vld [vmem:[#allocation11 + $0xb64] sm:$0xf] }
 0x5fd   : > { %v14639_v17 = vadd.f32 %v6449_v38, %v14530_v10  ;;  %v7068_v10 = vld [vmem:[#allocation2 + $0x148] sm:$0xfe]  ;;  %v11667_v38 = vld [vmem:[#allocation11 + $0xb68] sm:$0xf0] }
 0x5fe   : > { %v14648_v41 = vpop.f32.mrf.mxu3  ;;  %v7204_v5 = vrot.slane %v7068_v10, 1  ;;  %v12192_v43 = vld [vmem:[#allocation11 + $0xbe4] sm:$0xf]  ;;  %v11670_v32 = vor.u32 %v12176_v56, %v11667_v38  ;;  %v12193_v38 = vld [vmem:[#allocation11 + $0xbe4] sm:$0xf0] }
 0x600   : > { %v6497_v48 = vpop.f32.mrf.mxu2  ;;  %8312 = vmatpush.bf16.msrb.mxu2 %v11670_v32 }
 0x601   : > { %v6547_v49 = vadd.f32 %v14615_v61, %v6497_v48  ;;  %v7200_v48 = vsel %vm2534_vm1, %v7198_v27, %v7199_v29  ;;  %v12177_v27 = vld [vmem:[#allocation11 + $0xb64] sm:$0xf0]  ;;  %v11729_v29 = vld [vmem:[#allocation11 + $0xbe0] sm:$0xf] }
 0x602   : > { %v6402_v47 = vpop.f32.mrf.mxu0 }
 0x603   : > { %v14645_v13 = vadd.f32 %v6547_v49, %v14533_v19  ;;  %v6452_v58 = vadd.f32 %v14620_v23, %v6402_v47  ;;  %v11731_v19 = vld [vmem:[#allocation11 + $0xbe8] sm:$0xf0]  ;;  %v14653_v39 = vpop.f32.mrf.mxu1  ;;  %v7059_v49 = vld [vmem:[#allocation2 + $0xc0] sm:$0xfe]  ;;  %v7184_v47 = vrot.slane %v7057_v21, 1 }
 0x604   : > { %v11734_v23 = vor.u32 %v12192_v43, %v11731_v19  ;;  %v7072_v19 = vld [vmem:[#allocation2 + $0x188] sm:$0xfe] }
 0x605   : > { %v14651_v61 = vadd.f32 %v6452_v58, %v14536_v50  ;;  %6870 = vmatmul.bf16.gmra.mxu0 %v6632_v31  ;;  %6968 = vmatmul.bf16.gmra.mxu2 %v6632_v31  ;;  %v7206_v50 = vsel %vm2534_vm1, %v7204_v5, %v7205_v51  ;;  %v11665_v31 = vld [vmem:[#allocation11 + $0xb60] sm:$0xf]  ;;  %v7189_v5 = vrot.slane %v7059_v49, 1  ;;  %v7190_v51 = vrot.slane %v7061_v45, 1 }
 0x606   : > { %8361 = vmatpush.bf16.msrb.mxu3 %v11734_v23  ;;  %v14661_v10 = vpop.f32.mrf.mxu3  ;;  %v7314_v58 = vpack.c.bf16 %v7206_v50, %v7200_v48  ;;  %v11666_v56 = vor.u32 %v12177_v27, %v11665_v31  ;;  %v7185_v32 = vsel %vm2534_vm1, %v7183_v14, %v7184_v47  ;;  %v7210_v49 = vrot.slane %v7072_v19, 1  ;;  %v12174_v31 = vld [vmem:[#allocation11 + $0xb54] sm:$0xf]  ;;  %v11659_v27 = vld [vmem:[#allocation11 + $0xb58] sm:$0xf0] }
 0x607   : > { %v7191_v21 = vsel %vm2534_vm1, %v7189_v5, %v7190_v51 }
 0x608   : > { %v6500_v16 = vpop.f32.mrf.mxu2  ;;  %8214 = vmatpush.bf16.msrb.mxu0 %v11666_v56 }
 0x609   : > { %v6550_v63 = vadd.f32 %v14625_v7, %v6500_v16  ;;  %v7076_v16 = vld [vmem:[#allocation2 + $0x1c8] sm:$0xfe] }
 0x60a   : > { %v6404_v60 = vpop.f32.mrf.mxu0  ;;  %v7216_v14 = vrot.slane %v7076_v16, 1  ;;  %v7069_v16 = vld [vmem:[#allocation2 + $0x160] sm:$0x1] }
 0x60b   : > { %v14659_v18 = vadd.f32 %v6550_v63, %v14539_v52  ;;  %v6454_v26 = vadd.f32 %v6453_v57, %v6404_v60  ;;  %v14666_v52 = vpop.f32.mrf.mxu1  ;;  %v11730_v57 = vor.u32 %v12193_v38, %v11729_v29  ;;  %7680 = vmatmul.bf16.gmra.mxu3 %v7314_v58  ;;  %v7078_v63 = vld [vmem:[#allocation2 + $0x1e8] sm:$0x1]  ;;  %v7311_v60 = vpack.c.bf16 %v7191_v21, %v7185_v32  ;;  %v7063_v38 = vld [vmem:[#allocation2 + $0x100] sm:$0xfe] }
 0x60c   : > { %7582 = vmatmul.bf16.gmra.mxu1 %v7314_v58  ;;  %v12190_v58 = vld [vmem:[#allocation11 + $0xbd4] sm:$0xf]  ;;  %v11662_v29 = vor.u32 %v12174_v31, %v11659_v27 }
 0x60d   : > { %v14664_v7 = vadd.f32 %v6454_v26, %v14542_v24  ;;  %8263 = vmatpush.bf16.msrb.mxu1 %v11730_v57  ;;  %v7074_v24 = vld [vmem:[#allocation2 + $0x1a8] sm:$0x1]  ;;  %v7065_v57 = vld [vmem:[#allocation2 + $0x120] sm:$0x1] }
 0x60e   : > { %v14675_v26 = vpop.f32.mrf.mxu3  ;;  %v7211_v45 = vrot.slane %v7074_v24, 1  ;;  %8313 = vmatpush.bf16.msrb.mxu2 %v11662_v29  ;;  %v7067_v24 = vld [vmem:[#allocation2 + $0x140] sm:$0xfe]  ;;  %v7196_v21 = vrot.slane %v7065_v57, 1 }
 0x610   : > { %v6502_v43 = vpop.f32.mrf.mxu2 }
 0x611   : > { %v6552_v23 = vadd.f32 %v14636_v46, %v6502_v43  ;;  %v7217_v46 = vrot.slane %v7078_v63, 1  ;;  %v7212_v43 = vsel %vm2534_vm1, %v7210_v49, %v7211_v45  ;;  %v12175_v49 = vld [vmem:[#allocation11 + $0xb54] sm:$0xf0]  ;;  %v11721_v45 = vld [vmem:[#allocation11 + $0xbd0] sm:$0xf] }
 0x612   : > { %v6836_v62 = vpop.f32.mrf.mxu0 }
 0x613   : > { %v14672_v48 = vadd.f32 %v6552_v23, %v14545_v12  ;;  %v6886_v50 = vadd.f32 %v14641_v8, %v6836_v62  ;;  %v11723_v12 = vld [vmem:[#allocation11 + $0xbd8] sm:$0xf0]  ;;  %v14680_v5 = vpop.f32.mrf.mxu1  ;;  %v7195_v62 = vrot.slane %v7063_v38, 1 }
 0x614   : > { %v11726_v8 = vor.u32 %v12190_v58, %v11723_v12  ;;  %v7080_v12 = vld [vmem:[#allocation2 + $0x208] sm:$0xfe] }
 0x615   : > { %v14678_v47 = vadd.f32 %v6886_v50, %v14548_v2  ;;  %7528 = vmatmul.bf16.vlgmr.msra.gmra.mxu0 %v7311_v60  ;;  %7626 = vmatmul.bf16.vlgmr.msra.gmra.mxu2 %v7311_v60  ;;  %v7218_v2 = vsel %vm2534_vm1, %v7216_v14, %v7217_v46  ;;  %v11657_v60 = vld [vmem:[#allocation11 + $0xb50] sm:$0xf]  ;;  %v7201_v14 = vrot.slane %v7067_v24, 1  ;;  %v7202_v46 = vrot.slane %v7069_v16, 1 }
 0x616   : > { %8362 = vmatpush.bf16.msrb.mxu3 %v11726_v8  ;;  %v14689_v63 = vpop.f32.mrf.mxu3  ;;  %v11658_v31 = vor.u32 %v12175_v49, %v11657_v60  ;;  %v7197_v29 = vsel %vm2534_vm1, %v7195_v62, %v7196_v21  ;;  %v7222_v24 = vrot.slane %v7080_v12, 1  ;;  %v12172_v60 = vld [vmem:[#allocation11 + $0xb44] sm:$0xf]  ;;  %v11651_v49 = vld [vmem:[#allocation11 + $0xb48] sm:$0xf0] }
 0x617   : > { %v7203_v57 = vsel %vm2534_vm1, %v7201_v14, %v7202_v46 }
 0x618   : > { %v6934_v51 = vpop.f32.mrf.mxu2  ;;  %8215 = vmatpush.bf16.msrb.mxu0 %v11658_v31 }
 0x619   : > { %v6984_v56 = vadd.f32 %v14648_v41, %v6934_v51  ;;  %v7316_v41 = vpack.c.bf16 %v7218_v2, %v7212_v43  ;;  %v7084_v51 = vld [vmem:[#allocation2 + $0x248] sm:$0xfe] }
 0x61a   : > { %v6838_v32 = vpop.f32.mrf.mxu0  ;;  %v7228_v62 = vrot.slane %v7084_v51, 1  ;;  %v7077_v51 = vld [vmem:[#allocation2 + $0x1e0] sm:$0x1] }
 0x61b   : > { %v14686_v19 = vadd.f32 %v6984_v56, %v14551_v22  ;;  %v6888_v23 = vadd.f32 %v14653_v39, %v6838_v32  ;;  %v12191_v22 = vld [vmem:[#allocation11 + $0xbd4] sm:$0xf0]  ;;  %v14694_v27 = vpop.f32.mrf.mxu1  ;;  %7685 = vmatmul.bf16.gmra.mxu3 %v7316_v41  ;;  %v7086_v56 = vld [vmem:[#allocation2 + $0x268] sm:$0x1]  ;;  %v7313_v32 = vpack.c.bf16 %v7203_v57, %v7197_v29 }
 0x61c   : > { %v11722_v39 = vor.u32 %v12191_v22, %v11721_v45  ;;  %7587 = vmatmul.bf16.gmra.mxu1 %v7316_v41  ;;  %v12188_v41 = vld [vmem:[#allocation11 + $0xbc4] sm:$0xf]  ;;  %v11654_v45 = vor.u32 %v12172_v60, %v11651_v49  ;;  %v7071_v22 = vld [vmem:[#allocation2 + $0x180] sm:$0xfe] }
 0x61d   : > { %v14692_v50 = vadd.f32 %v6888_v23, %v14554_v33  ;;  %v7082_v33 = vld [vmem:[#allocation2 + $0x228] sm:$0x1] }
 0x61e   : > { %8264 = vmatpush.bf16.msrb.mxu1 %v11722_v39  ;;  %v14703_v23 = vpop.f32.mrf.mxu3  ;;  %v7223_v16 = vrot.slane %v7082_v33, 1  ;;  %8314 = vmatpush.bf16.msrb.mxu2 %v11654_v45  ;;  %v7073_v39 = vld [vmem:[#allocation2 + $0x1a0] sm:$0x1]  ;;  %v7075_v33 = vld [vmem:[#allocation2 + $0x1c0] sm:$0xfe] }
 0x61f   : > { %v7208_v57 = vrot.slane %v7073_v39, 1 }
 0x620   : > { %v6936_v58 = vpop.f32.mrf.mxu2 }
 0x621   : > { %v6986_v8 = vadd.f32 %v14661_v10, %v6936_v58  ;;  %v7229_v10 = vrot.slane %v7086_v56, 1  ;;  %v7224_v58 = vsel %vm2534_vm1, %v7222_v24, %v7223_v16  ;;  %v12173_v24 = vld [vmem:[#allocation11 + $0xb44] sm:$0xf0]  ;;  %v11713_v16 = vld [vmem:[#allocation11 + $0xbc0] sm:$0xf] }
 0x622   : > { %v6841_v38 = vpop.f32.mrf.mxu0 }
 0x623   : > { %v14700_v43 = vadd.f32 %v6986_v8, %v14557_v3  ;;  %v6891_v2 = vadd.f32 %v14666_v52, %v6841_v38  ;;  %v11715_v3 = vld [vmem:[#allocation11 + $0xbc8] sm:$0xf0]  ;;  %v14708_v14 = vpop.f32.mrf.mxu1  ;;  %v7207_v38 = vrot.slane %v7071_v22, 1 }
 0x624   : > { %v11718_v52 = vor.u32 %v12188_v41, %v11715_v3  ;;  %v7088_v3 = vld [vmem:[#allocation2 + $0x288] sm:$0xfe] }
 0x625   : > { %v14706_v21 = vadd.f32 %v6891_v2, %v14560_v11  ;;  %7533 = vmatmul.bf16.gmra.mxu0 %v7313_v32  ;;  %7631 = vmatmul.bf16.gmra.mxu2 %v7313_v32  ;;  %v7230_v11 = vsel %vm2534_vm1, %v7228_v62, %v7229_v10  ;;  %v11649_v32 = vld [vmem:[#allocation11 + $0xb40] sm:$0xf]  ;;  %v7213_v62 = vrot.slane %v7075_v33, 1  ;;  %v7214_v10 = vrot.slane %v7077_v51, 1 }
 0x626   : > { %8363 = vmatpush.bf16.msrb.mxu3 %v11718_v52  ;;  %v14717_v56 = vpop.f32.mrf.mxu3  ;;  %v11650_v60 = vor.u32 %v12173_v24, %v11649_v32  ;;  %v7209_v45 = vsel %vm2534_vm1, %v7207_v38, %v7208_v57  ;;  %v7234_v33 = vrot.slane %v7088_v3, 1  ;;  %v12170_v32 = vld [vmem:[#allocation11 + $0xb34] sm:$0xf]  ;;  %v11643_v24 = vld [vmem:[#allocation11 + $0xb38] sm:$0xf0] }
 0x627   : > { %v7215_v39 = vsel %vm2534_vm1, %v7213_v62, %v7214_v10 }
 0x628   : > { %v6939_v46 = vpop.f32.mrf.mxu2  ;;  %8216 = vmatpush.bf16.msrb.mxu0 %v11650_v60 }
 0x629   : > { %v6989_v31 = vadd.f32 %v14675_v26, %v6939_v46  ;;  %v7318_v26 = vpack.c.bf16 %v7230_v11, %v7224_v58  ;;  %v7092_v46 = vld [vmem:[#allocation2 + $0x2c8] sm:$0xfe] }
 0x62a   : > { %v6843_v29 = vpop.f32.mrf.mxu0  ;;  %v7240_v38 = vrot.slane %v7092_v46, 1  ;;  %v7085_v46 = vld [vmem:[#allocation2 + $0x260] sm:$0x1] }
 0x62b   : > { %v14714_v12 = vadd.f32 %v6989_v31, %v14563_v54  ;;  %v6893_v8 = vadd.f32 %v14680_v5, %v6843_v29  ;;  %v12189_v54 = vld [vmem:[#allocation11 + $0xbc4] sm:$0xf0]  ;;  %v14722_v49 = vpop.f32.mrf.mxu1  ;;  %7690 = vmatmul.bf16.gmra.mxu3 %v7318_v26  ;;  %v7094_v31 = vld [vmem:[#allocation2 + $0x2e8] sm:$0x1]  ;;  %v7315_v29 = vpack.c.bf16 %v7215_v39, %v7209_v45 }
 0x62c   : > { %v11714_v5 = vor.u32 %v12189_v54, %v11713_v16  ;;  %7592 = vmatmul.bf16.gmra.mxu1 %v7318_v26  ;;  %v12186_v26 = vld [vmem:[#allocation11 + $0xbb4] sm:$0xf]  ;;  %v11646_v16 = vor.u32 %v12170_v32, %v11643_v24  ;;  %v7079_v54 = vld [vmem:[#allocation2 + $0x200] sm:$0xfe] }
 0x62d   : > { %v14720_v2 = vadd.f32 %v6893_v8, %v14566_v35  ;;  %v7090_v35 = vld [vmem:[#allocation2 + $0x2a8] sm:$0x1] }
 0x62e   : > { %8265 = vmatpush.bf16.msrb.mxu1 %v11714_v5  ;;  %v14731_v8 = vpop.f32.mrf.mxu3  ;;  %v7235_v51 = vrot.slane %v7090_v35, 1  ;;  %8315 = vmatpush.bf16.msrb.mxu2 %v11646_v16  ;;  %v7081_v5 = vld [vmem:[#allocation2 + $0x220] sm:$0x1]  ;;  %v7083_v35 = vld [vmem:[#allocation2 + $0x240] sm:$0xfe] }
 0x62f   : > { %v7220_v39 = vrot.slane %v7081_v5, 1 }
 0x630   : > { %v6941_v41 = vpop.f32.mrf.mxu2 }
 0x631   : > { %v6991_v52 = vadd.f32 %v14689_v63, %v6941_v41  ;;  %v7241_v63 = vrot.slane %v7094_v31, 1  ;;  %v7236_v41 = vsel %vm2534_vm1, %v7234_v33, %v7235_v51  ;;  %v12171_v33 = vld [vmem:[#allocation11 + $0xb34] sm:$0xf0]  ;;  %v11705_v51 = vld [vmem:[#allocation11 + $0xbb0] sm:$0xf] }
 0x632   : > { %v6846_v22 = vpop.f32.mrf.mxu0 }
 0x633   : > { %v14728_v58 = vadd.f32 %v6991_v52, %v14569_v30  ;;  %v6896_v11 = vadd.f32 %v14694_v27, %v6846_v22  ;;  %v11707_v30 = vld [vmem:[#allocation11 + $0xbb8] sm:$0xf0]  ;;  %v14736_v62 = vpop.f32.mrf.mxu1  ;;  %v7219_v22 = vrot.slane %v7079_v54, 1 }
 0x634   : > { %v11710_v27 = vor.u32 %v12186_v26, %v11707_v30  ;;  %v7096_v30 = vld [vmem:[#allocation2 + $0x308] sm:$0xfe] }
 0x635   : > { %v14734_v57 = vadd.f32 %v6896_v11, %v14572_v37  ;;  %7538 = vmatmul.bf16.gmra.mxu0 %v7315_v29  ;;  %7636 = vmatmul.bf16.gmra.mxu2 %v7315_v29  ;;  %v7242_v37 = vsel %vm2534_vm1, %v7240_v38, %v7241_v63  ;;  %v11641_v29 = vld [vmem:[#allocation11 + $0xb30] sm:$0xf]  ;;  %v7225_v38 = vrot.slane %v7083_v35, 1  ;;  %v7226_v63 = vrot.slane %v7085_v46, 1 }
 0x636   : > { %8364 = vmatpush.bf16.msrb.mxu3 %v11710_v27  ;;  %v14745_v31 = vpop.f32.mrf.mxu3  ;;  %v11642_v32 = vor.u32 %v12171_v33, %v11641_v29  ;;  %v7221_v16 = vsel %vm2534_vm1, %v7219_v22, %v7220_v39  ;;  %v7246_v35 = vrot.slane %v7096_v30, 1  ;;  %v12168_v29 = vld [vmem:[#allocation11 + $0xb24] sm:$0xf]  ;;  %v11635_v33 = vld [vmem:[#allocation11 + $0xb28] sm:$0xf0] }
 0x637   : > { %v7227_v5 = vsel %vm2534_vm1, %v7225_v38, %v7226_v63 }
 0x638   : > { %v6944_v10 = vpop.f32.mrf.mxu2  ;;  %8217 = vmatpush.bf16.msrb.mxu0 %v11642_v32 }
 0x639   : > { %v6994_v60 = vadd.f32 %v14703_v23, %v6944_v10  ;;  %v7320_v23 = vpack.c.bf16 %v7242_v37, %v7236_v41  ;;  %v7100_v10 = vld [vmem:[#allocation2 + $0x348] sm:$0xfe] }
 0x63a   : > { %v6848_v45 = vpop.f32.mrf.mxu0  ;;  %v7252_v22 = vrot.slane %v7100_v10, 1  ;;  %v7093_v10 = vld [vmem:[#allocation2 + $0x2e0] sm:$0x1] }
 0x63b   : > { %v14742_v3 = vadd.f32 %v6994_v60, %v14575_v55  ;;  %v6898_v52 = vadd.f32 %v14708_v14, %v6848_v45  ;;  %v12187_v55 = vld [vmem:[#allocation11 + $0xbb4] sm:$0xf0]  ;;  %v14750_v24 = vpop.f32.mrf.mxu1  ;;  %7695 = vmatmul.bf16.gmra.mxu3 %v7320_v23  ;;  %v7102_v60 = vld [vmem:[#allocation2 + $0x368] sm:$0x1]  ;;  %v7317_v45 = vpack.c.bf16 %v7227_v5, %v7221_v16 }
 0x63c   : > { %v11706_v14 = vor.u32 %v12187_v55, %v11705_v51  ;;  %7597 = vmatmul.bf16.gmra.mxu1 %v7320_v23  ;;  %v12184_v23 = vld [vmem:[#allocation11 + $0xba4] sm:$0xf]  ;;  %v11638_v51 = vor.u32 %v12168_v29, %v11635_v33  ;;  %v7087_v55 = vld [vmem:[#allocation2 + $0x280] sm:$0xfe] }
 0x63d   : > { %v14748_v11 = vadd.f32 %v6898_v52, %v14578_v28  ;;  %v7098_v28 = vld [vmem:[#allocation2 + $0x328] sm:$0x1] }
 0x63e   : > { %8266 = vmatpush.bf16.msrb.mxu1 %v11706_v14  ;;  %v14759_v52 = vpop.f32.mrf.mxu3  ;;  %v7247_v46 = vrot.slane %v7098_v28, 1  ;;  %8316 = vmatpush.bf16.msrb.mxu2 %v11638_v51  ;;  %v7089_v14 = vld [vmem:[#allocation2 + $0x2a0] sm:$0x1]  ;;  %v7091_v28 = vld [vmem:[#allocation2 + $0x2c0] sm:$0xfe] }
 0x63f   : > { %v7232_v5 = vrot.slane %v7089_v14, 1 }
 0x640   : > { %v6946_v26 = vpop.f32.mrf.mxu2 }
 0x641   : > { %v6996_v27 = vadd.f32 %v14717_v56, %v6946_v26  ;;  %v7253_v56 = vrot.slane %v7102_v60, 1  ;;  %v7248_v26 = vsel %vm2534_vm1, %v7246_v35, %v7247_v46  ;;  %v12169_v35 = vld [vmem:[#allocation11 + $0xb24] sm:$0xf0]  ;;  %v11697_v46 = vld [vmem:[#allocation11 + $0xba0] sm:$0xf] }
 0x642   : > { %v6851_v54 = vpop.f32.mrf.mxu0 }
 0x643   : > { %v14756_v41 = vadd.f32 %v6996_v27, %v14581_v0  ;;  %v6901_v37 = vadd.f32 %v14722_v49, %v6851_v54  ;;  %v11699_v0 = vld [vmem:[#allocation11 + $0xba8] sm:$0xf0]  ;;  %v14764_v38 = vpop.f32.mrf.mxu1  ;;  %v7231_v54 = vrot.slane %v7087_v55, 1 }
 0x644   : > { %v11702_v49 = vor.u32 %v12184_v23, %v11699_v0  ;;  %v7104_v0 = vld [vmem:[#allocation2 + $0x388] sm:$0xfe] }
 0x645   : > { %v14762_v39 = vadd.f32 %v6901_v37, %v14584_v6  ;;  %7543 = vmatmul.bf16.gmra.mxu0 %v7317_v45  ;;  %7641 = vmatmul.bf16.gmra.mxu2 %v7317_v45  ;;  %v7254_v6 = vsel %vm2534_vm1, %v7252_v22, %v7253_v56  ;;  %v11633_v45 = vld [vmem:[#allocation11 + $0xb20] sm:$0xf]  ;;  %v7237_v22 = vrot.slane %v7091_v28, 1  ;;  %v7238_v56 = vrot.slane %v7093_v10, 1 }
 0x646   : > { %8365 = vmatpush.bf16.msrb.mxu3 %v11702_v49  ;;  %v14773_v60 = vpop.f32.mrf.mxu3  ;;  %v11634_v29 = vor.u32 %v12169_v35, %v11633_v45  ;;  %v7233_v51 = vsel %vm2534_vm1, %v7231_v54, %v7232_v5  ;;  %v7258_v28 = vrot.slane %v7104_v0, 1  ;;  %v12166_v45 = vld [vmem:[#allocation11 + $0xb14] sm:$0xf]  ;;  %v11627_v35 = vld [vmem:[#allocation11 + $0xb18] sm:$0xf0] }
 0x647   : > { %v7239_v14 = vsel %vm2534_vm1, %v7237_v22, %v7238_v56 }
 0x648   : > { %v6949_v63 = vpop.f32.mrf.mxu2  ;;  %8218 = vmatpush.bf16.msrb.mxu0 %v11634_v29 }
 0x649   : > { %v6999_v32 = vadd.f32 %v14731_v8, %v6949_v63  ;;  %v7322_v8 = vpack.c.bf16 %v7254_v6, %v7248_v26  ;;  %v7108_v63 = vld [vmem:[#allocation2 + $0x3c8] sm:$0xfe] }
 0x64a   : > { %v6853_v16 = vpop.f32.mrf.mxu0  ;;  %v7264_v54 = vrot.slane %v7108_v63, 1  ;;  %v7101_v63 = vld [vmem:[#allocation2 + $0x360] sm:$0x1] }
 0x64b   : > { %v14770_v30 = vadd.f32 %v6999_v32, %v14587_v53  ;;  %v6903_v27 = vadd.f32 %v14736_v62, %v6853_v16  ;;  %v12185_v53 = vld [vmem:[#allocation11 + $0xba4] sm:$0xf0]  ;;  %v14778_v33 = vpop.f32.mrf.mxu1  ;;  %7700 = vmatmul.bf16.gmra.mxu3 %v7322_v8  ;;  %v7110_v32 = vld [vmem:[#allocation2 + $0x3e8] sm:$0x1]  ;;  %v7319_v16 = vpack.c.bf16 %v7239_v14, %v7233_v51 }
 0x64c   : > { %v11698_v62 = vor.u32 %v12185_v53, %v11697_v46  ;;  %7602 = vmatmul.bf16.gmra.mxu1 %v7322_v8  ;;  %v12182_v8 = vld [vmem:[#allocation11 + $0xb94] sm:$0xf]  ;;  %v11630_v46 = vor.u32 %v12166_v45, %v11627_v35  ;;  %v7095_v53 = vld [vmem:[#allocation2 + $0x300] sm:$0xfe] }
 0x64d   : > { %v14776_v37 = vadd.f32 %v6903_v27, %v14590_v36  ;;  %v7106_v36 = vld [vmem:[#allocation2 + $0x3a8] sm:$0x1] }
 0x64e   : > { %8267 = vmatpush.bf16.msrb.mxu1 %v11698_v62  ;;  %v14787_v27 = vpop.f32.mrf.mxu3  ;;  %v7259_v10 = vrot.slane %v7106_v36, 1  ;;  %8317 = vmatpush.bf16.msrb.mxu2 %v11630_v46  ;;  %v7097_v62 = vld [vmem:[#allocation2 + $0x320] sm:$0x1]  ;;  %v7099_v36 = vld [vmem:[#allocation2 + $0x340] sm:$0xfe] }
 0x64f   : > { %v7244_v14 = vrot.slane %v7097_v62, 1 }
 0x650   : > { %v6951_v23 = vpop.f32.mrf.mxu2 }
 0x651   : > { %v7001_v49 = vadd.f32 %v14745_v31, %v6951_v23  ;;  %v7265_v31 = vrot.slane %v7110_v32, 1  ;;  %v7260_v23 = vsel %vm2534_vm1, %v7258_v28, %v7259_v10  ;;  %v12167_v28 = vld [vmem:[#allocation11 + $0xb14] sm:$0xf0]  ;;  %v11689_v10 = vld [vmem:[#allocation11 + $0xb90] sm:$0xf] }
 0x652   : > { %v6856_v55 = vpop.f32.mrf.mxu0 }
 0x653   : > { %v14784_v26 = vadd.f32 %v7001_v49, %v14593_v44  ;;  %v6906_v6 = vadd.f32 %v14750_v24, %v6856_v55  ;;  %v11691_v44 = vld [vmem:[#allocation11 + $0xb98] sm:$0xf0]  ;;  %v14792_v22 = vpop.f32.mrf.mxu1  ;;  %v7243_v55 = vrot.slane %v7095_v53, 1 }
 0x654   : > { %v11694_v24 = vor.u32 %v12182_v8, %v11691_v44  ;;  %v7112_v44 = vld [vmem:[#allocation2 + $0x408] sm:$0xfe] }
 0x655   : > { %v14790_v5 = vadd.f32 %v6906_v6, %v14596_v59  ;;  %7548 = vmatmul.bf16.gmra.mxu0 %v7319_v16  ;;  %7646 = vmatmul.bf16.gmra.mxu2 %v7319_v16  ;;  %v7266_v59 = vsel %vm2534_vm1, %v7264_v54, %v7265_v31  ;;  %v11625_v16 = vld [vmem:[#allocation11 + $0xb10] sm:$0xf]  ;;  %v7249_v54 = vrot.slane %v7099_v36, 1  ;;  %v7250_v31 = vrot.slane %v7101_v63, 1 }
 0x656   : > { %8366 = vmatpush.bf16.msrb.mxu3 %v11694_v24  ;;  %v14801_v32 = vpop.f32.mrf.mxu3  ;;  %v11626_v45 = vor.u32 %v12167_v28, %v11625_v16  ;;  %v7245_v46 = vsel %vm2534_vm1, %v7243_v55, %v7244_v14  ;;  %v7270_v36 = vrot.slane %v7112_v44, 1  ;;  %v12164_v16 = vld [vmem:[#allocation11 + $0xb04] sm:$0xf]  ;;  %v11619_v28 = vld [vmem:[#allocation11 + $0xb08] sm:$0xf0] }
 0x657   : > { %v7251_v62 = vsel %vm2534_vm1, %v7249_v54, %v7250_v31 }
 0x658   : > { %v6954_v56 = vpop.f32.mrf.mxu2  ;;  %8219 = vmatpush.bf16.msrb.mxu0 %v11626_v45 }
 0x659   : > { %v7004_v29 = vadd.f32 %v14759_v52, %v6954_v56  ;;  %v7324_v52 = vpack.c.bf16 %v7266_v59, %v7260_v23  ;;  %v7116_v56 = vld [vmem:[#allocation2 + $0x448] sm:$0xfe] }
 0x65a   : > { %v6858_v51 = vpop.f32.mrf.mxu0  ;;  %v7276_v55 = vrot.slane %v7116_v56, 1  ;;  %v7109_v56 = vld [vmem:[#allocation2 + $0x3e0] sm:$0x1] }
 0x65b   : > { %v14798_v0 = vadd.f32 %v7004_v29, %v14599_v25  ;;  %v6908_v49 = vadd.f32 %v14764_v38, %v6858_v51  ;;  %v12183_v25 = vld [vmem:[#allocation11 + $0xb94] sm:$0xf0]  ;;  %v14806_v35 = vpop.f32.mrf.mxu1  ;;  %7705 = vmatmul.bf16.gmra.mxu3 %v7324_v52  ;;  %v7118_v29 = vld [vmem:[#allocation2 + $0x468] sm:$0x1]  ;;  %v7321_v51 = vpack.c.bf16 %v7251_v62, %v7245_v46 }
 0x65c   : > { %v11690_v38 = vor.u32 %v12183_v25, %v11689_v10  ;;  %7607 = vmatmul.bf16.gmra.mxu1 %v7324_v52  ;;  %v12180_v52 = vld [vmem:[#allocation11 + $0xb84] sm:$0xf]  ;;  %v11622_v10 = vor.u32 %v12164_v16, %v11619_v28  ;;  %v7103_v25 = vld [vmem:[#allocation2 + $0x380] sm:$0xfe]  ;;  %v12181_v28 = vld [vmem:[#allocation11 + $0xb84] sm:$0xf0] }
 0x65d   : > { %v14804_v6 = vadd.f32 %v6908_v49, %v14602_v9  ;;  %v7114_v9 = vld [vmem:[#allocation2 + $0x428] sm:$0x1] }
 0x65e   : > { %8268 = vmatpush.bf16.msrb.mxu1 %v11690_v38  ;;  %v14815_v49 = vpop.f32.mrf.mxu3  ;;  %v7271_v63 = vrot.slane %v7114_v9, 1  ;;  %8318 = vmatpush.bf16.msrb.mxu2 %v11622_v10  ;;  %v7105_v38 = vld [vmem:[#allocation2 + $0x3a0] sm:$0x1]  ;;  %v7107_v9 = vld [vmem:[#allocation2 + $0x3c0] sm:$0xfe] }
 0x65f   : > { %v7256_v62 = vrot.slane %v7105_v38, 1  ;;  %v7755_v38 = vld [vmem:[#allocation2 + $0xf8] sm:$0x1] }
 0x660   : > { %v6956_v8 = vpop.f32.mrf.mxu2 }
 0x661   : > { %v7006_v24 = vadd.f32 %v14773_v60, %v6956_v8  ;;  %v7277_v60 = vrot.slane %v7118_v29, 1  ;;  %v7272_v8 = vsel %vm2534_vm1, %v7270_v36, %v7271_v63  ;;  %v12165_v36 = vld [vmem:[#allocation11 + $0xb04] sm:$0xf0]  ;;  %v11681_v63 = vld [vmem:[#allocation11 + $0xb80] sm:$0xf] }
 0x662   : > { %v6861_v53 = vpop.f32.mrf.mxu0 }
 0x663   : > { %v14812_v23 = vadd.f32 %v7006_v24, %v14605_v4  ;;  %v6911_v59 = vadd.f32 %v14778_v33, %v6861_v53  ;;  %v11683_v4 = vld [vmem:[#allocation11 + $0xb88] sm:$0xf0]  ;;  %v14820_v54 = vpop.f32.mrf.mxu1  ;;  %v7255_v53 = vrot.slane %v7103_v25, 1  ;;  %v7753_v25 = vld [vmem:[#allocation2 + $0xd8] sm:$0xfe] }
 0x664   : > { %v11686_v33 = vor.u32 %v12180_v52, %v11683_v4  ;;  %v11682_v52 = vor.u32 %v12181_v28, %v11681_v63 }
 0x665   : > { %v14818_v14 = vadd.f32 %v6911_v59, %v14610_v34  ;;  %7553 = vmatmul.bf16.gmra.mxu0 %v7321_v51  ;;  %7651 = vmatmul.bf16.gmra.mxu2 %v7321_v51  ;;  %v7278_v34 = vsel %vm2534_vm1, %v7276_v55, %v7277_v60  ;;  %v11617_v51 = vld [vmem:[#allocation11 + $0xb00] sm:$0xf]  ;;  %v7261_v55 = vrot.slane %v7107_v9, 1  ;;  %v7262_v60 = vrot.slane %v7109_v56, 1 }
 0x666   : > { %8367 = vmatpush.bf16.msrb.mxu3 %v11686_v33  ;;  %v7015_v29 = vpop.f32.mrf.mxu3  ;;  %v7326_v59 = vpack.c.bf16 %v7278_v34, %v7272_v8  ;;  %v11618_v16 = vor.u32 %v12165_v36, %v11617_v51  ;;  %8269 = vmatpush.bf16.msrb.mxu1 %v11682_v52  ;;  %v7749_v33 = vld [vmem:[#allocation2 + $0x98] sm:$0xfe]  ;;  %v7111_v36 = vld [vmem:[#allocation2 + $0x400] sm:$0xfe] }
 0x667   : > { %v7879_v9 = vrot.slane %v7749_v33, 1 }
 0x668   : > { %v6959_v31 = vpop.f32.mrf.mxu2  ;;  %8220 = vmatpush.bf16.msrb.mxu0 %v11618_v16 }
 0x669   : > { %v7009_v45 = vadd.f32 %v14787_v27, %v6959_v31  ;;  %v7263_v31 = vsel %vm2534_vm1, %v7261_v55, %v7262_v60  ;;  %v7115_v55 = vld [vmem:[#allocation2 + $0x440] sm:$0xfe]  ;;  %v7117_v60 = vld [vmem:[#allocation2 + $0x460] sm:$0x1] }
 0x66a   : > { %v6863_v46 = vpop.f32.mrf.mxu0  ;;  %v7273_v33 = vrot.slane %v7115_v55, 1 }
 0x66b   : > { %v14826_v44 = vadd.f32 %v7009_v45, %v14613_v20  ;;  %v6913_v24 = vadd.f32 %v14792_v22, %v6863_v46  ;;  %v6920_v20 = vpop.f32.mrf.mxu1  ;;  %v7257_v22 = vsel %vm2534_vm1, %v7255_v53, %v7256_v62  ;;  %7710 = vmatmul.bf16.gmra.mxu3 %v7326_v59  ;;  %v7751_v45 = vld [vmem:[#allocation2 + $0xb8] sm:$0x1]  ;;  %v7885_v53 = vrot.slane %v7753_v25, 1 }
 0x66c   : > { %7612 = vmatmul.bf16.gmra.mxu1 %v7326_v59  ;;  %v7323_v46 = vpack.c.bf16 %v7263_v31, %v7257_v22  ;;  %v7886_v62 = vrot.slane %v7755_v38, 1 }
 0x66d   : > { %v14830_v27 = vadd.f32 %v6913_v24, %v14618_v15 }
 0x66e   : > { %v7018_v24 = vpop.f32.mrf.mxu3  ;;  %v7887_v16 = vsel %vm2534_vm1, %v7885_v53, %v7886_v62  ;;  %v7763_v53 = vld [vmem:[#allocation2 + $0x178] sm:$0x1] }
 0x670   : > { %v6961_v10 = vpop.f32.mrf.mxu2 }
 0x671   : > { %v7011_v4 = vadd.f32 %v14801_v32, %v6961_v10  ;;  %v7880_v32 = vrot.slane %v7751_v45, 1  ;;  %v7267_v10 = vrot.slane %v7111_v36, 1 }
 0x672   : > { %v6866_v15 = vpop.f32.mrf.mxu0 }
 0x673   : > { %v14836_v8 = vadd.f32 %v7011_v4, %v14623_v40  ;;  %v6916_v34 = vadd.f32 %v14806_v35, %v6866_v15  ;;  %v6922_v59 = vpop.f32.mrf.mxu1  ;;  %v7113_v40 = vld [vmem:[#allocation2 + $0x420] sm:$0x1]  ;;  %v7881_v35 = vsel %vm2534_vm1, %v7879_v9, %v7880_v32  ;;  %v7274_v15 = vrot.slane %v7117_v60, 1  ;;  %v7761_v32 = vld [vmem:[#allocation2 + $0x158] sm:$0xfe] }
 0x674   : > { %v7268_v4 = vrot.slane %v7113_v40, 1  ;;  %v8005_v31 = vpack.c.bf16 %v7887_v16, %v7881_v35  ;;  %v7898_v60 = vrot.slane %v7763_v53, 1 }
 0x675   : > { %v14840_v56 = vadd.f32 %v6916_v34, %v14628_v1  ;;  %7558 = vmatmul.bf16.gmra.mxu0 %v7323_v46  ;;  %7656 = vmatmul.bf16.gmra.mxu2 %v7323_v46  ;;  %v7275_v34 = vsel %vm2534_vm1, %v7273_v33, %v7274_v15  ;;  %v7757_v46 = vld [vmem:[#allocation2 + $0x118] sm:$0xfe]  ;;  %v7752_v15 = vld [vmem:[#allocation2 + $0xd0] sm:$0xfe] }
 0x676   : > { %v7020_v22 = vpop.f32.mrf.mxu3  ;;  %v7269_v38 = vsel %vm2534_vm1, %v7267_v10, %v7268_v4  ;;  %v7750_v10 = vld [vmem:[#allocation2 + $0xb0] sm:$0x1] }
 0x678   : > { %v6964_v51 = vpop.f32.mrf.mxu2 }
 0x679   : > { %v7014_v63 = vadd.f32 %v14815_v49, %v6964_v51 }
 0x67a   : > { %v6868_v28 = vpop.f32.mrf.mxu0 }
 0x67b   : > { %v14846_v1 = vadd.f32 %v7014_v63, %v14634_v42  ;;  %v6918_v52 = vadd.f32 %v14820_v54, %v6868_v28  ;;  %v7578_v45 = vpop.f32.mrf.mxu1  ;;  %8368 = vmatmul.bf16.vlgmr.msrb.gmra.mxu3 %v8005_v31  ;;  %v7759_v54 = vld [vmem:[#allocation2 + $0x138] sm:$0x1]  ;;  %v7891_v63 = vrot.slane %v7757_v46, 1 }
 0x67c   : > { %8270 = vmatmul.bf16.vlgmr.msrb.gmra.mxu1 %v8005_v31  ;;  %v7892_v55 = vrot.slane %v7759_v54, 1  ;;  %v7754_v31 = vld [vmem:[#allocation2 + $0xf0] sm:$0x1] }
 0x67d   : > { %v14850_v49 = vadd.f32 %v6918_v52, %v14639_v17  ;;  %v7325_v17 = vpack.c.bf16 %v7275_v34, %v7269_v38  ;;  %v7748_v52 = vld [vmem:[#allocation2 + $0x90] sm:$0xfe]  ;;  %v7877_v34 = vrot.slane %v7750_v10, 1 }
 0x67e   : > { %v7676_v36 = vpop.f32.mrf.mxu3  ;;  %v7876_v38 = vrot.slane %v7748_v52, 1 }
 0x680   : > { %v6966_v25 = vpop.f32.mrf.mxu2  ;;  %v7878_v53 = vsel %vm2534_vm1, %v7876_v38, %v7877_v34  ;;  %v7758_v38 = vld [vmem:[#allocation2 + $0x130] sm:$0x1] }
 0x681   : > { %v7016_v42 = vadd.f32 %v7015_v29, %v6966_v25  ;;  %v7897_v29 = vrot.slane %v7761_v32, 1 }
 0x682   : > { %v6871_v9 = vpop.f32.mrf.mxu0 }
 0x683   : > { %v14855_v62 = vadd.f32 %v7016_v42, %v14645_v13  ;;  %v6921_v51 = vadd.f32 %v6920_v20, %v6871_v9  ;;  %v7580_v35 = vpop.f32.mrf.mxu1  ;;  %v7893_v13 = vsel %vm2534_vm1, %v7891_v63, %v7892_v55  ;;  %v7899_v20 = vsel %vm2534_vm1, %v7897_v29, %v7898_v60  ;;  %v7767_v63 = vld [vmem:[#allocation2 + $0x1b8] sm:$0x1]  ;;  %v7769_v55 = vld [vmem:[#allocation2 + $0x1d8] sm:$0xfe] }
 0x684   : > { %v8007_v42 = vpack.c.bf16 %v7899_v20, %v7893_v13  ;;  %v7883_v9 = vrot.slane %v7754_v31, 1  ;;  %v7771_v29 = vld [vmem:[#allocation2 + $0x1f8] sm:$0x1]  ;;  %v7909_v13 = vrot.slane %v7769_v55, 1  ;;  %v7756_v31 = vld [vmem:[#allocation2 + $0x110] sm:$0xfe] }
 0x685   : > { %v14858_v40 = vadd.f32 %v6921_v51, %v14651_v61  ;;  %7563 = vmatmul.bf16.gmra.mxu0 %v7325_v17  ;;  %7661 = vmatmul.bf16.gmra.mxu2 %v7325_v17  ;;  %v7910_v20 = vrot.slane %v7771_v29, 1 }
 0x686   : > { %v7678_v25 = vpop.f32.mrf.mxu3 }
 0x688   : > { %v6969_v16 = vpop.f32.mrf.mxu2 }
 0x689   : > { %v7019_v28 = vadd.f32 %v7018_v24, %v6969_v16  ;;  %v7882_v24 = vrot.slane %v7752_v15, 1 }
 0x68a   : > { %v6873_v4 = vpop.f32.mrf.mxu0 }
 0x68b   : > { %v14863_v33 = vadd.f32 %v7019_v28, %v14659_v18  ;;  %v6923_v61 = vadd.f32 %v6922_v59, %v6873_v4  ;;  %v7583_v54 = vpop.f32.mrf.mxu1  ;;  %8373 = vmatmul.bf16.gmra.mxu3 %v8007_v42  ;;  %v7765_v18 = vld [vmem:[#allocation2 + $0x198] sm:$0xfe]  ;;  %v7884_v59 = vsel %vm2534_vm1, %v7882_v24, %v7883_v9  ;;  %v7760_v24 = vld [vmem:[#allocation2 + $0x150] sm:$0xfe]  ;;  %v7762_v9 = vld [vmem:[#allocation2 + $0x170] sm:$0x1] }
 0x68c   : > { %8275 = vmatmul.bf16.gmra.mxu1 %v8007_v42  ;;  %v8004_v16 = vpack.c.bf16 %v7884_v59, %v7878_v53  ;;  %v7903_v52 = vrot.slane %v7765_v18, 1  ;;  %v7888_v53 = vrot.slane %v7756_v31, 1  ;;  %v7895_v59 = vrot.slane %v7762_v9, 1  ;;  %v7764_v9 = vld [vmem:[#allocation2 + $0x190] sm:$0xfe] }
 0x68d   : > { %v14866_v46 = vadd.f32 %v6923_v61, %v14664_v7 }
 0x68e   : > { %v7681_v28 = vpop.f32.mrf.mxu3 }
 0x690   : > { %v6971_v32 = vpop.f32.mrf.mxu2 }
 0x691   : > { %v7021_v51 = vadd.f32 %v7020_v22, %v6971_v32  ;;  %v7904_v22 = vrot.slane %v7767_v63, 1 }
 0x692   : > { %v7529_v17 = vpop.f32.mrf.mxu0 }
 0x693   : > { %v14871_v60 = vadd.f32 %v7021_v51, %v14672_v48  ;;  %v7579_v7 = vadd.f32 %v7578_v45, %v7529_v17  ;;  %v7585_v4 = vpop.f32.mrf.mxu1  ;;  %v7905_v48 = vsel %vm2534_vm1, %v7903_v52, %v7904_v22  ;;  %v7911_v45 = vsel %vm2534_vm1, %v7909_v13, %v7910_v20  ;;  %v7775_v52 = vld [vmem:[#allocation2 + $0x238] sm:$0x1]  ;;  %v7777_v22 = vld [vmem:[#allocation2 + $0x258] sm:$0xfe] }
 0x694   : > { %v7889_v51 = vrot.slane %v7758_v38, 1  ;;  %v8009_v18 = vpack.c.bf16 %v7911_v45, %v7905_v48  ;;  %v7779_v13 = vld [vmem:[#allocation2 + $0x278] sm:$0x1]  ;;  %v7921_v48 = vrot.slane %v7777_v22, 1 }
 0x695   : > { %v14874_v10 = vadd.f32 %v7579_v7, %v14678_v47  ;;  %8221 = vmatmul.bf16.vlgmr.msrb.gmra.mxu0 %v8004_v16  ;;  %8319 = vmatmul.bf16.vlgmr.msrb.gmra.mxu2 %v8004_v16  ;;  %v7922_v45 = vrot.slane %v7779_v13, 1 }
 0x696   : > { %v7683_v32 = vpop.f32.mrf.mxu3  ;;  %v7890_v29 = vsel %vm2534_vm1, %v7888_v53, %v7889_v51  ;;  %v7766_v53 = vld [vmem:[#allocation2 + $0x1b0] sm:$0x1] }
 0x698   : > { %v7627_v61 = vpop.f32.mrf.mxu2 }
 0x699   : > { %v7677_v15 = vadd.f32 %v7676_v36, %v7627_v61  ;;  %v7894_v36 = vrot.slane %v7760_v24, 1 }
 0x69a   : > { %v7531_v34 = vpop.f32.mrf.mxu0 }
 0x69b   : > { %v14879_v42 = vadd.f32 %v7677_v15, %v14686_v19  ;;  %v7581_v47 = vadd.f32 %v7580_v35, %v7531_v34  ;;  %v7588_v63 = vpop.f32.mrf.mxu1  ;;  %8378 = vmatmul.bf16.gmra.mxu3 %v8009_v18  ;;  %v7773_v19 = vld [vmem:[#allocation2 + $0x218] sm:$0xfe]  ;;  %v7896_v35 = vsel %vm2534_vm1, %v7894_v36, %v7895_v59  ;;  %v7768_v36 = vld [vmem:[#allocation2 + $0x1d0] sm:$0xfe]  ;;  %v7770_v59 = vld [vmem:[#allocation2 + $0x1f0] sm:$0x1] }
 0x69c   : > { %8280 = vmatmul.bf16.gmra.mxu1 %v8009_v18  ;;  %v8006_v61 = vpack.c.bf16 %v7896_v35, %v7890_v29  ;;  %v7915_v31 = vrot.slane %v7773_v19, 1  ;;  %v7901_v29 = vrot.slane %v7766_v53, 1  ;;  %v7907_v35 = vrot.slane %v7770_v59, 1  ;;  %v7772_v59 = vld [vmem:[#allocation2 + $0x210] sm:$0xfe] }
 0x69d   : > { %v14882_v17 = vadd.f32 %v7581_v47, %v14692_v50 }
 0x69e   : > { %v7686_v15 = vpop.f32.mrf.mxu3 }
 0x6a0   : > { %v7629_v55 = vpop.f32.mrf.mxu2 }
 0x6a1   : > { %v7679_v7 = vadd.f32 %v7678_v25, %v7629_v55  ;;  %v7916_v25 = vrot.slane %v7775_v52, 1  ;;  %v7900_v55 = vrot.slane %v7764_v9, 1 }
 0x6a2   : > { %v7534_v16 = vpop.f32.mrf.mxu0 }
 0x6a3   : > { %v14887_v20 = vadd.f32 %v7679_v7, %v14700_v43  ;;  %v7584_v50 = vadd.f32 %v7583_v54, %v7534_v16  ;;  %v7590_v34 = vpop.f32.mrf.mxu1  ;;  %v7917_v43 = vsel %vm2534_vm1, %v7915_v31, %v7916_v25  ;;  %v7923_v54 = vsel %vm2534_vm1, %v7921_v48, %v7922_v45  ;;  %v7783_v31 = vld [vmem:[#allocation2 + $0x2b8] sm:$0x1]  ;;  %v7785_v25 = vld [vmem:[#allocation2 + $0x2d8] sm:$0xfe] }
 0x6a4   : > { %v8011_v19 = vpack.c.bf16 %v7923_v54, %v7917_v43  ;;  %v7902_v13 = vsel %vm2534_vm1, %v7900_v55, %v7901_v29  ;;  %v7787_v48 = vld [vmem:[#allocation2 + $0x2f8] sm:$0x1]  ;;  %v7933_v53 = vrot.slane %v7785_v25, 1  ;;  %v7774_v55 = vld [vmem:[#allocation2 + $0x230] sm:$0x1] }
 0x6a5   : > { %v14890_v38 = vadd.f32 %v7584_v50, %v14706_v21  ;;  %8226 = vmatmul.bf16.gmra.mxu0 %v8006_v61  ;;  %8324 = vmatmul.bf16.gmra.mxu2 %v8006_v61  ;;  %v7934_v43 = vrot.slane %v7787_v48, 1 }
 0x6a6   : > { %v7688_v7 = vpop.f32.mrf.mxu3 }
 0x6a8   : > { %v7632_v47 = vpop.f32.mrf.mxu2 }
 0x6a9   : > { %v7682_v24 = vadd.f32 %v7681_v28, %v7632_v47  ;;  %v7906_v28 = vrot.slane %v7768_v36, 1 }
 0x6aa   : > { %v7536_v51 = vpop.f32.mrf.mxu0 }
 0x6ab   : > { %v14895_v18 = vadd.f32 %v7682_v24, %v14714_v12  ;;  %v7586_v21 = vadd.f32 %v7585_v4, %v7536_v51  ;;  %v7593_v52 = vpop.f32.mrf.mxu1  ;;  %8383 = vmatmul.bf16.gmra.mxu3 %v8011_v19  ;;  %v7781_v12 = vld [vmem:[#allocation2 + $0x298] sm:$0xfe]  ;;  %v7908_v4 = vsel %vm2534_vm1, %v7906_v28, %v7907_v35  ;;  %v7776_v28 = vld [vmem:[#allocation2 + $0x250] sm:$0xfe]  ;;  %v7778_v35 = vld [vmem:[#allocation2 + $0x270] sm:$0x1] }
 0x6ac   : > { %8285 = vmatmul.bf16.gmra.mxu1 %v8011_v19  ;;  %v8008_v47 = vpack.c.bf16 %v7908_v4, %v7902_v13  ;;  %v7927_v24 = vrot.slane %v7781_v12, 1  ;;  %v7913_v13 = vrot.slane %v7774_v55, 1 }
 0x6ad   : > { %v14898_v16 = vadd.f32 %v7586_v21, %v14720_v2 }
 0x6ae   : > { %v7691_v54 = vpop.f32.mrf.mxu3 }
 0x6b0   : > { %v7634_v22 = vpop.f32.mrf.mxu2 }
 0x6b1   : > { %v7684_v50 = vadd.f32 %v7683_v32, %v7634_v22  ;;  %v7928_v32 = vrot.slane %v7783_v31, 1  ;;  %v7912_v22 = vrot.slane %v7772_v59, 1 }
 0x6b2   : > { %v7539_v61 = vpop.f32.mrf.mxu0 }
 0x6b3   : > { %v14903_v45 = vadd.f32 %v7684_v50, %v14728_v58  ;;  %v7589_v2 = vadd.f32 %v7588_v63, %v7539_v61  ;;  %v7595_v21 = vpop.f32.mrf.mxu1  ;;  %v7929_v58 = vsel %vm2534_vm1, %v7927_v24, %v7928_v32  ;;  %v7935_v63 = vsel %vm2534_vm1, %v7933_v53, %v7934_v43  ;;  %v7791_v24 = vld [vmem:[#allocation2 + $0x338] sm:$0x1]  ;;  %v7793_v32 = vld [vmem:[#allocation2 + $0x358] sm:$0xfe] }
 0x6b4   : > { %v8013_v50 = vpack.c.bf16 %v7935_v63, %v7929_v58  ;;  %v7919_v61 = vrot.slane %v7778_v35, 1  ;;  %v7914_v31 = vsel %vm2534_vm1, %v7912_v22, %v7913_v13  ;;  %v7795_v53 = vld [vmem:[#allocation2 + $0x378] sm:$0x1]  ;;  %v7945_v55 = vrot.slane %v7793_v32, 1 }
 0x6b5   : > { %v14906_v9 = vadd.f32 %v7589_v2, %v14734_v57  ;;  %8231 = vmatmul.bf16.gmra.mxu0 %v8008_v47  ;;  %8329 = vmatmul.bf16.gmra.mxu2 %v8008_v47  ;;  %v7789_v2 = vld [vmem:[#allocation2 + $0x318] sm:$0xfe]  ;;  %v7946_v58 = vrot.slane %v7795_v53, 1 }
 0x6b6   : > { %v7693_v25 = vpop.f32.mrf.mxu3  ;;  %v7797_v53 = vld [vmem:[#allocation2 + $0x398] sm:$0xfe] }
 0x6b8   : > { %v7637_v51 = vpop.f32.mrf.mxu2 }
 0x6b9   : > { %v7687_v36 = vadd.f32 %v7686_v15, %v7637_v51  ;;  %v7918_v15 = vrot.slane %v7776_v28, 1  ;;  %v7782_v28 = vld [vmem:[#allocation2 + $0x2b0] sm:$0x1] }
 0x6ba   : > { %v7541_v29 = vpop.f32.mrf.mxu0 }
 0x6bb   : > { %v14911_v19 = vadd.f32 %v7687_v36, %v14742_v3  ;;  %v7591_v57 = vadd.f32 %v7590_v34, %v7541_v29  ;;  %8388 = vmatmul.bf16.gmra.mxu3 %v8013_v50  ;;  %v7920_v34 = vsel %vm2534_vm1, %v7918_v15, %v7919_v61  ;;  %v7598_v47 = vpop.f32.mrf.mxu1  ;;  %v7939_v36 = vrot.slane %v7789_v2, 1  ;;  %v7786_v15 = vld [vmem:[#allocation2 + $0x2f0] sm:$0x1] }
 0x6bc   : > { %8290 = vmatmul.bf16.gmra.mxu1 %v8013_v50  ;;  %v8010_v51 = vpack.c.bf16 %v7920_v34, %v7914_v31  ;;  %v7784_v50 = vld [vmem:[#allocation2 + $0x2d0] sm:$0xfe] }
 0x6bd   : > { %v14914_v12 = vadd.f32 %v7591_v57, %v14748_v11  ;;  %v7780_v57 = vld [vmem:[#allocation2 + $0x290] sm:$0xfe]  ;;  %v7930_v2 = vrot.slane %v7784_v50, 1  ;;  %v7790_v50 = vld [vmem:[#allocation2 + $0x330] sm:$0x1] }
 0x6be   : > { %v7924_v61 = vrot.slane %v7780_v57, 1 }
 0x6c0   : > { %v7639_v4 = vpop.f32.mrf.mxu2 }
 0x6c1   : > { %v7689_v48 = vadd.f32 %v7688_v7, %v7639_v4  ;;  %v7940_v7 = vrot.slane %v7791_v24, 1  ;;  %v7925_v4 = vrot.slane %v7782_v28, 1 }
 0x6c2   : > { %v7544_v3 = vpop.f32.mrf.mxu0 }
 0x6c3   : > { %v14919_v11 = vadd.f32 %v7689_v48, %v14756_v41  ;;  %v7594_v43 = vadd.f32 %v7593_v52, %v7544_v3  ;;  %v7941_v35 = vsel %vm2534_vm1, %v7939_v36, %v7940_v7  ;;  %v7947_v41 = vsel %vm2534_vm1, %v7945_v55, %v7946_v58  ;;  %v7696_v52 = vpop.f32.mrf.mxu3  ;;  %v7600_v31 = vpop.f32.mrf.mxu1  ;;  %v7803_v36 = vld [vmem:[#allocation2 + $0x3f8] sm:$0x1] }
 0x6c4   : > { %v8015_v48 = vpack.c.bf16 %v7947_v41, %v7941_v35  ;;  %v7931_v3 = vrot.slane %v7786_v15, 1  ;;  %v7926_v24 = vsel %vm2534_vm1, %v7924_v61, %v7925_v4  ;;  %v7958_v28 = vrot.slane %v7803_v36, 1  ;;  %v7792_v4 = vld [vmem:[#allocation2 + $0x350] sm:$0xfe] }
 0x6c5   : > { %v14922_v59 = vadd.f32 %v7594_v43, %v14762_v39  ;;  %8236 = vmatmul.bf16.gmra.mxu0 %v8010_v51  ;;  %8334 = vmatmul.bf16.gmra.mxu2 %v8010_v51  ;;  %v7799_v43 = vld [vmem:[#allocation2 + $0x3b8] sm:$0x1]  ;;  %v7801_v51 = vld [vmem:[#allocation2 + $0x3d8] sm:$0xfe] }
 0x6c6   : > { %v7957_v57 = vrot.slane %v7801_v51, 1 }
 0x6c8   : > { %v7642_v63 = vpop.f32.mrf.mxu2 }
 0x6c9   : > { %v7692_v29 = vadd.f32 %v7691_v54, %v7642_v63  ;;  %v7951_v63 = vrot.slane %v7797_v53, 1 }
 0x6ca   : > { %v7546_v22 = vpop.f32.mrf.mxu0 }
 0x6cb   : > { %v14927_v13 = vadd.f32 %v7692_v29, %v14770_v30  ;;  %v7596_v39 = vadd.f32 %v7595_v21, %v7546_v22  ;;  %8393 = vmatmul.bf16.gmra.mxu3 %v8015_v48  ;;  %v7932_v21 = vsel %vm2534_vm1, %v7930_v2, %v7931_v3  ;;  %v7698_v58 = vpop.f32.mrf.mxu3  ;;  %v7603_v35 = vpop.f32.mrf.mxu1  ;;  %v7937_v3 = vrot.slane %v7790_v50, 1 }
 0x6cc   : > { %8295 = vmatmul.bf16.gmra.mxu1 %v8015_v48  ;;  %v8012_v55 = vpack.c.bf16 %v7932_v21, %v7926_v24  ;;  %v7794_v48 = vld [vmem:[#allocation2 + $0x370] sm:$0x1] }
 0x6cd   : > { %v14930_v54 = vadd.f32 %v7596_v39, %v14776_v37  ;;  %v7788_v39 = vld [vmem:[#allocation2 + $0x310] sm:$0xfe]  ;;  %v7943_v53 = vrot.slane %v7794_v48, 1 }
 0x6ce   : > { %v7936_v2 = vrot.slane %v7788_v39, 1 }
 0x6d0   : > { %v7644_v34 = vpop.f32.mrf.mxu2  ;;  %v7938_v21 = vsel %vm2534_vm1, %v7936_v2, %v7937_v3  ;;  %v7800_v3 = vld [vmem:[#allocation2 + $0x3d0] sm:$0xfe] }
 0x6d1   : > { %v7694_v32 = vadd.f32 %v7693_v25, %v7644_v34  ;;  %v7952_v25 = vrot.slane %v7799_v43, 1 }
 0x6d2   : > { %v7549_v30 = vpop.f32.mrf.mxu0 }
 0x6d3   : > { %v14935_v7 = vadd.f32 %v7694_v32, %v14784_v26  ;;  %v7599_v37 = vadd.f32 %v7598_v47, %v7549_v30  ;;  %v7953_v26 = vsel %vm2534_vm1, %v7951_v63, %v7952_v25  ;;  %v7959_v47 = vsel %vm2534_vm1, %v7957_v57, %v7958_v28  ;;  %v7605_v43 = vpop.f32.mrf.mxu1  ;;  %v7811_v63 = vld [vmem:[#allocation2 + $0x478] sm:$0x1] }
 0x6d4   : > { %v8017_v34 = vpack.c.bf16 %v7959_v47, %v7953_v26  ;;  %v7942_v32 = vrot.slane %v7792_v4, 1  ;;  %v7970_v39 = vrot.slane %v7811_v63, 1 }
 0x6d5   : > { %v14938_v29 = vadd.f32 %v7599_v37, %v14790_v5  ;;  %8241 = vmatmul.bf16.gmra.mxu0 %v8012_v55  ;;  %8339 = vmatmul.bf16.gmra.mxu2 %v8012_v55  ;;  %v7807_v37 = vld [vmem:[#allocation2 + $0x438] sm:$0x1]  ;;  %v7809_v55 = vld [vmem:[#allocation2 + $0x458] sm:$0xfe] }
 0x6d8   : > { %v7647_v41 = vpop.f32.mrf.mxu2 }
 0x6d9   : > { %v7697_v22 = vadd.f32 %v7696_v52, %v7647_v41  ;;  %v7701_v52 = vpop.f32.mrf.mxu3 }
 0x6da   : > { %v7551_v15 = vpop.f32.mrf.mxu0 }
 0x6db   : > { %v14943_v61 = vadd.f32 %v7697_v22, %v14798_v0  ;;  %v7601_v5 = vadd.f32 %v7600_v31, %v7551_v15  ;;  %8398 = vmatmul.bf16.gmra.mxu3 %v8017_v34  ;;  %v7805_v0 = vld [vmem:[#allocation2 + $0x418] sm:$0xfe]  ;;  %v7944_v31 = vsel %vm2534_vm1, %v7942_v32, %v7943_v53  ;;  %v7969_v22 = vrot.slane %v7809_v55, 1  ;;  %v7796_v15 = vld [vmem:[#allocation2 + $0x390] sm:$0xfe]  ;;  %v7608_v48 = vpop.f32.mrf.mxu1 }
 0x6dc   : > { %8300 = vmatmul.bf16.gmra.mxu1 %v8017_v34  ;;  %v8014_v57 = vpack.c.bf16 %v7944_v31, %v7938_v21  ;;  %v7963_v28 = vrot.slane %v7805_v0, 1  ;;  %v7802_v34 = vld [vmem:[#allocation2 + $0x3f0] sm:$0x1]  ;;  %v7948_v32 = vrot.slane %v7796_v15, 1 }
 0x6dd   : > { %v14946_v24 = vadd.f32 %v7601_v5, %v14804_v6  ;;  %v7798_v5 = vld [vmem:[#allocation2 + $0x3b0] sm:$0x1] }
 0x6de   : > { %v7949_v53 = vrot.slane %v7798_v5, 1 }
 0x6e0   : > { %v7649_v30 = vpop.f32.mrf.mxu2 }
 0x6e1   : > { %v7699_v51 = vadd.f32 %v7698_v58, %v7649_v30  ;;  %v7964_v58 = vrot.slane %v7807_v37, 1  ;;  %v7703_v26 = vpop.f32.mrf.mxu3 }
 0x6e2   : > { %v7554_v36 = vpop.f32.mrf.mxu0 }
 0x6e3   : > { %v14951_v6 = vadd.f32 %v7699_v51, %v14812_v23  ;;  %v7604_v25 = vadd.f32 %v7603_v35, %v7554_v36  ;;  %v7965_v4 = vsel %vm2534_vm1, %v7963_v28, %v7964_v58  ;;  %v7971_v23 = vsel %vm2534_vm1, %v7969_v22, %v7970_v39  ;;  %v7804_v58 = vld [vmem:[#allocation2 + $0x410] sm:$0xfe]  ;;  %v7806_v39 = vld [vmem:[#allocation2 + $0x430] sm:$0x1] }
 0x6e4   : > { %v8019_v30 = vpack.c.bf16 %v7971_v23, %v7965_v4  ;;  %v7955_v51 = vrot.slane %v7802_v34, 1  ;;  %v7950_v36 = vsel %vm2534_vm1, %v7948_v32, %v7949_v53  ;;  %v7960_v4 = vrot.slane %v7804_v58, 1 }
 0x6e5   : > { %v14954_v41 = vadd.f32 %v7604_v25, %v14818_v14  ;;  %8246 = vmatmul.bf16.gmra.mxu0 %v8014_v57  ;;  %8344 = vmatmul.bf16.gmra.mxu2 %v8014_v57  ;;  %v7610_v57 = vpop.f32.mrf.mxu1  ;;  %v7961_v23 = vrot.slane %v7806_v39, 1 }
 0x6e7   : > { %v7962_v34 = vsel %vm2534_vm1, %v7960_v4, %v7961_v23 }
 0x6e8   : > { %v7652_v50 = vpop.f32.mrf.mxu2 }
 0x6e9   : > { %v7702_v47 = vadd.f32 %v7701_v52, %v7652_v50  ;;  %v7954_v52 = vrot.slane %v7800_v3, 1  ;;  %v7706_v37 = vpop.f32.mrf.mxu3  ;;  %v7808_v50 = vld [vmem:[#allocation2 + $0x450] sm:$0xfe] }
 0x6ea   : > { %v7556_v35 = vpop.f32.mrf.mxu0 }
 0x6eb   : > { %v14959_v2 = vadd.f32 %v7702_v47, %v14826_v44  ;;  %v7606_v14 = vadd.f32 %v7605_v43, %v7556_v35  ;;  %8403 = vmatmul.bf16.gmra.mxu3 %v8019_v30  ;;  %v7956_v44 = vsel %vm2534_vm1, %v7954_v52, %v7955_v51  ;;  %v7966_v35 = vrot.slane %v7808_v50, 1 }
 0x6ec   : > { %8305 = vmatmul.bf16.gmra.mxu1 %v8019_v30  ;;  %v8016_v25 = vpack.c.bf16 %v7956_v44, %v7950_v36 }
 0x6ed   : > { %v14962_v21 = vadd.f32 %v7606_v14, %v14830_v27  ;;  %v7613_v14 = vpop.f32.mrf.mxu1 }
 0x6f0   : > { %v7654_v0 = vpop.f32.mrf.mxu2 }
 0x6f1   : > { %v7704_v31 = vadd.f32 %v7703_v26, %v7654_v0  ;;  %v7810_v26 = vld [vmem:[#allocation2 + $0x470] sm:$0x1]  ;;  %v7708_v5 = vpop.f32.mrf.mxu3 }
 0x6f2   : > { %v7559_v55 = vpop.f32.mrf.mxu0 }
 0x6f3   : > { %v14967_v43 = vadd.f32 %v7704_v31, %v14836_v8  ;;  %v7609_v63 = vadd.f32 %v7608_v48, %v7559_v55  ;;  %v7967_v48 = vrot.slane %v7810_v26, 1 }
 0x6f5   : > { %v14970_v27 = vadd.f32 %v7609_v63, %v14840_v56  ;;  %8251 = vmatmul.bf16.gmra.mxu0 %v8016_v25  ;;  %8349 = vmatmul.bf16.gmra.mxu2 %v8016_v25  ;;  %v7968_v32 = vsel %vm2534_vm1, %v7966_v35, %v7967_v48  ;;  %v7615_v36 = vpop.f32.mrf.mxu1 }
 0x6f6   : > { %v8018_v51 = vpack.c.bf16 %v7968_v32, %v7962_v34 }
 0x6f8   : > { %v7657_v28 = vpop.f32.mrf.mxu2 }
 0x6f9   : > { %v7707_v22 = vadd.f32 %v7706_v37, %v7657_v28  ;;  %v8441_v28 = vld [vmem:[#allocation13] sm:$0x3] }
 0x6fa   : > { %v7561_v47 = vpop.f32.mrf.mxu0  ;;  %v14995_v26 = vperm.slane %v8441_v28, 0 }
 0x6fb   : > { %v14973_v15 = vadd.f32 %v7707_v22, %v14846_v1  ;;  %v7611_v8 = vadd.f32 %v7610_v57, %v7561_v47 }
 0x6fd   : > { %v14976_v56 = vadd.f32 %v7611_v8, %v14850_v49  ;;  %v7711_v49 = vpop.f32.mrf.mxu3 }
 0x700   : > { %v7659_v3 = vpop.f32.mrf.mxu2 }
 0x701   : > { %v7709_v53 = vadd.f32 %v7708_v5, %v7659_v3 }
 0x702   : > { %v7564_v30 = vpop.f32.mrf.mxu0 }
 0x703   : > { %v14981_v1 = vadd.f32 %v7709_v53, %v14855_v62  ;;  %v7614_v52 = vadd.f32 %v7613_v14, %v7564_v30 }
 0x705   : > { %v14984_v0 = vadd.f32 %v7614_v52, %v14858_v40  ;;  %8256 = vmatmul.bf16.gmra.mxu0 %v8018_v51  ;;  %8354 = vmatmul.bf16.gmra.mxu2 %v8018_v51  ;;  %v7713_v62 = vpop.f32.mrf.mxu3  ;;  %v8271_v40 = vpop.f32.mrf.mxu1  ;;  %v14999_v52 = vperm.slane %v8441_v28, 1 }
 0x708   : > { %v7662_v31 = vpop.f32.mrf.mxu2 }
 0x709   : > { %v7712_v37 = vadd.f32 %v7711_v49, %v7662_v31 }
 0x70a   : > { %v7566_v55 = vpop.f32.mrf.mxu0 }
 0x70b   : > { %v14987_v44 = vadd.f32 %v7712_v37, %v14863_v33  ;;  %v7616_v63 = vadd.f32 %v7615_v36, %v7566_v55 }
 0x70d   : > { %v14990_v25 = vadd.f32 %v7616_v63, %v14866_v46  ;;  %v8369_v34 = vpop.f32.mrf.mxu3 }
 0x710   : > { %v7664_v57 = vpop.f32.mrf.mxu2 }
 0x711   : > { %v7714_v58 = vadd.f32 %v7713_v62, %v7664_v57 }
 0x712   : > { %v8222_v22 = vpop.f32.mrf.mxu0 }
 0x713   : > { %v14993_v39 = vadd.f32 %v7714_v58, %v14871_v60  ;;  %v8272_v50 = vadd.f32 %v8271_v40, %v8222_v22 }
 0x715   : > { %16024 = vst [vmem:[#allocation18_spill] sm:$0xff] %v14993_v39  ;;  %v8409_v47 = vadd.f32 %v8272_v50, %v14874_v10 }
 0x717   : > { %v8447_v33 = vadd.f32 %v14995_v26, %v8409_v47 }
 0x718   : > { %v8320_v53 = vpop.f32.mrf.mxu2 }
 0x719   : > { %v8511_v8 = vmul.f32 0.70710677, %v8447_v33  ;;  %v8370_v30 = vadd.f32 %v8369_v34, %v8320_v53 }
 0x71b   : > { %v8607_v5 = vand.u32 2147483647, %v8511_v8  ;;  %v8410_v31 = vadd.f32 %v8370_v30, %v14879_v42  ;;  %vm8543_vm6 = vcmp.ge.f32.partialorder %v8511_v8, 0.0 }
 0x71d   : > { %v8639_v46 = vmul.f32 0.3275911, %v8607_v5  ;;  %v9471_v49 = vsub.f32 0.0, %v8607_v5  ;;  %v15003_v55 = vadd.f32 %v14999_v52, %v8410_v31  ;;  %v8479_v31 = vmul.f32 0.5, %v8447_v33 }
 0x71f   : > { %v8671_v4 = vadd.f32 1.0, %v8639_v46  ;;  %v9503_v62 = vmul.f32 %v9471_v49, %v8607_v5  ;;  %v15006_v57 = vmul.f32 0.70710677, %v15003_v55 }
 0x721   : > { %12302 = vrcp.f32 %v8671_v4  ;;  %v8714_v14 = vand.u32 2147483648, %v8671_v4  ;;  %v8712_v60 = vand.u32 2147483647, %v8671_v4  ;;  %vm8708_vm3 = vweird.f32 %v8671_v4 }
 0x722   : > { %v8608_v40 = vand.u32 2147483647, %v15006_v57  ;;  %v9535_v22 = vmul.f32 1.442695, %v9503_v62  ;;  %vm8544_vm11 = vcmp.ge.f32.partialorder %v15006_v57, 0.0 }
 0x723   : > { %v8715_v10 = vor.u32 1.1754944e-38, %v8714_v14  ;;  %vm8713_vm5 = vcmp.eq.f32.partialorder %v8712_v60, 8.507059e+37 }
 0x724   : > { %v8640_v50 = vmul.f32 0.3275911, %v8608_v40  ;;  %12304 = vpow2.f32 %v9535_v22 }
 0x726   : > { %v8672_v46 = vadd.f32 1.0, %v8640_v50  ;;  %v9472_v50 = vsub.f32 0.0, %v8608_v40 }
 0x727   : > { %v12303_v23 = vpop.eup %12302 }
 0x728   : > { %v8704_v35 = vmul.f32 %v12303_v23, %v8671_v4  ;;  %vm8709_vm2 = vweird.f32 %v12303_v23  ;;  %12306 = vrcp.f32 %v8672_v46  ;;  %v8727_v49 = vand.u32 2147483647, %v8672_v46 }
 0x729   : > { %vm8710_vm4 = vmor %vm8708_vm3, %vm8709_vm2  ;;  %vm8723_vm8 = vweird.f32 %v8672_v46 }
 0x72a   : > { %v8705_v48 = vsub.f32 1.0, %v8704_v35  ;;  %v12305_v35 = vpop.eup %12304  ;;  %vm8728_vm10 = vcmp.eq.f32.partialorder %v8727_v49, 8.507059e+37 }
 0x72c   : > { %v8706_v3 = vmul.f32 %v12303_v23, %v8705_v48 }
 0x72e   : > { %v8707_v32 = vadd.f32 %v12303_v23, %v8706_v3  ;;  %v12307_v14 = vpop.eup %12306 }
 0x72f   : > { %v8719_v3 = vmul.f32 %v12307_v14, %v8672_v46  ;;  %vm8724_vm7 = vweird.f32 %v12307_v14 }
 0x730   : > { %v8711_v51 = vsel %vm8710_vm4, %v12303_v23, %v8707_v32  ;;  %v16015_v32 = vmov -1.0   ;;  %vm8725_vm9 = vmor %vm8723_vm8, %vm8724_vm7 }
 0x731   : > { %v8716_v36 = vsel %vm8713_vm5, %v8715_v10, %v8711_v51  ;;  %v8720_v34 = vsub.f32 1.0, %v8719_v3  ;;  %v8575_v53 = vsel %vm8543_vm6, 1.0, %v16015_v32  ;;  %v8729_v10 = vand.u32 2147483648, %v8672_v46 }
 0x732   : > { %v9183_v37 = vmul.f32 1.0614054, %v8716_v36 }
 0x733   : > { %v8721_v51 = vmul.f32 %v12307_v14, %v8720_v34  ;;  %v8730_v8 = vor.u32 1.1754944e-38, %v8729_v10 }
 0x734   : > { %v9215_v63 = vadd.f32 -1.4531521, %v9183_v37 }
 0x735   : > { %v8722_v62 = vadd.f32 %v12307_v14, %v8721_v51 }
 0x736   : > { %v9247_v58 = vmul.f32 %v9215_v63, %v8716_v36  ;;  %v8273_v63 = vpop.f32.mrf.mxu1 }
 0x737   : > { %v8726_v22 = vsel %vm8725_vm9, %v12307_v14, %v8722_v62 }
 0x738   : > { %v9279_v28 = vadd.f32 1.4214138, %v9247_v58  ;;  %v8731_v33 = vsel %vm8728_vm10, %v8730_v8, %v8726_v22 }
 0x739   : > { %v9184_v46 = vmul.f32 1.0614054, %v8731_v33 }
 0x73a   : > { %v9311_v47 = vmul.f32 %v9279_v28, %v8716_v36 }
 0x73c   : > { %v9343_v4 = vadd.f32 -0.28449672, %v9311_v47 }
 0x73e   : > { %v9375_v42 = vmul.f32 %v9343_v4, %v8716_v36 }
 0x740   : > { %v9407_v23 = vadd.f32 0.2548296, %v9375_v42  ;;  %v9216_v42 = vadd.f32 -1.4531521, %v9184_v46  ;;  %v8371_v46 = vpop.f32.mrf.mxu3 }
 0x742   : > { %v9439_v48 = vmul.f32 %v9407_v23, %v8716_v36  ;;  %v8224_v36 = vpop.f32.mrf.mxu0  ;;  %v9504_v23 = vmul.f32 %v9472_v50, %v8608_v40  ;;  %v8480_v50 = vmul.f32 0.5, %v15003_v55 }
 0x743   : > { %v8274_v58 = vadd.f32 %v8273_v63, %v8224_v36  ;;  %v8576_v36 = vsel %vm8544_vm11, 1.0, %v16015_v32 }
 0x744   : > { %v9599_v5 = vmul.f32 %v12305_v35, %v9439_v48  ;;  %v9248_v48 = vmul.f32 %v9216_v42, %v8731_v33  ;;  %v9537_v14 = vmul.f32 1.442695, %v9504_v23  ;;  %v8322_v42 = vpop.f32.mrf.mxu2 }
 0x745   : > { %v8411_v47 = vadd.f32 %v8274_v58, %v14882_v17  ;;  %v8372_v23 = vadd.f32 %v8371_v46, %v8322_v42 }
 0x746   : > { %v9631_v60 = vsub.f32 1.0, %v9599_v5  ;;  %v9280_v3 = vadd.f32 1.4214138, %v9248_v48  ;;  %12308 = vpow2.f32 %v9537_v14 }
 0x747   : > { %v15020_v4 = vadd.f32 %v14995_v26, %v8411_v47 }
 0x748   : > { %v9663_v30 = vmul.f32 %v9631_v60, %v8575_v53  ;;  %v9312_v34 = vmul.f32 %v9280_v3, %v8731_v33 }
 0x749   : > { %v15023_v35 = vmul.f32 0.70710677, %v15020_v4 }
 0x74a   : > { %v9695_v37 = vadd.f32 1.0, %v9663_v30  ;;  %v9344_v10 = vadd.f32 -0.28449672, %v9312_v34  ;;  %v8412_v34 = vadd.f32 %v8372_v23, %v14887_v20 }
 0x74b   : > { %v8609_v5 = vand.u32 2147483647, %v15023_v35  ;;  %vm8545_vm0 = vcmp.ge.f32.partialorder %v15023_v35, 0.0 }
 0x74c   : > { %v9727_v28 = vmul.f32 %v9695_v37, %v8479_v31  ;;  %v9376_v17 = vmul.f32 %v9344_v10, %v8731_v33  ;;  %v12309_v51 = vpop.eup %12308 }
 0x74d   : > { %v8641_v60 = vmul.f32 0.3275911, %v8609_v5  ;;  %v9473_v14 = vsub.f32 0.0, %v8609_v5 }
 0x74e   : > { %9759 = vst [vmem:[%s15015_s16] sm:$0xff] %v9727_v28  ;;  %v9408_v30 = vadd.f32 0.2548296, %v9376_v17  ;;  %v15032_v17 = vadd.f32 %v14999_v52, %v8412_v34  ;;  %v8276_v34 = vpop.f32.mrf.mxu1 }
 0x74f   : > { %v8673_v53 = vadd.f32 1.0, %v8641_v60 }
 0x750   : > { %v9440_v49 = vmul.f32 %v9408_v30, %v8731_v33  ;;  %v9505_v30 = vmul.f32 %v9473_v14, %v8609_v5 }
 0x751   : > { %12310 = vrcp.f32 %v8673_v53  ;;  %v8744_v8 = vand.u32 2147483648, %v8673_v53  ;;  %v8742_v22 = vand.u32 2147483647, %v8673_v53  ;;  %vm8738_vm13 = vweird.f32 %v8673_v53 }
 0x752   : > { %v9600_v40 = vmul.f32 %v12309_v51, %v9440_v49 }
 0x753   : > { %v8745_v57 = vor.u32 1.1754944e-38, %v8744_v8  ;;  %vm8743_vm15 = vcmp.eq.f32.partialorder %v8742_v22, 8.507059e+37 }
 0x754   : > { %v9632_v63 = vsub.f32 1.0, %v9600_v40 }
 0x756   : > { %v9664_v58 = vmul.f32 %v9632_v63, %v8576_v36 }
 0x757   : > { %v12311_v31 = vpop.eup %12310 }
 0x758   : > { %v8734_v37 = vmul.f32 %v12311_v31, %v8673_v53  ;;  %vm8739_vm12 = vweird.f32 %v12311_v31  ;;  %v9696_v47 = vadd.f32 1.0, %v9664_v58  ;;  %v15035_v53 = vmul.f32 0.70710677, %v15032_v17 }
 0x759   : > { %vm8740_vm14 = vmor %vm8738_vm13, %vm8739_vm12 }
 0x75a   : > { %v8735_v62 = vsub.f32 1.0, %v8734_v37  ;;  %v9728_v48 = vmul.f32 %v9696_v47, %v8480_v50  ;;  %v8610_v49 = vand.u32 2147483647, %v15035_v53  ;;  %vm8546_vm5 = vcmp.ge.f32.partialorder %v15035_v53, 0.0 }
 0x75b   : > { %v8482_v53 = vmul.f32 0.5, %v15032_v17 }
 0x75c   : > { %v8736_v28 = vmul.f32 %v12311_v31, %v8735_v62  ;;  %9760 = vst [vmem:[%s15015_s16 + $0x8] sm:$0xff] %v9728_v48  ;;  %v8642_v37 = vmul.f32 0.3275911, %v8610_v49 }
 0x75e   : > { %v8737_v33 = vadd.f32 %v12311_v31, %v8736_v28  ;;  %v8674_v62 = vadd.f32 1.0, %v8642_v37 }
 0x760   : > { %v8741_v3 = vsel %vm8740_vm14, %v12311_v31, %v8737_v33  ;;  %v9539_v31 = vmul.f32 1.442695, %v9505_v30  ;;  %v8577_v33 = vsel %vm8545_vm0, 1.0, %v16015_v32  ;;  %v8759_v42 = vand.u32 2147483648, %v8674_v62 }
 0x761   : > { %v8746_v60 = vsel %vm8743_vm15, %v8745_v57, %v8741_v3  ;;  %v8757_v48 = vand.u32 2147483647, %v8674_v62  ;;  %v8481_v3 = vmul.f32 0.5, %v15020_v4  ;;  %vm8753_vm2 = vweird.f32 %v8674_v62 }
 0x762   : > { %v9185_v10 = vmul.f32 1.0614054, %v8746_v60  ;;  %12312 = vpow2.f32 %v9539_v31  ;;  %v8760_v35 = vor.u32 1.1754944e-38, %v8759_v42 }
 0x763   : > { %12314 = vrcp.f32 %v8674_v62  ;;  %vm8758_vm4 = vcmp.eq.f32.partialorder %v8757_v48, 8.507059e+37 }
 0x764   : > { %v9217_v55 = vadd.f32 -1.4531521, %v9185_v10  ;;  %v8227_v10 = vpop.f32.mrf.mxu0 }
 0x766   : > { %v9249_v51 = vmul.f32 %v9217_v55, %v8746_v60  ;;  %v8277_v55 = vadd.f32 %v8276_v34, %v8227_v10  ;;  %v8278_v10 = vpop.f32.mrf.mxu1 }
 0x768   : > { %v9281_v40 = vadd.f32 1.4214138, %v9249_v51  ;;  %v12313_v58 = vpop.eup %12312  ;;  %v8413_v37 = vadd.f32 %v8277_v55, %v14890_v38 }
 0x769   : > { %v12315_v22 = vpop.eup %12314 }
 0x76a   : > { %v9313_v63 = vmul.f32 %v9281_v40, %v8746_v60  ;;  %v8749_v50 = vmul.f32 %v12315_v22, %v8674_v62  ;;  %vm8754_vm1 = vweird.f32 %v12315_v22  ;;  %v9474_v40 = vsub.f32 0.0, %v8610_v49 }
 0x76b   : > { %vm8755_vm3 = vmor %vm8753_vm2, %vm8754_vm1 }
 0x76c   : > { %v9345_v36 = vadd.f32 -0.28449672, %v9313_v63  ;;  %v8750_v46 = vsub.f32 1.0, %v8749_v50 }
 0x76e   : > { %v9377_v20 = vmul.f32 %v9345_v36, %v8746_v60  ;;  %v8751_v23 = vmul.f32 %v12315_v22, %v8750_v46  ;;  %v15044_v36 = vadd.f32 %v14995_v26, %v8413_v37 }
 0x770   : > { %v9409_v8 = vadd.f32 0.2548296, %v9377_v20  ;;  %v9506_v20 = vmul.f32 %v9474_v40, %v8610_v49  ;;  %v15047_v62 = vmul.f32 0.70710677, %v15044_v36  ;;  %v8578_v40 = vsel %vm8546_vm5, 1.0, %v16015_v32 }
 0x772   : > { %v9441_v28 = vmul.f32 %v9409_v8, %v8746_v60  ;;  %v8752_v60 = vadd.f32 %v12315_v22, %v8751_v23  ;;  %vm8547_vm10 = vcmp.ge.f32.partialorder %v15047_v62, 0.0 }
 0x774   : > { %v9601_v5 = vmul.f32 %v12313_v58, %v9441_v28  ;;  %v8756_v51 = vsel %vm8755_vm3, %v12315_v22, %v8752_v60  ;;  %v8611_v58 = vand.u32 2147483647, %v15047_v62  ;;  %v9541_v22 = vmul.f32 1.442695, %v9506_v20 }
 0x775   : > { %v8761_v31 = vsel %vm8758_vm4, %v8760_v35, %v8756_v51 }
 0x776   : > { %v9633_v47 = vsub.f32 1.0, %v9601_v5  ;;  %v9186_v63 = vmul.f32 1.0614054, %v8761_v31  ;;  %v8643_v5 = vmul.f32 0.3275911, %v8611_v58  ;;  %12316 = vpow2.f32 %v9541_v22 }
 0x778   : > { %v9665_v57 = vmul.f32 %v9633_v47, %v8577_v33  ;;  %v9218_v4 = vadd.f32 -1.4531521, %v9186_v63  ;;  %v8675_v47 = vadd.f32 1.0, %v8643_v5  ;;  %v8374_v33 = vpop.f32.mrf.mxu3 }
 0x77a   : > { %v9697_v14 = vadd.f32 1.0, %v9665_v57  ;;  %v9250_v8 = vmul.f32 %v9218_v4, %v8761_v31  ;;  %12318 = vrcp.f32 %v8675_v47  ;;  %v8325_v57 = vpop.f32.mrf.mxu2  ;;  %v8774_v37 = vand.u32 2147483648, %v8675_v47 }
 0x77b   : > { %v8375_v48 = vadd.f32 %v8374_v33, %v8325_v57  ;;  %vm8768_vm7 = vweird.f32 %v8675_v47 }
 0x77c   : > { %v9729_v30 = vmul.f32 %v9697_v14, %v8481_v3  ;;  %v9282_v28 = vadd.f32 1.4214138, %v9250_v8  ;;  %v12317_v23 = vpop.eup %12316  ;;  %v8229_v14 = vpop.f32.mrf.mxu0  ;;  %v8772_v8 = vand.u32 2147483647, %v8675_v47 }
 0x77d   : > { %v8414_v35 = vadd.f32 %v8375_v48, %v14895_v18  ;;  %v8279_v55 = vadd.f32 %v8278_v10, %v8229_v14 }
 0x77e   : > { %9761 = vst [vmem:[%s15015_s16 + $0x10] sm:$0xff] %v9729_v30  ;;  %v9314_v50 = vmul.f32 %v9282_v28, %v8761_v31  ;;  %vm8773_vm9 = vcmp.eq.f32.partialorder %v8772_v8, 8.507059e+37 }
 0x77f   : > { %v8452_v63 = vadd.f32 %v14999_v52, %v8414_v35  ;;  %v8281_v35 = vpop.f32.mrf.mxu1 }
 0x780   : > { %v9346_v46 = vadd.f32 -0.28449672, %v9314_v50  ;;  %v12319_v3 = vpop.eup %12318  ;;  %v8376_v22 = vpop.f32.mrf.mxu3 }
 0x781   : > { %v8764_v60 = vmul.f32 %v12319_v3, %v8675_v47  ;;  %vm8769_vm6 = vweird.f32 %v12319_v3  ;;  %v8516_v28 = vmul.f32 0.70710677, %v8452_v63 }
 0x782   : > { %v9378_v38 = vmul.f32 %v9346_v46, %v8761_v31  ;;  %v8327_v5 = vpop.f32.mrf.mxu2  ;;  %vm8770_vm8 = vmor %vm8768_vm7, %vm8769_vm6 }
 0x783   : > { %v8765_v51 = vsub.f32 1.0, %v8764_v60  ;;  %v8377_v33 = vadd.f32 %v8376_v22, %v8327_v5  ;;  %vm8548_vm11 = vcmp.ge.f32.partialorder %v8516_v28, 0.0  ;;  %v15074_v22 = vsel %vm8547_vm10, 1.0, %v16015_v32 }
 0x784   : > { %v9410_v42 = vadd.f32 0.2548296, %v9378_v38  ;;  %v9475_v38 = vsub.f32 0.0, %v8611_v58  ;;  %v8232_v47 = vpop.f32.mrf.mxu0 }
 0x785   : > { %v8766_v20 = vmul.f32 %v12319_v3, %v8765_v51  ;;  %v8416_v17 = vadd.f32 %v8377_v33, %v14903_v45  ;;  %v8282_v51 = vadd.f32 %v8281_v35, %v8232_v47 }
 0x786   : > { %v9442_v49 = vmul.f32 %v9410_v42, %v8761_v31  ;;  %v8415_v31 = vadd.f32 %v8279_v55, %v14898_v16  ;;  %v8775_v42 = vor.u32 1.1754944e-38, %v8774_v37  ;;  %v8612_v16 = vand.u32 2147483647, %v8516_v28 }
 0x787   : > { %v8767_v46 = vadd.f32 %v12319_v3, %v8766_v20  ;;  %v9507_v60 = vmul.f32 %v9475_v38, %v8611_v58  ;;  %v8417_v58 = vadd.f32 %v8282_v51, %v14906_v9  ;;  %v15071_v20 = vmul.f32 0.5, %v15044_v36 }
 0x788   : > { %v9602_v34 = vmul.f32 %v12317_v23, %v9442_v49  ;;  %v8453_v18 = vadd.f32 %v14995_v26, %v8415_v31  ;;  %v8644_v14 = vmul.f32 0.3275911, %v8612_v16  ;;  %v9476_v5 = vsub.f32 0.0, %v8612_v16  ;;  %v8379_v36 = vpop.f32.mrf.mxu3 }
 0x789   : > { %v8771_v49 = vsel %vm8770_vm8, %v12319_v3, %v8767_v46  ;;  %v9543_v3 = vmul.f32 1.442695, %v9507_v60  ;;  %v15084_v28 = vsel %vm8548_vm11, 1.0, %v16015_v32  ;;  %v15089_v33 = vadd.f32 %v14995_v26, %v8417_v58 }
 0x78a   : > { %v9634_v30 = vsub.f32 1.0, %v9602_v34  ;;  %v8517_v57 = vmul.f32 0.70710677, %v8453_v18  ;;  %v15058_v48 = vsel %vm8773_vm9, %v8775_v42, %v8771_v49  ;;  %v8676_v55 = vadd.f32 1.0, %v8644_v14 }
 0x78b   : > { %v9187_v34 = vmul.f32 1.0614054, %v15058_v48  ;;  %v15086_v38 = vmul.f32 0.5, %v8453_v18  ;;  %v9508_v47 = vmul.f32 %v9476_v5, %v8612_v16 }
 0x78c   : > { %v9666_v4 = vmul.f32 %v9634_v30, %v8578_v40  ;;  %v8613_v10 = vand.u32 2147483647, %v8517_v57  ;;  %v8454_v30 = vadd.f32 %v14999_v52, %v8416_v17  ;;  %12320 = vrcp.f32 %v8676_v55 }
 0x78d   : > { %v9219_v40 = vadd.f32 -1.4531521, %v9187_v34  ;;  %vm8549_vm12 = vcmp.ge.f32.partialorder %v8517_v57, 0.0  ;;  %v8787_v17 = vand.u32 2147483647, %v8676_v55  ;;  %vm8783_vm13 = vweird.f32 %v8676_v55 }
 0x78e   : > { %v9698_v50 = vadd.f32 1.0, %v9666_v4  ;;  %v8645_v37 = vmul.f32 0.3275911, %v8613_v10  ;;  %v15067_v4 = vmul.f32 0.70710677, %v8454_v30  ;;  %v15092_v49 = vsel %vm8549_vm12, 1.0, %v16015_v32 }
 0x78f   : > { %v9251_v45 = vmul.f32 %v9219_v40, %v15058_v48  ;;  %v9477_v14 = vsub.f32 0.0, %v8613_v10  ;;  %v15096_v34 = vmul.f32 0.70710677, %v15089_v33  ;;  %v15099_v35 = vmul.f32 0.5, %v8454_v30 }
 0x790   : > { %v9730_v23 = vmul.f32 %v9698_v50, %v8482_v53  ;;  %v15065_v31 = vadd.f32 1.0, %v8645_v37  ;;  %v8330_v53 = vpop.f32.mrf.mxu2  ;;  %v15078_v50 = vmul.f32 0.5, %v8452_v63  ;;  %v15081_v9 = vand.u32 2147483647, %v15067_v4 }
 0x791   : > { %v9283_v8 = vadd.f32 1.4214138, %v9251_v45  ;;  %v8380_v42 = vadd.f32 %v8379_v36, %v8330_v53  ;;  %v8789_v37 = vand.u32 2147483648, %v8676_v55  ;;  %v15104_v45 = vand.u32 2147483647, %v15096_v34 }
 0x792   : > { %9762 = vst [vmem:[%s15015_s16 + $0x18] sm:$0xff] %v9730_v23  ;;  %12322 = vrcp.f32 %v15065_v31  ;;  %v12321_v46 = vpop.eup %12320  ;;  %v8646_v63 = vmul.f32 0.3275911, %v15081_v9  ;;  %vm15108_vm15 = vcmp.eq.f32.partialorder %v8787_v17, 8.507059e+37  ;;  %v9545_v30 = vmul.f32 1.442695, %v9508_v47 }
 0x793   : > { %v9315_v62 = vmul.f32 %v9283_v8, %v15058_v48  ;;  %12324 = vpow2.f32 %v9543_v3  ;;  %v8779_v23 = vmul.f32 %v12321_v46, %v8676_v55  ;;  %v8418_v3 = vadd.f32 %v8380_v42, %v14911_v19 }
 0x794   : > { %v15101_v51 = vadd.f32 1.0, %v8646_v63  ;;  %vm8784_vm14 = vweird.f32 %v12321_v46  ;;  %v8802_v19 = vand.u32 2147483647, %v15065_v31  ;;  %v8790_v42 = vor.u32 1.1754944e-38, %v8789_v37 }
 0x795   : > { %v9347_v57 = vadd.f32 -0.28449672, %v9315_v62  ;;  %v8780_v60 = vsub.f32 1.0, %v8779_v23  ;;  %v9509_v62 = vmul.f32 %v9477_v14, %v8613_v10  ;;  %vm8785_vm0 = vmor %vm8783_vm13, %vm8784_vm14  ;;  %v8804_v63 = vand.u32 2147483648, %v15065_v31 }
 0x796   : > { %12326 = vrcp.f32 %v15101_v51  ;;  %v8647_v17 = vmul.f32 0.3275911, %v15104_v45  ;;  %vm8798_vm2 = vweird.f32 %v15065_v31  ;;  %vm8803_vm3 = vcmp.eq.f32.partialorder %v8802_v19, 8.507059e+37 }
 0x797   : > { %v9379_v18 = vmul.f32 %v9347_v57, %v15058_v48  ;;  %v8781_v8 = vmul.f32 %v12321_v46, %v8780_v60  ;;  %12328 = vpow2.f32 %v9545_v30  ;;  %v8817_v19 = vand.u32 2147483647, %v15101_v51 }
 0x798   : > { %v12323_v40 = vpop.eup %12322  ;;  %v15126_v55 = vadd.f32 1.0, %v8647_v17  ;;  %vm8813_vm6 = vweird.f32 %v15101_v51  ;;  %vm8550_vm13 = vcmp.ge.f32.partialorder %v15067_v4, 0.0 }
 0x799   : > { %v12325_v16 = vpop.eup %12324  ;;  %v9411_v58 = vadd.f32 0.2548296, %v9379_v18  ;;  %v8794_v53 = vmul.f32 %v12323_v40, %v15065_v31  ;;  %v8782_v57 = vadd.f32 %v12321_v46, %v8781_v8  ;;  %v15119_v18 = vadd.f32 %v14999_v52, %v8418_v3 }
 0x79a   : > { %vm8799_vm1 = vweird.f32 %v12323_v40  ;;  %12330 = vrcp.f32 %v15126_v55  ;;  %vm15148_vm7 = vcmp.eq.f32.partialorder %v8817_v19, 8.507059e+37  ;;  %vm8828_vm10 = vweird.f32 %v15126_v55 }
 0x79b   : > { %v9443_v36 = vmul.f32 %v9411_v58, %v15058_v48  ;;  %v8795_v23 = vsub.f32 1.0, %v8794_v53  ;;  %v8786_v10 = vsel %vm8785_vm0, %v12321_v46, %v8782_v57  ;;  %vm8800_vm4 = vmor %vm8798_vm2, %vm8799_vm1  ;;  %v9478_v46 = vsub.f32 0.0, %v15081_v9 }
 0x79c   : > { %v15123_v48 = vsel %vm15108_vm15, %v8790_v42, %v8786_v10  ;;  %v12327_v3 = vpop.eup %12326  ;;  %v15132_v8 = vmul.f32 0.70710677, %v15119_v18  ;;  %v8819_v42 = vand.u32 2147483648, %v15101_v51  ;;  %vm8551_vm2 = vcmp.ge.f32.partialorder %v15096_v34, 0.0 }
 0x79d   : > { %v9603_v47 = vmul.f32 %v12325_v16, %v9443_v36  ;;  %v8796_v14 = vmul.f32 %v12323_v40, %v8795_v23  ;;  %v9188_v37 = vmul.f32 1.0614054, %v15123_v48  ;;  %v8805_v16 = vor.u32 1.1754944e-38, %v8804_v63  ;;  %v8234_v36 = vpop.f32.mrf.mxu0 }
 0x79e   : > { %v8809_v30 = vmul.f32 %v12327_v3, %v15101_v51  ;;  %v9547_v23 = vmul.f32 1.442695, %v9509_v62  ;;  %vm8814_vm5 = vweird.f32 %v12327_v3  ;;  %v9479_v51 = vsub.f32 0.0, %v15104_v45 }
 0x79f   : > { %v9635_v60 = vsub.f32 1.0, %v9603_v47  ;;  %v8797_v58 = vadd.f32 %v12323_v40, %v8796_v14  ;;  %v9220_v31 = vadd.f32 -1.4531521, %v9188_v37  ;;  %v12329_v14 = vpop.eup %12328  ;;  %vm8815_vm8 = vmor %vm8813_vm6, %vm8814_vm5  ;;  %v8487_v34 = vmul.f32 0.5, %v15089_v33 }
 0x7a0   : > { %v8810_v10 = vsub.f32 1.0, %v8809_v30  ;;  %v8820_v30 = vor.u32 1.1754944e-38, %v8819_v42 }
 0x7a1   : > { %v9667_v53 = vmul.f32 %v9635_v60, %v15074_v22  ;;  %v8801_v5 = vsel %vm8800_vm4, %v12323_v40, %v8797_v58  ;;  %v9252_v17 = vmul.f32 %v9220_v31, %v15123_v48  ;;  %v8283_v22 = vpop.f32.mrf.mxu1  ;;  %v9510_v40 = vmul.f32 %v9478_v46, %v15081_v9 }
 0x7a2   : > { %v15136_v57 = vsel %vm8803_vm3, %v8805_v16, %v8801_v5  ;;  %v15144_v60 = vand.u32 2147483647, %v15132_v8  ;;  %v8284_v62 = vadd.f32 %v8283_v22, %v8234_v36  ;;  %v12331_v5 = vpop.eup %12330 }
 0x7a3   : > { %v9699_v63 = vadd.f32 1.0, %v9667_v53  ;;  %v9189_v47 = vmul.f32 1.0614054, %v15136_v57  ;;  %v9284_v58 = vadd.f32 1.4214138, %v9252_v17  ;;  %v8811_v53 = vmul.f32 %v12327_v3, %v8810_v10 }
 0x7a4   : > { %v8648_v32 = vmul.f32 0.3275911, %v15144_v60  ;;  %v8419_v42 = vadd.f32 %v8284_v62, %v14914_v12  ;;  %vm8829_vm9 = vweird.f32 %v12331_v5  ;;  %v9549_v62 = vmul.f32 1.442695, %v9510_v40 }
 0x7a5   : > { %v9731_v37 = vmul.f32 %v9699_v63, %v15071_v20  ;;  %v9221_v16 = vadd.f32 -1.4531521, %v9189_v47  ;;  %v9316_v9 = vmul.f32 %v9284_v58, %v15123_v48  ;;  %v8812_v36 = vadd.f32 %v12327_v3, %v8811_v53  ;;  %vm8830_vm11 = vmor %vm8828_vm10, %vm8829_vm9 }
 0x7a6   : > { %v8824_v20 = vmul.f32 %v12331_v5, %v15126_v55  ;;  %v8832_v63 = vand.u32 2147483647, %v15126_v55  ;;  %v15160_v19 = vadd.f32 1.0, %v8648_v32  ;;  %v8834_v58 = vand.u32 2147483648, %v15126_v55 }
 0x7a7   : > { %9763 = vst [vmem:[%s15015_s16 + $0x20] sm:$0xff] %v9731_v37  ;;  %v9253_v46 = vmul.f32 %v9221_v16, %v15136_v57  ;;  %v9348_v17 = vadd.f32 -0.28449672, %v9316_v9  ;;  %v8816_v10 = vsel %vm8815_vm8, %v12327_v3, %v8812_v36  ;;  %v9511_v3 = vmul.f32 %v9479_v51, %v15104_v45 }
 0x7a8   : > { %v8825_v22 = vsub.f32 1.0, %v8824_v20  ;;  %v15165_v37 = vsel %vm15148_vm7, %v8820_v30, %v8816_v10  ;;  %12332 = vrcp.f32 %v15160_v19  ;;  %v15175_v31 = vadd.f32 %v14995_v26, %v8419_v42  ;;  %v8332_v42 = vpop.f32.mrf.mxu2 }
 0x7a9   : > { %v9285_v47 = vadd.f32 1.4214138, %v9253_v46  ;;  %v9380_v16 = vmul.f32 %v9348_v17, %v15123_v48  ;;  %v9190_v53 = vmul.f32 1.0614054, %v15165_v37  ;;  %12334 = vpow2.f32 %v9547_v23 }
 0x7aa   : > { %v8826_v12 = vmul.f32 %v12331_v5, %v8825_v22  ;;  %vm8833_vm12 = vcmp.eq.f32.partialorder %v8832_v63, 8.507059e+37  ;;  %v8835_v20 = vor.u32 1.1754944e-38, %v8834_v58  ;;  %v15179_v17 = vmul.f32 0.70710677, %v15175_v31 }
 0x7ab   : > { %v9317_v32 = vmul.f32 %v9285_v47, %v15136_v57  ;;  %v9412_v30 = vadd.f32 0.2548296, %v9380_v16  ;;  %v9222_v46 = vadd.f32 -1.4531521, %v9190_v53  ;;  %12336 = vpow2.f32 %v9549_v62 }
 0x7ac   : > { %v8827_v36 = vadd.f32 %v12331_v5, %v8826_v12  ;;  %v9551_v10 = vmul.f32 1.442695, %v9511_v3  ;;  %v15188_v63 = vand.u32 2147483647, %v15179_v17  ;;  %v9480_v12 = vsub.f32 0.0, %v15144_v60 }
 0x7ad   : > { %v9349_v9 = vadd.f32 -0.28449672, %v9317_v32  ;;  %v9444_v40 = vmul.f32 %v9412_v30, %v15123_v48  ;;  %v9254_v45 = vmul.f32 %v9222_v46, %v15165_v37  ;;  %v8381_v32 = vpop.f32.mrf.mxu3  ;;  %vm8843_vm15 = vweird.f32 %v15160_v19 }
 0x7ae   : > { %v8831_v51 = vsel %vm8830_vm11, %v12331_v5, %v8827_v36  ;;  %v12333_v47 = vpop.eup %12332  ;;  %v8649_v5 = vmul.f32 0.3275911, %v15188_v63  ;;  %v8382_v30 = vadd.f32 %v8381_v32, %v8332_v42  ;;  %vm8552_vm7 = vcmp.ge.f32.partialorder %v15132_v8, 0.0 }
 0x7af   : > { %v9381_v55 = vmul.f32 %v9349_v9, %v15136_v57  ;;  %v15185_v23 = vsel %vm8833_vm12, %v8835_v20, %v8831_v51  ;;  %v9604_v22 = vmul.f32 %v12329_v14, %v9444_v40  ;;  %v9286_v16 = vadd.f32 1.4214138, %v9254_v45  ;;  %v12335_v36 = vpop.eup %12334 }
 0x7b0   : > { %v9191_v48 = vmul.f32 1.0614054, %v15185_v23  ;;  %v8839_v53 = vmul.f32 %v12333_v47, %v15160_v19  ;;  %v8847_v20 = vand.u32 2147483647, %v15160_v19  ;;  %v8849_v40 = vand.u32 2147483648, %v15160_v19 }
 0x7b1   : > { %v9413_v58 = vadd.f32 0.2548296, %v9381_v55  ;;  %v9636_v62 = vsub.f32 1.0, %v9604_v22  ;;  %v9318_v3 = vmul.f32 %v9286_v16, %v15165_v37  ;;  %v15198_v55 = vadd.f32 1.0, %v8649_v5  ;;  %v12337_v22 = vpop.eup %12336 }
 0x7b2   : > { %v9223_v46 = vadd.f32 -1.4531521, %v9191_v48  ;;  %v8840_v14 = vsub.f32 1.0, %v8839_v53  ;;  %vm8844_vm14 = vweird.f32 %v12333_v47  ;;  %vm8848_vm1 = vcmp.eq.f32.partialorder %v8847_v20, 8.507059e+37 }
 0x7b3   : > { %v9445_v9 = vmul.f32 %v9413_v58, %v15136_v57  ;;  %v9668_v45 = vmul.f32 %v9636_v62, %v15084_v28  ;;  %v9350_v39 = vadd.f32 -0.28449672, %v9318_v3  ;;  %12338 = vrcp.f32 %v15198_v55  ;;  %vm8845_vm0 = vmor %vm8843_vm15, %vm8844_vm14 }
 0x7b4   : > { %v9255_v42 = vmul.f32 %v9223_v46, %v15185_v23  ;;  %v8841_v32 = vmul.f32 %v12333_v47, %v8840_v14  ;;  %v8420_v57 = vadd.f32 %v8382_v30, %v14919_v11  ;;  %v8850_v28 = vor.u32 1.1754944e-38, %v8849_v40 }
 0x7b5   : > { %v9605_v51 = vmul.f32 %v12335_v36, %v9445_v9  ;;  %v9700_v58 = vadd.f32 1.0, %v9668_v45  ;;  %v9382_v48 = vmul.f32 %v9350_v39, %v15165_v37  ;;  %v9512_v62 = vmul.f32 %v9480_v12, %v15144_v60 }
 0x7b6   : > { %v9287_v53 = vadd.f32 1.4214138, %v9255_v42  ;;  %v8842_v5 = vadd.f32 %v12333_v47, %v8841_v32  ;;  %v16029_v11 = vmov -1.0   ;;  %v15215_v19 = vadd.f32 %v14999_v52, %v8420_v57  ;;  %v8237_v42 = vpop.f32.mrf.mxu0 }
 0x7b7   : > { %v9637_v16 = vsub.f32 1.0, %v9605_v51  ;;  %v9732_v9 = vmul.f32 %v9700_v58, %v15078_v50  ;;  %v9414_v46 = vadd.f32 0.2548296, %v9382_v48  ;;  %v8582_v39 = vsel %vm8550_vm13, 1.0, %v16029_v11 }
 0x7b8   : > { %v9319_v36 = vmul.f32 %v9287_v53, %v15185_v23  ;;  %v8846_v30 = vsel %vm8845_vm0, %v12333_v47, %v8842_v5  ;;  %12340 = vpow2.f32 %v9551_v10  ;;  %v9553_v40 = vmul.f32 1.442695, %v9512_v62  ;;  %v8335_v10 = vpop.f32.mrf.mxu2  ;;  %v8384_v62 = vpop.f32.mrf.mxu3 }
 0x7b9   : > { %v9669_v3 = vmul.f32 %v9637_v16, %v15092_v49  ;;  %9764 = vst [vmem:[%s15015_s16 + $0x28] sm:$0xff] %v9732_v9  ;;  %v9446_v50 = vmul.f32 %v9414_v46, %v15165_v37  ;;  %v15220_v12 = vsel %vm8848_vm1, %v8850_v28, %v8846_v30  ;;  %v12339_v14 = vpop.eup %12338  ;;  %v15224_v47 = vmul.f32 0.70710677, %v15215_v19 }
 0x7ba   : > { %v9351_v49 = vadd.f32 -0.28449672, %v9319_v36  ;;  %v9192_v4 = vmul.f32 1.0614054, %v15220_v12  ;;  %v8854_v37 = vmul.f32 %v12339_v14, %v15198_v55  ;;  %v8862_v57 = vand.u32 2147483647, %v15198_v55 }
 0x7bb   : > { %v9701_v60 = vadd.f32 1.0, %v9669_v3  ;;  %v9606_v45 = vmul.f32 %v12337_v22, %v9446_v50  ;;  %v15231_v58 = vand.u32 2147483647, %v15224_v47  ;;  %v8864_v5 = vand.u32 2147483648, %v15198_v55 }
 0x7bc   : > { %v9383_v51 = vmul.f32 %v9351_v49, %v15185_v23  ;;  %v9224_v32 = vadd.f32 -1.4531521, %v9192_v4  ;;  %v8855_v53 = vsub.f32 1.0, %v8854_v37  ;;  %vm8859_vm3 = vweird.f32 %v12339_v14 }
 0x7bd   : > { %v9733_v20 = vmul.f32 %v9701_v60, %v15086_v38  ;;  %v9638_v16 = vsub.f32 1.0, %v9606_v45  ;;  %v8286_v38 = vpop.f32.mrf.mxu1  ;;  %v8650_v28 = vmul.f32 0.3275911, %v15231_v58  ;;  %v8385_v30 = vadd.f32 %v8384_v62, %v8335_v10 }
 0x7be   : > { %v9415_v48 = vadd.f32 0.2548296, %v9383_v51  ;;  %v9256_v22 = vmul.f32 %v9224_v32, %v15220_v12  ;;  %v8287_v9 = vadd.f32 %v8286_v38, %v8237_v42  ;;  %v8856_v36 = vmul.f32 %v12339_v14, %v8855_v53  ;;  %v12341_v60 = vpop.eup %12340 }
 0x7bf   : > { %9765 = vst [vmem:[%s15015_s16 + $0x30] sm:$0xff] %v9733_v20  ;;  %v9670_v3 = vmul.f32 %v9638_v16, %v8582_v39  ;;  %vm8858_vm4 = vweird.f32 %v15198_v55  ;;  %v9481_v49 = vsub.f32 0.0, %v15188_v63  ;;  %v15240_v4 = vadd.f32 1.0, %v8650_v28 }
 0x7c0   : > { %v9447_v46 = vmul.f32 %v9415_v48, %v15185_v23  ;;  %v9288_v50 = vadd.f32 1.4214138, %v9256_v22  ;;  %v8857_v51 = vadd.f32 %v12339_v14, %v8856_v36  ;;  %v8421_v37 = vadd.f32 %v8287_v9, %v14922_v59  ;;  %vm8860_vm5 = vmor %vm8858_vm4, %vm8859_vm3 }
 0x7c1   : > { %v9702_v20 = vadd.f32 1.0, %v9670_v3  ;;  %v8865_v23 = vor.u32 1.1754944e-38, %v8864_v5  ;;  %12342 = vrcp.f32 %v15240_v4  ;;  %v8422_v42 = vadd.f32 %v8385_v30, %v14927_v13 }
 0x7c2   : > { %v9607_v45 = vmul.f32 %v12341_v60, %v9447_v46  ;;  %v9320_v39 = vmul.f32 %v9288_v50, %v15220_v12  ;;  %v8861_v10 = vsel %vm8860_vm5, %v12339_v14, %v8857_v51  ;;  %vm8863_vm6 = vcmp.eq.f32.partialorder %v8862_v57, 8.507059e+37 }
 0x7c3   : > { %v9734_v55 = vmul.f32 %v9702_v20, %v15099_v35  ;;  %v8583_v16 = vsel %vm8551_vm2, 1.0, %v16029_v11  ;;  %v15251_v59 = vsel %vm8863_vm6, %v8865_v23, %v8861_v10  ;;  %12344 = vpow2.f32 %v9553_v40  ;;  %v8239_v40 = vpop.f32.mrf.mxu0 }
 0x7c4   : > { %v9639_v32 = vsub.f32 1.0, %v9607_v45  ;;  %v9352_v48 = vadd.f32 -0.28449672, %v9320_v39  ;;  %v9193_v5 = vmul.f32 1.0614054, %v15251_v59  ;;  %v15256_v38 = vadd.f32 %v14995_v26, %v8421_v37 }
 0x7c5   : > { %9766 = vst [vmem:[%s15015_s16 + $0x38] sm:$0xff] %v9734_v55  ;;  %v9513_v35 = vmul.f32 %v9481_v49, %v15188_v63  ;;  %v15261_v14 = vadd.f32 %v14999_v52, %v8422_v42  ;;  %v8488_v46 = vmul.f32 0.5, %v15119_v18  ;;  %v8288_v30 = vpop.f32.mrf.mxu1  ;;  %v8584_v45 = vsel %vm8552_vm7, 1.0, %v16029_v11 }
 0x7c6   : > { %v9671_v53 = vmul.f32 %v9639_v32, %v8583_v16  ;;  %v9384_v13 = vmul.f32 %v9352_v48, %v15220_v12  ;;  %v9225_v22 = vadd.f32 -1.4531521, %v9193_v5  ;;  %v15265_v28 = vmul.f32 0.70710677, %v15256_v38 }
 0x7c7   : > { %v12343_v62 = vpop.eup %12342  ;;  %v15269_v3 = vmul.f32 0.70710677, %v15261_v14  ;;  %v9555_v50 = vmul.f32 1.442695, %v9513_v35  ;;  %v8289_v20 = vadd.f32 %v8288_v30, %v8239_v40  ;;  %v9482_v18 = vsub.f32 0.0, %v15231_v58  ;;  %v8337_v30 = vpop.f32.mrf.mxu2 }
 0x7c8   : > { %v9703_v57 = vadd.f32 1.0, %v9671_v53  ;;  %v9416_v9 = vadd.f32 0.2548296, %v9384_v13  ;;  %v9257_v36 = vmul.f32 %v9225_v22, %v15251_v59  ;;  %v8869_v33 = vmul.f32 %v12343_v62, %v15240_v4 }
 0x7c9   : > { %v15276_v49 = vand.u32 2147483647, %v15265_v28  ;;  %v12345_v8 = vpop.eup %12344  ;;  %v8879_v23 = vand.u32 2147483648, %v15240_v4  ;;  %vm8874_vm8 = vweird.f32 %v12343_v62  ;;  %v8877_v10 = vand.u32 2147483647, %v15240_v4 }
 0x7ca   : > { %v9735_v63 = vmul.f32 %v9703_v57, %v8487_v34  ;;  %v9448_v60 = vmul.f32 %v9416_v9, %v15220_v12  ;;  %v9289_v51 = vadd.f32 1.4214138, %v9257_v36  ;;  %v8870_v37 = vsub.f32 1.0, %v8869_v33 }
 0x7cb   : > { %v8651_v42 = vmul.f32 0.3275911, %v15276_v49  ;;  %v15284_v12 = vand.u32 2147483647, %v15269_v3  ;;  %v8423_v5 = vadd.f32 %v8289_v20, %v14930_v54  ;;  %12346 = vpow2.f32 %v9555_v50 }
 0x7cc   : > { %9767 = vst [vmem:[%s15015_s16 + $0x40] sm:$0xff] %v9735_v63  ;;  %v9608_v39 = vmul.f32 %v12345_v8, %v9448_v60  ;;  %v9321_v55 = vmul.f32 %v9289_v51, %v15251_v59  ;;  %v8871_v32 = vmul.f32 %v12343_v62, %v8870_v37  ;;  %vm8873_vm9 = vweird.f32 %v15240_v4 }
 0x7cd   : > { %v15288_v48 = vadd.f32 1.0, %v8651_v42  ;;  %v8652_v53 = vmul.f32 0.3275911, %v15284_v12  ;;  %vm8875_vm10 = vmor %vm8873_vm9, %vm8874_vm8  ;;  %v8880_v57 = vor.u32 1.1754944e-38, %v8879_v23  ;;  %v9514_v22 = vmul.f32 %v9482_v18, %v15231_v58  ;;  %v8386_v18 = vpop.f32.mrf.mxu3 }
 0x7ce   : > { %v9640_v16 = vsub.f32 1.0, %v9608_v39  ;;  %v9353_v13 = vadd.f32 -0.28449672, %v9321_v55  ;;  %v8872_v35 = vadd.f32 %v12343_v62, %v8871_v32  ;;  %vm8553_vm11 = vcmp.ge.f32.partialorder %v15179_v17, 0.0 }
 0x7cf   : > { %12348 = vrcp.f32 %v15288_v48  ;;  %vm8878_vm12 = vcmp.eq.f32.partialorder %v8877_v10, 8.507059e+37  ;;  %v15299_v36 = vadd.f32 1.0, %v8652_v53  ;;  %v15302_v4 = vadd.f32 %v14995_v26, %v8423_v5 }
 0x7d0   : > { %v9672_v34 = vmul.f32 %v9640_v16, %v8584_v45  ;;  %v9385_v40 = vmul.f32 %v9353_v13, %v15251_v59  ;;  %v8876_v9 = vsel %vm8875_vm10, %v12343_v62, %v8872_v35  ;;  %vm8554_vm13 = vcmp.ge.f32.partialorder %v15224_v47, 0.0 }
 0x7d1   : > { %v15297_v54 = vsel %vm8878_vm12, %v8880_v57, %v8876_v9  ;;  %v9557_v50 = vmul.f32 1.442695, %v9514_v22  ;;  %v9483_v62 = vsub.f32 0.0, %v15276_v49  ;;  %12350 = vrcp.f32 %v15299_v36  ;;  %v12347_v20 = vpop.eup %12346 }
 0x7d2   : > { %v9704_v63 = vadd.f32 1.0, %v9672_v34  ;;  %v9417_v33 = vadd.f32 0.2548296, %v9385_v40  ;;  %v9194_v58 = vmul.f32 1.0614054, %v15297_v54  ;;  %v8489_v8 = vmul.f32 0.5, %v15175_v31 }
 0x7d3   : > { %v8585_v45 = vsel %vm8553_vm11, 1.0, %v16029_v11  ;;  %v8892_v23 = vand.u32 2147483647, %v15288_v48  ;;  %v15319_v42 = vmul.f32 0.70710677, %v15302_v4  ;;  %v8387_v55 = vadd.f32 %v8386_v18, %v8337_v30 }
 0x7d4   : > { %v9736_v60 = vmul.f32 %v9704_v63, %v8488_v46  ;;  %v9449_v51 = vmul.f32 %v9417_v33, %v15251_v59  ;;  %v9226_v37 = vadd.f32 -1.4531521, %v9194_v58  ;;  %v15315_v46 = vmul.f32 0.5, %v15215_v19  ;;  %v8242_v63 = vpop.f32.mrf.mxu0 }
 0x7d5   : > { %v12349_v39 = vpop.eup %12348  ;;  %v15324_v17 = vsel %vm8554_vm13, 1.0, %v16029_v11  ;;  %12352 = vpow2.f32 %v9557_v50  ;;  %v8894_v19 = vand.u32 2147483648, %v15288_v48  ;;  %v9515_v10 = vmul.f32 %v9483_v62, %v15276_v49 }
 0x7d6   : > { %9768 = vst [vmem:[%s15015_s16 + $0x48] sm:$0xff] %v9736_v60  ;;  %v9609_v31 = vmul.f32 %v12347_v20, %v9449_v51  ;;  %v9258_v59 = vmul.f32 %v9226_v37, %v15297_v54  ;;  %v8884_v32 = vmul.f32 %v12349_v39, %v15288_v48  ;;  %v15331_v16 = vand.u32 2147483647, %v15319_v42 }
 0x7d7   : > { %vm8888_vm14 = vweird.f32 %v15288_v48  ;;  %v12351_v47 = vpop.eup %12350  ;;  %vm8889_vm15 = vweird.f32 %v12349_v39  ;;  %vm15334_vm0 = vcmp.eq.f32.partialorder %v8892_v23, 8.507059e+37  ;;  %v8424_v57 = vadd.f32 %v8387_v55, %v14935_v7  ;;  %v8291_v7 = vpop.f32.mrf.mxu1 }
 0x7d8   : > { %v9641_v53 = vsub.f32 1.0, %v9609_v31  ;;  %v9290_v5 = vadd.f32 1.4214138, %v9258_v59  ;;  %v8885_v13 = vsub.f32 1.0, %v8884_v32  ;;  %v8653_v34 = vmul.f32 0.3275911, %v15331_v16  ;;  %vm8890_vm1 = vmor %vm8888_vm14, %vm8889_vm15 }
 0x7d9   : > { %v8899_v9 = vmul.f32 %v12351_v47, %v15299_v36  ;;  %v8895_v33 = vor.u32 1.1754944e-38, %v8894_v19  ;;  %v8907_v58 = vand.u32 2147483647, %v15299_v36  ;;  %v8909_v30 = vand.u32 2147483648, %v15299_v36 }
 0x7da   : > { %v9673_v22 = vmul.f32 %v9641_v53, %v8585_v45  ;;  %v9322_v49 = vmul.f32 %v9290_v5, %v15297_v54  ;;  %v8886_v40 = vmul.f32 %v12349_v39, %v8885_v13  ;;  %v15344_v60 = vadd.f32 1.0, %v8653_v34 }
 0x7db   : > { %v8900_v51 = vsub.f32 1.0, %v8899_v9  ;;  %v12353_v45 = vpop.eup %12352  ;;  %vm8904_vm2 = vweird.f32 %v12351_v47  ;;  %v15351_v37 = vadd.f32 %v14999_v52, %v8424_v57  ;;  %v8292_v18 = vadd.f32 %v8291_v7, %v8242_v63  ;;  %v8389_v7 = vpop.f32.mrf.mxu3 }
 0x7dc   : > { %v9705_v50 = vadd.f32 1.0, %v9673_v22  ;;  %v9354_v62 = vadd.f32 -0.28449672, %v9322_v49  ;;  %v8887_v20 = vadd.f32 %v12349_v39, %v8886_v40  ;;  %12354 = vrcp.f32 %v15344_v60 }
 0x7dd   : > { %v8901_v59 = vmul.f32 %v12351_v47, %v8900_v51  ;;  %v15355_v32 = vmul.f32 0.5, %v15256_v38  ;;  %v9559_v48 = vmul.f32 1.442695, %v9515_v10  ;;  %v15362_v53 = vmul.f32 0.5, %v15261_v14 }
 0x7de   : > { %v9737_v23 = vmul.f32 %v9705_v50, %v8489_v8  ;;  %v9386_v55 = vmul.f32 %v9354_v62, %v15297_v54  ;;  %v8891_v31 = vsel %vm8890_vm1, %v12349_v39, %v8887_v20  ;;  %vm8903_vm3 = vweird.f32 %v15299_v36 }
 0x7df   : > { %v15359_v19 = vsel %vm15334_vm0, %v8895_v33, %v8891_v31  ;;  %v8902_v8 = vadd.f32 %v12351_v47, %v8901_v59  ;;  %vm8905_vm4 = vmor %vm8903_vm3, %vm8904_vm2  ;;  %v8910_v39 = vor.u32 1.1754944e-38, %v8909_v30  ;;  %v9484_v38 = vsub.f32 0.0, %v15284_v12 }
 0x7e0   : > { %9769 = vst [vmem:[%s15015_s16 + $0x50] sm:$0xff] %v9737_v23  ;;  %v9418_v5 = vadd.f32 0.2548296, %v9386_v55  ;;  %v9195_v13 = vmul.f32 1.0614054, %v15359_v19  ;;  %v8425_v10 = vadd.f32 %v8292_v18, %v14938_v29  ;;  %vm8908_vm5 = vcmp.eq.f32.partialorder %v8907_v58, 8.507059e+37 }
 0x7e1   : > { %v15370_v35 = vmul.f32 0.70710677, %v15351_v37  ;;  %v8906_v57 = vsel %vm8905_vm4, %v12351_v47, %v8902_v8  ;;  %vm8555_vm6 = vcmp.ge.f32.partialorder %v15265_v28, 0.0  ;;  %12356 = vpow2.f32 %v9559_v48 }
 0x7e2   : > { %v9450_v14 = vmul.f32 %v9418_v5, %v15297_v54  ;;  %v9227_v34 = vadd.f32 -1.4531521, %v9195_v13  ;;  %v12355_v22 = vpop.eup %12354  ;;  %v15375_v36 = vsel %vm8908_vm5, %v8910_v39, %v8906_v57  ;;  %v8340_v54 = vpop.f32.mrf.mxu2  ;;  %v9516_v47 = vmul.f32 %v9484_v38, %v15284_v12 }
 0x7e3   : > { %v15378_v49 = vand.u32 2147483647, %v15370_v35  ;;  %v9196_v63 = vmul.f32 1.0614054, %v15375_v36  ;;  %v8914_v29 = vmul.f32 %v12355_v22, %v15344_v60  ;;  %v8922_v33 = vand.u32 2147483647, %v15344_v60 }
 0x7e4   : > { %v9610_v40 = vmul.f32 %v12353_v45, %v9450_v14  ;;  %v9259_v9 = vmul.f32 %v9227_v34, %v15359_v19  ;;  %v15387_v30 = vadd.f32 %v14995_v26, %v8425_v10  ;;  %vm8919_vm7 = vweird.f32 %v12355_v22 }
 0x7e5   : > { %v8654_v58 = vmul.f32 0.3275911, %v15378_v49  ;;  %v9228_v20 = vadd.f32 -1.4531521, %v9196_v63  ;;  %v8915_v51 = vsub.f32 1.0, %v8914_v29  ;;  %v8924_v45 = vand.u32 2147483648, %v15344_v60 }
 0x7e6   : > { %v9642_v50 = vsub.f32 1.0, %v9610_v40  ;;  %v9291_v62 = vadd.f32 1.4214138, %v9259_v9  ;;  %v8390_v23 = vadd.f32 %v8389_v7, %v8340_v54  ;;  %vm8556_vm8 = vcmp.ge.f32.partialorder %v15269_v3, 0.0  ;;  %v8293_v7 = vpop.f32.mrf.mxu1 }
 0x7e7   : > { %v15390_v18 = vadd.f32 1.0, %v8654_v58  ;;  %v9260_v31 = vmul.f32 %v9228_v20, %v15375_v36  ;;  %v8916_v59 = vmul.f32 %v12355_v22, %v8915_v51  ;;  %v12357_v48 = vpop.eup %12356  ;;  %vm8918_vm9 = vweird.f32 %v15344_v60 }
 0x7e8   : > { %v9674_v12 = vmul.f32 %v9642_v50, %v15324_v17  ;;  %v9323_v55 = vmul.f32 %v9291_v62, %v15359_v19  ;;  %v15399_v5 = vmul.f32 0.70710677, %v15387_v30  ;;  %v9561_v38 = vmul.f32 1.442695, %v9516_v47  ;;  %vm8920_vm10 = vmor %vm8918_vm9, %vm8919_vm7 }
 0x7e9   : > { %12358 = vrcp.f32 %v15390_v18  ;;  %v9292_v39 = vadd.f32 1.4214138, %v9260_v31  ;;  %v8917_v17 = vadd.f32 %v12355_v22, %v8916_v59  ;;  %vm8923_vm11 = vcmp.eq.f32.partialorder %v8922_v33, 8.507059e+37  ;;  %v8244_v33 = vpop.f32.mrf.mxu0 }
 0x7ea   : > { %v9706_v13 = vadd.f32 1.0, %v9674_v12  ;;  %v9355_v8 = vadd.f32 -0.28449672, %v9323_v55  ;;  %v8925_v10 = vor.u32 1.1754944e-38, %v8924_v45  ;;  %v8426_v14 = vadd.f32 %v8390_v23, %v14943_v61 }
 0x7eb   : > { %v9324_v57 = vmul.f32 %v9292_v39, %v15375_v36  ;;  %v8921_v40 = vsel %vm8920_vm10, %v12355_v22, %v8917_v17  ;;  %v8587_v9 = vsel %vm8555_vm6, 1.0, %v16029_v11  ;;  %v9485_v29 = vsub.f32 0.0, %v15331_v16 }
 0x7ec   : > { %v9738_v34 = vmul.f32 %v9706_v13, %v15315_v46  ;;  %v9387_v60 = vmul.f32 %v9355_v8, %v15359_v19  ;;  %v15409_v63 = vsel %vm8923_vm11, %v8925_v10, %v8921_v40  ;;  %v15413_v54 = vand.u32 2147483647, %v15399_v5 }
 0x7ed   : > { %v8588_v46 = vsel %vm8556_vm8, 1.0, %v16029_v11  ;;  %v9356_v47 = vadd.f32 -0.28449672, %v9324_v57  ;;  %12360 = vpow2.f32 %v9561_v38  ;;  %v9197_v28 = vmul.f32 1.0614054, %v15409_v63 }
 0x7ee   : > { %9770 = vst [vmem:[%s15015_s16 + $0x58] sm:$0xff] %v9738_v34  ;;  %v9419_v61 = vadd.f32 0.2548296, %v9387_v60  ;;  %v8655_v58 = vmul.f32 0.3275911, %v15413_v54  ;;  %v15422_v50 = vadd.f32 %v14999_v52, %v8426_v14  ;;  %v15427_v51 = vmul.f32 0.5, %v15302_v4 }
 0x7ef   : > { %v12359_v22 = vpop.eup %12358  ;;  %v9388_v20 = vmul.f32 %v9356_v47, %v15375_v36  ;;  %v9229_v45 = vadd.f32 -1.4531521, %v9197_v28  ;;  %v9517_v23 = vmul.f32 %v9485_v29, %v15331_v16  ;;  %v8294_v55 = vadd.f32 %v8293_v7, %v8244_v33 }
 0x7f0   : > { %v9451_v62 = vmul.f32 %v9419_v61, %v15359_v19  ;;  %v8929_v3 = vmul.f32 %v12359_v22, %v15390_v18  ;;  %v15431_v12 = vadd.f32 1.0, %v8655_v58  ;;  %v8937_v8 = vand.u32 2147483647, %v15390_v18 }
 0x7f1   : > { %v9420_v59 = vadd.f32 0.2548296, %v9388_v20  ;;  %v9261_v19 = vmul.f32 %v9229_v45, %v15409_v63  ;;  %v8939_v39 = vand.u32 2147483648, %v15390_v18  ;;  %v15438_v4 = vmul.f32 0.70710677, %v15422_v50 }
 0x7f2   : > { %v9611_v31 = vmul.f32 %v12357_v48, %v9451_v62  ;;  %v8930_v13 = vsub.f32 1.0, %v8929_v3  ;;  %12362 = vrcp.f32 %v15431_v12  ;;  %vm8934_vm12 = vweird.f32 %v12359_v22  ;;  %v8342_v3 = vpop.f32.mrf.mxu2 }
 0x7f3   : > { %v9452_v16 = vmul.f32 %v9420_v59, %v15375_v36  ;;  %v12361_v10 = vpop.eup %12360  ;;  %vm8557_vm13 = vcmp.ge.f32.partialorder %v15319_v42, 0.0  ;;  %v9293_v48 = vadd.f32 1.4214138, %v9261_v19  ;;  %v9563_v14 = vmul.f32 1.442695, %v9517_v23  ;;  %v8391_v59 = vpop.f32.mrf.mxu3 }
 0x7f4   : > { %v9643_v17 = vsub.f32 1.0, %v9611_v31  ;;  %v8931_v38 = vmul.f32 %v12359_v22, %v8930_v13  ;;  %v9486_v34 = vsub.f32 0.0, %v15378_v49  ;;  %vm8933_vm14 = vweird.f32 %v15390_v18 }
 0x7f5   : > { %v9612_v57 = vmul.f32 %v12361_v10, %v9452_v16  ;;  %v9325_v29 = vmul.f32 %v9293_v48, %v15409_v63  ;;  %vm8935_vm15 = vmor %vm8933_vm14, %vm8934_vm12  ;;  %v8940_v61 = vor.u32 1.1754944e-38, %v8939_v39  ;;  %v15446_v36 = vand.u32 2147483647, %v15438_v4 }
 0x7f6   : > { %v9675_v60 = vmul.f32 %v9643_v17, %v8587_v9  ;;  %v8932_v40 = vadd.f32 %v12359_v22, %v8931_v38  ;;  %v8427_v47 = vadd.f32 %v8294_v55, %v14946_v24  ;;  %vm8938_vm0 = vcmp.eq.f32.partialorder %v8937_v8, 8.507059e+37 }
 0x7f7   : > { %v9644_v28 = vsub.f32 1.0, %v9612_v57  ;;  %v9357_v9 = vadd.f32 -0.28449672, %v9325_v29  ;;  %12364 = vpow2.f32 %v9563_v14  ;;  %v8656_v18 = vmul.f32 0.3275911, %v15446_v36 }
 0x7f8   : > { %v9707_v33 = vadd.f32 1.0, %v9675_v60  ;;  %v8936_v58 = vsel %vm8935_vm15, %v12359_v22, %v8932_v40  ;;  %v12363_v62 = vpop.eup %12362  ;;  %v9518_v22 = vmul.f32 %v9486_v34, %v15378_v49  ;;  %v15460_v13 = vadd.f32 %v14995_v26, %v8427_v47 }
 0x7f9   : > { %v15449_v20 = vsel %vm8938_vm0, %v8940_v61, %v8936_v58  ;;  %v9676_v45 = vmul.f32 %v9644_v28, %v8588_v46  ;;  %v8944_v24 = vmul.f32 %v12363_v62, %v15431_v12  ;;  %v9389_v55 = vmul.f32 %v9357_v9, %v15409_v63 }
 0x7fa   : > { %v9739_v7 = vmul.f32 %v9707_v33, %v15355_v32  ;;  %v9198_v23 = vmul.f32 1.0614054, %v15449_v20  ;;  %v15457_v31 = vadd.f32 1.0, %v8656_v18  ;;  %v8392_v46 = vadd.f32 %v8391_v59, %v8342_v3 }
 0x7fb   : > { %v9708_v8 = vadd.f32 1.0, %v9676_v45  ;;  %v8945_v32 = vsub.f32 1.0, %v8944_v24  ;;  %v9421_v39 = vadd.f32 0.2548296, %v9389_v55  ;;  %v8952_v17 = vand.u32 2147483647, %v15431_v12 }
 0x7fc   : > { %9771 = vst [vmem:[%s15015_s16 + $0x60] sm:$0xff] %v9739_v7  ;;  %v9230_v19 = vadd.f32 -1.4531521, %v9198_v23  ;;  %v8954_v16 = vand.u32 2147483648, %v15431_v12  ;;  %12366 = vrcp.f32 %v15457_v31  ;;  %vm8949_vm1 = vweird.f32 %v12363_v62 }
 0x7fd   : > { %v9740_v49 = vmul.f32 %v9708_v8, %v15362_v53  ;;  %v8946_v10 = vmul.f32 %v12363_v62, %v8945_v32  ;;  %v12365_v48 = vpop.eup %12364  ;;  %v8589_v14 = vsel %vm8557_vm13, 1.0, %v16029_v11  ;;  %v9453_v34 = vmul.f32 %v9421_v39, %v15409_v63 }
 0x7fe   : > { %v9262_v38 = vmul.f32 %v9230_v19, %v15449_v20  ;;  %v9565_v60 = vmul.f32 1.442695, %v9518_v22  ;;  %v15473_v57 = vmul.f32 0.70710677, %v15460_v13  ;;  %vm8948_vm2 = vweird.f32 %v15431_v12 }
 0x7ff   : > { %9772 = vst [vmem:[%s15015_s16 + $0x68] sm:$0xff] %v9740_v49  ;;  %v8947_v29 = vadd.f32 %v12363_v62, %v8946_v10  ;;  %v8428_v53 = vadd.f32 %v8392_v46, %v14951_v6  ;;  %v9613_v61 = vmul.f32 %v12365_v48, %v9453_v34  ;;  %vm8950_vm3 = vmor %vm8948_vm2, %vm8949_vm1  ;;  %v8955_v47 = vor.u32 1.1754944e-38, %v8954_v16  ;;  %v8247_v16 = vpop.f32.mrf.mxu0 }
 0x800   : > { %v9294_v40 = vadd.f32 1.4214138, %v9262_v38  ;;  %v9487_v33 = vsub.f32 0.0, %v15413_v54  ;;  %v15480_v42 = vand.u32 2147483647, %v15473_v57  ;;  %v15483_v63 = vmul.f32 0.5, %v15351_v37 }
 0x801   : > { %v8951_v58 = vsel %vm8950_vm3, %v12363_v62, %v8947_v29  ;;  %vm8953_vm4 = vcmp.eq.f32.partialorder %v8952_v17, 8.507059e+37  ;;  %v9645_v18 = vsub.f32 1.0, %v9613_v61  ;;  %v15490_v3 = vadd.f32 %v14999_v52, %v8428_v53 }
 0x802   : > { %v9326_v28 = vmul.f32 %v9294_v40, %v15449_v20  ;;  %v12367_v9 = vpop.eup %12366  ;;  %v15486_v12 = vsel %vm8953_vm4, %v8955_v47, %v8951_v58  ;;  %v8657_v6 = vmul.f32 0.3275911, %v15480_v42  ;;  %vm8558_vm5 = vcmp.ge.f32.partialorder %v15370_v35, 0.0 }
 0x803   : > { %v9199_v45 = vmul.f32 1.0614054, %v15486_v12  ;;  %v8959_v37 = vmul.f32 %v12367_v9, %v15457_v31  ;;  %v9677_v23 = vmul.f32 %v9645_v18, %v8589_v14  ;;  %12368 = vpow2.f32 %v9565_v60  ;;  %v8296_v60 = vpop.f32.mrf.mxu1 }
 0x804   : > { %v9358_v7 = vadd.f32 -0.28449672, %v9326_v28  ;;  %v9519_v62 = vmul.f32 %v9487_v33, %v15413_v54  ;;  %v15496_v24 = vadd.f32 1.0, %v8657_v6  ;;  %v8967_v8 = vand.u32 2147483647, %v15457_v31 }
 0x805   : > { %v9231_v22 = vadd.f32 -1.4531521, %v9199_v45  ;;  %v8960_v59 = vsub.f32 1.0, %v8959_v37  ;;  %v9709_v19 = vadd.f32 1.0, %v9677_v23  ;;  %v8969_v32 = vand.u32 2147483648, %v15457_v31  ;;  %v8345_v37 = vpop.f32.mrf.mxu2 }
 0x806   : > { %v9390_v55 = vmul.f32 %v9358_v7, %v15449_v20  ;;  %12370 = vrcp.f32 %v15496_v24  ;;  %v15503_v46 = vmul.f32 0.70710677, %v15490_v3  ;;  %vm8964_vm6 = vweird.f32 %v12367_v9 }
 0x807   : > { %v9263_v54 = vmul.f32 %v9231_v22, %v15486_v12  ;;  %v8961_v17 = vmul.f32 %v12367_v9, %v8960_v59  ;;  %v9741_v49 = vmul.f32 %v9709_v19, %v15427_v51  ;;  %v8590_v38 = vsel %vm8558_vm5, 1.0, %v16029_v11  ;;  %v8394_v19 = vpop.f32.mrf.mxu3 }
 0x808   : > { %v9422_v39 = vadd.f32 0.2548296, %v9390_v55  ;;  %vm8559_vm7 = vcmp.ge.f32.partialorder %v15399_v5, 0.0  ;;  %v9567_v10 = vmul.f32 1.442695, %v9519_v62  ;;  %vm8963_vm8 = vweird.f32 %v15457_v31 }
 0x809   : > { %v9295_v14 = vadd.f32 1.4214138, %v9263_v54  ;;  %v8962_v34 = vadd.f32 %v12367_v9, %v8961_v17  ;;  %v12369_v40 = vpop.eup %12368  ;;  %9773 = vst [vmem:[%s15015_s16 + $0x70] sm:$0xff] %v9741_v49  ;;  %vm8965_vm9 = vmor %vm8963_vm8, %vm8964_vm6  ;;  %v8970_v29 = vor.u32 1.1754944e-38, %v8969_v32  ;;  %v9488_v51 = vsub.f32 0.0, %v15446_v36 }
 0x80a   : > { %v9454_v48 = vmul.f32 %v9422_v39, %v15449_v20  ;;  %v15516_v53 = vand.u32 2147483647, %v15503_v46  ;;  %v8297_v35 = vadd.f32 %v8296_v60, %v8247_v16  ;;  %vm8968_vm10 = vcmp.eq.f32.partialorder %v8967_v8, 8.507059e+37 }
 0x80b   : > { %v9327_v47 = vmul.f32 %v9295_v14, %v15486_v12  ;;  %v8966_v33 = vsel %vm8965_vm9, %v12367_v9, %v8962_v34  ;;  %12372 = vpow2.f32 %v9567_v10  ;;  %v9520_v23 = vmul.f32 %v9488_v51, %v15446_v36 }
 0x80c   : > { %v9614_v61 = vmul.f32 %v12369_v40, %v9454_v48  ;;  %v12371_v20 = vpop.eup %12370  ;;  %v15519_v28 = vsel %vm8968_vm10, %v8970_v29, %v8966_v33  ;;  %v8658_v31 = vmul.f32 0.3275911, %v15516_v53  ;;  %v8429_v58 = vadd.f32 %v8297_v35, %v14954_v41 }
 0x80d   : > { %v9359_v6 = vadd.f32 -0.28449672, %v9327_v47  ;;  %v9200_v7 = vmul.f32 1.0614054, %v15519_v28  ;;  %v8974_v45 = vmul.f32 %v12371_v20, %v15496_v24  ;;  %v8982_v9 = vand.u32 2147483647, %v15496_v24 }
 0x80e   : > { %v9646_v18 = vsub.f32 1.0, %v9614_v61  ;;  %v8984_v62 = vand.u32 2147483648, %v15496_v24  ;;  %v15528_v55 = vadd.f32 1.0, %v8658_v31  ;;  %vm8979_vm11 = vweird.f32 %v12371_v20 }
 0x80f   : > { %v9391_v59 = vmul.f32 %v9359_v6, %v15486_v12  ;;  %v9232_v8 = vadd.f32 -1.4531521, %v9200_v7  ;;  %v8975_v41 = vsub.f32 1.0, %v8974_v45  ;;  %v15533_v32 = vadd.f32 %v14995_v26, %v8429_v58 }
 0x810   : > { %v9678_v22 = vmul.f32 %v9646_v18, %v8590_v38  ;;  %12374 = vrcp.f32 %v15528_v55  ;;  %v8395_v39 = vadd.f32 %v8394_v19, %v8345_v37  ;;  %v8495_v38 = vmul.f32 0.5, %v15387_v30 }
 0x811   : > { %v9423_v54 = vadd.f32 0.2548296, %v9391_v59  ;;  %v9264_v17 = vmul.f32 %v9232_v8, %v15519_v28  ;;  %v8976_v16 = vmul.f32 %v12371_v20, %v8975_v41  ;;  %v12373_v49 = vpop.eup %12372  ;;  %v8591_v10 = vsel %vm8559_vm7, 1.0, %v16029_v11 }
 0x812   : > { %v9710_v36 = vadd.f32 1.0, %v9678_v22  ;;  %v9569_v48 = vmul.f32 1.442695, %v9520_v23  ;;  %vm8978_vm12 = vweird.f32 %v15496_v24  ;;  %v8985_v29 = vor.u32 1.1754944e-38, %v8984_v62 }
 0x813   : > { %v9455_v34 = vmul.f32 %v9423_v54, %v15486_v12  ;;  %v9296_v60 = vadd.f32 1.4214138, %v9264_v17  ;;  %v8977_v40 = vadd.f32 %v12371_v20, %v8976_v16  ;;  %vm8980_vm13 = vmor %vm8978_vm12, %vm8979_vm11  ;;  %v9489_v51 = vsub.f32 0.0, %v15480_v42 }
 0x814   : > { %v9742_v14 = vmul.f32 %v9710_v36, %v15483_v63  ;;  %v15546_v30 = vmul.f32 0.70710677, %v15533_v32  ;;  %v8430_v5 = vadd.f32 %v8395_v39, %v14959_v2  ;;  %vm8983_vm14 = vcmp.eq.f32.partialorder %v8982_v9, 8.507059e+37  ;;  %v8249_v9 = vpop.f32.mrf.mxu0  ;;  %v8298_v39 = vpop.f32.mrf.mxu1 }
 0x815   : > { %v9615_v35 = vmul.f32 %v12373_v49, %v9455_v34  ;;  %v9328_v24 = vmul.f32 %v9296_v60, %v15519_v28  ;;  %v8981_v61 = vsel %vm8980_vm13, %v12371_v20, %v8977_v40  ;;  %v15552_v12 = vmul.f32 0.5, %v15422_v50 }
 0x816   : > { %9774 = vst [vmem:[%s15015_s16 + $0x78] sm:$0xff] %v9742_v14  ;;  %v12375_v63 = vpop.eup %12374  ;;  %vm8560_vm15 = vcmp.ge.f32.partialorder %v15438_v4, 0.0  ;;  %v15555_v47 = vsel %vm8983_vm14, %v8985_v29, %v8981_v61  ;;  %v15558_v33 = vand.u32 2147483647, %v15546_v30  ;;  %12376 = vpow2.f32 %v9569_v48 }
 0x817   : > { %v9647_v31 = vsub.f32 1.0, %v9615_v35  ;;  %v9360_v58 = vadd.f32 -0.28449672, %v9328_v24  ;;  %v9201_v2 = vmul.f32 1.0614054, %v15555_v47  ;;  %v8989_v18 = vmul.f32 %v12375_v63, %v15528_v55 }
 0x818   : > { %v9521_v20 = vmul.f32 %v9489_v51, %v15480_v42  ;;  %v8659_v6 = vmul.f32 0.3275911, %v15558_v33  ;;  %v15565_v50 = vadd.f32 %v14999_v52, %v8430_v5  ;;  %vm8994_vm0 = vweird.f32 %v12375_v63 }
 0x819   : > { %v9679_v7 = vmul.f32 %v9647_v31, %v8591_v10  ;;  %v9392_v45 = vmul.f32 %v9360_v58, %v15519_v28  ;;  %v9233_v37 = vadd.f32 -1.4531521, %v9201_v2  ;;  %v8990_v23 = vsub.f32 1.0, %v8989_v18  ;;  %v8347_v31 = vpop.f32.mrf.mxu2 }
 0x81a   : > { %v8997_v62 = vand.u32 2147483647, %v15528_v55  ;;  %v8999_v22 = vand.u32 2147483648, %v15528_v55  ;;  %v15570_v59 = vadd.f32 1.0, %v8659_v6  ;;  %vm8993_vm1 = vweird.f32 %v15528_v55  ;;  %v8396_v6 = vpop.f32.mrf.mxu3 }
 0x81b   : > { %v9711_v8 = vadd.f32 1.0, %v9679_v7  ;;  %v9424_v42 = vadd.f32 0.2548296, %v9392_v45  ;;  %v9265_v41 = vmul.f32 %v9233_v37, %v15555_v47  ;;  %v8991_v19 = vmul.f32 %v12375_v63, %v8990_v23  ;;  %vm8995_vm3 = vmor %vm8993_vm1, %vm8994_vm0 }
 0x81c   : > { %12378 = vrcp.f32 %v15570_v59  ;;  %v15576_v36 = vmul.f32 0.70710677, %v15565_v50  ;;  %v8299_v54 = vadd.f32 %v8298_v39, %v8249_v9  ;;  %v12377_v48 = vpop.eup %12376  ;;  %v8592_v14 = vsel %vm8560_vm15, 1.0, %v16029_v11 }
 0x81d   : > { %v9743_v17 = vmul.f32 %v9711_v8, %v8495_v38  ;;  %v9456_v16 = vmul.f32 %v9424_v42, %v15519_v28  ;;  %v9297_v49 = vadd.f32 1.4214138, %v9265_v41  ;;  %v8992_v10 = vadd.f32 %v12375_v63, %v8991_v19 }
 0x81e   : > { %vm8561_vm2 = vcmp.ge.f32.partialorder %v15473_v57, 0.0  ;;  %v9571_v34 = vmul.f32 1.442695, %v9521_v20  ;;  %v9000_v55 = vor.u32 1.1754944e-38, %v8999_v22  ;;  %vm8998_vm4 = vcmp.eq.f32.partialorder %v8997_v62, 8.507059e+37 }
 0x81f   : > { %9775 = vst [vmem:[%s15015_s16 + $0x80] sm:$0xff] %v9743_v17  ;;  %v9616_v60 = vmul.f32 %v12377_v48, %v9456_v16  ;;  %v9329_v40 = vmul.f32 %v9297_v49, %v15555_v47  ;;  %v8996_v38 = vsel %vm8995_vm3, %v12375_v63, %v8992_v10  ;;  %v9490_v29 = vsub.f32 0.0, %v15516_v53 }
 0x820   : > { %v15586_v28 = vsel %vm8998_vm4, %v9000_v55, %v8996_v38  ;;  %v15590_v51 = vand.u32 2147483647, %v15576_v36  ;;  %v8431_v4 = vadd.f32 %v8299_v54, %v14962_v21  ;;  %v15594_v35 = vmul.f32 0.5, %v15460_v13  ;;  %v8252_v38 = vpop.f32.mrf.mxu0 }
 0x821   : > { %v9648_v5 = vsub.f32 1.0, %v9616_v60  ;;  %v9361_v24 = vadd.f32 -0.28449672, %v9329_v40  ;;  %v9202_v61 = vmul.f32 1.0614054, %v15586_v28  ;;  %v8593_v63 = vsel %vm8561_vm2, 1.0, %v16029_v11 }
 0x822   : > { %v12379_v58 = vpop.eup %12378  ;;  %12380 = vpow2.f32 %v9571_v34  ;;  %vm8562_vm5 = vcmp.ge.f32.partialorder %v15503_v46, 0.0  ;;  %v8660_v2 = vmul.f32 0.3275911, %v15590_v51  ;;  %v9522_v7 = vmul.f32 %v9490_v29, %v15516_v53 }
 0x823   : > { %v9680_v18 = vmul.f32 %v9648_v5, %v8592_v14  ;;  %v9393_v21 = vmul.f32 %v9361_v24, %v15555_v47  ;;  %v9234_v20 = vadd.f32 -1.4531521, %v9202_v61  ;;  %v9004_v13 = vmul.f32 %v12379_v58, %v15570_v59 }
 0x824   : > { %v15605_v45 = vadd.f32 1.0, %v8660_v2  ;;  %v15608_v37 = vadd.f32 %v14995_v26, %v8431_v4  ;;  %v8397_v57 = vadd.f32 %v8396_v6, %v8347_v31  ;;  %vm9009_vm6 = vweird.f32 %v12379_v58  ;;  %v8301_v2 = vpop.f32.mrf.mxu1 }
 0x825   : > { %v9712_v23 = vadd.f32 1.0, %v9680_v18  ;;  %v9425_v9 = vadd.f32 0.2548296, %v9393_v21  ;;  %v9266_v62 = vmul.f32 %v9234_v20, %v15586_v28  ;;  %v9005_v22 = vsub.f32 1.0, %v9004_v13 }
 0x826   : > { %v9012_v8 = vand.u32 2147483647, %v15570_v59  ;;  %v9014_v42 = vand.u32 2147483648, %v15570_v59  ;;  %12382 = vrcp.f32 %v15605_v45  ;;  %v15617_v17 = vmul.f32 0.5, %v15490_v3 }
 0x827   : > { %v9744_v53 = vmul.f32 %v9712_v23, %v15552_v12  ;;  %v9457_v41 = vmul.f32 %v9425_v9, %v15555_v47  ;;  %v9298_v19 = vadd.f32 1.4214138, %v9266_v62  ;;  %v9006_v39 = vmul.f32 %v12379_v58, %v9005_v22 }
 0x828   : > { %v12381_v54 = vpop.eup %12380  ;;  %v9573_v16 = vmul.f32 1.442695, %v9522_v7  ;;  %v15620_v49 = vmul.f32 0.70710677, %v15608_v37  ;;  %v8432_v10 = vadd.f32 %v8397_v57, %v14967_v43  ;;  %vm9008_vm7 = vweird.f32 %v15570_v59 }
 0x829   : > { %9776 = vst [vmem:[%s15015_s16 + $0x88] sm:$0xff] %v9744_v53  ;;  %v9617_v48 = vmul.f32 %v12381_v54, %v9457_v41  ;;  %v9330_v14 = vmul.f32 %v9298_v19, %v15586_v28  ;;  %v9007_v34 = vadd.f32 %v12379_v58, %v9006_v39  ;;  %v8594_v12 = vsel %vm8562_vm5, 1.0, %v16029_v11  ;;  %vm9010_vm8 = vmor %vm9008_vm7, %vm9009_vm6 }
 0x82a   : > { %v9015_v3 = vor.u32 1.1754944e-38, %v9014_v42  ;;  %v9491_v47 = vsub.f32 0.0, %v15558_v33  ;;  %v15632_v55 = vand.u32 2147483647, %v15620_v49  ;;  %vm9013_vm9 = vcmp.eq.f32.partialorder %v9012_v8, 8.507059e+37 }
 0x82b   : > { %v9649_v43 = vsub.f32 1.0, %v9617_v48  ;;  %v9362_v60 = vadd.f32 -0.28449672, %v9330_v14  ;;  %v9011_v40 = vsel %vm9010_vm8, %v12379_v58, %v9007_v34  ;;  %12384 = vpow2.f32 %v9573_v16 }
 0x82c   : > { %v12383_v29 = vpop.eup %12382  ;;  %v15634_v59 = vsel %vm9013_vm9, %v9015_v3, %v9011_v40  ;;  %v8661_v46 = vmul.f32 0.3275911, %v15632_v55  ;;  %v15638_v4 = vadd.f32 %v14999_v52, %v8432_v10  ;;  %v9523_v58 = vmul.f32 %v9491_v47, %v15558_v33  ;;  %v8350_v40 = vpop.f32.mrf.mxu2 }
 0x82d   : > { %v9681_v5 = vmul.f32 %v9649_v43, %v8593_v63  ;;  %v9394_v24 = vmul.f32 %v9362_v60, %v15586_v28  ;;  %v9203_v61 = vmul.f32 1.0614054, %v15634_v59  ;;  %v9019_v31 = vmul.f32 %v12383_v29, %v15605_v45 }
 0x82e   : > { %v9027_v18 = vand.u32 2147483647, %v15605_v45  ;;  %v15645_v21 = vadd.f32 1.0, %v8661_v46  ;;  %v8302_v20 = vadd.f32 %v8301_v2, %v8252_v38  ;;  %vm9024_vm10 = vweird.f32 %v12383_v29  ;;  %v8399_v2 = vpop.f32.mrf.mxu3 }
 0x82f   : > { %v9713_v13 = vadd.f32 1.0, %v9681_v5  ;;  %v9426_v6 = vadd.f32 0.2548296, %v9394_v24  ;;  %v9235_v7 = vadd.f32 -1.4531521, %v9203_v61  ;;  %v9020_v57 = vsub.f32 1.0, %v9019_v31 }
 0x830   : > { %v9029_v63 = vand.u32 2147483648, %v15605_v45  ;;  %12386 = vrcp.f32 %v15645_v21  ;;  %v15650_v23 = vmul.f32 0.70710677, %v15638_v4  ;;  %v15656_v42 = vmul.f32 0.5, %v15533_v32 }
 0x831   : > { %v9745_v33 = vmul.f32 %v9713_v13, %v15594_v35  ;;  %v9458_v9 = vmul.f32 %v9426_v6, %v15586_v28  ;;  %v9267_v62 = vmul.f32 %v9235_v7, %v15634_v59  ;;  %v9021_v22 = vmul.f32 %v12383_v29, %v9020_v57  ;;  %v12385_v8 = vpop.eup %12384 }
 0x832   : > { %vm8563_vm11 = vcmp.ge.f32.partialorder %v15546_v30, 0.0  ;;  %v9575_v53 = vmul.f32 1.442695, %v9523_v58  ;;  %v8433_v41 = vadd.f32 %v8302_v20, %v14970_v27  ;;  %vm9023_vm12 = vweird.f32 %v15605_v45 }
 0x833   : > { %9777 = vst [vmem:[%s15015_s16 + $0x90] sm:$0xff] %v9745_v33  ;;  %v9618_v19 = vmul.f32 %v12385_v8, %v9458_v9  ;;  %v9299_v39 = vadd.f32 1.4214138, %v9267_v62  ;;  %v9022_v54 = vadd.f32 %v12383_v29, %v9021_v22  ;;  %vm8564_vm13 = vcmp.ge.f32.partialorder %v15576_v36, 0.0  ;;  %vm9025_vm14 = vmor %vm9023_vm12, %vm9024_vm10 }
 0x834   : > { %v9030_v28 = vor.u32 1.1754944e-38, %v9029_v63  ;;  %v9492_v35 = vsub.f32 0.0, %v15590_v51  ;;  %v15666_v32 = vand.u32 2147483647, %v15650_v23  ;;  %vm9028_vm15 = vcmp.eq.f32.partialorder %v9027_v18, 8.507059e+37 }
 0x835   : > { %v9650_v16 = vsub.f32 1.0, %v9618_v19  ;;  %v9331_v10 = vmul.f32 %v9299_v39, %v15634_v59  ;;  %v9026_v27 = vsel %vm9025_vm14, %v12383_v29, %v9022_v54  ;;  %12388 = vpow2.f32 %v9575_v53 }
 0x836   : > { %v12387_v48 = vpop.eup %12386  ;;  %v15669_v14 = vsel %vm9028_vm15, %v9030_v28, %v9026_v27  ;;  %v8662_v45 = vmul.f32 0.3275911, %v15666_v32  ;;  %v15673_v34 = vadd.f32 %v14995_v26, %v8433_v41  ;;  %v9524_v38 = vmul.f32 %v9492_v35, %v15590_v51  ;;  %v8303_v27 = vpop.f32.mrf.mxu1 }
 0x837   : > { %v9682_v3 = vmul.f32 %v9650_v16, %v8594_v12  ;;  %v9363_v47 = vadd.f32 -0.28449672, %v9331_v10  ;;  %v9204_v43 = vmul.f32 1.0614054, %v15669_v14  ;;  %v9034_v60 = vmul.f32 %v12387_v48, %v15645_v21 }
 0x838   : > { %v9042_v29 = vand.u32 2147483647, %v15645_v21  ;;  %v9044_v46 = vand.u32 2147483648, %v15645_v21  ;;  %v15680_v5 = vadd.f32 1.0, %v8662_v45  ;;  %vm9039_vm0 = vweird.f32 %v12387_v48 }
 0x839   : > { %v9714_v24 = vadd.f32 1.0, %v9682_v3  ;;  %v9395_v61 = vmul.f32 %v9363_v47, %v15634_v59  ;;  %v9236_v31 = vadd.f32 -1.4531521, %v9204_v43  ;;  %v9035_v12 = vsub.f32 1.0, %v9034_v60 }
 0x83a   : > { %12390 = vrcp.f32 %v15680_v5  ;;  %v15685_v58 = vmul.f32 0.70710677, %v15673_v34  ;;  %v8400_v51 = vadd.f32 %v8399_v2, %v8350_v40  ;;  %v8595_v57 = vsel %vm8563_vm11, 1.0, %v16029_v11 }
 0x83b   : > { %v9746_v18 = vmul.f32 %v9714_v24, %v15617_v17  ;;  %v9427_v20 = vadd.f32 0.2548296, %v9395_v61  ;;  %v9268_v13 = vmul.f32 %v9236_v31, %v15669_v14  ;;  %v9036_v6 = vmul.f32 %v12387_v48, %v9035_v12  ;;  %v12389_v7 = vpop.eup %12388 }
 0x83c   : > { %v15693_v63 = vmul.f32 0.5, %v15565_v50  ;;  %v15698_v33 = vsel %vm8564_vm13, 1.0, %v16029_v11  ;;  %v9577_v9 = vmul.f32 1.442695, %v9524_v38  ;;  %vm9038_vm1 = vweird.f32 %v15645_v21 }
 0x83d   : > { %9778 = vst [vmem:[%s15015_s16 + $0x98] sm:$0xff] %v9746_v18  ;;  %v9459_v17 = vmul.f32 %v9427_v20, %v15634_v59  ;;  %v9300_v62 = vadd.f32 1.4214138, %v9268_v13  ;;  %v9037_v22 = vadd.f32 %v12387_v48, %v9036_v6  ;;  %vm9040_vm2 = vmor %vm9038_vm1, %vm9039_vm0  ;;  %v9045_v30 = vor.u32 1.1754944e-38, %v9044_v46  ;;  %v8254_v59 = vpop.f32.mrf.mxu0 }
 0x83e   : > { %v9493_v8 = vsub.f32 0.0, %v15632_v55  ;;  %v15706_v50 = vand.u32 2147483647, %v15685_v58  ;;  %v8434_v36 = vadd.f32 %v8400_v51, %v14973_v15  ;;  %vm9043_vm3 = vcmp.eq.f32.partialorder %v9042_v29, 8.507059e+37 }
 0x83f   : > { %v9619_v53 = vmul.f32 %v12389_v7, %v9459_v17  ;;  %v9332_v41 = vmul.f32 %v9300_v62, %v15669_v14  ;;  %v9041_v19 = vsel %vm9040_vm2, %v12387_v48, %v9037_v22  ;;  %12392 = vpow2.f32 %v9577_v9 }
 0x840   : > { %v12391_v39 = vpop.eup %12390  ;;  %v15711_v21 = vmul.f32 0.5, %v15608_v37  ;;  %v15713_v54 = vsel %vm9043_vm3, %v9045_v30, %v9041_v19  ;;  %v8663_v28 = vmul.f32 0.3275911, %v15706_v50  ;;  %v9525_v48 = vmul.f32 %v9493_v8, %v15632_v55  ;;  %v8401_v19 = vpop.f32.mrf.mxu3 }
 0x841   : > { %v9651_v35 = vsub.f32 1.0, %v9619_v53  ;;  %v9364_v16 = vadd.f32 -0.28449672, %v9332_v41  ;;  %v9205_v10 = vmul.f32 1.0614054, %v15713_v54  ;;  %v9049_v15 = vmul.f32 %v12391_v39, %v15680_v5 }
 0x842   : > { %v15719_v45 = vadd.f32 1.0, %v8663_v28  ;;  %v15722_v3 = vadd.f32 %v14999_v52, %v8434_v36  ;;  %v8304_v37 = vadd.f32 %v8303_v27, %v8254_v59  ;;  %vm9054_vm4 = vweird.f32 %v12391_v39 }
 0x843   : > { %v9683_v47 = vmul.f32 %v9651_v35, %v8595_v57  ;;  %v9396_v43 = vmul.f32 %v9364_v16, %v15669_v14  ;;  %v9237_v60 = vadd.f32 -1.4531521, %v9205_v10  ;;  %v9050_v40 = vsub.f32 1.0, %v9049_v15 }
 0x844   : > { %v9057_v38 = vand.u32 2147483647, %v15680_v5  ;;  %v9059_v29 = vand.u32 2147483648, %v15680_v5  ;;  %12394 = vrcp.f32 %v15719_v45  ;;  %v9579_v12 = vmul.f32 1.442695, %v9525_v48 }
 0x845   : > { %v9715_v46 = vadd.f32 1.0, %v9683_v47  ;;  %v9428_v55 = vadd.f32 0.2548296, %v9396_v43  ;;  %v9269_v24 = vmul.f32 %v9237_v60, %v15713_v54  ;;  %v9051_v61 = vmul.f32 %v12391_v39, %v9050_v40  ;;  %v12393_v31 = vpop.eup %12392 }
 0x846   : > { %vm9053_vm5 = vweird.f32 %v15680_v5  ;;  %v15731_v2 = vmul.f32 0.70710677, %v15722_v3  ;;  %v8435_v51 = vadd.f32 %v8304_v37, %v14976_v56  ;;  %vm8565_vm6 = vcmp.ge.f32.partialorder %v15620_v49, 0.0 }
 0x847   : > { %v9747_v18 = vmul.f32 %v9715_v46, %v15656_v42  ;;  %v9460_v20 = vmul.f32 %v9428_v55, %v15669_v14  ;;  %v9301_v13 = vadd.f32 1.4214138, %v9269_v24  ;;  %v9052_v6 = vadd.f32 %v12391_v39, %v9051_v61  ;;  %vm9055_vm7 = vmor %vm9053_vm5, %vm9054_vm4  ;;  %v8352_v42 = vpop.f32.mrf.mxu2 }
 0x848   : > { %v9060_v7 = vor.u32 1.1754944e-38, %v9059_v29  ;;  %v9494_v57 = vsub.f32 0.0, %v15666_v32  ;;  %v15740_v5 = vand.u32 2147483647, %v15731_v2  ;;  %vm9058_vm8 = vcmp.eq.f32.partialorder %v9057_v38, 8.507059e+37 }
 0x849   : > { %9779 = vst [vmem:[%s15015_s16 + $0xa0] sm:$0xff] %v9747_v18  ;;  %v9620_v9 = vmul.f32 %v12393_v31, %v9460_v20  ;;  %v9333_v56 = vmul.f32 %v9301_v13, %v15713_v54  ;;  %v9056_v17 = vsel %vm9055_vm7, %v12391_v39, %v9052_v6  ;;  %12396 = vpow2.f32 %v9579_v12 }
 0x84a   : > { %v12395_v14 = vpop.eup %12394  ;;  %v15744_v62 = vsel %vm9058_vm8, %v9060_v7, %v9056_v17  ;;  %v8664_v22 = vmul.f32 0.3275911, %v15740_v5  ;;  %v15748_v30 = vadd.f32 %v14995_v26, %v8435_v51  ;;  %v9526_v59 = vmul.f32 %v9494_v57, %v15666_v32  ;;  %v8257_v57 = vpop.f32.mrf.mxu0 }
 0x84b   : > { %v9652_v8 = vsub.f32 1.0, %v9620_v9  ;;  %v9365_v36 = vadd.f32 -0.28449672, %v9333_v56  ;;  %v9206_v53 = vmul.f32 1.0614054, %v15744_v62  ;;  %v9064_v41 = vmul.f32 %v12395_v14, %v15719_v45 }
 0x84c   : > { %v9072_v39 = vand.u32 2147483647, %v15719_v45  ;;  %v15754_v28 = vadd.f32 1.0, %v8664_v22  ;;  %v8402_v35 = vadd.f32 %v8401_v19, %v8352_v42  ;;  %vm9069_vm9 = vweird.f32 %v12395_v14 }
 0x84d   : > { %v9684_v16 = vmul.f32 %v9652_v8, %v15698_v33  ;;  %v9397_v10 = vmul.f32 %v9365_v36, %v15713_v54  ;;  %v9238_v15 = vadd.f32 -1.4531521, %v9206_v53  ;;  %v9065_v27 = vsub.f32 1.0, %v9064_v41  ;;  %v8306_v53 = vpop.f32.mrf.mxu1 }
 0x84e   : > { %v9074_v48 = vand.u32 2147483648, %v15719_v45  ;;  %12398 = vrcp.f32 %v15754_v28  ;;  %v15761_v37 = vmul.f32 0.70710677, %v15748_v30  ;;  %v8597_v33 = vsel %vm8565_vm6, 1.0, %v16029_v11 }
 0x84f   : > { %v9716_v32 = vadd.f32 1.0, %v9684_v16  ;;  %v9429_v47 = vadd.f32 0.2548296, %v9397_v10  ;;  %v9270_v43 = vmul.f32 %v9238_v15, %v15744_v62  ;;  %v9066_v60 = vmul.f32 %v12395_v14, %v9065_v27  ;;  %v12397_v40 = vpop.eup %12396 }
 0x850   : > { %v15768_v38 = vmul.f32 0.5, %v15638_v4  ;;  %v9581_v29 = vmul.f32 1.442695, %v9526_v59  ;;  %vm9068_vm10 = vweird.f32 %v15719_v45  ;;  %v9075_v31 = vor.u32 1.1754944e-38, %v9074_v48 }
 0x851   : > { %v9748_v46 = vmul.f32 %v9716_v32, %v15693_v63  ;;  %v9461_v55 = vmul.f32 %v9429_v47, %v15713_v54  ;;  %v9302_v24 = vadd.f32 1.4214138, %v9270_v43  ;;  %v9067_v61 = vadd.f32 %v12395_v14, %v9066_v60  ;;  %vm9070_vm11 = vmor %vm9068_vm10, %vm9069_vm9 }
 0x852   : > { %v9495_v12 = vsub.f32 0.0, %v15706_v50  ;;  %v15776_v49 = vand.u32 2147483647, %v15761_v37  ;;  %v8436_v4 = vadd.f32 %v8402_v35, %v14981_v1  ;;  %vm9073_vm12 = vcmp.eq.f32.partialorder %v9072_v39, 8.507059e+37 }
 0x853   : > { %9780 = vst [vmem:[%s15015_s16 + $0xa8] sm:$0xff] %v9748_v46  ;;  %v9621_v51 = vmul.f32 %v12397_v40, %v9461_v55  ;;  %v9334_v45 = vmul.f32 %v9302_v24, %v15744_v62  ;;  %v9071_v18 = vsel %vm9070_vm11, %v12395_v14, %v9067_v61  ;;  %vm8566_vm13 = vcmp.ge.f32.partialorder %v15650_v23, 0.0 }
 0x854   : > { %v12399_v63 = vpop.eup %12398  ;;  %12400 = vpow2.f32 %v9581_v29  ;;  %v15782_v54 = vsel %vm9073_vm12, %v9075_v31, %v9071_v18  ;;  %v8665_v20 = vmul.f32 0.3275911, %v15776_v49  ;;  %v9527_v9 = vmul.f32 %v9495_v12, %v15706_v50 }
 0x855   : > { %v9653_v13 = vsub.f32 1.0, %v9621_v51  ;;  %v9366_v6 = vadd.f32 -0.28449672, %v9334_v45  ;;  %v9207_v7 = vmul.f32 1.0614054, %v15782_v54  ;;  %v9079_v1 = vmul.f32 %v12399_v63, %v15754_v28 }
 0x856   : > { %v9087_v56 = vand.u32 2147483647, %v15754_v28  ;;  %v15789_v17 = vadd.f32 1.0, %v8665_v20  ;;  %v15792_v42 = vadd.f32 %v14999_v52, %v8436_v4  ;;  %vm9084_vm14 = vweird.f32 %v12399_v63 }
 0x857   : > { %v9685_v14 = vmul.f32 %v9653_v13, %v8597_v33  ;;  %v9398_v22 = vmul.f32 %v9366_v6, %v15744_v62  ;;  %v9239_v8 = vadd.f32 -1.4531521, %v9207_v7  ;;  %v9080_v36 = vsub.f32 1.0, %v9079_v1 }
 0x858   : > { %v9089_v41 = vand.u32 2147483648, %v15754_v28  ;;  %12402 = vrcp.f32 %v15789_v17  ;;  %v8307_v19 = vadd.f32 %v8306_v53, %v8257_v57  ;;  %v8598_v10 = vsel %vm8566_vm13, 1.0, %v16029_v11 }
 0x859   : > { %v9717_v50 = vadd.f32 1.0, %v9685_v14  ;;  %v9430_v59 = vadd.f32 0.2548296, %v9398_v22  ;;  %v9271_v39 = vmul.f32 %v9239_v8, %v15782_v54  ;;  %v9081_v35 = vmul.f32 %v12399_v63, %v9080_v36 }
 0x85a   : > { %v12401_v16 = vpop.eup %12400  ;;  %v9583_v15 = vmul.f32 1.442695, %v9527_v9  ;;  %vm9083_vm15 = vweird.f32 %v15754_v28  ;;  %v15803_v27 = vmul.f32 0.70710677, %v15792_v42  ;;  %v9090_v60 = vor.u32 1.1754944e-38, %v9089_v41  ;;  %v8355_v9 = vpop.f32.mrf.mxu2 }
 0x85b   : > { %v9749_v48 = vmul.f32 %v9717_v50, %v15711_v21  ;;  %v9462_v32 = vmul.f32 %v9430_v59, %v15744_v62  ;;  %v9303_v47 = vadd.f32 1.4214138, %v9271_v39  ;;  %v9082_v43 = vadd.f32 %v12399_v63, %v9081_v35  ;;  %vm9085_vm0 = vmor %vm9083_vm15, %vm9084_vm14 }
 0x85c   : > { %v9496_v40 = vsub.f32 0.0, %v15740_v5  ;;  %v15810_v23 = vand.u32 2147483647, %v15803_v27  ;;  %v8437_v33 = vadd.f32 %v8307_v19, %v14984_v0  ;;  %vm9088_vm1 = vcmp.eq.f32.partialorder %v9087_v56, 8.507059e+37  ;;  %v8404_v19 = vpop.f32.mrf.mxu3 }
 0x85d   : > { %9781 = vst [vmem:[%s15015_s16 + $0xb0] sm:$0xff] %v9749_v48  ;;  %v9622_v28 = vmul.f32 %v12401_v16, %v9462_v32  ;;  %v9335_v29 = vmul.f32 %v9303_v47, %v15782_v54  ;;  %v9086_v46 = vsel %vm9085_vm0, %v12399_v63, %v9082_v43  ;;  %v15816_v62 = vmul.f32 0.5, %v15673_v34 }
 0x85e   : > { %v12403_v21 = vpop.eup %12402  ;;  %vm8567_vm2 = vcmp.ge.f32.partialorder %v15685_v58, 0.0  ;;  %v15819_v55 = vsel %vm9088_vm1, %v9090_v60, %v9086_v46  ;;  %v8666_v24 = vmul.f32 0.3275911, %v15810_v23  ;;  %12404 = vpow2.f32 %v9583_v15 }
 0x85f   : > { %v9654_v61 = vsub.f32 1.0, %v9622_v28  ;;  %v9367_v31 = vadd.f32 -0.28449672, %v9335_v29  ;;  %v9208_v0 = vmul.f32 1.0614054, %v15819_v55  ;;  %v9094_v12 = vmul.f32 %v12403_v21, %v15789_v17 }
 0x860   : > { %v9528_v4 = vmul.f32 %v9496_v40, %v15740_v5  ;;  %v15825_v51 = vadd.f32 1.0, %v8666_v24  ;;  %v15828_v34 = vadd.f32 %v14995_v26, %v8437_v33  ;;  %vm9099_vm3 = vweird.f32 %v12403_v21 }
 0x861   : > { %v9686_v45 = vmul.f32 %v9654_v61, %v8598_v10  ;;  %v9399_v18 = vmul.f32 %v9367_v31, %v15782_v54  ;;  %v9240_v63 = vadd.f32 -1.4531521, %v9208_v0  ;;  %v9095_v20 = vsub.f32 1.0, %v9094_v12 }
 0x862   : > { %v9102_v13 = vand.u32 2147483647, %v15789_v17  ;;  %v9104_v6 = vand.u32 2147483648, %v15789_v17  ;;  %12406 = vrcp.f32 %v15825_v51  ;;  %v8599_v56 = vsel %vm8567_vm2, 1.0, %v16029_v11 }
 0x863   : > { %v9718_v7 = vadd.f32 1.0, %v9686_v45  ;;  %v9431_v1 = vadd.f32 0.2548296, %v9399_v18  ;;  %v9272_v5 = vmul.f32 %v9240_v63, %v15819_v55  ;;  %v9096_v57 = vmul.f32 %v12403_v21, %v9095_v20 }
 0x864   : > { %v9585_v14 = vmul.f32 1.442695, %v9528_v4  ;;  %vm9098_vm4 = vweird.f32 %v15789_v17  ;;  %v15840_v22 = vmul.f32 0.70710677, %v15828_v34  ;;  %v12405_v50 = vpop.eup %12404  ;;  %v9105_v59 = vor.u32 1.1754944e-38, %v9104_v6  ;;  %v8259_v4 = vpop.f32.mrf.mxu0 }
 0x865   : > { %v9750_v8 = vmul.f32 %v9718_v7, %v15768_v38  ;;  %v9463_v36 = vmul.f32 %v9431_v1, %v15782_v54  ;;  %v9304_v53 = vadd.f32 1.4214138, %v9272_v5  ;;  %v9097_v41 = vadd.f32 %v12403_v21, %v9096_v57  ;;  %vm9100_vm5 = vmor %vm9098_vm4, %vm9099_vm3  ;;  %v8308_v1 = vpop.f32.mrf.mxu1 }
 0x866   : > { %v9497_v58 = vsub.f32 0.0, %v15776_v49  ;;  %v15847_v39 = vand.u32 2147483647, %v15840_v22  ;;  %v8405_v17 = vadd.f32 %v8404_v19, %v8355_v9  ;;  %vm9103_vm6 = vcmp.eq.f32.partialorder %v9102_v13, 8.507059e+37 }
 0x867   : > { %9782 = vst [vmem:[%s15015_s16 + $0xb8] sm:$0xff] %v9750_v8  ;;  %v9623_v35 = vmul.f32 %v12405_v50, %v9463_v36  ;;  %v9336_v16 = vmul.f32 %v9304_v53, %v15819_v55  ;;  %v9101_v38 = vsel %vm9100_vm5, %v12403_v21, %v9097_v41  ;;  %vm8568_vm7 = vcmp.ge.f32.partialorder %v15731_v2, 0.0 }
 0x868   : > { %v12407_v54 = vpop.eup %12406  ;;  %v15852_v10 = vsel %vm9103_vm6, %v9105_v59, %v9101_v38  ;;  %v8667_v15 = vmul.f32 0.3275911, %v15847_v39  ;;  %v8438_v48 = vadd.f32 %v8405_v17, %v14987_v44  ;;  %12408 = vpow2.f32 %v9585_v14 }
 0x869   : > { %v9655_v32 = vsub.f32 1.0, %v9623_v35  ;;  %v9368_v47 = vadd.f32 -0.28449672, %v9336_v16  ;;  %v9209_v43 = vmul.f32 1.0614054, %v15852_v10  ;;  %v9109_v60 = vmul.f32 %v12407_v54, %v15825_v51 }
 0x86a   : > { %v9529_v40 = vmul.f32 %v9497_v58, %v15776_v49  ;;  %v9117_v33 = vand.u32 2147483647, %v15825_v51  ;;  %v15860_v28 = vadd.f32 1.0, %v8667_v15  ;;  %vm9114_vm8 = vweird.f32 %v12407_v54  ;;  %v8406_v58 = vpop.f32.mrf.mxu3 }
 0x86b   : > { %v9687_v29 = vmul.f32 %v9655_v32, %v8599_v56  ;;  %v9400_v46 = vmul.f32 %v9368_v47, %v15819_v55  ;;  %v9241_v21 = vadd.f32 -1.4531521, %v9209_v43  ;;  %v9110_v24 = vsub.f32 1.0, %v9109_v60 }
 0x86c   : > { %v9119_v44 = vand.u32 2147483648, %v15825_v51  ;;  %12410 = vrcp.f32 %v15860_v28  ;;  %v15866_v61 = vadd.f32 %v14999_v52, %v8438_v48  ;;  %v8504_v45 = vmul.f32 0.5, %v15722_v3 }
 0x86d   : > { %v9719_v31 = vadd.f32 1.0, %v9687_v29  ;;  %v9432_v0 = vadd.f32 0.2548296, %v9400_v46  ;;  %v9273_v49 = vmul.f32 %v9241_v21, %v15852_v10  ;;  %v9111_v12 = vmul.f32 %v12407_v54, %v9110_v24  ;;  %v16032_v46 = vld [vmem:[#allocation18_spill] sm:$0xff] }
 0x86e   : > { %v8600_v18 = vsel %vm8568_vm7, 1.0, %v16029_v11  ;;  %v9587_v63 = vmul.f32 1.442695, %v9529_v40  ;;  %vm9113_vm9 = vweird.f32 %v15825_v51  ;;  %v12409_v5 = vpop.eup %12408  ;;  %v9120_v57 = vor.u32 1.1754944e-38, %v9119_v44 }
 0x86f   : > { %v9751_v20 = vmul.f32 %v9719_v31, %v15816_v62  ;;  %v9464_v13 = vmul.f32 %v9432_v0, %v15819_v55  ;;  %v9305_v6 = vadd.f32 1.4214138, %v9273_v49  ;;  %v9112_v7 = vadd.f32 %v12407_v54, %v9111_v12  ;;  %vm9115_vm10 = vmor %vm9113_vm9, %vm9114_vm8  ;;  %v8357_v55 = vpop.f32.mrf.mxu2 }
 0x870   : > { %v9498_v3 = vsub.f32 0.0, %v15810_v23  ;;  %v15879_v9 = vmul.f32 0.70710677, %v15866_v61  ;;  %v8309_v2 = vadd.f32 %v8308_v1, %v8259_v4  ;;  %vm9118_vm11 = vcmp.eq.f32.partialorder %v9117_v33, 8.507059e+37 }
 0x871   : > { %9783 = vst [vmem:[%s15015_s16 + $0xc0] sm:$0xff] %v9751_v20  ;;  %v9624_v56 = vmul.f32 %v12409_v5, %v9464_v13  ;;  %v9337_v51 = vmul.f32 %v9305_v6, %v15852_v10  ;;  %v9116_v62 = vsel %vm9115_vm10, %v12407_v54, %v9112_v7  ;;  %12412 = vpow2.f32 %v9587_v63 }
 0x872   : > { %v12411_v14 = vpop.eup %12410  ;;  %v15883_v8 = vsel %vm9118_vm11, %v9120_v57, %v9116_v62  ;;  %v15886_v36 = vand.u32 2147483647, %v15879_v9  ;;  %v8439_v53 = vadd.f32 %v8309_v2, %v14990_v25  ;;  %v9530_v17 = vmul.f32 %v9498_v3, %v15810_v23 }
 0x873   : > { %v9656_v41 = vsub.f32 1.0, %v9624_v56  ;;  %v9369_v19 = vadd.f32 -0.28449672, %v9337_v51  ;;  %v9210_v50 = vmul.f32 1.0614054, %v15883_v8  ;;  %v9124_v59 = vmul.f32 %v12411_v14, %v15860_v28 }
 0x874   : > { %v9132_v35 = vand.u32 2147483647, %v15860_v28  ;;  %v8668_v16 = vmul.f32 0.3275911, %v15886_v36  ;;  %v8407_v38 = vadd.f32 %v8406_v58, %v8357_v55  ;;  %vm9129_vm12 = vweird.f32 %v12411_v14 }
 0x875   : > { %v9688_v54 = vmul.f32 %v9656_v41, %v8600_v18  ;;  %v9401_v15 = vmul.f32 %v9369_v19, %v15852_v10  ;;  %v9242_v48 = vadd.f32 -1.4531521, %v9210_v50  ;;  %v9125_v32 = vsub.f32 1.0, %v9124_v59 }
 0x876   : > { %v9134_v25 = vand.u32 2147483648, %v15860_v28  ;;  %v15896_v47 = vadd.f32 1.0, %v8668_v16  ;;  %v15899_v43 = vadd.f32 %v14995_v26, %v8439_v53  ;;  %vm9128_vm13 = vweird.f32 %v15860_v28 }
 0x877   : > { %v9720_v60 = vadd.f32 1.0, %v9688_v54  ;;  %v9433_v23 = vadd.f32 0.2548296, %v9401_v15  ;;  %v9274_v40 = vmul.f32 %v9242_v48, %v15883_v8  ;;  %v9126_v33 = vmul.f32 %v12411_v14, %v9125_v32  ;;  %v12413_v29 = vpop.eup %12412  ;;  %vm9130_vm15 = vmor %vm9128_vm13, %vm9129_vm12 }
 0x878   : > { %12414 = vrcp.f32 %v15896_v47  ;;  %v8440_v21 = vadd.f32 %v8407_v38, %v16032_v46  ;;  %vm8569_vm14 = vcmp.ge.f32.partialorder %v15761_v37, 0.0  ;;  %v9589_v26 = vmul.f32 1.442695, %v9530_v17 }
 0x879   : > { %v9752_v24 = vmul.f32 %v9720_v60, %v8504_v45  ;;  %v9465_v44 = vmul.f32 %v9433_v23, %v15852_v10  ;;  %v9306_v31 = vadd.f32 1.4214138, %v9274_v40  ;;  %v9127_v0 = vadd.f32 %v12411_v14, %v9126_v33 }
 0x87a   : > { %vm9133_vm0 = vcmp.eq.f32.partialorder %v9132_v35, 8.507059e+37  ;;  %v9135_v49 = vor.u32 1.1754944e-38, %v9134_v25  ;;  %v15911_v18 = vmul.f32 0.70710677, %v15899_v43  ;;  %v9499_v10 = vsub.f32 0.0, %v15847_v39 }
 0x87b   : > { %9784 = vst [vmem:[%s15015_s16 + $0xc8] sm:$0xff] %v9752_v24  ;;  %v9625_v12 = vmul.f32 %v12413_v29, %v9465_v44  ;;  %v9338_v28 = vmul.f32 %v9306_v31, %v15883_v8  ;;  %v9131_v4 = vsel %vm9130_vm15, %v12411_v14, %v9127_v0  ;;  %v15917_v63 = vadd.f32 %v14999_v52, %v8440_v21 }
 0x87c   : > { %v15913_v45 = vsel %vm9133_vm0, %v9135_v49, %v9131_v4  ;;  %v8601_v1 = vsel %vm8569_vm14, 1.0, %v16029_v11  ;;  %12416 = vpow2.f32 %v9589_v26  ;;  %v15924_v5 = vand.u32 2147483647, %v15911_v18 }
 0x87d   : > { %v9657_v20 = vsub.f32 1.0, %v9625_v12  ;;  %v9370_v13 = vadd.f32 -0.28449672, %v9338_v28  ;;  %v9211_v6 = vmul.f32 1.0614054, %v15913_v45  ;;  %v8505_v51 = vmul.f32 0.5, %v15748_v30 }
 0x87e   : > { %v12415_v7 = vpop.eup %12414  ;;  %v15927_v57 = vmul.f32 0.70710677, %v15917_v63  ;;  %v9531_v62 = vmul.f32 %v9499_v10, %v15847_v39  ;;  %v9147_v37 = vand.u32 2147483647, %v15896_v47  ;;  %v8669_v55 = vmul.f32 0.3275911, %v15924_v5 }
 0x87f   : > { %v9689_v3 = vmul.f32 %v9657_v20, %v8601_v1  ;;  %v9402_v52 = vmul.f32 %v9370_v13, %v15883_v8  ;;  %v9243_v2 = vadd.f32 -1.4531521, %v9211_v6  ;;  %v9139_v56 = vmul.f32 %v12415_v7, %v15896_v47 }
 0x880   : > { %vm9144_vm1 = vweird.f32 %v12415_v7  ;;  %v9149_v50 = vand.u32 2147483648, %v15896_v47  ;;  %v15937_v59 = vadd.f32 1.0, %v8669_v55  ;;  %v15940_v58 = vand.u32 2147483647, %v15927_v57 }
 0x881   : > { %v9721_v14 = vadd.f32 1.0, %v9689_v3  ;;  %v9434_v53 = vadd.f32 0.2548296, %v9402_v52  ;;  %v9275_v41 = vmul.f32 %v9243_v2, %v15913_v45  ;;  %v9140_v19 = vsub.f32 1.0, %v9139_v56 }
 0x882   : > { %v12417_v16 = vpop.eup %12416  ;;  %vm8570_vm2 = vcmp.ge.f32.partialorder %v15803_v27, 0.0  ;;  %v9591_v38 = vmul.f32 1.442695, %v9531_v62  ;;  %12418 = vrcp.f32 %v15937_v59  ;;  %vm9143_vm3 = vweird.f32 %v15896_v47 }
 0x883   : > { %v9753_v30 = vmul.f32 %v9721_v14, %v8505_v51  ;;  %v9466_v39 = vmul.f32 %v9434_v53, %v15883_v8  ;;  %v9307_v17 = vadd.f32 1.4214138, %v9275_v41  ;;  %v9141_v35 = vmul.f32 %v12415_v7, %v9140_v19  ;;  %vm9145_vm4 = vmor %vm9143_vm3, %vm9144_vm1 }
 0x884   : > { %v9150_v32 = vor.u32 1.1754944e-38, %v9149_v50  ;;  %v9500_v8 = vsub.f32 0.0, %v15886_v36  ;;  %v8670_v25 = vmul.f32 0.3275911, %v15940_v58  ;;  %vm9148_vm5 = vcmp.eq.f32.partialorder %v9147_v37, 8.507059e+37 }
 0x885   : > { %9785 = vst [vmem:[%s15015_s16 + $0xd0] sm:$0xff] %v9753_v30  ;;  %v9626_v54 = vmul.f32 %v12417_v16, %v9466_v39  ;;  %v9339_v15 = vmul.f32 %v9307_v17, %v15913_v45  ;;  %v9142_v48 = vadd.f32 %v12415_v7, %v9141_v35  ;;  %v8602_v33 = vsel %vm8570_vm2, 1.0, %v16029_v11 }
 0x886   : > { %12420 = vpow2.f32 %v9591_v38  ;;  %v15954_v46 = vadd.f32 1.0, %v8670_v25  ;;  %v8506_v31 = vmul.f32 0.5, %v15792_v42  ;;  %v9532_v0 = vmul.f32 %v9500_v8, %v15886_v36 }
 0x887   : > { %v9658_v60 = vsub.f32 1.0, %v9626_v54  ;;  %v9371_v23 = vadd.f32 -0.28449672, %v9339_v15  ;;  %v9146_v40 = vsel %vm9145_vm4, %v12415_v7, %v9142_v48  ;;  %vm8571_vm6 = vcmp.ge.f32.partialorder %v15840_v22, 0.0 }
 0x888   : > { %v9151_v29 = vsel %vm9148_vm5, %v9150_v32, %v9146_v40  ;;  %v12419_v44 = vpop.eup %12418  ;;  %12422 = vrcp.f32 %v15954_v46  ;;  %v9593_v6 = vmul.f32 1.442695, %v9532_v0  ;;  %v9162_v42 = vand.u32 2147483647, %v15937_v59 }
 0x889   : > { %v9690_v47 = vmul.f32 %v9658_v60, %v8602_v33  ;;  %v9403_v21 = vmul.f32 %v9371_v23, %v15913_v45  ;;  %v9212_v24 = vmul.f32 1.0614054, %v9151_v29  ;;  %v9154_v12 = vmul.f32 %v12419_v44, %v15937_v59 }
 0x88a   : > { %v9164_v36 = vand.u32 2147483648, %v15937_v59  ;;  %vm9159_vm7 = vweird.f32 %v12419_v44  ;;  %v8507_v2 = vmul.f32 0.5, %v15828_v34  ;;  %vm9158_vm8 = vweird.f32 %v15937_v59 }
 0x88b   : > { %v9722_v26 = vadd.f32 1.0, %v9690_v47  ;;  %v9435_v49 = vadd.f32 0.2548296, %v9403_v21  ;;  %v9244_v27 = vadd.f32 -1.4531521, %v9212_v24  ;;  %v9155_v20 = vsub.f32 1.0, %v9154_v12  ;;  %vm9160_vm9 = vmor %vm9158_vm8, %vm9159_vm7 }
 0x88c   : > { %v12421_v13 = vpop.eup %12420  ;;  %12424 = vpow2.f32 %v9593_v6  ;;  %vm9163_vm10 = vcmp.eq.f32.partialorder %v9162_v42, 8.507059e+37  ;;  %v9165_v55 = vor.u32 1.1754944e-38, %v9164_v36  ;;  %v9501_v14 = vsub.f32 0.0, %v15924_v5 }
 0x88d   : > { %v9754_v28 = vmul.f32 %v9722_v26, %v8506_v31  ;;  %v9467_v4 = vmul.f32 %v9435_v49, %v15913_v45  ;;  %v9276_v10 = vmul.f32 %v9244_v27, %v9151_v29  ;;  %v9156_v3 = vmul.f32 %v12419_v44, %v9155_v20 }
 0x88e   : > { %v12423_v52 = vpop.eup %12422  ;;  %v8603_v45 = vsel %vm8571_vm6, 1.0, %v16029_v11  ;;  %v9177_v22 = vand.u32 2147483647, %v15954_v46  ;;  %v9179_v59 = vand.u32 2147483648, %v15954_v46  ;;  %vm9173_vm12 = vweird.f32 %v15954_v46 }
 0x88f   : > { %9786 = vst [vmem:[%s15015_s16 + $0xd8] sm:$0xff] %v9754_v28  ;;  %v9627_v7 = vmul.f32 %v12421_v13, %v9467_v4  ;;  %v9308_v1 = vadd.f32 1.4214138, %v9276_v10  ;;  %v9157_v62 = vadd.f32 %v12419_v44, %v9156_v3  ;;  %v9169_v37 = vmul.f32 %v12423_v52, %v15954_v46 }
 0x890   : > { %vm9174_vm11 = vweird.f32 %v12423_v52  ;;  %v9533_v32 = vmul.f32 %v9501_v14, %v15924_v5  ;;  %v9180_v8 = vor.u32 1.1754944e-38, %v9179_v59  ;;  %vm9178_vm14 = vcmp.eq.f32.partialorder %v9177_v22, 8.507059e+37 }
 0x891   : > { %v9659_v56 = vsub.f32 1.0, %v9627_v7  ;;  %v9340_v51 = vmul.f32 %v9308_v1, %v9151_v29  ;;  %v9161_v34 = vsel %vm9160_vm9, %v12419_v44, %v9157_v62  ;;  %v9170_v19 = vsub.f32 1.0, %v9169_v37  ;;  %vm9175_vm13 = vmor %vm9173_vm12, %vm9174_vm11 }
 0x892   : > { %v9166_v50 = vsel %vm9163_vm10, %v9165_v55, %v9161_v34  ;;  %v12425_v48 = vpop.eup %12424  ;;  %v9502_v33 = vsub.f32 0.0, %v15940_v58  ;;  %vm8572_vm15 = vcmp.ge.f32.partialorder %v15879_v9, 0.0  ;;  %v9595_v24 = vmul.f32 1.442695, %v9533_v32 }
 0x893   : > { %v9691_v53 = vmul.f32 %v9659_v56, %v8603_v45  ;;  %v9372_v41 = vadd.f32 -0.28449672, %v9340_v51  ;;  %v9213_v17 = vmul.f32 1.0614054, %v9166_v50  ;;  %v9171_v35 = vmul.f32 %v12423_v52, %v9170_v19 }
 0x894   : > { %v8604_v0 = vsel %vm8572_vm15, 1.0, %v16029_v11  ;;  %12426 = vpow2.f32 %v9595_v24  ;;  %v8508_v12 = vmul.f32 0.5, %v15866_v61  ;;  %vm8573_vm0 = vcmp.ge.f32.partialorder %v15911_v18, 0.0 }
 0x895   : > { %v9723_v30 = vadd.f32 1.0, %v9691_v53  ;;  %v9404_v39 = vmul.f32 %v9372_v41, %v9151_v29  ;;  %v9245_v54 = vadd.f32 -1.4531521, %v9213_v17  ;;  %v9172_v15 = vadd.f32 %v12423_v52, %v9171_v35 }
 0x896   : > { %v8605_v61 = vsel %vm8573_vm0, 1.0, %v16029_v11  ;;  %v8509_v51 = vmul.f32 0.5, %v15899_v43  ;;  %vm8574_vm1 = vcmp.ge.f32.partialorder %v15927_v57, 0.0  ;;  %v8510_v41 = vmul.f32 0.5, %v15917_v63 }
 0x897   : > { %v9755_v16 = vmul.f32 %v9723_v30, %v8507_v2  ;;  %v9436_v38 = vadd.f32 0.2548296, %v9404_v39  ;;  %v9277_v60 = vmul.f32 %v9245_v54, %v9166_v50  ;;  %v9176_v23 = vsel %vm9175_vm13, %v12423_v52, %v9172_v15 }
 0x898   : > { %v9181_v40 = vsel %vm9178_vm14, %v9180_v8, %v9176_v23  ;;  %v8606_v18 = vsel %vm8574_vm1, 1.0, %v16029_v11 }
 0x899   : > { %9787 = vst [vmem:[%s15015_s16 + $0xe0] sm:$0xff] %v9755_v16  ;;  %v9468_v25 = vmul.f32 %v9436_v38, %v9151_v29  ;;  %v9309_v47 = vadd.f32 1.4214138, %v9277_v60  ;;  %v9214_v21 = vmul.f32 1.0614054, %v9181_v40  ;;  %v9534_v29 = vmul.f32 %v9502_v33, %v15940_v58 }
 0x89a   : > { %v12427_v7 = vpop.eup %12426 }
 0x89b   : > { %v9628_v46 = vmul.f32 %v12425_v48, %v9468_v25  ;;  %v9341_v31 = vmul.f32 %v9309_v47, %v9166_v50  ;;  %v9246_v5 = vadd.f32 -1.4531521, %v9214_v21  ;;  %v9597_v10 = vmul.f32 1.442695, %v9534_v29 }
 0x89d   : > { %v9660_v44 = vsub.f32 1.0, %v9628_v46  ;;  %v9373_v49 = vadd.f32 -0.28449672, %v9341_v31  ;;  %v9278_v27 = vmul.f32 %v9246_v5, %v9181_v40  ;;  %12428 = vpow2.f32 %v9597_v10 }
 0x89f   : > { %v9692_v26 = vmul.f32 %v9660_v44, %v8604_v0  ;;  %v9405_v9 = vmul.f32 %v9373_v49, %v9166_v50  ;;  %v9310_v4 = vadd.f32 1.4214138, %v9278_v27 }
 0x8a1   : > { %v9724_v28 = vadd.f32 1.0, %v9692_v26  ;;  %v9437_v13 = vadd.f32 0.2548296, %v9405_v9  ;;  %v9342_v6 = vmul.f32 %v9310_v4, %v9181_v40 }
 0x8a3   : > { %v9756_v20 = vmul.f32 %v9724_v28, %v8508_v12  ;;  %v9469_v42 = vmul.f32 %v9437_v13, %v9166_v50  ;;  %v9374_v36 = vadd.f32 -0.28449672, %v9342_v6  ;;  %v12429_v56 = vpop.eup %12428 }
 0x8a5   : > { %9788 = vst [vmem:[%s15015_s16 + $0xe8] sm:$0xff] %v9756_v20  ;;  %v9629_v58 = vmul.f32 %v12427_v7, %v9469_v42  ;;  %v9406_v1 = vmul.f32 %v9374_v36, %v9181_v40 }
 0x8a7   : > { %v9661_v3 = vsub.f32 1.0, %v9629_v58  ;;  %v9438_v52 = vadd.f32 0.2548296, %v9406_v1 }
 0x8a9   : > { %v9693_v2 = vmul.f32 %v9661_v3, %v8605_v61  ;;  %v9470_v45 = vmul.f32 %v9438_v52, %v9181_v40 }
 0x8ab   : > { %v9725_v62 = vadd.f32 1.0, %v9693_v2  ;;  %v9630_v37 = vmul.f32 %v12429_v56, %v9470_v45 }
 0x8ad   : > { %v9757_v55 = vmul.f32 %v9725_v62, %v8509_v51  ;;  %v9662_v14 = vsub.f32 1.0, %v9630_v37 }
 0x8af   : > { %9789 = vst [vmem:[%s15015_s16 + $0xf0] sm:$0xff] %v9757_v55  ;;  %v9694_v53 = vmul.f32 %v9662_v14, %v8606_v18 }
 0x8b1   : > { %v9726_v34 = vadd.f32 1.0, %v9694_v53 }
 0x8b3   : > { %v9758_v19 = vmul.f32 %v9726_v34, %v8510_v41 }
 0x8b5   : > { %9790 = vst [vmem:[%s15015_s16 + $0xf8] sm:$0xff] %v9758_v19 }
 0x8b6 PF: > { %p21_p3 = scmp.ge.s32.totalorder %s12817_s17, 4   ;;  %s16033_s27 = smov %s12678_s28 }
 0x8b7   : > { %s16034_s28 = smov %s12682_s29  ;;  %s16035_s29 = smov %s12828_s11 }
 0x8b8   : > { %s16036_s30 = smov %s12817_s17  ;;  %23 = sbr.rel (!%p21_p3) target bundleno = 6 (0x6), region = 182 }
 0x8bd   :  { %9812 = vsyncpa [#allocation4], 1 }
 0x8be   :  { %9814 = vsyncpa [#allocation4 + $0x1], 1 }
 0x8bf   :  { %9815 = vsyncpa [#allocation6], 1 }
 0x8c0   :  { %9816 = vsyncpa [#allocation9], 1 }
 0x8c1   :  { %9817 = vsyncpa [#allocation12], 1 }

</bundles_post_ra>
